<compile_context>
chip_gen: v6e
topology: v6e:2x2x1
jax: 0.10.0
libtpu: 0.0.40
codegen_flags: <defaults>
</compile_context>

<pallas_src>
import functools

import jax
import jax.numpy as jnp
from jax.experimental import pallas as pl
from jax.experimental.pallas import tpu as pltpu

_LANE = 128
_SUB = 8


def _round_up(x, m):
    return ((x + m - 1) // m) * m


def _choose_tb(batch, seq, e_pad):
    """Batch rows per grid step.  Bigger TB amortizes the ~0.35us step overhead,
    widens the output store and raises DMA concurrency, but is capped so
    (a) the per-position (TB, E_pad) slab stays a few vregs (no spills in the
    accumulation) and (b) the fully-unrolled DMA issue loop stays bounded."""
    tb = 32
    while tb > _SUB and tb * e_pad > 8 * 1024:   # slab <= 8 vregs of f32
        tb //= 2
    while tb > _SUB and tb * seq > 1024:         # bound unrolled DMA-issue count
        tb //= 2
    tb = min(tb, _round_up(max(batch, 1), _SUB))  # don't over-pad tiny batches
    return max(tb, _SUB)


def _cbow_kernel(ids_ref, lens_ref, emb_hbm, out_ref, rows, sems):
    """One grid step: masked-mean embeddings for a block of TB batch rows.

    ids_ref : (B_pad * S,) int32 in SMEM (scalar prefetch, flattened)
    lens_ref: (TB, 1)      int32 VMEM block
    emb_hbm : (V, E_pad)   embedding table left in HBM (pl.ANY)
    out_ref : (TB, E_pad)  f32 VMEM block
    rows    : (2, S, TB, E_pad) VMEM scratch (double-buffered gathered rows)
    sems    : (2,) DMA semaphores, one per buffer slot
    """
    _, seq, tb, _ = rows.shape
    blk = pl.program_id(0)
    nblk = pl.num_programs(0)
    slot = blk % 2

    def issue_block(block_idx, buf_slot):
        # Fully unrolled: tb*seq small row DMAs, all signalling sems[buf_slot].
        base = block_idx * (tb * seq)
        for t in range(tb):
            row_base = base + t * seq
            for s in range(seq):
                tok = ids_ref[row_base + s]
                pltpu.make_async_copy(
                    emb_hbm.at[tok], rows.at[buf_slot, s, t], sems.at[buf_slot]
                ).start()
        # TODO(synk): skip gathers for padded batch rows / positions >= len
        # (needs matching per-row waits so the semaphore byte count stays exact).

    @pl.when(blk == 0)
    def _prime():
        issue_block(0, 0)

    @pl.when(blk + 1 < nblk)
    def _prefetch_next():
        issue_block(blk + 1, (blk + 1) % 2)

    # One wait drains the whole block: every row copy signalled sems[slot], and
    # this block-sized descriptor's byte count equals their sum.  The source is
    # shape-only (a wait never moves data); using the other scratch slot keeps
    # its shape/dtype identical to the destination by construction.
    pltpu.make_async_copy(rows.at[1 - slot], rows.at[slot], sems.at[slot]).wait()

    # Masked-mean weights; lengths are clamped to >= 1 so a len==0 row yields
    # zeros instead of the NaN the unguarded reference division would produce.
    lens = lens_ref[...]                                   # (TB, 1) int32
    inv_len = 1.0 / jnp.maximum(lens.astype(jnp.float32), 1.0)

    # Unrolled accumulation over the sequence: each step is one dense
    # (TB, E_pad) multiply-add, so vreg pressure is independent of S.
    acc = jnp.zeros(out_ref.shape, jnp.float32)
    for s in range(seq):
        w_s = jnp.where(s < lens, inv_len, 0.0)            # (TB, 1)
        acc = acc + w_s * rows[slot, s].astype(jnp.float32)
    out_ref[...] = acc.astype(out_ref.dtype)


def _encode_with_padded_table(x, x_lens, emb_padded, emb_dim):
    """x: (B, S) int ids; x_lens: (B,); emb_padded: (V, E_pad), E_pad % 128 == 0."""
    B, S = x.shape
    _, e_pad = emb_padded.shape
    assert e_pad % _LANE == 0

    tb = _choose_tb(B, S, e_pad)
    b_pad = _round_up(B, tb)

    ids = x.astype(jnp.int32)
    lens = x_lens.reshape(B, 1).astype(jnp.int32)
    if b_pad != B:
        ids = jnp.pad(ids, ((0, b_pad - B), (0, 0)))                       # padded rows gather token 0
        lens = jnp.pad(lens, ((0, b_pad - B), (0, 0)), constant_values=1)  # keep weights finite
    ids_flat = ids.reshape(b_pad * S)  # 1-D SMEM prefetch (2-D would pad last dim to 128 words)

    itemsize = emb_padded.dtype.itemsize
    rows_bytes = 2 * S * tb * e_pad * itemsize     # double-buffered gather scratch
    out_bytes = 2 * tb * e_pad * 4                 # pipelined output blocks
    vmem_limit = int(min(max(2 * (rows_bytes + out_bytes) + (4 << 20), 16 << 20), 40 << 20))

    out = pl.pallas_call(
        _cbow_kernel,
        out_shape=jax.ShapeDtypeStruct((b_pad, e_pad), jnp.float32),
        grid_spec=pltpu.PrefetchScalarGridSpec(
            num_scalar_prefetch=1,                               # ids -> SMEM before the grid runs
            grid=(b_pad // tb,),
            in_specs=[
                pl.BlockSpec((tb, 1), lambda b, ids: (b, 0)),    # lens (VMEM block)
                pl.BlockSpec(memory_space=pl.ANY),               # embedding table stays in HBM
            ],
            out_specs=pl.BlockSpec((tb, e_pad), lambda b, ids: (b, 0)),
            scratch_shapes=[
                pltpu.VMEM((2, S, tb, e_pad), emb_padded.dtype),  # double-buffered gathered rows
                pltpu.SemaphoreType.DMA((2,)),                    # one semaphore per buffer slot
            ],
        ),
        compiler_params=pltpu.CompilerParams(
            # Cross-step gather prefetch carries scratch/semaphore state between
            # grid steps -> the batch axis must stay sequential (no megacore split).
            dimension_semantics=("arbitrary",),
            vmem_limit_bytes=vmem_limit,
        ),
    )(ids_flat, lens, emb_padded)
    return out[:B, :emb_dim]


def cbow_encoder(x, x_lens, emb_table):
    """Functional entry point; pads the table per call if E is not lane-aligned.
    For large vocabs prefer CBOWEncoder below, which hoists the O(V*E) pad."""
    _, E = emb_table.shape
    e_pad = _round_up(E, _LANE)
    emb = emb_table if e_pad == E else jnp.pad(emb_table, ((0, 0), (0, e_pad - E)))
    return _encode_with_padded_table(x, x_lens, emb, E)


class CBOWEncoder:
    """JAX/Pallas counterpart of the PyTorch module (frozen embedding table).

    The lane-padding of the table is done ONCE at construction, not per call.
    NOTE: on v6e/v7x a natively-bf16 table halves gather bytes and scratch; the
    table is kept in its own dtype here (f32 in the tests) for bit-exactness.
    """

    def __init__(self, vectors=None, vocab_size=None, emb_dim=None, key=None):
        if vectors is None:
            if key is None:
                key = jax.random.PRNGKey(0)
            vectors = jax.random.normal(key, (vocab_size, emb_dim), dtype=jnp.float32)
        self.emb_dim = int(vectors.shape[1])
        e_pad = _round_up(self.emb_dim, _LANE)
        self.table = (vectors if e_pad == self.emb_dim
                      else jnp.pad(vectors, ((0, 0), (0, e_pad - self.emb_dim))))
        self._forward = jax.jit(
            functools.partial(_encode_with_padded_table, emb_dim=self.emb_dim))

    def __call__(self, x, x_lens):
        return self._forward(x, x_lens, self.table)


def cbow_reference(x, x_lens, emb_table):
    """Pure-JAX reference mirroring the PyTorch forward."""
    embeddings = emb_table[x]                                        # (B, S, E)
    S = x.shape[1]
    mask = (jnp.arange(S)[None, :] < x_lens[:, None]).astype(jnp.float32)
    weights = mask / x_lens[:, None].astype(jnp.float32)             # (B, S)
    return jnp.einsum("bs,bse->be", weights, embeddings)             # (B, E)


if __name__ == "__main__":
    def run_case(key, B, S, V, E, use_class=True):
        k_emb, k_ids, k_len = jax.random.split(key, 3)
        emb_table = jax.random.normal(k_emb, (V, E), dtype=jnp.float32)
        x = jax.random.randint(k_ids, (B, S), 0, V, dtype=jnp.int32)
        x_lens = jax.random.randint(k_len, (B,), 1, S + 1, dtype=jnp.int32)

        if use_class:
            enc = CBOWEncoder(vectors=emb_table)        # pad hoisted to "model build"
            out = jax.block_until_ready(enc(x, x_lens))
        else:
            out = jax.block_until_ready(jax.jit(cbow_encoder)(x, x_lens, emb_table))

        ref = cbow_reference(x, x_lens, emb_table)
        assert out.shape == (B, E), (out.shape, (B, E))
        assert jnp.allclose(out, ref, atol=1e-5, rtol=1e-5), (
            f"mismatch vs reference for B={B} S={S} V={V} E={E}: "
            f"max abs err {jnp.max(jnp.abs(out - ref))}")

    key = jax.random.PRNGKey(0)
    k1, k2, k3 = jax.random.split(key, 3)
    run_case(k1, B=2, S=8, V=50, E=32)                       # module's toy shapes
    run_case(k2, B=20, S=12, V=1000, E=160)                  # B/E padding, single grid step
    run_case(k3, B=80, S=12, V=300, E=160, use_class=False)  # multi-step grid: exercises the
                                                             # cross-step prefetch / double buffer
    print("KERNEL_OK")
</pallas_src>

<mosaic_0001>
module attributes {stable_mosaic.version = 11 : i64} {
  func.func @_cbow_kernel(%arg0: i32, %arg1: memref<64xi32, #tpu.memory_space<smem>>, %arg2: memref<8x1xi32, #tpu.memory_space<vmem>>, %arg3: memref<50x128xf32, #tpu.memory_space<any>>, %arg4: memref<8x128xf32, #tpu.memory_space<vmem>>, %arg5: memref<2x8x8x128xf32, #tpu.memory_space<vmem>>, %arg6: memref<2x!tpu.dma_semaphore, #tpu.memory_space<semaphore_mem>>) attributes {dimension_semantics = [#tpu.dimension_semantics<arbitrary>], iteration_bounds = array<i64: 1>, scalar_prefetch = 1 : i64, scratch_operands = 2 : i64, tpu.core_type = #tpu.core_type<tc>, window_params = [{transform_indices = @transform_0, window_bounds = array<i64: 8, 1>}, {}, {transform_indices = @transform_2, window_bounds = array<i64: 8, 128>}]} {
    %c2_i32 = arith.constant 2 : i32
    %c0_i32 = arith.constant 0 : i32
    %0 = arith.cmpi eq, %c2_i32, %c0_i32 : i32
    %c1_i32 = arith.constant 1 : i32
    %1 = arith.select %0, %c1_i32, %c2_i32 : i32
    %2 = arith.remsi %arg0, %1 : i32
    %c0_i32_0 = arith.constant 0 : i32
    %3 = arith.cmpi ne, %2, %c0_i32_0 : i32
    %c0_i32_1 = arith.constant 0 : i32
    %4 = arith.cmpi slt, %2, %c0_i32_1 : i32
    %c0_i32_2 = arith.constant 0 : i32
    %5 = arith.cmpi slt, %1, %c0_i32_2 : i32
    %6 = arith.xori %4, %5 : i1
    %7 = arith.andi %6, %3 : i1
    %8 = arith.addi %2, %1 : i32
    %9 = arith.select %7, %8, %2 : i32
    %c0_i32_3 = arith.constant 0 : i32
    %10 = arith.cmpi eq, %arg0, %c0_i32_3 : i32
    %11 = arith.extui %10 : i1 to i32
    %c0_i32_4 = arith.constant 0 : i32
    %12 = arith.cmpi ne, %11, %c0_i32_4 : i32
    scf.if %12 {
      %c0_48 = arith.constant 0 : index
      %112 = memref.load %arg1[%c0_48] : memref<64xi32, #tpu.memory_space<smem>>
      %c0_i32_49 = arith.constant 0 : i32
      %c0_i32_50 = arith.constant 0 : i32
      %c0_i32_51 = arith.constant 0 : i32
      %c0_i32_52 = arith.constant 0 : i32
      %c0_i32_53 = arith.constant 0 : i32
      %113 = tpu.memref_slice %arg3[%112, %c0_i32_53] : memref<50x128xf32, #tpu.memory_space<any>> -> memref<1x128xf32, #tpu.memory_space<any>>
      %114 = tpu.memref_squeeze %113 : memref<1x128xf32, #tpu.memory_space<any>> -> memref<128xf32, #tpu.memory_space<any>>
      %c0_i32_54 = arith.constant 0 : i32
      %115 = tpu.memref_slice %arg5[%c0_i32_49, %c0_i32_50, %c0_i32_51, %c0_i32_54] : memref<2x8x8x128xf32, #tpu.memory_space<vmem>> -> memref<1x1x1x128xf32, #tpu.memory_space<vmem>>
      %116 = tpu.memref_squeeze %115 : memref<1x1x1x128xf32, #tpu.memory_space<vmem>> -> memref<128xf32, #tpu.memory_space<vmem>>
      %117 = tpu.memref_slice %arg6[%c0_i32_52] : memref<2x!tpu.dma_semaphore, #tpu.memory_space<semaphore_mem>> -> memref<1x!tpu.dma_semaphore, #tpu.memory_space<semaphore_mem>>
      %118 = tpu.memref_squeeze %117 : memref<1x!tpu.dma_semaphore, #tpu.memory_space<semaphore_mem>> -> memref<!tpu.dma_semaphore, #tpu.memory_space<semaphore_mem>>
      tpu.enqueue_dma source(%114 : memref<128xf32, #tpu.memory_space<any>>) target(%116 : memref<128xf32, #tpu.memory_space<vmem>>) target_semaphore(%118 : memref<!tpu.dma_semaphore, #tpu.memory_space<semaphore_mem>>)
      %c1_55 = arith.constant 1 : index
      %119 = memref.load %arg1[%c1_55] : memref<64xi32, #tpu.memory_space<smem>>
      %c0_i32_56 = arith.constant 0 : i32
      %c1_i32_57 = arith.constant 1 : i32
      %c0_i32_58 = arith.constant 0 : i32
      %c0_i32_59 = arith.constant 0 : i32
      %c0_i32_60 = arith.constant 0 : i32
      %120 = tpu.memref_slice %arg3[%119, %c0_i32_60] : memref<50x128xf32, #tpu.memory_space<any>> -> memref<1x128xf32, #tpu.memory_space<any>>
      %121 = tpu.memref_squeeze %120 : memref<1x128xf32, #tpu.memory_space<any>> -> memref<128xf32, #tpu.memory_space<any>>
      %c0_i32_61 = arith.constant 0 : i32
      %122 = tpu.memref_slice %arg5[%c0_i32_56, %c1_i32_57, %c0_i32_58, %c0_i32_61] : memref<2x8x8x128xf32, #tpu.memory_space<vmem>> -> memref<1x1x1x128xf32, #tpu.memory_space<vmem>>
      %123 = tpu.memref_squeeze %122 : memref<1x1x1x128xf32, #tpu.memory_space<vmem>> -> memref<128xf32, #tpu.memory_space<vmem>>
      %124 = tpu.memref_slice %arg6[%c0_i32_59] : memref<2x!tpu.dma_semaphore, #tpu.memory_space<semaphore_mem>> -> memref<1x!tpu.dma_semaphore, #tpu.memory_space<semaphore_mem>>
      %125 = tpu.memref_squeeze %124 : memref<1x!tpu.dma_semaphore, #tpu.memory_space<semaphore_mem>> -> memref<!tpu.dma_semaphore, #tpu.memory_space<semaphore_mem>>
      tpu.enqueue_dma source(%121 : memref<128xf32, #tpu.memory_space<any>>) target(%123 : memref<128xf32, #tpu.memory_space<vmem>>) target_semaphore(%125 : memref<!tpu.dma_semaphore, #tpu.memory_space<semaphore_mem>>)
      %c2_62 = arith.constant 2 : index
      %126 = memref.load %arg1[%c2_62] : memref<64xi32, #tpu.memory_space<smem>>
      %c0_i32_63 = arith.constant 0 : i32
      %c2_i32_64 = arith.constant 2 : i32
      %c0_i32_65 = arith.constant 0 : i32
      %c0_i32_66 = arith.constant 0 : i32
      %c0_i32_67 = arith.constant 0 : i32
      %127 = tpu.memref_slice %arg3[%126, %c0_i32_67] : memref<50x128xf32, #tpu.memory_space<any>> -> memref<1x128xf32, #tpu.memory_space<any>>
      %128 = tpu.memref_squeeze %127 : memref<1x128xf32, #tpu.memory_space<any>> -> memref<128xf32, #tpu.memory_space<any>>
      %c0_i32_68 = arith.constant 0 : i32
      %129 = tpu.memref_slice %arg5[%c0_i32_63, %c2_i32_64, %c0_i32_65, %c0_i32_68] : memref<2x8x8x128xf32, #tpu.memory_space<vmem>> -> memref<1x1x1x128xf32, #tpu.memory_space<vmem>>
      %130 = tpu.memref_squeeze %129 : memref<1x1x1x128xf32, #tpu.memory_space<vmem>> -> memref<128xf32, #tpu.memory_space<vmem>>
      %131 = tpu.memref_slice %arg6[%c0_i32_66] : memref<2x!tpu.dma_semaphore, #tpu.memory_space<semaphore_mem>> -> memref<1x!tpu.dma_semaphore, #tpu.memory_space<semaphore_mem>>
      %132 = tpu.memref_squeeze %131 : memref<1x!tpu.dma_semaphore, #tpu.memory_space<semaphore_mem>> -> memref<!tpu.dma_semaphore, #tpu.memory_space<semaphore_mem>>
      tpu.enqueue_dma source(%128 : memref<128xf32, #tpu.memory_space<any>>) target(%130 : memref<128xf32, #tpu.memory_space<vmem>>) target_semaphore(%132 : memref<!tpu.dma_semaphore, #tpu.memory_space<semaphore_mem>>)
      %c3_69 = arith.constant 3 : index
      %133 = memref.load %arg1[%c3_69] : memref<64xi32, #tpu.memory_space<smem>>
      %c0_i32_70 = arith.constant 0 : i32
      %c3_i32_71 = arith.constant 3 : i32
      %c0_i32_72 = arith.constant 0 : i32
      %c0_i32_73 = arith.constant 0 : i32
      %c0_i32_74 = arith.constant 0 : i32
      %134 = tpu.memref_slice %arg3[%133, %c0_i32_74] : memref<50x128xf32, #tpu.memory_space<any>> -> memref<1x128xf32, #tpu.memory_space<any>>
      %135 = tpu.memref_squeeze %134 : memref<1x128xf32, #tpu.memory_space<any>> -> memref<128xf32, #tpu.memory_space<any>>
      %c0_i32_75 = arith.constant 0 : i32
      %136 = tpu.memref_slice %arg5[%c0_i32_70, %c3_i32_71, %c0_i32_72, %c0_i32_75] : memref<2x8x8x128xf32, #tpu.memory_space<vmem>> -> memref<1x1x1x128xf32, #tpu.memory_space<vmem>>
      %137 = tpu.memref_squeeze %136 : memref<1x1x1x128xf32, #tpu.memory_space<vmem>> -> memref<128xf32, #tpu.memory_space<vmem>>
      %138 = tpu.memref_slice %arg6[%c0_i32_73] : memref<2x!tpu.dma_semaphore, #tpu.memory_space<semaphore_mem>> -> memref<1x!tpu.dma_semaphore, #tpu.memory_space<semaphore_mem>>
      %139 = tpu.memref_squeeze %138 : memref<1x!tpu.dma_semaphore, #tpu.memory_space<semaphore_mem>> -> memref<!tpu.dma_semaphore, #tpu.memory_space<semaphore_mem>>
      tpu.enqueue_dma source(%135 : memref<128xf32, #tpu.memory_space<any>>) target(%137 : memref<128xf32, #tpu.memory_space<vmem>>) target_semaphore(%139 : memref<!tpu.dma_semaphore, #tpu.memory_space<semaphore_mem>>)
      %c4_76 = arith.constant 4 : index
      %140 = memref.load %arg1[%c4_76] : memref<64xi32, #tpu.memory_space<smem>>
      %c0_i32_77 = arith.constant 0 : i32
      %c4_i32_78 = arith.constant 4 : i32
      %c0_i32_79 = arith.constant 0 : i32
      %c0_i32_80 = arith.constant 0 : i32
      %c0_i32_81 = arith.constant 0 : i32
      %141 = tpu.memref_slice %arg3[%140, %c0_i32_81] : memref<50x128xf32, #tpu.memory_space<any>> -> memref<1x128xf32, #tpu.memory_space<any>>
      %142 = tpu.memref_squeeze %141 : memref<1x128xf32, #tpu.memory_space<any>> -> memref<128xf32, #tpu.memory_space<any>>
      %c0_i32_82 = arith.constant 0 : i32
      %143 = tpu.memref_slice %arg5[%c0_i32_77, %c4_i32_78, %c0_i32_79, %c0_i32_82] : memref<2x8x8x128xf32, #tpu.memory_space<vmem>> -> memref<1x1x1x128xf32, #tpu.memory_space<vmem>>
      %144 = tpu.memref_squeeze %143 : memref<1x1x1x128xf32, #tpu.memory_space<vmem>> -> memref<128xf32, #tpu.memory_space<vmem>>
      %145 = tpu.memref_slice %arg6[%c0_i32_80] : memref<2x!tpu.dma_semaphore, #tpu.memory_space<semaphore_mem>> -> memref<1x!tpu.dma_semaphore, #tpu.memory_space<semaphore_mem>>
      %146 = tpu.memref_squeeze %145 : memref<1x!tpu.dma_semaphore, #tpu.memory_space<semaphore_mem>> -> memref<!tpu.dma_semaphore, #tpu.memory_space<semaphore_mem>>
      tpu.enqueue_dma source(%142 : memref<128xf32, #tpu.memory_space<any>>) target(%144 : memref<128xf32, #tpu.memory_space<vmem>>) target_semaphore(%146 : memref<!tpu.dma_semaphore, #tpu.memory_space<semaphore_mem>>)
      %c5_83 = arith.constant 5 : index
      %147 = memref.load %arg1[%c5_83] : memref<64xi32, #tpu.memory_space<smem>>
      %c0_i32_84 = arith.constant 0 : i32
      %c5_i32_85 = arith.constant 5 : i32
      %c0_i32_86 = arith.constant 0 : i32
      %c0_i32_87 = arith.constant 0 : i32
      %c0_i32_88 = arith.constant 0 : i32
      %148 = tpu.memref_slice %arg3[%147, %c0_i32_88] : memref<50x128xf32, #tpu.memory_space<any>> -> memref<1x128xf32, #tpu.memory_space<any>>
      %149 = tpu.memref_squeeze %148 : memref<1x128xf32, #tpu.memory_space<any>> -> memref<128xf32, #tpu.memory_space<any>>
      %c0_i32_89 = arith.constant 0 : i32
      %150 = tpu.memref_slice %arg5[%c0_i32_84, %c5_i32_85, %c0_i32_86, %c0_i32_89] : memref<2x8x8x128xf32, #tpu.memory_space<vmem>> -> memref<1x1x1x128xf32, #tpu.memory_space<vmem>>
      %151 = tpu.memref_squeeze %150 : memref<1x1x1x128xf32, #tpu.memory_space<vmem>> -> memref<128xf32, #tpu.memory_space<vmem>>
      %152 = tpu.memref_slice %arg6[%c0_i32_87] : memref<2x!tpu.dma_semaphore, #tpu.memory_space<semaphore_mem>> -> memref<1x!tpu.dma_semaphore, #tpu.memory_space<semaphore_mem>>
      %153 = tpu.memref_squeeze %152 : memref<1x!tpu.dma_semaphore, #tpu.memory_space<semaphore_mem>> -> memref<!tpu.dma_semaphore, #tpu.memory_space<semaphore_mem>>
      tpu.enqueue_dma source(%149 : memref<128xf32, #tpu.memory_space<any>>) target(%151 : memref<128xf32, #tpu.memory_space<vmem>>) target_semaphore(%153 : memref<!tpu.dma_semaphore, #tpu.memory_space<semaphore_mem>>)
      %c6_90 = arith.constant 6 : index
      %154 = memref.load %arg1[%c6_90] : memref<64xi32, #tpu.memory_space<smem>>
      %c0_i32_91 = arith.constant 0 : i32
      %c6_i32_92 = arith.constant 6 : i32
      %c0_i32_93 = arith.constant 0 : i32
      %c0_i32_94 = arith.constant 0 : i32
      %c0_i32_95 = arith.constant 0 : i32
      %155 = tpu.memref_slice %arg3[%154, %c0_i32_95] : memref<50x128xf32, #tpu.memory_space<any>> -> memref<1x128xf32, #tpu.memory_space<any>>
      %156 = tpu.memref_squeeze %155 : memref<1x128xf32, #tpu.memory_space<any>> -> memref<128xf32, #tpu.memory_space<any>>
      %c0_i32_96 = arith.constant 0 : i32
      %157 = tpu.memref_slice %arg5[%c0_i32_91, %c6_i32_92, %c0_i32_93, %c0_i32_96] : memref<2x8x8x128xf32, #tpu.memory_space<vmem>> -> memref<1x1x1x128xf32, #tpu.memory_space<vmem>>
      %158 = tpu.memref_squeeze %157 : memref<1x1x1x128xf32, #tpu.memory_space<vmem>> -> memref<128xf32, #tpu.memory_space<vmem>>
      %159 = tpu.memref_slice %arg6[%c0_i32_94] : memref<2x!tpu.dma_semaphore, #tpu.memory_space<semaphore_mem>> -> memref<1x!tpu.dma_semaphore, #tpu.memory_space<semaphore_mem>>
      %160 = tpu.memref_squeeze %159 : memref<1x!tpu.dma_semaphore, #tpu.memory_space<semaphore_mem>> -> memref<!tpu.dma_semaphore, #tpu.memory_space<semaphore_mem>>
      tpu.enqueue_dma source(%156 : memref<128xf32, #tpu.memory_space<any>>) target(%158 : memref<128xf32, #tpu.memory_space<vmem>>) target_semaphore(%160 : memref<!tpu.dma_semaphore, #tpu.memory_space<semaphore_mem>>)
      %c7_97 = arith.constant 7 : index
      %161 = memref.load %arg1[%c7_97] : memref<64xi32, #tpu.memory_space<smem>>
      %c0_i32_98 = arith.constant 0 : i32
      %c7_i32_99 = arith.constant 7 : i32
      %c0_i32_100 = arith.constant 0 : i32
      %c0_i32_101 = arith.constant 0 : i32
      %c0_i32_102 = arith.constant 0 : i32
      %162 = tpu.memref_slice %arg3[%161, %c0_i32_102] : memref<50x128xf32, #tpu.memory_space<any>> -> memref<1x128xf32, #tpu.memory_space<any>>
      %163 = tpu.memref_squeeze %162 : memref<1x128xf32, #tpu.memory_space<any>> -> memref<128xf32, #tpu.memory_space<any>>
      %c0_i32_103 = arith.constant 0 : i32
      %164 = tpu.memref_slice %arg5[%c0_i32_98, %c7_i32_99, %c0_i32_100, %c0_i32_103] : memref<2x8x8x128xf32, #tpu.memory_space<vmem>> -> memref<1x1x1x128xf32, #tpu.memory_space<vmem>>
      %165 = tpu.memref_squeeze %164 : memref<1x1x1x128xf32, #tpu.memory_space<vmem>> -> memref<128xf32, #tpu.memory_space<vmem>>
      %166 = tpu.memref_slice %arg6[%c0_i32_101] : memref<2x!tpu.dma_semaphore, #tpu.memory_space<semaphore_mem>> -> memref<1x!tpu.dma_semaphore, #tpu.memory_space<semaphore_mem>>
      %167 = tpu.memref_squeeze %166 : memref<1x!tpu.dma_semaphore, #tpu.memory_space<semaphore_mem>> -> memref<!tpu.dma_semaphore, #tpu.memory_space<semaphore_mem>>
      tpu.enqueue_dma source(%163 : memref<128xf32, #tpu.memory_space<any>>) target(%165 : memref<128xf32, #tpu.memory_space<vmem>>) target_semaphore(%167 : memref<!tpu.dma_semaphore, #tpu.memory_space<semaphore_mem>>)
      %c8 = arith.constant 8 : index
      %168 = memref.load %arg1[%c8] : memref<64xi32, #tpu.memory_space<smem>>
      %c0_i32_104 = arith.constant 0 : i32
      %c0_i32_105 = arith.constant 0 : i32
      %c1_i32_106 = arith.constant 1 : i32
      %c0_i32_107 = arith.constant 0 : i32
      %c0_i32_108 = arith.constant 0 : i32
      %169 = tpu.memref_slice %arg3[%168, %c0_i32_108] : memref<50x128xf32, #tpu.memory_space<any>> -> memref<1x128xf32, #tpu.memory_space<any>>
      %170 = tpu.memref_squeeze %169 : memref<1x128xf32, #tpu.memory_space<any>> -> memref<128xf32, #tpu.memory_space<any>>
      %c0_i32_109 = arith.constant 0 : i32
      %171 = tpu.memref_slice %arg5[%c0_i32_104, %c0_i32_105, %c1_i32_106, %c0_i32_109] : memref<2x8x8x128xf32, #tpu.memory_space<vmem>> -> memref<1x1x1x128xf32, #tpu.memory_space<vmem>>
      %172 = tpu.memref_squeeze %171 : memref<1x1x1x128xf32, #tpu.memory_space<vmem>> -> memref<128xf32, #tpu.memory_space<vmem>>
      %173 = tpu.memref_slice %arg6[%c0_i32_107] : memref<2x!tpu.dma_semaphore, #tpu.memory_space<semaphore_mem>> -> memref<1x!tpu.dma_semaphore, #tpu.memory_space<semaphore_mem>>
      %174 = tpu.memref_squeeze %173 : memref<1x!tpu.dma_semaphore, #tpu.memory_space<semaphore_mem>> -> memref<!tpu.dma_semaphore, #tpu.memory_space<semaphore_mem>>
      tpu.enqueue_dma source(%170 : memref<128xf32, #tpu.memory_space<any>>) target(%172 : memref<128xf32, #tpu.memory_space<vmem>>) target_semaphore(%174 : memref<!tpu.dma_semaphore, #tpu.memory_space<semaphore_mem>>)
      %c9 = arith.constant 9 : index
      %175 = memref.load %arg1[%c9] : memref<64xi32, #tpu.memory_space<smem>>
      %c0_i32_110 = arith.constant 0 : i32
      %c1_i32_111 = arith.constant 1 : i32
      %c1_i32_112 = arith.constant 1 : i32
      %c0_i32_113 = arith.constant 0 : i32
      %c0_i32_114 = arith.constant 0 : i32
      %176 = tpu.memref_slice %arg3[%175, %c0_i32_114] : memref<50x128xf32, #tpu.memory_space<any>> -> memref<1x128xf32, #tpu.memory_space<any>>
      %177 = tpu.memref_squeeze %176 : memref<1x128xf32, #tpu.memory_space<any>> -> memref<128xf32, #tpu.memory_space<any>>
      %c0_i32_115 = arith.constant 0 : i32
      %178 = tpu.memref_slice %arg5[%c0_i32_110, %c1_i32_111, %c1_i32_112, %c0_i32_115] : memref<2x8x8x128xf32, #tpu.memory_space<vmem>> -> memref<1x1x1x128xf32, #tpu.memory_space<vmem>>
      %179 = tpu.memref_squeeze %178 : memref<1x1x1x128xf32, #tpu.memory_space<vmem>> -> memref<128xf32, #tpu.memory_space<vmem>>
      %180 = tpu.memref_slice %arg6[%c0_i32_113] : memref<2x!tpu.dma_semaphore, #tpu.memory_space<semaphore_mem>> -> memref<1x!tpu.dma_semaphore, #tpu.memory_space<semaphore_mem>>
      %181 = tpu.memref_squeeze %180 : memref<1x!tpu.dma_semaphore, #tpu.memory_space<semaphore_mem>> -> memref<!tpu.dma_semaphore, #tpu.memory_space<semaphore_mem>>
      tpu.enqueue_dma source(%177 : memref<128xf32, #tpu.memory_space<any>>) target(%179 : memref<128xf32, #tpu.memory_space<vmem>>) target_semaphore(%181 : memref<!tpu.dma_semaphore, #tpu.memory_space<semaphore_mem>>)
      %c10 = arith.constant 10 : index
      %182 = memref.load %arg1[%c10] : memref<64xi32, #tpu.memory_space<smem>>
      %c0_i32_116 = arith.constant 0 : i32
      %c2_i32_117 = arith.constant 2 : i32
      %c1_i32_118 = arith.constant 1 : i32
      %c0_i32_119 = arith.constant 0 : i32
      %c0_i32_120 = arith.constant 0 : i32
      %183 = tpu.memref_slice %arg3[%182, %c0_i32_120] : memref<50x128xf32, #tpu.memory_space<any>> -> memref<1x128xf32, #tpu.memory_space<any>>
      %184 = tpu.memref_squeeze %183 : memref<1x128xf32, #tpu.memory_space<any>> -> memref<128xf32, #tpu.memory_space<any>>
      %c0_i32_121 = arith.constant 0 : i32
      %185 = tpu.memref_slice %arg5[%c0_i32_116, %c2_i32_117, %c1_i32_118, %c0_i32_121] : memref<2x8x8x128xf32, #tpu.memory_space<vmem>> -> memref<1x1x1x128xf32, #tpu.memory_space<vmem>>
      %186 = tpu.memref_squeeze %185 : memref<1x1x1x128xf32, #tpu.memory_space<vmem>> -> memref<128xf32, #tpu.memory_space<vmem>>
      %187 = tpu.memref_slice %arg6[%c0_i32_119] : memref<2x!tpu.dma_semaphore, #tpu.memory_space<semaphore_mem>> -> memref<1x!tpu.dma_semaphore, #tpu.memory_space<semaphore_mem>>
      %188 = tpu.memref_squeeze %187 : memref<1x!tpu.dma_semaphore, #tpu.memory_space<semaphore_mem>> -> memref<!tpu.dma_semaphore, #tpu.memory_space<semaphore_mem>>
      tpu.enqueue_dma source(%184 : memref<128xf32, #tpu.memory_space<any>>) target(%186 : memref<128xf32, #tpu.memory_space<vmem>>) target_semaphore(%188 : memref<!tpu.dma_semaphore, #tpu.memory_space<semaphore_mem>>)
      %c11 = arith.constant 11 : index
      %189 = memref.load %arg1[%c11] : memref<64xi32, #tpu.memory_space<smem>>
      %c0_i32_122 = arith.constant 0 : i32
      %c3_i32_123 = arith.constant 3 : i32
      %c1_i32_124 = arith.constant 1 : i32
      %c0_i32_125 = arith.constant 0 : i32
      %c0_i32_126 = arith.constant 0 : i32
      %190 = tpu.memref_slice %arg3[%189, %c0_i32_126] : memref<50x128xf32, #tpu.memory_space<any>> -> memref<1x128xf32, #tpu.memory_space<any>>
      %191 = tpu.memref_squeeze %190 : memref<1x128xf32, #tpu.memory_space<any>> -> memref<128xf32, #tpu.memory_space<any>>
      %c0_i32_127 = arith.constant 0 : i32
      %192 = tpu.memref_slice %arg5[%c0_i32_122, %c3_i32_123, %c1_i32_124, %c0_i32_127] : memref<2x8x8x128xf32, #tpu.memory_space<vmem>> -> memref<1x1x1x128xf32, #tpu.memory_space<vmem>>
      %193 = tpu.memref_squeeze %192 : memref<1x1x1x128xf32, #tpu.memory_space<vmem>> -> memref<128xf32, #tpu.memory_space<vmem>>
      %194 = tpu.memref_slice %arg6[%c0_i32_125] : memref<2x!tpu.dma_semaphore, #tpu.memory_space<semaphore_mem>> -> memref<1x!tpu.dma_semaphore, #tpu.memory_space<semaphore_mem>>
      %195 = tpu.memref_squeeze %194 : memref<1x!tpu.dma_semaphore, #tpu.memory_space<semaphore_mem>> -> memref<!tpu.dma_semaphore, #tpu.memory_space<semaphore_mem>>
      tpu.enqueue_dma source(%191 : memref<128xf32, #tpu.memory_space<any>>) target(%193 : memref<128xf32, #tpu.memory_space<vmem>>) target_semaphore(%195 : memref<!tpu.dma_semaphore, #tpu.memory_space<semaphore_mem>>)
      %c12 = arith.constant 12 : index
      %196 = memref.load %arg1[%c12] : memref<64xi32, #tpu.memory_space<smem>>
      %c0_i32_128 = arith.constant 0 : i32
      %c4_i32_129 = arith.constant 4 : i32
      %c1_i32_130 = arith.constant 1 : i32
      %c0_i32_131 = arith.constant 0 : i32
      %c0_i32_132 = arith.constant 0 : i32
      %197 = tpu.memref_slice %arg3[%196, %c0_i32_132] : memref<50x128xf32, #tpu.memory_space<any>> -> memref<1x128xf32, #tpu.memory_space<any>>
      %198 = tpu.memref_squeeze %197 : memref<1x128xf32, #tpu.memory_space<any>> -> memref<128xf32, #tpu.memory_space<any>>
      %c0_i32_133 = arith.constant 0 : i32
      %199 = tpu.memref_slice %arg5[%c0_i32_128, %c4_i32_129, %c1_i32_130, %c0_i32_133] : memref<2x8x8x128xf32, #tpu.memory_space<vmem>> -> memref<1x1x1x128xf32, #tpu.memory_space<vmem>>
      %200 = tpu.memref_squeeze %199 : memref<1x1x1x128xf32, #tpu.memory_space<vmem>> -> memref<128xf32, #tpu.memory_space<vmem>>
      %201 = tpu.memref_slice %arg6[%c0_i32_131] : memref<2x!tpu.dma_semaphore, #tpu.memory_space<semaphore_mem>> -> memref<1x!tpu.dma_semaphore, #tpu.memory_space<semaphore_mem>>
      %202 = tpu.memref_squeeze %201 : memref<1x!tpu.dma_semaphore, #tpu.memory_space<semaphore_mem>> -> memref<!tpu.dma_semaphore, #tpu.memory_space<semaphore_mem>>
      tpu.enqueue_dma source(%198 : memref<128xf32, #tpu.memory_space<any>>) target(%200 : memref<128xf32, #tpu.memory_space<vmem>>) target_semaphore(%202 : memref<!tpu.dma_semaphore, #tpu.memory_space<semaphore_mem>>)
      %c13 = arith.constant 13 : index
      %203 = memref.load %arg1[%c13] : memref<64xi32, #tpu.memory_space<smem>>
      %c0_i32_134 = arith.constant 0 : i32
      %c5_i32_135 = arith.constant 5 : i32
      %c1_i32_136 = arith.constant 1 : i32
      %c0_i32_137 = arith.constant 0 : i32
      %c0_i32_138 = arith.constant 0 : i32
      %204 = tpu.memref_slice %arg3[%203, %c0_i32_138] : memref<50x128xf32, #tpu.memory_space<any>> -> memref<1x128xf32, #tpu.memory_space<any>>
      %205 = tpu.memref_squeeze %204 : memref<1x128xf32, #tpu.memory_space<any>> -> memref<128xf32, #tpu.memory_space<any>>
      %c0_i32_139 = arith.constant 0 : i32
      %206 = tpu.memref_slice %arg5[%c0_i32_134, %c5_i32_135, %c1_i32_136, %c0_i32_139] : memref<2x8x8x128xf32, #tpu.memory_space<vmem>> -> memref<1x1x1x128xf32, #tpu.memory_space<vmem>>
      %207 = tpu.memref_squeeze %206 : memref<1x1x1x128xf32, #tpu.memory_space<vmem>> -> memref<128xf32, #tpu.memory_space<vmem>>
      %208 = tpu.memref_slice %arg6[%c0_i32_137] : memref<2x!tpu.dma_semaphore, #tpu.memory_space<semaphore_mem>> -> memref<1x!tpu.dma_semaphore, #tpu.memory_space<semaphore_mem>>
      %209 = tpu.memref_squeeze %208 : memref<1x!tpu.dma_semaphore, #tpu.memory_space<semaphore_mem>> -> memref<!tpu.dma_semaphore, #tpu.memory_space<semaphore_mem>>
      tpu.enqueue_dma source(%205 : memref<128xf32, #tpu.memory_space<any>>) target(%207 : memref<128xf32, #tpu.memory_space<vmem>>) target_semaphore(%209 : memref<!tpu.dma_semaphore, #tpu.memory_space<semaphore_mem>>)
      %c14 = arith.constant 14 : index
      %210 = memref.load %arg1[%c14] : memref<64xi32, #tpu.memory_space<smem>>
      %c0_i32_140 = arith.constant 0 : i32
      %c6_i32_141 = arith.constant 6 : i32
      %c1_i32_142 = arith.constant 1 : i32
      %c0_i32_143 = arith.constant 0 : i32
      %c0_i32_144 = arith.constant 0 : i32
      %211 = tpu.memref_slice %arg3[%210, %c0_i32_144] : memref<50x128xf32, #tpu.memory_space<any>> -> memref<1x128xf32, #tpu.memory_space<any>>
      %212 = tpu.memref_squeeze %211 : memref<1x128xf32, #tpu.memory_space<any>> -> memref<128xf32, #tpu.memory_space<any>>
      %c0_i32_145 = arith.constant 0 : i32
      %213 = tpu.memref_slice %arg5[%c0_i32_140, %c6_i32_141, %c1_i32_142, %c0_i32_145] : memref<2x8x8x128xf32, #tpu.memory_space<vmem>> -> memref<1x1x1x128xf32, #tpu.memory_space<vmem>>
      %214 = tpu.memref_squeeze %213 : memref<1x1x1x128xf32, #tpu.memory_space<vmem>> -> memref<128xf32, #tpu.memory_space<vmem>>
      %215 = tpu.memref_slice %arg6[%c0_i32_143] : memref<2x!tpu.dma_semaphore, #tpu.memory_space<semaphore_mem>> -> memref<1x!tpu.dma_semaphore, #tpu.memory_space<semaphore_mem>>
      %216 = tpu.memref_squeeze %215 : memref<1x!tpu.dma_semaphore, #tpu.memory_space<semaphore_mem>> -> memref<!tpu.dma_semaphore, #tpu.memory_space<semaphore_mem>>
      tpu.enqueue_dma source(%212 : memref<128xf32, #tpu.memory_space<any>>) target(%214 : memref<128xf32, #tpu.memory_space<vmem>>) target_semaphore(%216 : memref<!tpu.dma_semaphore, #tpu.memory_space<semaphore_mem>>)
      %c15 = arith.constant 15 : index
      %217 = memref.load %arg1[%c15] : memref<64xi32, #tpu.memory_space<smem>>
      %c0_i32_146 = arith.constant 0 : i32
      %c7_i32_147 = arith.constant 7 : i32
      %c1_i32_148 = arith.constant 1 : i32
      %c0_i32_149 = arith.constant 0 : i32
      %c0_i32_150 = arith.constant 0 : i32
      %218 = tpu.memref_slice %arg3[%217, %c0_i32_150] : memref<50x128xf32, #tpu.memory_space<any>> -> memref<1x128xf32, #tpu.memory_space<any>>
      %219 = tpu.memref_squeeze %218 : memref<1x128xf32, #tpu.memory_space<any>> -> memref<128xf32, #tpu.memory_space<any>>
      %c0_i32_151 = arith.constant 0 : i32
      %220 = tpu.memref_slice %arg5[%c0_i32_146, %c7_i32_147, %c1_i32_148, %c0_i32_151] : memref<2x8x8x128xf32, #tpu.memory_space<vmem>> -> memref<1x1x1x128xf32, #tpu.memory_space<vmem>>
      %221 = tpu.memref_squeeze %220 : memref<1x1x1x128xf32, #tpu.memory_space<vmem>> -> memref<128xf32, #tpu.memory_space<vmem>>
      %222 = tpu.memref_slice %arg6[%c0_i32_149] : memref<2x!tpu.dma_semaphore, #tpu.memory_space<semaphore_mem>> -> memref<1x!tpu.dma_semaphore, #tpu.memory_space<semaphore_mem>>
      %223 = tpu.memref_squeeze %222 : memref<1x!tpu.dma_semaphore, #tpu.memory_space<semaphore_mem>> -> memref<!tpu.dma_semaphore, #tpu.memory_space<semaphore_mem>>
      tpu.enqueue_dma source(%219 : memref<128xf32, #tpu.memory_space<any>>) target(%221 : memref<128xf32, #tpu.memory_space<vmem>>) target_semaphore(%223 : memref<!tpu.dma_semaphore, #tpu.memory_space<semaphore_mem>>)
      %c16 = arith.constant 16 : index
      %224 = memref.load %arg1[%c16] : memref<64xi32, #tpu.memory_space<smem>>
      %c0_i32_152 = arith.constant 0 : i32
      %c0_i32_153 = arith.constant 0 : i32
      %c2_i32_154 = arith.constant 2 : i32
      %c0_i32_155 = arith.constant 0 : i32
      %c0_i32_156 = arith.constant 0 : i32
      %225 = tpu.memref_slice %arg3[%224, %c0_i32_156] : memref<50x128xf32, #tpu.memory_space<any>> -> memref<1x128xf32, #tpu.memory_space<any>>
      %226 = tpu.memref_squeeze %225 : memref<1x128xf32, #tpu.memory_space<any>> -> memref<128xf32, #tpu.memory_space<any>>
      %c0_i32_157 = arith.constant 0 : i32
      %227 = tpu.memref_slice %arg5[%c0_i32_152, %c0_i32_153, %c2_i32_154, %c0_i32_157] : memref<2x8x8x128xf32, #tpu.memory_space<vmem>> -> memref<1x1x1x128xf32, #tpu.memory_space<vmem>>
      %228 = tpu.memref_squeeze %227 : memref<1x1x1x128xf32, #tpu.memory_space<vmem>> -> memref<128xf32, #tpu.memory_space<vmem>>
      %229 = tpu.memref_slice %arg6[%c0_i32_155] : memref<2x!tpu.dma_semaphore, #tpu.memory_space<semaphore_mem>> -> memref<1x!tpu.dma_semaphore, #tpu.memory_space<semaphore_mem>>
      %230 = tpu.memref_squeeze %229 : memref<1x!tpu.dma_semaphore, #tpu.memory_space<semaphore_mem>> -> memref<!tpu.dma_semaphore, #tpu.memory_space<semaphore_mem>>
      tpu.enqueue_dma source(%226 : memref<128xf32, #tpu.memory_space<any>>) target(%228 : memref<128xf32, #tpu.memory_space<vmem>>) target_semaphore(%230 : memref<!tpu.dma_semaphore, #tpu.memory_space<semaphore_mem>>)
      %c17 = arith.constant 17 : index
      %231 = memref.load %arg1[%c17] : memref<64xi32, #tpu.memory_space<smem>>
      %c0_i32_158 = arith.constant 0 : i32
      %c1_i32_159 = arith.constant 1 : i32
      %c2_i32_160 = arith.constant 2 : i32
      %c0_i32_161 = arith.constant 0 : i32
      %c0_i32_162 = arith.constant 0 : i32
      %232 = tpu.memref_slice %arg3[%231, %c0_i32_162] : memref<50x128xf32, #tpu.memory_space<any>> -> memref<1x128xf32, #tpu.memory_space<any>>
      %233 = tpu.memref_squeeze %232 : memref<1x128xf32, #tpu.memory_space<any>> -> memref<128xf32, #tpu.memory_space<any>>
      %c0_i32_163 = arith.constant 0 : i32
      %234 = tpu.memref_slice %arg5[%c0_i32_158, %c1_i32_159, %c2_i32_160, %c0_i32_163] : memref<2x8x8x128xf32, #tpu.memory_space<vmem>> -> memref<1x1x1x128xf32, #tpu.memory_space<vmem>>
      %235 = tpu.memref_squeeze %234 : memref<1x1x1x128xf32, #tpu.memory_space<vmem>> -> memref<128xf32, #tpu.memory_space<vmem>>
      %236 = tpu.memref_slice %arg6[%c0_i32_161] : memref<2x!tpu.dma_semaphore, #tpu.memory_space<semaphore_mem>> -> memref<1x!tpu.dma_semaphore, #tpu.memory_space<semaphore_mem>>
      %237 = tpu.memref_squeeze %236 : memref<1x!tpu.dma_semaphore, #tpu.memory_space<semaphore_mem>> -> memref<!tpu.dma_semaphore, #tpu.memory_space<semaphore_mem>>
      tpu.enqueue_dma source(%233 : memref<128xf32, #tpu.memory_space<any>>) target(%235 : memref<128xf32, #tpu.memory_space<vmem>>) target_semaphore(%237 : memref<!tpu.dma_semaphore, #tpu.memory_space<semaphore_mem>>)
      %c18 = arith.constant 18 : index
      %238 = memref.load %arg1[%c18] : memref<64xi32, #tpu.memory_space<smem>>
      %c0_i32_164 = arith.constant 0 : i32
      %c2_i32_165 = arith.constant 2 : i32
      %c2_i32_166 = arith.constant 2 : i32
      %c0_i32_167 = arith.constant 0 : i32
      %c0_i32_168 = arith.constant 0 : i32
      %239 = tpu.memref_slice %arg3[%238, %c0_i32_168] : memref<50x128xf32, #tpu.memory_space<any>> -> memref<1x128xf32, #tpu.memory_space<any>>
      %240 = tpu.memref_squeeze %239 : memref<1x128xf32, #tpu.memory_space<any>> -> memref<128xf32, #tpu.memory_space<any>>
      %c0_i32_169 = arith.constant 0 : i32
      %241 = tpu.memref_slice %arg5[%c0_i32_164, %c2_i32_165, %c2_i32_166, %c0_i32_169] : memref<2x8x8x128xf32, #tpu.memory_space<vmem>> -> memref<1x1x1x128xf32, #tpu.memory_space<vmem>>
      %242 = tpu.memref_squeeze %241 : memref<1x1x1x128xf32, #tpu.memory_space<vmem>> -> memref<128xf32, #tpu.memory_space<vmem>>
      %243 = tpu.memref_slice %arg6[%c0_i32_167] : memref<2x!tpu.dma_semaphore, #tpu.memory_space<semaphore_mem>> -> memref<1x!tpu.dma_semaphore, #tpu.memory_space<semaphore_mem>>
      %244 = tpu.memref_squeeze %243 : memref<1x!tpu.dma_semaphore, #tpu.memory_space<semaphore_mem>> -> memref<!tpu.dma_semaphore, #tpu.memory_space<semaphore_mem>>
      tpu.enqueue_dma source(%240 : memref<128xf32, #tpu.memory_space<any>>) target(%242 : memref<128xf32, #tpu.memory_space<vmem>>) target_semaphore(%244 : memref<!tpu.dma_semaphore, #tpu.memory_space<semaphore_mem>>)
      %c19 = arith.constant 19 : index
      %245 = memref.load %arg1[%c19] : memref<64xi32, #tpu.memory_space<smem>>
      %c0_i32_170 = arith.constant 0 : i32
      %c3_i32_171 = arith.constant 3 : i32
      %c2_i32_172 = arith.constant 2 : i32
      %c0_i32_173 = arith.constant 0 : i32
      %c0_i32_174 = arith.constant 0 : i32
      %246 = tpu.memref_slice %arg3[%245, %c0_i32_174] : memref<50x128xf32, #tpu.memory_space<any>> -> memref<1x128xf32, #tpu.memory_space<any>>
      %247 = tpu.memref_squeeze %246 : memref<1x128xf32, #tpu.memory_space<any>> -> memref<128xf32, #tpu.memory_space<any>>
      %c0_i32_175 = arith.constant 0 : i32
      %248 = tpu.memref_slice %arg5[%c0_i32_170, %c3_i32_171, %c2_i32_172, %c0_i32_175] : memref<2x8x8x128xf32, #tpu.memory_space<vmem>> -> memref<1x1x1x128xf32, #tpu.memory_space<vmem>>
      %249 = tpu.memref_squeeze %248 : memref<1x1x1x128xf32, #tpu.memory_space<vmem>> -> memref<128xf32, #tpu.memory_space<vmem>>
      %250 = tpu.memref_slice %arg6[%c0_i32_173] : memref<2x!tpu.dma_semaphore, #tpu.memory_space<semaphore_mem>> -> memref<1x!tpu.dma_semaphore, #tpu.memory_space<semaphore_mem>>
      %251 = tpu.memref_squeeze %250 : memref<1x!tpu.dma_semaphore, #tpu.memory_space<semaphore_mem>> -> memref<!tpu.dma_semaphore, #tpu.memory_space<semaphore_mem>>
      tpu.enqueue_dma source(%247 : memref<128xf32, #tpu.memory_space<any>>) target(%249 : memref<128xf32, #tpu.memory_space<vmem>>) target_semaphore(%251 : memref<!tpu.dma_semaphore, #tpu.memory_space<semaphore_mem>>)
      %c20 = arith.constant 20 : index
      %252 = memref.load %arg1[%c20] : memref<64xi32, #tpu.memory_space<smem>>
      %c0_i32_176 = arith.constant 0 : i32
      %c4_i32_177 = arith.constant 4 : i32
      %c2_i32_178 = arith.constant 2 : i32
      %c0_i32_179 = arith.constant 0 : i32
      %c0_i32_180 = arith.constant 0 : i32
      %253 = tpu.memref_slice %arg3[%252, %c0_i32_180] : memref<50x128xf32, #tpu.memory_space<any>> -> memref<1x128xf32, #tpu.memory_space<any>>
      %254 = tpu.memref_squeeze %253 : memref<1x128xf32, #tpu.memory_space<any>> -> memref<128xf32, #tpu.memory_space<any>>
      %c0_i32_181 = arith.constant 0 : i32
      %255 = tpu.memref_slice %arg5[%c0_i32_176, %c4_i32_177, %c2_i32_178, %c0_i32_181] : memref<2x8x8x128xf32, #tpu.memory_space<vmem>> -> memref<1x1x1x128xf32, #tpu.memory_space<vmem>>
      %256 = tpu.memref_squeeze %255 : memref<1x1x1x128xf32, #tpu.memory_space<vmem>> -> memref<128xf32, #tpu.memory_space<vmem>>
      %257 = tpu.memref_slice %arg6[%c0_i32_179] : memref<2x!tpu.dma_semaphore, #tpu.memory_space<semaphore_mem>> -> memref<1x!tpu.dma_semaphore, #tpu.memory_space<semaphore_mem>>
      %258 = tpu.memref_squeeze %257 : memref<1x!tpu.dma_semaphore, #tpu.memory_space<semaphore_mem>> -> memref<!tpu.dma_semaphore, #tpu.memory_space<semaphore_mem>>
      tpu.enqueue_dma source(%254 : memref<128xf32, #tpu.memory_space<any>>) target(%256 : memref<128xf32, #tpu.memory_space<vmem>>) target_semaphore(%258 : memref<!tpu.dma_semaphore, #tpu.memory_space<semaphore_mem>>)
      %c21 = arith.constant 21 : index
      %259 = memref.load %arg1[%c21] : memref<64xi32, #tpu.memory_space<smem>>
      %c0_i32_182 = arith.constant 0 : i32
      %c5_i32_183 = arith.constant 5 : i32
      %c2_i32_184 = arith.constant 2 : i32
      %c0_i32_185 = arith.constant 0 : i32
      %c0_i32_186 = arith.constant 0 : i32
      %260 = tpu.memref_slice %arg3[%259, %c0_i32_186] : memref<50x128xf32, #tpu.memory_space<any>> -> memref<1x128xf32, #tpu.memory_space<any>>
      %261 = tpu.memref_squeeze %260 : memref<1x128xf32, #tpu.memory_space<any>> -> memref<128xf32, #tpu.memory_space<any>>
      %c0_i32_187 = arith.constant 0 : i32
      %262 = tpu.memref_slice %arg5[%c0_i32_182, %c5_i32_183, %c2_i32_184, %c0_i32_187] : memref<2x8x8x128xf32, #tpu.memory_space<vmem>> -> memref<1x1x1x128xf32, #tpu.memory_space<vmem>>
      %263 = tpu.memref_squeeze %262 : memref<1x1x1x128xf32, #tpu.memory_space<vmem>> -> memref<128xf32, #tpu.memory_space<vmem>>
      %264 = tpu.memref_slice %arg6[%c0_i32_185] : memref<2x!tpu.dma_semaphore, #tpu.memory_space<semaphore_mem>> -> memref<1x!tpu.dma_semaphore, #tpu.memory_space<semaphore_mem>>
      %265 = tpu.memref_squeeze %264 : memref<1x!tpu.dma_semaphore, #tpu.memory_space<semaphore_mem>> -> memref<!tpu.dma_semaphore, #tpu.memory_space<semaphore_mem>>
      tpu.enqueue_dma source(%261 : memref<128xf32, #tpu.memory_space<any>>) target(%263 : memref<128xf32, #tpu.memory_space<vmem>>) target_semaphore(%265 : memref<!tpu.dma_semaphore, #tpu.memory_space<semaphore_mem>>)
      %c22 = arith.constant 22 : index
      %266 = memref.load %arg1[%c22] : memref<64xi32, #tpu.memory_space<smem>>
      %c0_i32_188 = arith.constant 0 : i32
      %c6_i32_189 = arith.constant 6 : i32
      %c2_i32_190 = arith.constant 2 : i32
      %c0_i32_191 = arith.constant 0 : i32
      %c0_i32_192 = arith.constant 0 : i32
      %267 = tpu.memref_slice %arg3[%266, %c0_i32_192] : memref<50x128xf32, #tpu.memory_space<any>> -> memref<1x128xf32, #tpu.memory_space<any>>
      %268 = tpu.memref_squeeze %267 : memref<1x128xf32, #tpu.memory_space<any>> -> memref<128xf32, #tpu.memory_space<any>>
      %c0_i32_193 = arith.constant 0 : i32
      %269 = tpu.memref_slice %arg5[%c0_i32_188, %c6_i32_189, %c2_i32_190, %c0_i32_193] : memref<2x8x8x128xf32, #tpu.memory_space<vmem>> -> memref<1x1x1x128xf32, #tpu.memory_space<vmem>>
      %270 = tpu.memref_squeeze %269 : memref<1x1x1x128xf32, #tpu.memory_space<vmem>> -> memref<128xf32, #tpu.memory_space<vmem>>
      %271 = tpu.memref_slice %arg6[%c0_i32_191] : memref<2x!tpu.dma_semaphore, #tpu.memory_space<semaphore_mem>> -> memref<1x!tpu.dma_semaphore, #tpu.memory_space<semaphore_mem>>
      %272 = tpu.memref_squeeze %271 : memref<1x!tpu.dma_semaphore, #tpu.memory_space<semaphore_mem>> -> memref<!tpu.dma_semaphore, #tpu.memory_space<semaphore_mem>>
      tpu.enqueue_dma source(%268 : memref<128xf32, #tpu.memory_space<any>>) target(%270 : memref<128xf32, #tpu.memory_space<vmem>>) target_semaphore(%272 : memref<!tpu.dma_semaphore, #tpu.memory_space<semaphore_mem>>)
      %c23 = arith.constant 23 : index
      %273 = memref.load %arg1[%c23] : memref<64xi32, #tpu.memory_space<smem>>
      %c0_i32_194 = arith.constant 0 : i32
      %c7_i32_195 = arith.constant 7 : i32
      %c2_i32_196 = arith.constant 2 : i32
      %c0_i32_197 = arith.constant 0 : i32
      %c0_i32_198 = arith.constant 0 : i32
      %274 = tpu.memref_slice %arg3[%273, %c0_i32_198] : memref<50x128xf32, #tpu.memory_space<any>> -> memref<1x128xf32, #tpu.memory_space<any>>
      %275 = tpu.memref_squeeze %274 : memref<1x128xf32, #tpu.memory_space<any>> -> memref<128xf32, #tpu.memory_space<any>>
      %c0_i32_199 = arith.constant 0 : i32
      %276 = tpu.memref_slice %arg5[%c0_i32_194, %c7_i32_195, %c2_i32_196, %c0_i32_199] : memref<2x8x8x128xf32, #tpu.memory_space<vmem>> -> memref<1x1x1x128xf32, #tpu.memory_space<vmem>>
      %277 = tpu.memref_squeeze %276 : memref<1x1x1x128xf32, #tpu.memory_space<vmem>> -> memref<128xf32, #tpu.memory_space<vmem>>
      %278 = tpu.memref_slice %arg6[%c0_i32_197] : memref<2x!tpu.dma_semaphore, #tpu.memory_space<semaphore_mem>> -> memref<1x!tpu.dma_semaphore, #tpu.memory_space<semaphore_mem>>
      %279 = tpu.memref_squeeze %278 : memref<1x!tpu.dma_semaphore, #tpu.memory_space<semaphore_mem>> -> memref<!tpu.dma_semaphore, #tpu.memory_space<semaphore_mem>>
      tpu.enqueue_dma source(%275 : memref<128xf32, #tpu.memory_space<any>>) target(%277 : memref<128xf32, #tpu.memory_space<vmem>>) target_semaphore(%279 : memref<!tpu.dma_semaphore, #tpu.memory_space<semaphore_mem>>)
      %c24 = arith.constant 24 : index
      %280 = memref.load %arg1[%c24] : memref<64xi32, #tpu.memory_space<smem>>
      %c0_i32_200 = arith.constant 0 : i32
      %c0_i32_201 = arith.constant 0 : i32
      %c3_i32_202 = arith.constant 3 : i32
      %c0_i32_203 = arith.constant 0 : i32
      %c0_i32_204 = arith.constant 0 : i32
      %281 = tpu.memref_slice %arg3[%280, %c0_i32_204] : memref<50x128xf32, #tpu.memory_space<any>> -> memref<1x128xf32, #tpu.memory_space<any>>
      %282 = tpu.memref_squeeze %281 : memref<1x128xf32, #tpu.memory_space<any>> -> memref<128xf32, #tpu.memory_space<any>>
      %c0_i32_205 = arith.constant 0 : i32
      %283 = tpu.memref_slice %arg5[%c0_i32_200, %c0_i32_201, %c3_i32_202, %c0_i32_205] : memref<2x8x8x128xf32, #tpu.memory_space<vmem>> -> memref<1x1x1x128xf32, #tpu.memory_space<vmem>>
      %284 = tpu.memref_squeeze %283 : memref<1x1x1x128xf32, #tpu.memory_space<vmem>> -> memref<128xf32, #tpu.memory_space<vmem>>
      %285 = tpu.memref_slice %arg6[%c0_i32_203] : memref<2x!tpu.dma_semaphore, #tpu.memory_space<semaphore_mem>> -> memref<1x!tpu.dma_semaphore, #tpu.memory_space<semaphore_mem>>
      %286 = tpu.memref_squeeze %285 : memref<1x!tpu.dma_semaphore, #tpu.memory_space<semaphore_mem>> -> memref<!tpu.dma_semaphore, #tpu.memory_space<semaphore_mem>>
      tpu.enqueue_dma source(%282 : memref<128xf32, #tpu.memory_space<any>>) target(%284 : memref<128xf32, #tpu.memory_space<vmem>>) target_semaphore(%286 : memref<!tpu.dma_semaphore, #tpu.memory_space<semaphore_mem>>)
      %c25 = arith.constant 25 : index
      %287 = memref.load %arg1[%c25] : memref<64xi32, #tpu.memory_space<smem>>
      %c0_i32_206 = arith.constant 0 : i32
      %c1_i32_207 = arith.constant 1 : i32
      %c3_i32_208 = arith.constant 3 : i32
      %c0_i32_209 = arith.constant 0 : i32
      %c0_i32_210 = arith.constant 0 : i32
      %288 = tpu.memref_slice %arg3[%287, %c0_i32_210] : memref<50x128xf32, #tpu.memory_space<any>> -> memref<1x128xf32, #tpu.memory_space<any>>
      %289 = tpu.memref_squeeze %288 : memref<1x128xf32, #tpu.memory_space<any>> -> memref<128xf32, #tpu.memory_space<any>>
      %c0_i32_211 = arith.constant 0 : i32
      %290 = tpu.memref_slice %arg5[%c0_i32_206, %c1_i32_207, %c3_i32_208, %c0_i32_211] : memref<2x8x8x128xf32, #tpu.memory_space<vmem>> -> memref<1x1x1x128xf32, #tpu.memory_space<vmem>>
      %291 = tpu.memref_squeeze %290 : memref<1x1x1x128xf32, #tpu.memory_space<vmem>> -> memref<128xf32, #tpu.memory_space<vmem>>
      %292 = tpu.memref_slice %arg6[%c0_i32_209] : memref<2x!tpu.dma_semaphore, #tpu.memory_space<semaphore_mem>> -> memref<1x!tpu.dma_semaphore, #tpu.memory_space<semaphore_mem>>
      %293 = tpu.memref_squeeze %292 : memref<1x!tpu.dma_semaphore, #tpu.memory_space<semaphore_mem>> -> memref<!tpu.dma_semaphore, #tpu.memory_space<semaphore_mem>>
      tpu.enqueue_dma source(%289 : memref<128xf32, #tpu.memory_space<any>>) target(%291 : memref<128xf32, #tpu.memory_space<vmem>>) target_semaphore(%293 : memref<!tpu.dma_semaphore, #tpu.memory_space<semaphore_mem>>)
      %c26 = arith.constant 26 : index
      %294 = memref.load %arg1[%c26] : memref<64xi32, #tpu.memory_space<smem>>
      %c0_i32_212 = arith.constant 0 : i32
      %c2_i32_213 = arith.constant 2 : i32
      %c3_i32_214 = arith.constant 3 : i32
      %c0_i32_215 = arith.constant 0 : i32
      %c0_i32_216 = arith.constant 0 : i32
      %295 = tpu.memref_slice %arg3[%294, %c0_i32_216] : memref<50x128xf32, #tpu.memory_space<any>> -> memref<1x128xf32, #tpu.memory_space<any>>
      %296 = tpu.memref_squeeze %295 : memref<1x128xf32, #tpu.memory_space<any>> -> memref<128xf32, #tpu.memory_space<any>>
      %c0_i32_217 = arith.constant 0 : i32
      %297 = tpu.memref_slice %arg5[%c0_i32_212, %c2_i32_213, %c3_i32_214, %c0_i32_217] : memref<2x8x8x128xf32, #tpu.memory_space<vmem>> -> memref<1x1x1x128xf32, #tpu.memory_space<vmem>>
      %298 = tpu.memref_squeeze %297 : memref<1x1x1x128xf32, #tpu.memory_space<vmem>> -> memref<128xf32, #tpu.memory_space<vmem>>
      %299 = tpu.memref_slice %arg6[%c0_i32_215] : memref<2x!tpu.dma_semaphore, #tpu.memory_space<semaphore_mem>> -> memref<1x!tpu.dma_semaphore, #tpu.memory_space<semaphore_mem>>
      %300 = tpu.memref_squeeze %299 : memref<1x!tpu.dma_semaphore, #tpu.memory_space<semaphore_mem>> -> memref<!tpu.dma_semaphore, #tpu.memory_space<semaphore_mem>>
      tpu.enqueue_dma source(%296 : memref<128xf32, #tpu.memory_space<any>>) target(%298 : memref<128xf32, #tpu.memory_space<vmem>>) target_semaphore(%300 : memref<!tpu.dma_semaphore, #tpu.memory_space<semaphore_mem>>)
      %c27 = arith.constant 27 : index
      %301 = memref.load %arg1[%c27] : memref<64xi32, #tpu.memory_space<smem>>
      %c0_i32_218 = arith.constant 0 : i32
      %c3_i32_219 = arith.constant 3 : i32
      %c3_i32_220 = arith.constant 3 : i32
      %c0_i32_221 = arith.constant 0 : i32
      %c0_i32_222 = arith.constant 0 : i32
      %302 = tpu.memref_slice %arg3[%301, %c0_i32_222] : memref<50x128xf32, #tpu.memory_space<any>> -> memref<1x128xf32, #tpu.memory_space<any>>
      %303 = tpu.memref_squeeze %302 : memref<1x128xf32, #tpu.memory_space<any>> -> memref<128xf32, #tpu.memory_space<any>>
      %c0_i32_223 = arith.constant 0 : i32
      %304 = tpu.memref_slice %arg5[%c0_i32_218, %c3_i32_219, %c3_i32_220, %c0_i32_223] : memref<2x8x8x128xf32, #tpu.memory_space<vmem>> -> memref<1x1x1x128xf32, #tpu.memory_space<vmem>>
      %305 = tpu.memref_squeeze %304 : memref<1x1x1x128xf32, #tpu.memory_space<vmem>> -> memref<128xf32, #tpu.memory_space<vmem>>
      %306 = tpu.memref_slice %arg6[%c0_i32_221] : memref<2x!tpu.dma_semaphore, #tpu.memory_space<semaphore_mem>> -> memref<1x!tpu.dma_semaphore, #tpu.memory_space<semaphore_mem>>
      %307 = tpu.memref_squeeze %306 : memref<1x!tpu.dma_semaphore, #tpu.memory_space<semaphore_mem>> -> memref<!tpu.dma_semaphore, #tpu.memory_space<semaphore_mem>>
      tpu.enqueue_dma source(%303 : memref<128xf32, #tpu.memory_space<any>>) target(%305 : memref<128xf32, #tpu.memory_space<vmem>>) target_semaphore(%307 : memref<!tpu.dma_semaphore, #tpu.memory_space<semaphore_mem>>)
      %c28 = arith.constant 28 : index
      %308 = memref.load %arg1[%c28] : memref<64xi32, #tpu.memory_space<smem>>
      %c0_i32_224 = arith.constant 0 : i32
      %c4_i32_225 = arith.constant 4 : i32
      %c3_i32_226 = arith.constant 3 : i32
      %c0_i32_227 = arith.constant 0 : i32
      %c0_i32_228 = arith.constant 0 : i32
      %309 = tpu.memref_slice %arg3[%308, %c0_i32_228] : memref<50x128xf32, #tpu.memory_space<any>> -> memref<1x128xf32, #tpu.memory_space<any>>
      %310 = tpu.memref_squeeze %309 : memref<1x128xf32, #tpu.memory_space<any>> -> memref<128xf32, #tpu.memory_space<any>>
      %c0_i32_229 = arith.constant 0 : i32
      %311 = tpu.memref_slice %arg5[%c0_i32_224, %c4_i32_225, %c3_i32_226, %c0_i32_229] : memref<2x8x8x128xf32, #tpu.memory_space<vmem>> -> memref<1x1x1x128xf32, #tpu.memory_space<vmem>>
      %312 = tpu.memref_squeeze %311 : memref<1x1x1x128xf32, #tpu.memory_space<vmem>> -> memref<128xf32, #tpu.memory_space<vmem>>
      %313 = tpu.memref_slice %arg6[%c0_i32_227] : memref<2x!tpu.dma_semaphore, #tpu.memory_space<semaphore_mem>> -> memref<1x!tpu.dma_semaphore, #tpu.memory_space<semaphore_mem>>
      %314 = tpu.memref_squeeze %313 : memref<1x!tpu.dma_semaphore, #tpu.memory_space<semaphore_mem>> -> memref<!tpu.dma_semaphore, #tpu.memory_space<semaphore_mem>>
      tpu.enqueue_dma source(%310 : memref<128xf32, #tpu.memory_space<any>>) target(%312 : memref<128xf32, #tpu.memory_space<vmem>>) target_semaphore(%314 : memref<!tpu.dma_semaphore, #tpu.memory_space<semaphore_mem>>)
      %c29 = arith.constant 29 : index
      %315 = memref.load %arg1[%c29] : memref<64xi32, #tpu.memory_space<smem>>
      %c0_i32_230 = arith.constant 0 : i32
      %c5_i32_231 = arith.constant 5 : i32
      %c3_i32_232 = arith.constant 3 : i32
      %c0_i32_233 = arith.constant 0 : i32
      %c0_i32_234 = arith.constant 0 : i32
      %316 = tpu.memref_slice %arg3[%315, %c0_i32_234] : memref<50x128xf32, #tpu.memory_space<any>> -> memref<1x128xf32, #tpu.memory_space<any>>
      %317 = tpu.memref_squeeze %316 : memref<1x128xf32, #tpu.memory_space<any>> -> memref<128xf32, #tpu.memory_space<any>>
      %c0_i32_235 = arith.constant 0 : i32
      %318 = tpu.memref_slice %arg5[%c0_i32_230, %c5_i32_231, %c3_i32_232, %c0_i32_235] : memref<2x8x8x128xf32, #tpu.memory_space<vmem>> -> memref<1x1x1x128xf32, #tpu.memory_space<vmem>>
      %319 = tpu.memref_squeeze %318 : memref<1x1x1x128xf32, #tpu.memory_space<vmem>> -> memref<128xf32, #tpu.memory_space<vmem>>
      %320 = tpu.memref_slice %arg6[%c0_i32_233] : memref<2x!tpu.dma_semaphore, #tpu.memory_space<semaphore_mem>> -> memref<1x!tpu.dma_semaphore, #tpu.memory_space<semaphore_mem>>
      %321 = tpu.memref_squeeze %320 : memref<1x!tpu.dma_semaphore, #tpu.memory_space<semaphore_mem>> -> memref<!tpu.dma_semaphore, #tpu.memory_space<semaphore_mem>>
      tpu.enqueue_dma source(%317 : memref<128xf32, #tpu.memory_space<any>>) target(%319 : memref<128xf32, #tpu.memory_space<vmem>>) target_semaphore(%321 : memref<!tpu.dma_semaphore, #tpu.memory_space<semaphore_mem>>)
      %c30 = arith.constant 30 : index
      %322 = memref.load %arg1[%c30] : memref<64xi32, #tpu.memory_space<smem>>
      %c0_i32_236 = arith.constant 0 : i32
      %c6_i32_237 = arith.constant 6 : i32
      %c3_i32_238 = arith.constant 3 : i32
      %c0_i32_239 = arith.constant 0 : i32
      %c0_i32_240 = arith.constant 0 : i32
      %323 = tpu.memref_slice %arg3[%322, %c0_i32_240] : memref<50x128xf32, #tpu.memory_space<any>> -> memref<1x128xf32, #tpu.memory_space<any>>
      %324 = tpu.memref_squeeze %323 : memref<1x128xf32, #tpu.memory_space<any>> -> memref<128xf32, #tpu.memory_space<any>>
      %c0_i32_241 = arith.constant 0 : i32
      %325 = tpu.memref_slice %arg5[%c0_i32_236, %c6_i32_237, %c3_i32_238, %c0_i32_241] : memref<2x8x8x128xf32, #tpu.memory_space<vmem>> -> memref<1x1x1x128xf32, #tpu.memory_space<vmem>>
      %326 = tpu.memref_squeeze %325 : memref<1x1x1x128xf32, #tpu.memory_space<vmem>> -> memref<128xf32, #tpu.memory_space<vmem>>
      %327 = tpu.memref_slice %arg6[%c0_i32_239] : memref<2x!tpu.dma_semaphore, #tpu.memory_space<semaphore_mem>> -> memref<1x!tpu.dma_semaphore, #tpu.memory_space<semaphore_mem>>
      %328 = tpu.memref_squeeze %327 : memref<1x!tpu.dma_semaphore, #tpu.memory_space<semaphore_mem>> -> memref<!tpu.dma_semaphore, #tpu.memory_space<semaphore_mem>>
      tpu.enqueue_dma source(%324 : memref<128xf32, #tpu.memory_space<any>>) target(%326 : memref<128xf32, #tpu.memory_space<vmem>>) target_semaphore(%328 : memref<!tpu.dma_semaphore, #tpu.memory_space<semaphore_mem>>)
      %c31 = arith.constant 31 : index
      %329 = memref.load %arg1[%c31] : memref<64xi32, #tpu.memory_space<smem>>
      %c0_i32_242 = arith.constant 0 : i32
      %c7_i32_243 = arith.constant 7 : i32
      %c3_i32_244 = arith.constant 3 : i32
      %c0_i32_245 = arith.constant 0 : i32
      %c0_i32_246 = arith.constant 0 : i32
      %330 = tpu.memref_slice %arg3[%329, %c0_i32_246] : memref<50x128xf32, #tpu.memory_space<any>> -> memref<1x128xf32, #tpu.memory_space<any>>
      %331 = tpu.memref_squeeze %330 : memref<1x128xf32, #tpu.memory_space<any>> -> memref<128xf32, #tpu.memory_space<any>>
      %c0_i32_247 = arith.constant 0 : i32
      %332 = tpu.memref_slice %arg5[%c0_i32_242, %c7_i32_243, %c3_i32_244, %c0_i32_247] : memref<2x8x8x128xf32, #tpu.memory_space<vmem>> -> memref<1x1x1x128xf32, #tpu.memory_space<vmem>>
      %333 = tpu.memref_squeeze %332 : memref<1x1x1x128xf32, #tpu.memory_space<vmem>> -> memref<128xf32, #tpu.memory_space<vmem>>
      %334 = tpu.memref_slice %arg6[%c0_i32_245] : memref<2x!tpu.dma_semaphore, #tpu.memory_space<semaphore_mem>> -> memref<1x!tpu.dma_semaphore, #tpu.memory_space<semaphore_mem>>
      %335 = tpu.memref_squeeze %334 : memref<1x!tpu.dma_semaphore, #tpu.memory_space<semaphore_mem>> -> memref<!tpu.dma_semaphore, #tpu.memory_space<semaphore_mem>>
      tpu.enqueue_dma source(%331 : memref<128xf32, #tpu.memory_space<any>>) target(%333 : memref<128xf32, #tpu.memory_space<vmem>>) target_semaphore(%335 : memref<!tpu.dma_semaphore, #tpu.memory_space<semaphore_mem>>)
      %c32 = arith.constant 32 : index
      %336 = memref.load %arg1[%c32] : memref<64xi32, #tpu.memory_space<smem>>
      %c0_i32_248 = arith.constant 0 : i32
      %c0_i32_249 = arith.constant 0 : i32
      %c4_i32_250 = arith.constant 4 : i32
      %c0_i32_251 = arith.constant 0 : i32
      %c0_i32_252 = arith.constant 0 : i32
      %337 = tpu.memref_slice %arg3[%336, %c0_i32_252] : memref<50x128xf32, #tpu.memory_space<any>> -> memref<1x128xf32, #tpu.memory_space<any>>
      %338 = tpu.memref_squeeze %337 : memref<1x128xf32, #tpu.memory_space<any>> -> memref<128xf32, #tpu.memory_space<any>>
      %c0_i32_253 = arith.constant 0 : i32
      %339 = tpu.memref_slice %arg5[%c0_i32_248, %c0_i32_249, %c4_i32_250, %c0_i32_253] : memref<2x8x8x128xf32, #tpu.memory_space<vmem>> -> memref<1x1x1x128xf32, #tpu.memory_space<vmem>>
      %340 = tpu.memref_squeeze %339 : memref<1x1x1x128xf32, #tpu.memory_space<vmem>> -> memref<128xf32, #tpu.memory_space<vmem>>
      %341 = tpu.memref_slice %arg6[%c0_i32_251] : memref<2x!tpu.dma_semaphore, #tpu.memory_space<semaphore_mem>> -> memref<1x!tpu.dma_semaphore, #tpu.memory_space<semaphore_mem>>
      %342 = tpu.memref_squeeze %341 : memref<1x!tpu.dma_semaphore, #tpu.memory_space<semaphore_mem>> -> memref<!tpu.dma_semaphore, #tpu.memory_space<semaphore_mem>>
      tpu.enqueue_dma source(%338 : memref<128xf32, #tpu.memory_space<any>>) target(%340 : memref<128xf32, #tpu.memory_space<vmem>>) target_semaphore(%342 : memref<!tpu.dma_semaphore, #tpu.memory_space<semaphore_mem>>)
      %c33 = arith.constant 33 : index
      %343 = memref.load %arg1[%c33] : memref<64xi32, #tpu.memory_space<smem>>
      %c0_i32_254 = arith.constant 0 : i32
      %c1_i32_255 = arith.constant 1 : i32
      %c4_i32_256 = arith.constant 4 : i32
      %c0_i32_257 = arith.constant 0 : i32
      %c0_i32_258 = arith.constant 0 : i32
      %344 = tpu.memref_slice %arg3[%343, %c0_i32_258] : memref<50x128xf32, #tpu.memory_space<any>> -> memref<1x128xf32, #tpu.memory_space<any>>
      %345 = tpu.memref_squeeze %344 : memref<1x128xf32, #tpu.memory_space<any>> -> memref<128xf32, #tpu.memory_space<any>>
      %c0_i32_259 = arith.constant 0 : i32
      %346 = tpu.memref_slice %arg5[%c0_i32_254, %c1_i32_255, %c4_i32_256, %c0_i32_259] : memref<2x8x8x128xf32, #tpu.memory_space<vmem>> -> memref<1x1x1x128xf32, #tpu.memory_space<vmem>>
      %347 = tpu.memref_squeeze %346 : memref<1x1x1x128xf32, #tpu.memory_space<vmem>> -> memref<128xf32, #tpu.memory_space<vmem>>
      %348 = tpu.memref_slice %arg6[%c0_i32_257] : memref<2x!tpu.dma_semaphore, #tpu.memory_space<semaphore_mem>> -> memref<1x!tpu.dma_semaphore, #tpu.memory_space<semaphore_mem>>
      %349 = tpu.memref_squeeze %348 : memref<1x!tpu.dma_semaphore, #tpu.memory_space<semaphore_mem>> -> memref<!tpu.dma_semaphore, #tpu.memory_space<semaphore_mem>>
      tpu.enqueue_dma source(%345 : memref<128xf32, #tpu.memory_space<any>>) target(%347 : memref<128xf32, #tpu.memory_space<vmem>>) target_semaphore(%349 : memref<!tpu.dma_semaphore, #tpu.memory_space<semaphore_mem>>)
      %c34 = arith.constant 34 : index
      %350 = memref.load %arg1[%c34] : memref<64xi32, #tpu.memory_space<smem>>
      %c0_i32_260 = arith.constant 0 : i32
      %c2_i32_261 = arith.constant 2 : i32
      %c4_i32_262 = arith.constant 4 : i32
      %c0_i32_263 = arith.constant 0 : i32
      %c0_i32_264 = arith.constant 0 : i32
      %351 = tpu.memref_slice %arg3[%350, %c0_i32_264] : memref<50x128xf32, #tpu.memory_space<any>> -> memref<1x128xf32, #tpu.memory_space<any>>
      %352 = tpu.memref_squeeze %351 : memref<1x128xf32, #tpu.memory_space<any>> -> memref<128xf32, #tpu.memory_space<any>>
      %c0_i32_265 = arith.constant 0 : i32
      %353 = tpu.memref_slice %arg5[%c0_i32_260, %c2_i32_261, %c4_i32_262, %c0_i32_265] : memref<2x8x8x128xf32, #tpu.memory_space<vmem>> -> memref<1x1x1x128xf32, #tpu.memory_space<vmem>>
      %354 = tpu.memref_squeeze %353 : memref<1x1x1x128xf32, #tpu.memory_space<vmem>> -> memref<128xf32, #tpu.memory_space<vmem>>
      %355 = tpu.memref_slice %arg6[%c0_i32_263] : memref<2x!tpu.dma_semaphore, #tpu.memory_space<semaphore_mem>> -> memref<1x!tpu.dma_semaphore, #tpu.memory_space<semaphore_mem>>
      %356 = tpu.memref_squeeze %355 : memref<1x!tpu.dma_semaphore, #tpu.memory_space<semaphore_mem>> -> memref<!tpu.dma_semaphore, #tpu.memory_space<semaphore_mem>>
      tpu.enqueue_dma source(%352 : memref<128xf32, #tpu.memory_space<any>>) target(%354 : memref<128xf32, #tpu.memory_space<vmem>>) target_semaphore(%356 : memref<!tpu.dma_semaphore, #tpu.memory_space<semaphore_mem>>)
      %c35 = arith.constant 35 : index
      %357 = memref.load %arg1[%c35] : memref<64xi32, #tpu.memory_space<smem>>
      %c0_i32_266 = arith.constant 0 : i32
      %c3_i32_267 = arith.constant 3 : i32
      %c4_i32_268 = arith.constant 4 : i32
      %c0_i32_269 = arith.constant 0 : i32
      %c0_i32_270 = arith.constant 0 : i32
      %358 = tpu.memref_slice %arg3[%357, %c0_i32_270] : memref<50x128xf32, #tpu.memory_space<any>> -> memref<1x128xf32, #tpu.memory_space<any>>
      %359 = tpu.memref_squeeze %358 : memref<1x128xf32, #tpu.memory_space<any>> -> memref<128xf32, #tpu.memory_space<any>>
      %c0_i32_271 = arith.constant 0 : i32
      %360 = tpu.memref_slice %arg5[%c0_i32_266, %c3_i32_267, %c4_i32_268, %c0_i32_271] : memref<2x8x8x128xf32, #tpu.memory_space<vmem>> -> memref<1x1x1x128xf32, #tpu.memory_space<vmem>>
      %361 = tpu.memref_squeeze %360 : memref<1x1x1x128xf32, #tpu.memory_space<vmem>> -> memref<128xf32, #tpu.memory_space<vmem>>
      %362 = tpu.memref_slice %arg6[%c0_i32_269] : memref<2x!tpu.dma_semaphore, #tpu.memory_space<semaphore_mem>> -> memref<1x!tpu.dma_semaphore, #tpu.memory_space<semaphore_mem>>
      %363 = tpu.memref_squeeze %362 : memref<1x!tpu.dma_semaphore, #tpu.memory_space<semaphore_mem>> -> memref<!tpu.dma_semaphore, #tpu.memory_space<semaphore_mem>>
      tpu.enqueue_dma source(%359 : memref<128xf32, #tpu.memory_space<any>>) target(%361 : memref<128xf32, #tpu.memory_space<vmem>>) target_semaphore(%363 : memref<!tpu.dma_semaphore, #tpu.memory_space<semaphore_mem>>)
      %c36 = arith.constant 36 : index
      %364 = memref.load %arg1[%c36] : memref<64xi32, #tpu.memory_space<smem>>
      %c0_i32_272 = arith.constant 0 : i32
      %c4_i32_273 = arith.constant 4 : i32
      %c4_i32_274 = arith.constant 4 : i32
      %c0_i32_275 = arith.constant 0 : i32
      %c0_i32_276 = arith.constant 0 : i32
      %365 = tpu.memref_slice %arg3[%364, %c0_i32_276] : memref<50x128xf32, #tpu.memory_space<any>> -> memref<1x128xf32, #tpu.memory_space<any>>
      %366 = tpu.memref_squeeze %365 : memref<1x128xf32, #tpu.memory_space<any>> -> memref<128xf32, #tpu.memory_space<any>>
      %c0_i32_277 = arith.constant 0 : i32
      %367 = tpu.memref_slice %arg5[%c0_i32_272, %c4_i32_273, %c4_i32_274, %c0_i32_277] : memref<2x8x8x128xf32, #tpu.memory_space<vmem>> -> memref<1x1x1x128xf32, #tpu.memory_space<vmem>>
      %368 = tpu.memref_squeeze %367 : memref<1x1x1x128xf32, #tpu.memory_space<vmem>> -> memref<128xf32, #tpu.memory_space<vmem>>
      %369 = tpu.memref_slice %arg6[%c0_i32_275] : memref<2x!tpu.dma_semaphore, #tpu.memory_space<semaphore_mem>> -> memref<1x!tpu.dma_semaphore, #tpu.memory_space<semaphore_mem>>
      %370 = tpu.memref_squeeze %369 : memref<1x!tpu.dma_semaphore, #tpu.memory_space<semaphore_mem>> -> memref<!tpu.dma_semaphore, #tpu.memory_space<semaphore_mem>>
      tpu.enqueue_dma source(%366 : memref<128xf32, #tpu.memory_space<any>>) target(%368 : memref<128xf32, #tpu.memory_space<vmem>>) target_semaphore(%370 : memref<!tpu.dma_semaphore, #tpu.memory_space<semaphore_mem>>)
      %c37 = arith.constant 37 : index
      %371 = memref.load %arg1[%c37] : memref<64xi32, #tpu.memory_space<smem>>
      %c0_i32_278 = arith.constant 0 : i32
      %c5_i32_279 = arith.constant 5 : i32
      %c4_i32_280 = arith.constant 4 : i32
      %c0_i32_281 = arith.constant 0 : i32
      %c0_i32_282 = arith.constant 0 : i32
      %372 = tpu.memref_slice %arg3[%371, %c0_i32_282] : memref<50x128xf32, #tpu.memory_space<any>> -> memref<1x128xf32, #tpu.memory_space<any>>
      %373 = tpu.memref_squeeze %372 : memref<1x128xf32, #tpu.memory_space<any>> -> memref<128xf32, #tpu.memory_space<any>>
      %c0_i32_283 = arith.constant 0 : i32
      %374 = tpu.memref_slice %arg5[%c0_i32_278, %c5_i32_279, %c4_i32_280, %c0_i32_283] : memref<2x8x8x128xf32, #tpu.memory_space<vmem>> -> memref<1x1x1x128xf32, #tpu.memory_space<vmem>>
      %375 = tpu.memref_squeeze %374 : memref<1x1x1x128xf32, #tpu.memory_space<vmem>> -> memref<128xf32, #tpu.memory_space<vmem>>
      %376 = tpu.memref_slice %arg6[%c0_i32_281] : memref<2x!tpu.dma_semaphore, #tpu.memory_space<semaphore_mem>> -> memref<1x!tpu.dma_semaphore, #tpu.memory_space<semaphore_mem>>
      %377 = tpu.memref_squeeze %376 : memref<1x!tpu.dma_semaphore, #tpu.memory_space<semaphore_mem>> -> memref<!tpu.dma_semaphore, #tpu.memory_space<semaphore_mem>>
      tpu.enqueue_dma source(%373 : memref<128xf32, #tpu.memory_space<any>>) target(%375 : memref<128xf32, #tpu.memory_space<vmem>>) target_semaphore(%377 : memref<!tpu.dma_semaphore, #tpu.memory_space<semaphore_mem>>)
      %c38 = arith.constant 38 : index
      %378 = memref.load %arg1[%c38] : memref<64xi32, #tpu.memory_space<smem>>
      %c0_i32_284 = arith.constant 0 : i32
      %c6_i32_285 = arith.constant 6 : i32
      %c4_i32_286 = arith.constant 4 : i32
      %c0_i32_287 = arith.constant 0 : i32
      %c0_i32_288 = arith.constant 0 : i32
      %379 = tpu.memref_slice %arg3[%378, %c0_i32_288] : memref<50x128xf32, #tpu.memory_space<any>> -> memref<1x128xf32, #tpu.memory_space<any>>
      %380 = tpu.memref_squeeze %379 : memref<1x128xf32, #tpu.memory_space<any>> -> memref<128xf32, #tpu.memory_space<any>>
      %c0_i32_289 = arith.constant 0 : i32
      %381 = tpu.memref_slice %arg5[%c0_i32_284, %c6_i32_285, %c4_i32_286, %c0_i32_289] : memref<2x8x8x128xf32, #tpu.memory_space<vmem>> -> memref<1x1x1x128xf32, #tpu.memory_space<vmem>>
      %382 = tpu.memref_squeeze %381 : memref<1x1x1x128xf32, #tpu.memory_space<vmem>> -> memref<128xf32, #tpu.memory_space<vmem>>
      %383 = tpu.memref_slice %arg6[%c0_i32_287] : memref<2x!tpu.dma_semaphore, #tpu.memory_space<semaphore_mem>> -> memref<1x!tpu.dma_semaphore, #tpu.memory_space<semaphore_mem>>
      %384 = tpu.memref_squeeze %383 : memref<1x!tpu.dma_semaphore, #tpu.memory_space<semaphore_mem>> -> memref<!tpu.dma_semaphore, #tpu.memory_space<semaphore_mem>>
      tpu.enqueue_dma source(%380 : memref<128xf32, #tpu.memory_space<any>>) target(%382 : memref<128xf32, #tpu.memory_space<vmem>>) target_semaphore(%384 : memref<!tpu.dma_semaphore, #tpu.memory_space<semaphore_mem>>)
      %c39 = arith.constant 39 : index
      %385 = memref.load %arg1[%c39] : memref<64xi32, #tpu.memory_space<smem>>
      %c0_i32_290 = arith.constant 0 : i32
      %c7_i32_291 = arith.constant 7 : i32
      %c4_i32_292 = arith.constant 4 : i32
      %c0_i32_293 = arith.constant 0 : i32
      %c0_i32_294 = arith.constant 0 : i32
      %386 = tpu.memref_slice %arg3[%385, %c0_i32_294] : memref<50x128xf32, #tpu.memory_space<any>> -> memref<1x128xf32, #tpu.memory_space<any>>
      %387 = tpu.memref_squeeze %386 : memref<1x128xf32, #tpu.memory_space<any>> -> memref<128xf32, #tpu.memory_space<any>>
      %c0_i32_295 = arith.constant 0 : i32
      %388 = tpu.memref_slice %arg5[%c0_i32_290, %c7_i32_291, %c4_i32_292, %c0_i32_295] : memref<2x8x8x128xf32, #tpu.memory_space<vmem>> -> memref<1x1x1x128xf32, #tpu.memory_space<vmem>>
      %389 = tpu.memref_squeeze %388 : memref<1x1x1x128xf32, #tpu.memory_space<vmem>> -> memref<128xf32, #tpu.memory_space<vmem>>
      %390 = tpu.memref_slice %arg6[%c0_i32_293] : memref<2x!tpu.dma_semaphore, #tpu.memory_space<semaphore_mem>> -> memref<1x!tpu.dma_semaphore, #tpu.memory_space<semaphore_mem>>
      %391 = tpu.memref_squeeze %390 : memref<1x!tpu.dma_semaphore, #tpu.memory_space<semaphore_mem>> -> memref<!tpu.dma_semaphore, #tpu.memory_space<semaphore_mem>>
      tpu.enqueue_dma source(%387 : memref<128xf32, #tpu.memory_space<any>>) target(%389 : memref<128xf32, #tpu.memory_space<vmem>>) target_semaphore(%391 : memref<!tpu.dma_semaphore, #tpu.memory_space<semaphore_mem>>)
      %c40 = arith.constant 40 : index
      %392 = memref.load %arg1[%c40] : memref<64xi32, #tpu.memory_space<smem>>
      %c0_i32_296 = arith.constant 0 : i32
      %c0_i32_297 = arith.constant 0 : i32
      %c5_i32_298 = arith.constant 5 : i32
      %c0_i32_299 = arith.constant 0 : i32
      %c0_i32_300 = arith.constant 0 : i32
      %393 = tpu.memref_slice %arg3[%392, %c0_i32_300] : memref<50x128xf32, #tpu.memory_space<any>> -> memref<1x128xf32, #tpu.memory_space<any>>
      %394 = tpu.memref_squeeze %393 : memref<1x128xf32, #tpu.memory_space<any>> -> memref<128xf32, #tpu.memory_space<any>>
      %c0_i32_301 = arith.constant 0 : i32
      %395 = tpu.memref_slice %arg5[%c0_i32_296, %c0_i32_297, %c5_i32_298, %c0_i32_301] : memref<2x8x8x128xf32, #tpu.memory_space<vmem>> -> memref<1x1x1x128xf32, #tpu.memory_space<vmem>>
      %396 = tpu.memref_squeeze %395 : memref<1x1x1x128xf32, #tpu.memory_space<vmem>> -> memref<128xf32, #tpu.memory_space<vmem>>
      %397 = tpu.memref_slice %arg6[%c0_i32_299] : memref<2x!tpu.dma_semaphore, #tpu.memory_space<semaphore_mem>> -> memref<1x!tpu.dma_semaphore, #tpu.memory_space<semaphore_mem>>
      %398 = tpu.memref_squeeze %397 : memref<1x!tpu.dma_semaphore, #tpu.memory_space<semaphore_mem>> -> memref<!tpu.dma_semaphore, #tpu.memory_space<semaphore_mem>>
      tpu.enqueue_dma source(%394 : memref<128xf32, #tpu.memory_space<any>>) target(%396 : memref<128xf32, #tpu.memory_space<vmem>>) target_semaphore(%398 : memref<!tpu.dma_semaphore, #tpu.memory_space<semaphore_mem>>)
      %c41 = arith.constant 41 : index
      %399 = memref.load %arg1[%c41] : memref<64xi32, #tpu.memory_space<smem>>
      %c0_i32_302 = arith.constant 0 : i32
      %c1_i32_303 = arith.constant 1 : i32
      %c5_i32_304 = arith.constant 5 : i32
      %c0_i32_305 = arith.constant 0 : i32
      %c0_i32_306 = arith.constant 0 : i32
      %400 = tpu.memref_slice %arg3[%399, %c0_i32_306] : memref<50x128xf32, #tpu.memory_space<any>> -> memref<1x128xf32, #tpu.memory_space<any>>
      %401 = tpu.memref_squeeze %400 : memref<1x128xf32, #tpu.memory_space<any>> -> memref<128xf32, #tpu.memory_space<any>>
      %c0_i32_307 = arith.constant 0 : i32
      %402 = tpu.memref_slice %arg5[%c0_i32_302, %c1_i32_303, %c5_i32_304, %c0_i32_307] : memref<2x8x8x128xf32, #tpu.memory_space<vmem>> -> memref<1x1x1x128xf32, #tpu.memory_space<vmem>>
      %403 = tpu.memref_squeeze %402 : memref<1x1x1x128xf32, #tpu.memory_space<vmem>> -> memref<128xf32, #tpu.memory_space<vmem>>
      %404 = tpu.memref_slice %arg6[%c0_i32_305] : memref<2x!tpu.dma_semaphore, #tpu.memory_space<semaphore_mem>> -> memref<1x!tpu.dma_semaphore, #tpu.memory_space<semaphore_mem>>
      %405 = tpu.memref_squeeze %404 : memref<1x!tpu.dma_semaphore, #tpu.memory_space<semaphore_mem>> -> memref<!tpu.dma_semaphore, #tpu.memory_space<semaphore_mem>>
      tpu.enqueue_dma source(%401 : memref<128xf32, #tpu.memory_space<any>>) target(%403 : memref<128xf32, #tpu.memory_space<vmem>>) target_semaphore(%405 : memref<!tpu.dma_semaphore, #tpu.memory_space<semaphore_mem>>)
      %c42 = arith.constant 42 : index
      %406 = memref.load %arg1[%c42] : memref<64xi32, #tpu.memory_space<smem>>
      %c0_i32_308 = arith.constant 0 : i32
      %c2_i32_309 = arith.constant 2 : i32
      %c5_i32_310 = arith.constant 5 : i32
      %c0_i32_311 = arith.constant 0 : i32
      %c0_i32_312 = arith.constant 0 : i32
      %407 = tpu.memref_slice %arg3[%406, %c0_i32_312] : memref<50x128xf32, #tpu.memory_space<any>> -> memref<1x128xf32, #tpu.memory_space<any>>
      %408 = tpu.memref_squeeze %407 : memref<1x128xf32, #tpu.memory_space<any>> -> memref<128xf32, #tpu.memory_space<any>>
      %c0_i32_313 = arith.constant 0 : i32
      %409 = tpu.memref_slice %arg5[%c0_i32_308, %c2_i32_309, %c5_i32_310, %c0_i32_313] : memref<2x8x8x128xf32, #tpu.memory_space<vmem>> -> memref<1x1x1x128xf32, #tpu.memory_space<vmem>>
      %410 = tpu.memref_squeeze %409 : memref<1x1x1x128xf32, #tpu.memory_space<vmem>> -> memref<128xf32, #tpu.memory_space<vmem>>
      %411 = tpu.memref_slice %arg6[%c0_i32_311] : memref<2x!tpu.dma_semaphore, #tpu.memory_space<semaphore_mem>> -> memref<1x!tpu.dma_semaphore, #tpu.memory_space<semaphore_mem>>
      %412 = tpu.memref_squeeze %411 : memref<1x!tpu.dma_semaphore, #tpu.memory_space<semaphore_mem>> -> memref<!tpu.dma_semaphore, #tpu.memory_space<semaphore_mem>>
      tpu.enqueue_dma source(%408 : memref<128xf32, #tpu.memory_space<any>>) target(%410 : memref<128xf32, #tpu.memory_space<vmem>>) target_semaphore(%412 : memref<!tpu.dma_semaphore, #tpu.memory_space<semaphore_mem>>)
      %c43 = arith.constant 43 : index
      %413 = memref.load %arg1[%c43] : memref<64xi32, #tpu.memory_space<smem>>
      %c0_i32_314 = arith.constant 0 : i32
      %c3_i32_315 = arith.constant 3 : i32
      %c5_i32_316 = arith.constant 5 : i32
      %c0_i32_317 = arith.constant 0 : i32
      %c0_i32_318 = arith.constant 0 : i32
      %414 = tpu.memref_slice %arg3[%413, %c0_i32_318] : memref<50x128xf32, #tpu.memory_space<any>> -> memref<1x128xf32, #tpu.memory_space<any>>
      %415 = tpu.memref_squeeze %414 : memref<1x128xf32, #tpu.memory_space<any>> -> memref<128xf32, #tpu.memory_space<any>>
      %c0_i32_319 = arith.constant 0 : i32
      %416 = tpu.memref_slice %arg5[%c0_i32_314, %c3_i32_315, %c5_i32_316, %c0_i32_319] : memref<2x8x8x128xf32, #tpu.memory_space<vmem>> -> memref<1x1x1x128xf32, #tpu.memory_space<vmem>>
      %417 = tpu.memref_squeeze %416 : memref<1x1x1x128xf32, #tpu.memory_space<vmem>> -> memref<128xf32, #tpu.memory_space<vmem>>
      %418 = tpu.memref_slice %arg6[%c0_i32_317] : memref<2x!tpu.dma_semaphore, #tpu.memory_space<semaphore_mem>> -> memref<1x!tpu.dma_semaphore, #tpu.memory_space<semaphore_mem>>
      %419 = tpu.memref_squeeze %418 : memref<1x!tpu.dma_semaphore, #tpu.memory_space<semaphore_mem>> -> memref<!tpu.dma_semaphore, #tpu.memory_space<semaphore_mem>>
      tpu.enqueue_dma source(%415 : memref<128xf32, #tpu.memory_space<any>>) target(%417 : memref<128xf32, #tpu.memory_space<vmem>>) target_semaphore(%419 : memref<!tpu.dma_semaphore, #tpu.memory_space<semaphore_mem>>)
      %c44 = arith.constant 44 : index
      %420 = memref.load %arg1[%c44] : memref<64xi32, #tpu.memory_space<smem>>
      %c0_i32_320 = arith.constant 0 : i32
      %c4_i32_321 = arith.constant 4 : i32
      %c5_i32_322 = arith.constant 5 : i32
      %c0_i32_323 = arith.constant 0 : i32
      %c0_i32_324 = arith.constant 0 : i32
      %421 = tpu.memref_slice %arg3[%420, %c0_i32_324] : memref<50x128xf32, #tpu.memory_space<any>> -> memref<1x128xf32, #tpu.memory_space<any>>
      %422 = tpu.memref_squeeze %421 : memref<1x128xf32, #tpu.memory_space<any>> -> memref<128xf32, #tpu.memory_space<any>>
      %c0_i32_325 = arith.constant 0 : i32
      %423 = tpu.memref_slice %arg5[%c0_i32_320, %c4_i32_321, %c5_i32_322, %c0_i32_325] : memref<2x8x8x128xf32, #tpu.memory_space<vmem>> -> memref<1x1x1x128xf32, #tpu.memory_space<vmem>>
      %424 = tpu.memref_squeeze %423 : memref<1x1x1x128xf32, #tpu.memory_space<vmem>> -> memref<128xf32, #tpu.memory_space<vmem>>
      %425 = tpu.memref_slice %arg6[%c0_i32_323] : memref<2x!tpu.dma_semaphore, #tpu.memory_space<semaphore_mem>> -> memref<1x!tpu.dma_semaphore, #tpu.memory_space<semaphore_mem>>
      %426 = tpu.memref_squeeze %425 : memref<1x!tpu.dma_semaphore, #tpu.memory_space<semaphore_mem>> -> memref<!tpu.dma_semaphore, #tpu.memory_space<semaphore_mem>>
      tpu.enqueue_dma source(%422 : memref<128xf32, #tpu.memory_space<any>>) target(%424 : memref<128xf32, #tpu.memory_space<vmem>>) target_semaphore(%426 : memref<!tpu.dma_semaphore, #tpu.memory_space<semaphore_mem>>)
      %c45 = arith.constant 45 : index
      %427 = memref.load %arg1[%c45] : memref<64xi32, #tpu.memory_space<smem>>
      %c0_i32_326 = arith.constant 0 : i32
      %c5_i32_327 = arith.constant 5 : i32
      %c5_i32_328 = arith.constant 5 : i32
      %c0_i32_329 = arith.constant 0 : i32
      %c0_i32_330 = arith.constant 0 : i32
      %428 = tpu.memref_slice %arg3[%427, %c0_i32_330] : memref<50x128xf32, #tpu.memory_space<any>> -> memref<1x128xf32, #tpu.memory_space<any>>
      %429 = tpu.memref_squeeze %428 : memref<1x128xf32, #tpu.memory_space<any>> -> memref<128xf32, #tpu.memory_space<any>>
      %c0_i32_331 = arith.constant 0 : i32
      %430 = tpu.memref_slice %arg5[%c0_i32_326, %c5_i32_327, %c5_i32_328, %c0_i32_331] : memref<2x8x8x128xf32, #tpu.memory_space<vmem>> -> memref<1x1x1x128xf32, #tpu.memory_space<vmem>>
      %431 = tpu.memref_squeeze %430 : memref<1x1x1x128xf32, #tpu.memory_space<vmem>> -> memref<128xf32, #tpu.memory_space<vmem>>
      %432 = tpu.memref_slice %arg6[%c0_i32_329] : memref<2x!tpu.dma_semaphore, #tpu.memory_space<semaphore_mem>> -> memref<1x!tpu.dma_semaphore, #tpu.memory_space<semaphore_mem>>
      %433 = tpu.memref_squeeze %432 : memref<1x!tpu.dma_semaphore, #tpu.memory_space<semaphore_mem>> -> memref<!tpu.dma_semaphore, #tpu.memory_space<semaphore_mem>>
      tpu.enqueue_dma source(%429 : memref<128xf32, #tpu.memory_space<any>>) target(%431 : memref<128xf32, #tpu.memory_space<vmem>>) target_semaphore(%433 : memref<!tpu.dma_semaphore, #tpu.memory_space<semaphore_mem>>)
      %c46 = arith.constant 46 : index
      %434 = memref.load %arg1[%c46] : memref<64xi32, #tpu.memory_space<smem>>
      %c0_i32_332 = arith.constant 0 : i32
      %c6_i32_333 = arith.constant 6 : i32
      %c5_i32_334 = arith.constant 5 : i32
      %c0_i32_335 = arith.constant 0 : i32
      %c0_i32_336 = arith.constant 0 : i32
      %435 = tpu.memref_slice %arg3[%434, %c0_i32_336] : memref<50x128xf32, #tpu.memory_space<any>> -> memref<1x128xf32, #tpu.memory_space<any>>
      %436 = tpu.memref_squeeze %435 : memref<1x128xf32, #tpu.memory_space<any>> -> memref<128xf32, #tpu.memory_space<any>>
      %c0_i32_337 = arith.constant 0 : i32
      %437 = tpu.memref_slice %arg5[%c0_i32_332, %c6_i32_333, %c5_i32_334, %c0_i32_337] : memref<2x8x8x128xf32, #tpu.memory_space<vmem>> -> memref<1x1x1x128xf32, #tpu.memory_space<vmem>>
      %438 = tpu.memref_squeeze %437 : memref<1x1x1x128xf32, #tpu.memory_space<vmem>> -> memref<128xf32, #tpu.memory_space<vmem>>
      %439 = tpu.memref_slice %arg6[%c0_i32_335] : memref<2x!tpu.dma_semaphore, #tpu.memory_space<semaphore_mem>> -> memref<1x!tpu.dma_semaphore, #tpu.memory_space<semaphore_mem>>
      %440 = tpu.memref_squeeze %439 : memref<1x!tpu.dma_semaphore, #tpu.memory_space<semaphore_mem>> -> memref<!tpu.dma_semaphore, #tpu.memory_space<semaphore_mem>>
      tpu.enqueue_dma source(%436 : memref<128xf32, #tpu.memory_space<any>>) target(%438 : memref<128xf32, #tpu.memory_space<vmem>>) target_semaphore(%440 : memref<!tpu.dma_semaphore, #tpu.memory_space<semaphore_mem>>)
      %c47 = arith.constant 47 : index
      %441 = memref.load %arg1[%c47] : memref<64xi32, #tpu.memory_space<smem>>
      %c0_i32_338 = arith.constant 0 : i32
      %c7_i32_339 = arith.constant 7 : i32
      %c5_i32_340 = arith.constant 5 : i32
      %c0_i32_341 = arith.constant 0 : i32
      %c0_i32_342 = arith.constant 0 : i32
      %442 = tpu.memref_slice %arg3[%441, %c0_i32_342] : memref<50x128xf32, #tpu.memory_space<any>> -> memref<1x128xf32, #tpu.memory_space<any>>
      %443 = tpu.memref_squeeze %442 : memref<1x128xf32, #tpu.memory_space<any>> -> memref<128xf32, #tpu.memory_space<any>>
      %c0_i32_343 = arith.constant 0 : i32
      %444 = tpu.memref_slice %arg5[%c0_i32_338, %c7_i32_339, %c5_i32_340, %c0_i32_343] : memref<2x8x8x128xf32, #tpu.memory_space<vmem>> -> memref<1x1x1x128xf32, #tpu.memory_space<vmem>>
      %445 = tpu.memref_squeeze %444 : memref<1x1x1x128xf32, #tpu.memory_space<vmem>> -> memref<128xf32, #tpu.memory_space<vmem>>
      %446 = tpu.memref_slice %arg6[%c0_i32_341] : memref<2x!tpu.dma_semaphore, #tpu.memory_space<semaphore_mem>> -> memref<1x!tpu.dma_semaphore, #tpu.memory_space<semaphore_mem>>
      %447 = tpu.memref_squeeze %446 : memref<1x!tpu.dma_semaphore, #tpu.memory_space<semaphore_mem>> -> memref<!tpu.dma_semaphore, #tpu.memory_space<semaphore_mem>>
      tpu.enqueue_dma source(%443 : memref<128xf32, #tpu.memory_space<any>>) target(%445 : memref<128xf32, #tpu.memory_space<vmem>>) target_semaphore(%447 : memref<!tpu.dma_semaphore, #tpu.memory_space<semaphore_mem>>)
      %c48 = arith.constant 48 : index
      %448 = memref.load %arg1[%c48] : memref<64xi32, #tpu.memory_space<smem>>
      %c0_i32_344 = arith.constant 0 : i32
      %c0_i32_345 = arith.constant 0 : i32
      %c6_i32_346 = arith.constant 6 : i32
      %c0_i32_347 = arith.constant 0 : i32
      %c0_i32_348 = arith.constant 0 : i32
      %449 = tpu.memref_slice %arg3[%448, %c0_i32_348] : memref<50x128xf32, #tpu.memory_space<any>> -> memref<1x128xf32, #tpu.memory_space<any>>
      %450 = tpu.memref_squeeze %449 : memref<1x128xf32, #tpu.memory_space<any>> -> memref<128xf32, #tpu.memory_space<any>>
      %c0_i32_349 = arith.constant 0 : i32
      %451 = tpu.memref_slice %arg5[%c0_i32_344, %c0_i32_345, %c6_i32_346, %c0_i32_349] : memref<2x8x8x128xf32, #tpu.memory_space<vmem>> -> memref<1x1x1x128xf32, #tpu.memory_space<vmem>>
      %452 = tpu.memref_squeeze %451 : memref<1x1x1x128xf32, #tpu.memory_space<vmem>> -> memref<128xf32, #tpu.memory_space<vmem>>
      %453 = tpu.memref_slice %arg6[%c0_i32_347] : memref<2x!tpu.dma_semaphore, #tpu.memory_space<semaphore_mem>> -> memref<1x!tpu.dma_semaphore, #tpu.memory_space<semaphore_mem>>
      %454 = tpu.memref_squeeze %453 : memref<1x!tpu.dma_semaphore, #tpu.memory_space<semaphore_mem>> -> memref<!tpu.dma_semaphore, #tpu.memory_space<semaphore_mem>>
      tpu.enqueue_dma source(%450 : memref<128xf32, #tpu.memory_space<any>>) target(%452 : memref<128xf32, #tpu.memory_space<vmem>>) target_semaphore(%454 : memref<!tpu.dma_semaphore, #tpu.memory_space<semaphore_mem>>)
      %c49 = arith.constant 49 : index
      %455 = memref.load %arg1[%c49] : memref<64xi32, #tpu.memory_space<smem>>
      %c0_i32_350 = arith.constant 0 : i32
      %c1_i32_351 = arith.constant 1 : i32
      %c6_i32_352 = arith.constant 6 : i32
      %c0_i32_353 = arith.constant 0 : i32
      %c0_i32_354 = arith.constant 0 : i32
      %456 = tpu.memref_slice %arg3[%455, %c0_i32_354] : memref<50x128xf32, #tpu.memory_space<any>> -> memref<1x128xf32, #tpu.memory_space<any>>
      %457 = tpu.memref_squeeze %456 : memref<1x128xf32, #tpu.memory_space<any>> -> memref<128xf32, #tpu.memory_space<any>>
      %c0_i32_355 = arith.constant 0 : i32
      %458 = tpu.memref_slice %arg5[%c0_i32_350, %c1_i32_351, %c6_i32_352, %c0_i32_355] : memref<2x8x8x128xf32, #tpu.memory_space<vmem>> -> memref<1x1x1x128xf32, #tpu.memory_space<vmem>>
      %459 = tpu.memref_squeeze %458 : memref<1x1x1x128xf32, #tpu.memory_space<vmem>> -> memref<128xf32, #tpu.memory_space<vmem>>
      %460 = tpu.memref_slice %arg6[%c0_i32_353] : memref<2x!tpu.dma_semaphore, #tpu.memory_space<semaphore_mem>> -> memref<1x!tpu.dma_semaphore, #tpu.memory_space<semaphore_mem>>
      %461 = tpu.memref_squeeze %460 : memref<1x!tpu.dma_semaphore, #tpu.memory_space<semaphore_mem>> -> memref<!tpu.dma_semaphore, #tpu.memory_space<semaphore_mem>>
      tpu.enqueue_dma source(%457 : memref<128xf32, #tpu.memory_space<any>>) target(%459 : memref<128xf32, #tpu.memory_space<vmem>>) target_semaphore(%461 : memref<!tpu.dma_semaphore, #tpu.memory_space<semaphore_mem>>)
      %c50 = arith.constant 50 : index
      %462 = memref.load %arg1[%c50] : memref<64xi32, #tpu.memory_space<smem>>
      %c0_i32_356 = arith.constant 0 : i32
      %c2_i32_357 = arith.constant 2 : i32
      %c6_i32_358 = arith.constant 6 : i32
      %c0_i32_359 = arith.constant 0 : i32
      %c0_i32_360 = arith.constant 0 : i32
      %463 = tpu.memref_slice %arg3[%462, %c0_i32_360] : memref<50x128xf32, #tpu.memory_space<any>> -> memref<1x128xf32, #tpu.memory_space<any>>
      %464 = tpu.memref_squeeze %463 : memref<1x128xf32, #tpu.memory_space<any>> -> memref<128xf32, #tpu.memory_space<any>>
      %c0_i32_361 = arith.constant 0 : i32
      %465 = tpu.memref_slice %arg5[%c0_i32_356, %c2_i32_357, %c6_i32_358, %c0_i32_361] : memref<2x8x8x128xf32, #tpu.memory_space<vmem>> -> memref<1x1x1x128xf32, #tpu.memory_space<vmem>>
      %466 = tpu.memref_squeeze %465 : memref<1x1x1x128xf32, #tpu.memory_space<vmem>> -> memref<128xf32, #tpu.memory_space<vmem>>
      %467 = tpu.memref_slice %arg6[%c0_i32_359] : memref<2x!tpu.dma_semaphore, #tpu.memory_space<semaphore_mem>> -> memref<1x!tpu.dma_semaphore, #tpu.memory_space<semaphore_mem>>
      %468 = tpu.memref_squeeze %467 : memref<1x!tpu.dma_semaphore, #tpu.memory_space<semaphore_mem>> -> memref<!tpu.dma_semaphore, #tpu.memory_space<semaphore_mem>>
      tpu.enqueue_dma source(%464 : memref<128xf32, #tpu.memory_space<any>>) target(%466 : memref<128xf32, #tpu.memory_space<vmem>>) target_semaphore(%468 : memref<!tpu.dma_semaphore, #tpu.memory_space<semaphore_mem>>)
      %c51 = arith.constant 51 : index
      %469 = memref.load %arg1[%c51] : memref<64xi32, #tpu.memory_space<smem>>
      %c0_i32_362 = arith.constant 0 : i32
      %c3_i32_363 = arith.constant 3 : i32
      %c6_i32_364 = arith.constant 6 : i32
      %c0_i32_365 = arith.constant 0 : i32
      %c0_i32_366 = arith.constant 0 : i32
      %470 = tpu.memref_slice %arg3[%469, %c0_i32_366] : memref<50x128xf32, #tpu.memory_space<any>> -> memref<1x128xf32, #tpu.memory_space<any>>
      %471 = tpu.memref_squeeze %470 : memref<1x128xf32, #tpu.memory_space<any>> -> memref<128xf32, #tpu.memory_space<any>>
      %c0_i32_367 = arith.constant 0 : i32
      %472 = tpu.memref_slice %arg5[%c0_i32_362, %c3_i32_363, %c6_i32_364, %c0_i32_367] : memref<2x8x8x128xf32, #tpu.memory_space<vmem>> -> memref<1x1x1x128xf32, #tpu.memory_space<vmem>>
      %473 = tpu.memref_squeeze %472 : memref<1x1x1x128xf32, #tpu.memory_space<vmem>> -> memref<128xf32, #tpu.memory_space<vmem>>
      %474 = tpu.memref_slice %arg6[%c0_i32_365] : memref<2x!tpu.dma_semaphore, #tpu.memory_space<semaphore_mem>> -> memref<1x!tpu.dma_semaphore, #tpu.memory_space<semaphore_mem>>
      %475 = tpu.memref_squeeze %474 : memref<1x!tpu.dma_semaphore, #tpu.memory_space<semaphore_mem>> -> memref<!tpu.dma_semaphore, #tpu.memory_space<semaphore_mem>>
      tpu.enqueue_dma source(%471 : memref<128xf32, #tpu.memory_space<any>>) target(%473 : memref<128xf32, #tpu.memory_space<vmem>>) target_semaphore(%475 : memref<!tpu.dma_semaphore, #tpu.memory_space<semaphore_mem>>)
      %c52 = arith.constant 52 : index
      %476 = memref.load %arg1[%c52] : memref<64xi32, #tpu.memory_space<smem>>
      %c0_i32_368 = arith.constant 0 : i32
      %c4_i32_369 = arith.constant 4 : i32
      %c6_i32_370 = arith.constant 6 : i32
      %c0_i32_371 = arith.constant 0 : i32
      %c0_i32_372 = arith.constant 0 : i32
      %477 = tpu.memref_slice %arg3[%476, %c0_i32_372] : memref<50x128xf32, #tpu.memory_space<any>> -> memref<1x128xf32, #tpu.memory_space<any>>
      %478 = tpu.memref_squeeze %477 : memref<1x128xf32, #tpu.memory_space<any>> -> memref<128xf32, #tpu.memory_space<any>>
      %c0_i32_373 = arith.constant 0 : i32
      %479 = tpu.memref_slice %arg5[%c0_i32_368, %c4_i32_369, %c6_i32_370, %c0_i32_373] : memref<2x8x8x128xf32, #tpu.memory_space<vmem>> -> memref<1x1x1x128xf32, #tpu.memory_space<vmem>>
      %480 = tpu.memref_squeeze %479 : memref<1x1x1x128xf32, #tpu.memory_space<vmem>> -> memref<128xf32, #tpu.memory_space<vmem>>
      %481 = tpu.memref_slice %arg6[%c0_i32_371] : memref<2x!tpu.dma_semaphore, #tpu.memory_space<semaphore_mem>> -> memref<1x!tpu.dma_semaphore, #tpu.memory_space<semaphore_mem>>
      %482 = tpu.memref_squeeze %481 : memref<1x!tpu.dma_semaphore, #tpu.memory_space<semaphore_mem>> -> memref<!tpu.dma_semaphore, #tpu.memory_space<semaphore_mem>>
      tpu.enqueue_dma source(%478 : memref<128xf32, #tpu.memory_space<any>>) target(%480 : memref<128xf32, #tpu.memory_space<vmem>>) target_semaphore(%482 : memref<!tpu.dma_semaphore, #tpu.memory_space<semaphore_mem>>)
      %c53 = arith.constant 53 : index
      %483 = memref.load %arg1[%c53] : memref<64xi32, #tpu.memory_space<smem>>
      %c0_i32_374 = arith.constant 0 : i32
      %c5_i32_375 = arith.constant 5 : i32
      %c6_i32_376 = arith.constant 6 : i32
      %c0_i32_377 = arith.constant 0 : i32
      %c0_i32_378 = arith.constant 0 : i32
      %484 = tpu.memref_slice %arg3[%483, %c0_i32_378] : memref<50x128xf32, #tpu.memory_space<any>> -> memref<1x128xf32, #tpu.memory_space<any>>
      %485 = tpu.memref_squeeze %484 : memref<1x128xf32, #tpu.memory_space<any>> -> memref<128xf32, #tpu.memory_space<any>>
      %c0_i32_379 = arith.constant 0 : i32
      %486 = tpu.memref_slice %arg5[%c0_i32_374, %c5_i32_375, %c6_i32_376, %c0_i32_379] : memref<2x8x8x128xf32, #tpu.memory_space<vmem>> -> memref<1x1x1x128xf32, #tpu.memory_space<vmem>>
      %487 = tpu.memref_squeeze %486 : memref<1x1x1x128xf32, #tpu.memory_space<vmem>> -> memref<128xf32, #tpu.memory_space<vmem>>
      %488 = tpu.memref_slice %arg6[%c0_i32_377] : memref<2x!tpu.dma_semaphore, #tpu.memory_space<semaphore_mem>> -> memref<1x!tpu.dma_semaphore, #tpu.memory_space<semaphore_mem>>
      %489 = tpu.memref_squeeze %488 : memref<1x!tpu.dma_semaphore, #tpu.memory_space<semaphore_mem>> -> memref<!tpu.dma_semaphore, #tpu.memory_space<semaphore_mem>>
      tpu.enqueue_dma source(%485 : memref<128xf32, #tpu.memory_space<any>>) target(%487 : memref<128xf32, #tpu.memory_space<vmem>>) target_semaphore(%489 : memref<!tpu.dma_semaphore, #tpu.memory_space<semaphore_mem>>)
      %c54 = arith.constant 54 : index
      %490 = memref.load %arg1[%c54] : memref<64xi32, #tpu.memory_space<smem>>
      %c0_i32_380 = arith.constant 0 : i32
      %c6_i32_381 = arith.constant 6 : i32
      %c6_i32_382 = arith.constant 6 : i32
      %c0_i32_383 = arith.constant 0 : i32
      %c0_i32_384 = arith.constant 0 : i32
      %491 = tpu.memref_slice %arg3[%490, %c0_i32_384] : memref<50x128xf32, #tpu.memory_space<any>> -> memref<1x128xf32, #tpu.memory_space<any>>
      %492 = tpu.memref_squeeze %491 : memref<1x128xf32, #tpu.memory_space<any>> -> memref<128xf32, #tpu.memory_space<any>>
      %c0_i32_385 = arith.constant 0 : i32
      %493 = tpu.memref_slice %arg5[%c0_i32_380, %c6_i32_381, %c6_i32_382, %c0_i32_385] : memref<2x8x8x128xf32, #tpu.memory_space<vmem>> -> memref<1x1x1x128xf32, #tpu.memory_space<vmem>>
      %494 = tpu.memref_squeeze %493 : memref<1x1x1x128xf32, #tpu.memory_space<vmem>> -> memref<128xf32, #tpu.memory_space<vmem>>
      %495 = tpu.memref_slice %arg6[%c0_i32_383] : memref<2x!tpu.dma_semaphore, #tpu.memory_space<semaphore_mem>> -> memref<1x!tpu.dma_semaphore, #tpu.memory_space<semaphore_mem>>
      %496 = tpu.memref_squeeze %495 : memref<1x!tpu.dma_semaphore, #tpu.memory_space<semaphore_mem>> -> memref<!tpu.dma_semaphore, #tpu.memory_space<semaphore_mem>>
      tpu.enqueue_dma source(%492 : memref<128xf32, #tpu.memory_space<any>>) target(%494 : memref<128xf32, #tpu.memory_space<vmem>>) target_semaphore(%496 : memref<!tpu.dma_semaphore, #tpu.memory_space<semaphore_mem>>)
      %c55 = arith.constant 55 : index
      %497 = memref.load %arg1[%c55] : memref<64xi32, #tpu.memory_space<smem>>
      %c0_i32_386 = arith.constant 0 : i32
      %c7_i32_387 = arith.constant 7 : i32
      %c6_i32_388 = arith.constant 6 : i32
      %c0_i32_389 = arith.constant 0 : i32
      %c0_i32_390 = arith.constant 0 : i32
      %498 = tpu.memref_slice %arg3[%497, %c0_i32_390] : memref<50x128xf32, #tpu.memory_space<any>> -> memref<1x128xf32, #tpu.memory_space<any>>
      %499 = tpu.memref_squeeze %498 : memref<1x128xf32, #tpu.memory_space<any>> -> memref<128xf32, #tpu.memory_space<any>>
      %c0_i32_391 = arith.constant 0 : i32
      %500 = tpu.memref_slice %arg5[%c0_i32_386, %c7_i32_387, %c6_i32_388, %c0_i32_391] : memref<2x8x8x128xf32, #tpu.memory_space<vmem>> -> memref<1x1x1x128xf32, #tpu.memory_space<vmem>>
      %501 = tpu.memref_squeeze %500 : memref<1x1x1x128xf32, #tpu.memory_space<vmem>> -> memref<128xf32, #tpu.memory_space<vmem>>
      %502 = tpu.memref_slice %arg6[%c0_i32_389] : memref<2x!tpu.dma_semaphore, #tpu.memory_space<semaphore_mem>> -> memref<1x!tpu.dma_semaphore, #tpu.memory_space<semaphore_mem>>
      %503 = tpu.memref_squeeze %502 : memref<1x!tpu.dma_semaphore, #tpu.memory_space<semaphore_mem>> -> memref<!tpu.dma_semaphore, #tpu.memory_space<semaphore_mem>>
      tpu.enqueue_dma source(%499 : memref<128xf32, #tpu.memory_space<any>>) target(%501 : memref<128xf32, #tpu.memory_space<vmem>>) target_semaphore(%503 : memref<!tpu.dma_semaphore, #tpu.memory_space<semaphore_mem>>)
      %c56 = arith.constant 56 : index
      %504 = memref.load %arg1[%c56] : memref<64xi32, #tpu.memory_space<smem>>
      %c0_i32_392 = arith.constant 0 : i32
      %c0_i32_393 = arith.constant 0 : i32
      %c7_i32_394 = arith.constant 7 : i32
      %c0_i32_395 = arith.constant 0 : i32
      %c0_i32_396 = arith.constant 0 : i32
      %505 = tpu.memref_slice %arg3[%504, %c0_i32_396] : memref<50x128xf32, #tpu.memory_space<any>> -> memref<1x128xf32, #tpu.memory_space<any>>
      %506 = tpu.memref_squeeze %505 : memref<1x128xf32, #tpu.memory_space<any>> -> memref<128xf32, #tpu.memory_space<any>>
      %c0_i32_397 = arith.constant 0 : i32
      %507 = tpu.memref_slice %arg5[%c0_i32_392, %c0_i32_393, %c7_i32_394, %c0_i32_397] : memref<2x8x8x128xf32, #tpu.memory_space<vmem>> -> memref<1x1x1x128xf32, #tpu.memory_space<vmem>>
      %508 = tpu.memref_squeeze %507 : memref<1x1x1x128xf32, #tpu.memory_space<vmem>> -> memref<128xf32, #tpu.memory_space<vmem>>
      %509 = tpu.memref_slice %arg6[%c0_i32_395] : memref<2x!tpu.dma_semaphore, #tpu.memory_space<semaphore_mem>> -> memref<1x!tpu.dma_semaphore, #tpu.memory_space<semaphore_mem>>
      %510 = tpu.memref_squeeze %509 : memref<1x!tpu.dma_semaphore, #tpu.memory_space<semaphore_mem>> -> memref<!tpu.dma_semaphore, #tpu.memory_space<semaphore_mem>>
      tpu.enqueue_dma source(%506 : memref<128xf32, #tpu.memory_space<any>>) target(%508 : memref<128xf32, #tpu.memory_space<vmem>>) target_semaphore(%510 : memref<!tpu.dma_semaphore, #tpu.memory_space<semaphore_mem>>)
      %c57 = arith.constant 57 : index
      %511 = memref.load %arg1[%c57] : memref<64xi32, #tpu.memory_space<smem>>
      %c0_i32_398 = arith.constant 0 : i32
      %c1_i32_399 = arith.constant 1 : i32
      %c7_i32_400 = arith.constant 7 : i32
      %c0_i32_401 = arith.constant 0 : i32
      %c0_i32_402 = arith.constant 0 : i32
      %512 = tpu.memref_slice %arg3[%511, %c0_i32_402] : memref<50x128xf32, #tpu.memory_space<any>> -> memref<1x128xf32, #tpu.memory_space<any>>
      %513 = tpu.memref_squeeze %512 : memref<1x128xf32, #tpu.memory_space<any>> -> memref<128xf32, #tpu.memory_space<any>>
      %c0_i32_403 = arith.constant 0 : i32
      %514 = tpu.memref_slice %arg5[%c0_i32_398, %c1_i32_399, %c7_i32_400, %c0_i32_403] : memref<2x8x8x128xf32, #tpu.memory_space<vmem>> -> memref<1x1x1x128xf32, #tpu.memory_space<vmem>>
      %515 = tpu.memref_squeeze %514 : memref<1x1x1x128xf32, #tpu.memory_space<vmem>> -> memref<128xf32, #tpu.memory_space<vmem>>
      %516 = tpu.memref_slice %arg6[%c0_i32_401] : memref<2x!tpu.dma_semaphore, #tpu.memory_space<semaphore_mem>> -> memref<1x!tpu.dma_semaphore, #tpu.memory_space<semaphore_mem>>
      %517 = tpu.memref_squeeze %516 : memref<1x!tpu.dma_semaphore, #tpu.memory_space<semaphore_mem>> -> memref<!tpu.dma_semaphore, #tpu.memory_space<semaphore_mem>>
      tpu.enqueue_dma source(%513 : memref<128xf32, #tpu.memory_space<any>>) target(%515 : memref<128xf32, #tpu.memory_space<vmem>>) target_semaphore(%517 : memref<!tpu.dma_semaphore, #tpu.memory_space<semaphore_mem>>)
      %c58 = arith.constant 58 : index
      %518 = memref.load %arg1[%c58] : memref<64xi32, #tpu.memory_space<smem>>
      %c0_i32_404 = arith.constant 0 : i32
      %c2_i32_405 = arith.constant 2 : i32
      %c7_i32_406 = arith.constant 7 : i32
      %c0_i32_407 = arith.constant 0 : i32
      %c0_i32_408 = arith.constant 0 : i32
      %519 = tpu.memref_slice %arg3[%518, %c0_i32_408] : memref<50x128xf32, #tpu.memory_space<any>> -> memref<1x128xf32, #tpu.memory_space<any>>
      %520 = tpu.memref_squeeze %519 : memref<1x128xf32, #tpu.memory_space<any>> -> memref<128xf32, #tpu.memory_space<any>>
      %c0_i32_409 = arith.constant 0 : i32
      %521 = tpu.memref_slice %arg5[%c0_i32_404, %c2_i32_405, %c7_i32_406, %c0_i32_409] : memref<2x8x8x128xf32, #tpu.memory_space<vmem>> -> memref<1x1x1x128xf32, #tpu.memory_space<vmem>>
      %522 = tpu.memref_squeeze %521 : memref<1x1x1x128xf32, #tpu.memory_space<vmem>> -> memref<128xf32, #tpu.memory_space<vmem>>
      %523 = tpu.memref_slice %arg6[%c0_i32_407] : memref<2x!tpu.dma_semaphore, #tpu.memory_space<semaphore_mem>> -> memref<1x!tpu.dma_semaphore, #tpu.memory_space<semaphore_mem>>
      %524 = tpu.memref_squeeze %523 : memref<1x!tpu.dma_semaphore, #tpu.memory_space<semaphore_mem>> -> memref<!tpu.dma_semaphore, #tpu.memory_space<semaphore_mem>>
      tpu.enqueue_dma source(%520 : memref<128xf32, #tpu.memory_space<any>>) target(%522 : memref<128xf32, #tpu.memory_space<vmem>>) target_semaphore(%524 : memref<!tpu.dma_semaphore, #tpu.memory_space<semaphore_mem>>)
      %c59 = arith.constant 59 : index
      %525 = memref.load %arg1[%c59] : memref<64xi32, #tpu.memory_space<smem>>
      %c0_i32_410 = arith.constant 0 : i32
      %c3_i32_411 = arith.constant 3 : i32
      %c7_i32_412 = arith.constant 7 : i32
      %c0_i32_413 = arith.constant 0 : i32
      %c0_i32_414 = arith.constant 0 : i32
      %526 = tpu.memref_slice %arg3[%525, %c0_i32_414] : memref<50x128xf32, #tpu.memory_space<any>> -> memref<1x128xf32, #tpu.memory_space<any>>
      %527 = tpu.memref_squeeze %526 : memref<1x128xf32, #tpu.memory_space<any>> -> memref<128xf32, #tpu.memory_space<any>>
      %c0_i32_415 = arith.constant 0 : i32
      %528 = tpu.memref_slice %arg5[%c0_i32_410, %c3_i32_411, %c7_i32_412, %c0_i32_415] : memref<2x8x8x128xf32, #tpu.memory_space<vmem>> -> memref<1x1x1x128xf32, #tpu.memory_space<vmem>>
      %529 = tpu.memref_squeeze %528 : memref<1x1x1x128xf32, #tpu.memory_space<vmem>> -> memref<128xf32, #tpu.memory_space<vmem>>
      %530 = tpu.memref_slice %arg6[%c0_i32_413] : memref<2x!tpu.dma_semaphore, #tpu.memory_space<semaphore_mem>> -> memref<1x!tpu.dma_semaphore, #tpu.memory_space<semaphore_mem>>
      %531 = tpu.memref_squeeze %530 : memref<1x!tpu.dma_semaphore, #tpu.memory_space<semaphore_mem>> -> memref<!tpu.dma_semaphore, #tpu.memory_space<semaphore_mem>>
      tpu.enqueue_dma source(%527 : memref<128xf32, #tpu.memory_space<any>>) target(%529 : memref<128xf32, #tpu.memory_space<vmem>>) target_semaphore(%531 : memref<!tpu.dma_semaphore, #tpu.memory_space<semaphore_mem>>)
      %c60 = arith.constant 60 : index
      %532 = memref.load %arg1[%c60] : memref<64xi32, #tpu.memory_space<smem>>
      %c0_i32_416 = arith.constant 0 : i32
      %c4_i32_417 = arith.constant 4 : i32
      %c7_i32_418 = arith.constant 7 : i32
      %c0_i32_419 = arith.constant 0 : i32
      %c0_i32_420 = arith.constant 0 : i32
      %533 = tpu.memref_slice %arg3[%532, %c0_i32_420] : memref<50x128xf32, #tpu.memory_space<any>> -> memref<1x128xf32, #tpu.memory_space<any>>
      %534 = tpu.memref_squeeze %533 : memref<1x128xf32, #tpu.memory_space<any>> -> memref<128xf32, #tpu.memory_space<any>>
      %c0_i32_421 = arith.constant 0 : i32
      %535 = tpu.memref_slice %arg5[%c0_i32_416, %c4_i32_417, %c7_i32_418, %c0_i32_421] : memref<2x8x8x128xf32, #tpu.memory_space<vmem>> -> memref<1x1x1x128xf32, #tpu.memory_space<vmem>>
      %536 = tpu.memref_squeeze %535 : memref<1x1x1x128xf32, #tpu.memory_space<vmem>> -> memref<128xf32, #tpu.memory_space<vmem>>
      %537 = tpu.memref_slice %arg6[%c0_i32_419] : memref<2x!tpu.dma_semaphore, #tpu.memory_space<semaphore_mem>> -> memref<1x!tpu.dma_semaphore, #tpu.memory_space<semaphore_mem>>
      %538 = tpu.memref_squeeze %537 : memref<1x!tpu.dma_semaphore, #tpu.memory_space<semaphore_mem>> -> memref<!tpu.dma_semaphore, #tpu.memory_space<semaphore_mem>>
      tpu.enqueue_dma source(%534 : memref<128xf32, #tpu.memory_space<any>>) target(%536 : memref<128xf32, #tpu.memory_space<vmem>>) target_semaphore(%538 : memref<!tpu.dma_semaphore, #tpu.memory_space<semaphore_mem>>)
      %c61 = arith.constant 61 : index
      %539 = memref.load %arg1[%c61] : memref<64xi32, #tpu.memory_space<smem>>
      %c0_i32_422 = arith.constant 0 : i32
      %c5_i32_423 = arith.constant 5 : i32
      %c7_i32_424 = arith.constant 7 : i32
      %c0_i32_425 = arith.constant 0 : i32
      %c0_i32_426 = arith.constant 0 : i32
      %540 = tpu.memref_slice %arg3[%539, %c0_i32_426] : memref<50x128xf32, #tpu.memory_space<any>> -> memref<1x128xf32, #tpu.memory_space<any>>
      %541 = tpu.memref_squeeze %540 : memref<1x128xf32, #tpu.memory_space<any>> -> memref<128xf32, #tpu.memory_space<any>>
      %c0_i32_427 = arith.constant 0 : i32
      %542 = tpu.memref_slice %arg5[%c0_i32_422, %c5_i32_423, %c7_i32_424, %c0_i32_427] : memref<2x8x8x128xf32, #tpu.memory_space<vmem>> -> memref<1x1x1x128xf32, #tpu.memory_space<vmem>>
      %543 = tpu.memref_squeeze %542 : memref<1x1x1x128xf32, #tpu.memory_space<vmem>> -> memref<128xf32, #tpu.memory_space<vmem>>
      %544 = tpu.memref_slice %arg6[%c0_i32_425] : memref<2x!tpu.dma_semaphore, #tpu.memory_space<semaphore_mem>> -> memref<1x!tpu.dma_semaphore, #tpu.memory_space<semaphore_mem>>
      %545 = tpu.memref_squeeze %544 : memref<1x!tpu.dma_semaphore, #tpu.memory_space<semaphore_mem>> -> memref<!tpu.dma_semaphore, #tpu.memory_space<semaphore_mem>>
      tpu.enqueue_dma source(%541 : memref<128xf32, #tpu.memory_space<any>>) target(%543 : memref<128xf32, #tpu.memory_space<vmem>>) target_semaphore(%545 : memref<!tpu.dma_semaphore, #tpu.memory_space<semaphore_mem>>)
      %c62 = arith.constant 62 : index
      %546 = memref.load %arg1[%c62] : memref<64xi32, #tpu.memory_space<smem>>
      %c0_i32_428 = arith.constant 0 : i32
      %c6_i32_429 = arith.constant 6 : i32
      %c7_i32_430 = arith.constant 7 : i32
      %c0_i32_431 = arith.constant 0 : i32
      %c0_i32_432 = arith.constant 0 : i32
      %547 = tpu.memref_slice %arg3[%546, %c0_i32_432] : memref<50x128xf32, #tpu.memory_space<any>> -> memref<1x128xf32, #tpu.memory_space<any>>
      %548 = tpu.memref_squeeze %547 : memref<1x128xf32, #tpu.memory_space<any>> -> memref<128xf32, #tpu.memory_space<any>>
      %c0_i32_433 = arith.constant 0 : i32
      %549 = tpu.memref_slice %arg5[%c0_i32_428, %c6_i32_429, %c7_i32_430, %c0_i32_433] : memref<2x8x8x128xf32, #tpu.memory_space<vmem>> -> memref<1x1x1x128xf32, #tpu.memory_space<vmem>>
      %550 = tpu.memref_squeeze %549 : memref<1x1x1x128xf32, #tpu.memory_space<vmem>> -> memref<128xf32, #tpu.memory_space<vmem>>
      %551 = tpu.memref_slice %arg6[%c0_i32_431] : memref<2x!tpu.dma_semaphore, #tpu.memory_space<semaphore_mem>> -> memref<1x!tpu.dma_semaphore, #tpu.memory_space<semaphore_mem>>
      %552 = tpu.memref_squeeze %551 : memref<1x!tpu.dma_semaphore, #tpu.memory_space<semaphore_mem>> -> memref<!tpu.dma_semaphore, #tpu.memory_space<semaphore_mem>>
      tpu.enqueue_dma source(%548 : memref<128xf32, #tpu.memory_space<any>>) target(%550 : memref<128xf32, #tpu.memory_space<vmem>>) target_semaphore(%552 : memref<!tpu.dma_semaphore, #tpu.memory_space<semaphore_mem>>)
      %c63 = arith.constant 63 : index
      %553 = memref.load %arg1[%c63] : memref<64xi32, #tpu.memory_space<smem>>
      %c0_i32_434 = arith.constant 0 : i32
      %c7_i32_435 = arith.constant 7 : i32
      %c7_i32_436 = arith.constant 7 : i32
      %c0_i32_437 = arith.constant 0 : i32
      %c0_i32_438 = arith.constant 0 : i32
      %554 = tpu.memref_slice %arg3[%553, %c0_i32_438] : memref<50x128xf32, #tpu.memory_space<any>> -> memref<1x128xf32, #tpu.memory_space<any>>
      %555 = tpu.memref_squeeze %554 : memref<1x128xf32, #tpu.memory_space<any>> -> memref<128xf32, #tpu.memory_space<any>>
      %c0_i32_439 = arith.constant 0 : i32
      %556 = tpu.memref_slice %arg5[%c0_i32_434, %c7_i32_435, %c7_i32_436, %c0_i32_439] : memref<2x8x8x128xf32, #tpu.memory_space<vmem>> -> memref<1x1x1x128xf32, #tpu.memory_space<vmem>>
      %557 = tpu.memref_squeeze %556 : memref<1x1x1x128xf32, #tpu.memory_space<vmem>> -> memref<128xf32, #tpu.memory_space<vmem>>
      %558 = tpu.memref_slice %arg6[%c0_i32_437] : memref<2x!tpu.dma_semaphore, #tpu.memory_space<semaphore_mem>> -> memref<1x!tpu.dma_semaphore, #tpu.memory_space<semaphore_mem>>
      %559 = tpu.memref_squeeze %558 : memref<1x!tpu.dma_semaphore, #tpu.memory_space<semaphore_mem>> -> memref<!tpu.dma_semaphore, #tpu.memory_space<semaphore_mem>>
      tpu.enqueue_dma source(%555 : memref<128xf32, #tpu.memory_space<any>>) target(%557 : memref<128xf32, #tpu.memory_space<vmem>>) target_semaphore(%559 : memref<!tpu.dma_semaphore, #tpu.memory_space<semaphore_mem>>)
    } else {
    }
    %c1_i32_5 = arith.constant 1 : i32
    %13 = arith.addi %arg0, %c1_i32_5 : i32
    %c1_i32_6 = arith.constant 1 : i32
    %14 = arith.cmpi slt, %13, %c1_i32_6 : i32
    %15 = arith.extui %14 : i1 to i32
    %c0_i32_7 = arith.constant 0 : i32
    %16 = arith.cmpi ne, %15, %c0_i32_7 : i32
    scf.if %16 {
      %c1_i32_48 = arith.constant 1 : i32
      %112 = arith.addi %arg0, %c1_i32_48 : i32
      %c1_i32_49 = arith.constant 1 : i32
      %113 = arith.addi %arg0, %c1_i32_49 : i32
      %c2_i32_50 = arith.constant 2 : i32
      %c0_i32_51 = arith.constant 0 : i32
      %114 = arith.cmpi eq, %c2_i32_50, %c0_i32_51 : i32
      %c1_i32_52 = arith.constant 1 : i32
      %115 = arith.select %114, %c1_i32_52, %c2_i32_50 : i32
      %116 = arith.remsi %113, %115 : i32
      %c0_i32_53 = arith.constant 0 : i32
      %117 = arith.cmpi ne, %116, %c0_i32_53 : i32
      %c0_i32_54 = arith.constant 0 : i32
      %118 = arith.cmpi slt, %116, %c0_i32_54 : i32
      %c0_i32_55 = arith.constant 0 : i32
      %119 = arith.cmpi slt, %115, %c0_i32_55 : i32
      %120 = arith.xori %118, %119 : i1
      %121 = arith.andi %120, %117 : i1
      %122 = arith.addi %116, %115 : i32
      %123 = arith.select %121, %122, %116 : i32
      %c64_i32 = arith.constant 64 : i32
      %124 = arith.muli %112, %c64_i32 : i32
      %c0_i32_56 = arith.constant 0 : i32
      %125 = arith.addi %124, %c0_i32_56 : i32
      %c0_i32_57 = arith.constant 0 : i32
      %126 = arith.addi %125, %c0_i32_57 : i32
      %127 = arith.index_cast %126 : i32 to index
      %128 = memref.load %arg1[%127] : memref<64xi32, #tpu.memory_space<smem>>
      %c0_i32_58 = arith.constant 0 : i32
      %c0_i32_59 = arith.constant 0 : i32
      %c0_i32_60 = arith.constant 0 : i32
      %129 = tpu.memref_slice %arg3[%128, %c0_i32_60] : memref<50x128xf32, #tpu.memory_space<any>> -> memref<1x128xf32, #tpu.memory_space<any>>
      %130 = tpu.memref_squeeze %129 : memref<1x128xf32, #tpu.memory_space<any>> -> memref<128xf32, #tpu.memory_space<any>>
      %c0_i32_61 = arith.constant 0 : i32
      %131 = tpu.memref_slice %arg5[%123, %c0_i32_58, %c0_i32_59, %c0_i32_61] : memref<2x8x8x128xf32, #tpu.memory_space<vmem>> -> memref<1x1x1x128xf32, #tpu.memory_space<vmem>>
      %132 = tpu.memref_squeeze %131 : memref<1x1x1x128xf32, #tpu.memory_space<vmem>> -> memref<128xf32, #tpu.memory_space<vmem>>
      %133 = tpu.memref_slice %arg6[%123] : memref<2x!tpu.dma_semaphore, #tpu.memory_space<semaphore_mem>> -> memref<1x!tpu.dma_semaphore, #tpu.memory_space<semaphore_mem>>
      %134 = tpu.memref_squeeze %133 : memref<1x!tpu.dma_semaphore, #tpu.memory_space<semaphore_mem>> -> memref<!tpu.dma_semaphore, #tpu.memory_space<semaphore_mem>>
      tpu.enqueue_dma source(%130 : memref<128xf32, #tpu.memory_space<any>>) target(%132 : memref<128xf32, #tpu.memory_space<vmem>>) target_semaphore(%134 : memref<!tpu.dma_semaphore, #tpu.memory_space<semaphore_mem>>)
      %c1_i32_62 = arith.constant 1 : i32
      %135 = arith.addi %125, %c1_i32_62 : i32
      %136 = arith.index_cast %135 : i32 to index
      %137 = memref.load %arg1[%136] : memref<64xi32, #tpu.memory_space<smem>>
      %c1_i32_63 = arith.constant 1 : i32
      %c0_i32_64 = arith.constant 0 : i32
      %c0_i32_65 = arith.constant 0 : i32
      %138 = tpu.memref_slice %arg3[%137, %c0_i32_65] : memref<50x128xf32, #tpu.memory_space<any>> -> memref<1x128xf32, #tpu.memory_space<any>>
      %139 = tpu.memref_squeeze %138 : memref<1x128xf32, #tpu.memory_space<any>> -> memref<128xf32, #tpu.memory_space<any>>
      %c0_i32_66 = arith.constant 0 : i32
      %140 = tpu.memref_slice %arg5[%123, %c1_i32_63, %c0_i32_64, %c0_i32_66] : memref<2x8x8x128xf32, #tpu.memory_space<vmem>> -> memref<1x1x1x128xf32, #tpu.memory_space<vmem>>
      %141 = tpu.memref_squeeze %140 : memref<1x1x1x128xf32, #tpu.memory_space<vmem>> -> memref<128xf32, #tpu.memory_space<vmem>>
      %142 = tpu.memref_slice %arg6[%123] : memref<2x!tpu.dma_semaphore, #tpu.memory_space<semaphore_mem>> -> memref<1x!tpu.dma_semaphore, #tpu.memory_space<semaphore_mem>>
      %143 = tpu.memref_squeeze %142 : memref<1x!tpu.dma_semaphore, #tpu.memory_space<semaphore_mem>> -> memref<!tpu.dma_semaphore, #tpu.memory_space<semaphore_mem>>
      tpu.enqueue_dma source(%139 : memref<128xf32, #tpu.memory_space<any>>) target(%141 : memref<128xf32, #tpu.memory_space<vmem>>) target_semaphore(%143 : memref<!tpu.dma_semaphore, #tpu.memory_space<semaphore_mem>>)
      %c2_i32_67 = arith.constant 2 : i32
      %144 = arith.addi %125, %c2_i32_67 : i32
      %145 = arith.index_cast %144 : i32 to index
      %146 = memref.load %arg1[%145] : memref<64xi32, #tpu.memory_space<smem>>
      %c2_i32_68 = arith.constant 2 : i32
      %c0_i32_69 = arith.constant 0 : i32
      %c0_i32_70 = arith.constant 0 : i32
      %147 = tpu.memref_slice %arg3[%146, %c0_i32_70] : memref<50x128xf32, #tpu.memory_space<any>> -> memref<1x128xf32, #tpu.memory_space<any>>
      %148 = tpu.memref_squeeze %147 : memref<1x128xf32, #tpu.memory_space<any>> -> memref<128xf32, #tpu.memory_space<any>>
      %c0_i32_71 = arith.constant 0 : i32
      %149 = tpu.memref_slice %arg5[%123, %c2_i32_68, %c0_i32_69, %c0_i32_71] : memref<2x8x8x128xf32, #tpu.memory_space<vmem>> -> memref<1x1x1x128xf32, #tpu.memory_space<vmem>>
      %150 = tpu.memref_squeeze %149 : memref<1x1x1x128xf32, #tpu.memory_space<vmem>> -> memref<128xf32, #tpu.memory_space<vmem>>
      %151 = tpu.memref_slice %arg6[%123] : memref<2x!tpu.dma_semaphore, #tpu.memory_space<semaphore_mem>> -> memref<1x!tpu.dma_semaphore, #tpu.memory_space<semaphore_mem>>
      %152 = tpu.memref_squeeze %151 : memref<1x!tpu.dma_semaphore, #tpu.memory_space<semaphore_mem>> -> memref<!tpu.dma_semaphore, #tpu.memory_space<semaphore_mem>>
      tpu.enqueue_dma source(%148 : memref<128xf32, #tpu.memory_space<any>>) target(%150 : memref<128xf32, #tpu.memory_space<vmem>>) target_semaphore(%152 : memref<!tpu.dma_semaphore, #tpu.memory_space<semaphore_mem>>)
      %c3_i32_72 = arith.constant 3 : i32
      %153 = arith.addi %125, %c3_i32_72 : i32
      %154 = arith.index_cast %153 : i32 to index
      %155 = memref.load %arg1[%154] : memref<64xi32, #tpu.memory_space<smem>>
      %c3_i32_73 = arith.constant 3 : i32
      %c0_i32_74 = arith.constant 0 : i32
      %c0_i32_75 = arith.constant 0 : i32
      %156 = tpu.memref_slice %arg3[%155, %c0_i32_75] : memref<50x128xf32, #tpu.memory_space<any>> -> memref<1x128xf32, #tpu.memory_space<any>>
      %157 = tpu.memref_squeeze %156 : memref<1x128xf32, #tpu.memory_space<any>> -> memref<128xf32, #tpu.memory_space<any>>
      %c0_i32_76 = arith.constant 0 : i32
      %158 = tpu.memref_slice %arg5[%123, %c3_i32_73, %c0_i32_74, %c0_i32_76] : memref<2x8x8x128xf32, #tpu.memory_space<vmem>> -> memref<1x1x1x128xf32, #tpu.memory_space<vmem>>
      %159 = tpu.memref_squeeze %158 : memref<1x1x1x128xf32, #tpu.memory_space<vmem>> -> memref<128xf32, #tpu.memory_space<vmem>>
      %160 = tpu.memref_slice %arg6[%123] : memref<2x!tpu.dma_semaphore, #tpu.memory_space<semaphore_mem>> -> memref<1x!tpu.dma_semaphore, #tpu.memory_space<semaphore_mem>>
      %161 = tpu.memref_squeeze %160 : memref<1x!tpu.dma_semaphore, #tpu.memory_space<semaphore_mem>> -> memref<!tpu.dma_semaphore, #tpu.memory_space<semaphore_mem>>
      tpu.enqueue_dma source(%157 : memref<128xf32, #tpu.memory_space<any>>) target(%159 : memref<128xf32, #tpu.memory_space<vmem>>) target_semaphore(%161 : memref<!tpu.dma_semaphore, #tpu.memory_space<semaphore_mem>>)
      %c4_i32_77 = arith.constant 4 : i32
      %162 = arith.addi %125, %c4_i32_77 : i32
      %163 = arith.index_cast %162 : i32 to index
      %164 = memref.load %arg1[%163] : memref<64xi32, #tpu.memory_space<smem>>
      %c4_i32_78 = arith.constant 4 : i32
      %c0_i32_79 = arith.constant 0 : i32
      %c0_i32_80 = arith.constant 0 : i32
      %165 = tpu.memref_slice %arg3[%164, %c0_i32_80] : memref<50x128xf32, #tpu.memory_space<any>> -> memref<1x128xf32, #tpu.memory_space<any>>
      %166 = tpu.memref_squeeze %165 : memref<1x128xf32, #tpu.memory_space<any>> -> memref<128xf32, #tpu.memory_space<any>>
      %c0_i32_81 = arith.constant 0 : i32
      %167 = tpu.memref_slice %arg5[%123, %c4_i32_78, %c0_i32_79, %c0_i32_81] : memref<2x8x8x128xf32, #tpu.memory_space<vmem>> -> memref<1x1x1x128xf32, #tpu.memory_space<vmem>>
      %168 = tpu.memref_squeeze %167 : memref<1x1x1x128xf32, #tpu.memory_space<vmem>> -> memref<128xf32, #tpu.memory_space<vmem>>
      %169 = tpu.memref_slice %arg6[%123] : memref<2x!tpu.dma_semaphore, #tpu.memory_space<semaphore_mem>> -> memref<1x!tpu.dma_semaphore, #tpu.memory_space<semaphore_mem>>
      %170 = tpu.memref_squeeze %169 : memref<1x!tpu.dma_semaphore, #tpu.memory_space<semaphore_mem>> -> memref<!tpu.dma_semaphore, #tpu.memory_space<semaphore_mem>>
      tpu.enqueue_dma source(%166 : memref<128xf32, #tpu.memory_space<any>>) target(%168 : memref<128xf32, #tpu.memory_space<vmem>>) target_semaphore(%170 : memref<!tpu.dma_semaphore, #tpu.memory_space<semaphore_mem>>)
      %c5_i32_82 = arith.constant 5 : i32
      %171 = arith.addi %125, %c5_i32_82 : i32
      %172 = arith.index_cast %171 : i32 to index
      %173 = memref.load %arg1[%172] : memref<64xi32, #tpu.memory_space<smem>>
      %c5_i32_83 = arith.constant 5 : i32
      %c0_i32_84 = arith.constant 0 : i32
      %c0_i32_85 = arith.constant 0 : i32
      %174 = tpu.memref_slice %arg3[%173, %c0_i32_85] : memref<50x128xf32, #tpu.memory_space<any>> -> memref<1x128xf32, #tpu.memory_space<any>>
      %175 = tpu.memref_squeeze %174 : memref<1x128xf32, #tpu.memory_space<any>> -> memref<128xf32, #tpu.memory_space<any>>
      %c0_i32_86 = arith.constant 0 : i32
      %176 = tpu.memref_slice %arg5[%123, %c5_i32_83, %c0_i32_84, %c0_i32_86] : memref<2x8x8x128xf32, #tpu.memory_space<vmem>> -> memref<1x1x1x128xf32, #tpu.memory_space<vmem>>
      %177 = tpu.memref_squeeze %176 : memref<1x1x1x128xf32, #tpu.memory_space<vmem>> -> memref<128xf32, #tpu.memory_space<vmem>>
      %178 = tpu.memref_slice %arg6[%123] : memref<2x!tpu.dma_semaphore, #tpu.memory_space<semaphore_mem>> -> memref<1x!tpu.dma_semaphore, #tpu.memory_space<semaphore_mem>>
      %179 = tpu.memref_squeeze %178 : memref<1x!tpu.dma_semaphore, #tpu.memory_space<semaphore_mem>> -> memref<!tpu.dma_semaphore, #tpu.memory_space<semaphore_mem>>
      tpu.enqueue_dma source(%175 : memref<128xf32, #tpu.memory_space<any>>) target(%177 : memref<128xf32, #tpu.memory_space<vmem>>) target_semaphore(%179 : memref<!tpu.dma_semaphore, #tpu.memory_space<semaphore_mem>>)
      %c6_i32_87 = arith.constant 6 : i32
      %180 = arith.addi %125, %c6_i32_87 : i32
      %181 = arith.index_cast %180 : i32 to index
      %182 = memref.load %arg1[%181] : memref<64xi32, #tpu.memory_space<smem>>
      %c6_i32_88 = arith.constant 6 : i32
      %c0_i32_89 = arith.constant 0 : i32
      %c0_i32_90 = arith.constant 0 : i32
      %183 = tpu.memref_slice %arg3[%182, %c0_i32_90] : memref<50x128xf32, #tpu.memory_space<any>> -> memref<1x128xf32, #tpu.memory_space<any>>
      %184 = tpu.memref_squeeze %183 : memref<1x128xf32, #tpu.memory_space<any>> -> memref<128xf32, #tpu.memory_space<any>>
      %c0_i32_91 = arith.constant 0 : i32
      %185 = tpu.memref_slice %arg5[%123, %c6_i32_88, %c0_i32_89, %c0_i32_91] : memref<2x8x8x128xf32, #tpu.memory_space<vmem>> -> memref<1x1x1x128xf32, #tpu.memory_space<vmem>>
      %186 = tpu.memref_squeeze %185 : memref<1x1x1x128xf32, #tpu.memory_space<vmem>> -> memref<128xf32, #tpu.memory_space<vmem>>
      %187 = tpu.memref_slice %arg6[%123] : memref<2x!tpu.dma_semaphore, #tpu.memory_space<semaphore_mem>> -> memref<1x!tpu.dma_semaphore, #tpu.memory_space<semaphore_mem>>
      %188 = tpu.memref_squeeze %187 : memref<1x!tpu.dma_semaphore, #tpu.memory_space<semaphore_mem>> -> memref<!tpu.dma_semaphore, #tpu.memory_space<semaphore_mem>>
      tpu.enqueue_dma source(%184 : memref<128xf32, #tpu.memory_space<any>>) target(%186 : memref<128xf32, #tpu.memory_space<vmem>>) target_semaphore(%188 : memref<!tpu.dma_semaphore, #tpu.memory_space<semaphore_mem>>)
      %c7_i32_92 = arith.constant 7 : i32
      %189 = arith.addi %125, %c7_i32_92 : i32
      %190 = arith.index_cast %189 : i32 to index
      %191 = memref.load %arg1[%190] : memref<64xi32, #tpu.memory_space<smem>>
      %c7_i32_93 = arith.constant 7 : i32
      %c0_i32_94 = arith.constant 0 : i32
      %c0_i32_95 = arith.constant 0 : i32
      %192 = tpu.memref_slice %arg3[%191, %c0_i32_95] : memref<50x128xf32, #tpu.memory_space<any>> -> memref<1x128xf32, #tpu.memory_space<any>>
      %193 = tpu.memref_squeeze %192 : memref<1x128xf32, #tpu.memory_space<any>> -> memref<128xf32, #tpu.memory_space<any>>
      %c0_i32_96 = arith.constant 0 : i32
      %194 = tpu.memref_slice %arg5[%123, %c7_i32_93, %c0_i32_94, %c0_i32_96] : memref<2x8x8x128xf32, #tpu.memory_space<vmem>> -> memref<1x1x1x128xf32, #tpu.memory_space<vmem>>
      %195 = tpu.memref_squeeze %194 : memref<1x1x1x128xf32, #tpu.memory_space<vmem>> -> memref<128xf32, #tpu.memory_space<vmem>>
      %196 = tpu.memref_slice %arg6[%123] : memref<2x!tpu.dma_semaphore, #tpu.memory_space<semaphore_mem>> -> memref<1x!tpu.dma_semaphore, #tpu.memory_space<semaphore_mem>>
      %197 = tpu.memref_squeeze %196 : memref<1x!tpu.dma_semaphore, #tpu.memory_space<semaphore_mem>> -> memref<!tpu.dma_semaphore, #tpu.memory_space<semaphore_mem>>
      tpu.enqueue_dma source(%193 : memref<128xf32, #tpu.memory_space<any>>) target(%195 : memref<128xf32, #tpu.memory_space<vmem>>) target_semaphore(%197 : memref<!tpu.dma_semaphore, #tpu.memory_space<semaphore_mem>>)
      %c8_i32 = arith.constant 8 : i32
      %198 = arith.addi %124, %c8_i32 : i32
      %c0_i32_97 = arith.constant 0 : i32
      %199 = arith.addi %198, %c0_i32_97 : i32
      %200 = arith.index_cast %199 : i32 to index
      %201 = memref.load %arg1[%200] : memref<64xi32, #tpu.memory_space<smem>>
      %c0_i32_98 = arith.constant 0 : i32
      %c1_i32_99 = arith.constant 1 : i32
      %c0_i32_100 = arith.constant 0 : i32
      %202 = tpu.memref_slice %arg3[%201, %c0_i32_100] : memref<50x128xf32, #tpu.memory_space<any>> -> memref<1x128xf32, #tpu.memory_space<any>>
      %203 = tpu.memref_squeeze %202 : memref<1x128xf32, #tpu.memory_space<any>> -> memref<128xf32, #tpu.memory_space<any>>
      %c0_i32_101 = arith.constant 0 : i32
      %204 = tpu.memref_slice %arg5[%123, %c0_i32_98, %c1_i32_99, %c0_i32_101] : memref<2x8x8x128xf32, #tpu.memory_space<vmem>> -> memref<1x1x1x128xf32, #tpu.memory_space<vmem>>
      %205 = tpu.memref_squeeze %204 : memref<1x1x1x128xf32, #tpu.memory_space<vmem>> -> memref<128xf32, #tpu.memory_space<vmem>>
      %206 = tpu.memref_slice %arg6[%123] : memref<2x!tpu.dma_semaphore, #tpu.memory_space<semaphore_mem>> -> memref<1x!tpu.dma_semaphore, #tpu.memory_space<semaphore_mem>>
      %207 = tpu.memref_squeeze %206 : memref<1x!tpu.dma_semaphore, #tpu.memory_space<semaphore_mem>> -> memref<!tpu.dma_semaphore, #tpu.memory_space<semaphore_mem>>
      tpu.enqueue_dma source(%203 : memref<128xf32, #tpu.memory_space<any>>) target(%205 : memref<128xf32, #tpu.memory_space<vmem>>) target_semaphore(%207 : memref<!tpu.dma_semaphore, #tpu.memory_space<semaphore_mem>>)
      %c1_i32_102 = arith.constant 1 : i32
      %208 = arith.addi %198, %c1_i32_102 : i32
      %209 = arith.index_cast %208 : i32 to index
      %210 = memref.load %arg1[%209] : memref<64xi32, #tpu.memory_space<smem>>
      %c1_i32_103 = arith.constant 1 : i32
      %c1_i32_104 = arith.constant 1 : i32
      %c0_i32_105 = arith.constant 0 : i32
      %211 = tpu.memref_slice %arg3[%210, %c0_i32_105] : memref<50x128xf32, #tpu.memory_space<any>> -> memref<1x128xf32, #tpu.memory_space<any>>
      %212 = tpu.memref_squeeze %211 : memref<1x128xf32, #tpu.memory_space<any>> -> memref<128xf32, #tpu.memory_space<any>>
      %c0_i32_106 = arith.constant 0 : i32
      %213 = tpu.memref_slice %arg5[%123, %c1_i32_103, %c1_i32_104, %c0_i32_106] : memref<2x8x8x128xf32, #tpu.memory_space<vmem>> -> memref<1x1x1x128xf32, #tpu.memory_space<vmem>>
      %214 = tpu.memref_squeeze %213 : memref<1x1x1x128xf32, #tpu.memory_space<vmem>> -> memref<128xf32, #tpu.memory_space<vmem>>
      %215 = tpu.memref_slice %arg6[%123] : memref<2x!tpu.dma_semaphore, #tpu.memory_space<semaphore_mem>> -> memref<1x!tpu.dma_semaphore, #tpu.memory_space<semaphore_mem>>
      %216 = tpu.memref_squeeze %215 : memref<1x!tpu.dma_semaphore, #tpu.memory_space<semaphore_mem>> -> memref<!tpu.dma_semaphore, #tpu.memory_space<semaphore_mem>>
      tpu.enqueue_dma source(%212 : memref<128xf32, #tpu.memory_space<any>>) target(%214 : memref<128xf32, #tpu.memory_space<vmem>>) target_semaphore(%216 : memref<!tpu.dma_semaphore, #tpu.memory_space<semaphore_mem>>)
      %c2_i32_107 = arith.constant 2 : i32
      %217 = arith.addi %198, %c2_i32_107 : i32
      %218 = arith.index_cast %217 : i32 to index
      %219 = memref.load %arg1[%218] : memref<64xi32, #tpu.memory_space<smem>>
      %c2_i32_108 = arith.constant 2 : i32
      %c1_i32_109 = arith.constant 1 : i32
      %c0_i32_110 = arith.constant 0 : i32
      %220 = tpu.memref_slice %arg3[%219, %c0_i32_110] : memref<50x128xf32, #tpu.memory_space<any>> -> memref<1x128xf32, #tpu.memory_space<any>>
      %221 = tpu.memref_squeeze %220 : memref<1x128xf32, #tpu.memory_space<any>> -> memref<128xf32, #tpu.memory_space<any>>
      %c0_i32_111 = arith.constant 0 : i32
      %222 = tpu.memref_slice %arg5[%123, %c2_i32_108, %c1_i32_109, %c0_i32_111] : memref<2x8x8x128xf32, #tpu.memory_space<vmem>> -> memref<1x1x1x128xf32, #tpu.memory_space<vmem>>
      %223 = tpu.memref_squeeze %222 : memref<1x1x1x128xf32, #tpu.memory_space<vmem>> -> memref<128xf32, #tpu.memory_space<vmem>>
      %224 = tpu.memref_slice %arg6[%123] : memref<2x!tpu.dma_semaphore, #tpu.memory_space<semaphore_mem>> -> memref<1x!tpu.dma_semaphore, #tpu.memory_space<semaphore_mem>>
      %225 = tpu.memref_squeeze %224 : memref<1x!tpu.dma_semaphore, #tpu.memory_space<semaphore_mem>> -> memref<!tpu.dma_semaphore, #tpu.memory_space<semaphore_mem>>
      tpu.enqueue_dma source(%221 : memref<128xf32, #tpu.memory_space<any>>) target(%223 : memref<128xf32, #tpu.memory_space<vmem>>) target_semaphore(%225 : memref<!tpu.dma_semaphore, #tpu.memory_space<semaphore_mem>>)
      %c3_i32_112 = arith.constant 3 : i32
      %226 = arith.addi %198, %c3_i32_112 : i32
      %227 = arith.index_cast %226 : i32 to index
      %228 = memref.load %arg1[%227] : memref<64xi32, #tpu.memory_space<smem>>
      %c3_i32_113 = arith.constant 3 : i32
      %c1_i32_114 = arith.constant 1 : i32
      %c0_i32_115 = arith.constant 0 : i32
      %229 = tpu.memref_slice %arg3[%228, %c0_i32_115] : memref<50x128xf32, #tpu.memory_space<any>> -> memref<1x128xf32, #tpu.memory_space<any>>
      %230 = tpu.memref_squeeze %229 : memref<1x128xf32, #tpu.memory_space<any>> -> memref<128xf32, #tpu.memory_space<any>>
      %c0_i32_116 = arith.constant 0 : i32
      %231 = tpu.memref_slice %arg5[%123, %c3_i32_113, %c1_i32_114, %c0_i32_116] : memref<2x8x8x128xf32, #tpu.memory_space<vmem>> -> memref<1x1x1x128xf32, #tpu.memory_space<vmem>>
      %232 = tpu.memref_squeeze %231 : memref<1x1x1x128xf32, #tpu.memory_space<vmem>> -> memref<128xf32, #tpu.memory_space<vmem>>
      %233 = tpu.memref_slice %arg6[%123] : memref<2x!tpu.dma_semaphore, #tpu.memory_space<semaphore_mem>> -> memref<1x!tpu.dma_semaphore, #tpu.memory_space<semaphore_mem>>
      %234 = tpu.memref_squeeze %233 : memref<1x!tpu.dma_semaphore, #tpu.memory_space<semaphore_mem>> -> memref<!tpu.dma_semaphore, #tpu.memory_space<semaphore_mem>>
      tpu.enqueue_dma source(%230 : memref<128xf32, #tpu.memory_space<any>>) target(%232 : memref<128xf32, #tpu.memory_space<vmem>>) target_semaphore(%234 : memref<!tpu.dma_semaphore, #tpu.memory_space<semaphore_mem>>)
      %c4_i32_117 = arith.constant 4 : i32
      %235 = arith.addi %198, %c4_i32_117 : i32
      %236 = arith.index_cast %235 : i32 to index
      %237 = memref.load %arg1[%236] : memref<64xi32, #tpu.memory_space<smem>>
      %c4_i32_118 = arith.constant 4 : i32
      %c1_i32_119 = arith.constant 1 : i32
      %c0_i32_120 = arith.constant 0 : i32
      %238 = tpu.memref_slice %arg3[%237, %c0_i32_120] : memref<50x128xf32, #tpu.memory_space<any>> -> memref<1x128xf32, #tpu.memory_space<any>>
      %239 = tpu.memref_squeeze %238 : memref<1x128xf32, #tpu.memory_space<any>> -> memref<128xf32, #tpu.memory_space<any>>
      %c0_i32_121 = arith.constant 0 : i32
      %240 = tpu.memref_slice %arg5[%123, %c4_i32_118, %c1_i32_119, %c0_i32_121] : memref<2x8x8x128xf32, #tpu.memory_space<vmem>> -> memref<1x1x1x128xf32, #tpu.memory_space<vmem>>
      %241 = tpu.memref_squeeze %240 : memref<1x1x1x128xf32, #tpu.memory_space<vmem>> -> memref<128xf32, #tpu.memory_space<vmem>>
      %242 = tpu.memref_slice %arg6[%123] : memref<2x!tpu.dma_semaphore, #tpu.memory_space<semaphore_mem>> -> memref<1x!tpu.dma_semaphore, #tpu.memory_space<semaphore_mem>>
      %243 = tpu.memref_squeeze %242 : memref<1x!tpu.dma_semaphore, #tpu.memory_space<semaphore_mem>> -> memref<!tpu.dma_semaphore, #tpu.memory_space<semaphore_mem>>
      tpu.enqueue_dma source(%239 : memref<128xf32, #tpu.memory_space<any>>) target(%241 : memref<128xf32, #tpu.memory_space<vmem>>) target_semaphore(%243 : memref<!tpu.dma_semaphore, #tpu.memory_space<semaphore_mem>>)
      %c5_i32_122 = arith.constant 5 : i32
      %244 = arith.addi %198, %c5_i32_122 : i32
      %245 = arith.index_cast %244 : i32 to index
      %246 = memref.load %arg1[%245] : memref<64xi32, #tpu.memory_space<smem>>
      %c5_i32_123 = arith.constant 5 : i32
      %c1_i32_124 = arith.constant 1 : i32
      %c0_i32_125 = arith.constant 0 : i32
      %247 = tpu.memref_slice %arg3[%246, %c0_i32_125] : memref<50x128xf32, #tpu.memory_space<any>> -> memref<1x128xf32, #tpu.memory_space<any>>
      %248 = tpu.memref_squeeze %247 : memref<1x128xf32, #tpu.memory_space<any>> -> memref<128xf32, #tpu.memory_space<any>>
      %c0_i32_126 = arith.constant 0 : i32
      %249 = tpu.memref_slice %arg5[%123, %c5_i32_123, %c1_i32_124, %c0_i32_126] : memref<2x8x8x128xf32, #tpu.memory_space<vmem>> -> memref<1x1x1x128xf32, #tpu.memory_space<vmem>>
      %250 = tpu.memref_squeeze %249 : memref<1x1x1x128xf32, #tpu.memory_space<vmem>> -> memref<128xf32, #tpu.memory_space<vmem>>
      %251 = tpu.memref_slice %arg6[%123] : memref<2x!tpu.dma_semaphore, #tpu.memory_space<semaphore_mem>> -> memref<1x!tpu.dma_semaphore, #tpu.memory_space<semaphore_mem>>
      %252 = tpu.memref_squeeze %251 : memref<1x!tpu.dma_semaphore, #tpu.memory_space<semaphore_mem>> -> memref<!tpu.dma_semaphore, #tpu.memory_space<semaphore_mem>>
      tpu.enqueue_dma source(%248 : memref<128xf32, #tpu.memory_space<any>>) target(%250 : memref<128xf32, #tpu.memory_space<vmem>>) target_semaphore(%252 : memref<!tpu.dma_semaphore, #tpu.memory_space<semaphore_mem>>)
      %c6_i32_127 = arith.constant 6 : i32
      %253 = arith.addi %198, %c6_i32_127 : i32
      %254 = arith.index_cast %253 : i32 to index
      %255 = memref.load %arg1[%254] : memref<64xi32, #tpu.memory_space<smem>>
      %c6_i32_128 = arith.constant 6 : i32
      %c1_i32_129 = arith.constant 1 : i32
      %c0_i32_130 = arith.constant 0 : i32
      %256 = tpu.memref_slice %arg3[%255, %c0_i32_130] : memref<50x128xf32, #tpu.memory_space<any>> -> memref<1x128xf32, #tpu.memory_space<any>>
      %257 = tpu.memref_squeeze %256 : memref<1x128xf32, #tpu.memory_space<any>> -> memref<128xf32, #tpu.memory_space<any>>
      %c0_i32_131 = arith.constant 0 : i32
      %258 = tpu.memref_slice %arg5[%123, %c6_i32_128, %c1_i32_129, %c0_i32_131] : memref<2x8x8x128xf32, #tpu.memory_space<vmem>> -> memref<1x1x1x128xf32, #tpu.memory_space<vmem>>
      %259 = tpu.memref_squeeze %258 : memref<1x1x1x128xf32, #tpu.memory_space<vmem>> -> memref<128xf32, #tpu.memory_space<vmem>>
      %260 = tpu.memref_slice %arg6[%123] : memref<2x!tpu.dma_semaphore, #tpu.memory_space<semaphore_mem>> -> memref<1x!tpu.dma_semaphore, #tpu.memory_space<semaphore_mem>>
      %261 = tpu.memref_squeeze %260 : memref<1x!tpu.dma_semaphore, #tpu.memory_space<semaphore_mem>> -> memref<!tpu.dma_semaphore, #tpu.memory_space<semaphore_mem>>
      tpu.enqueue_dma source(%257 : memref<128xf32, #tpu.memory_space<any>>) target(%259 : memref<128xf32, #tpu.memory_space<vmem>>) target_semaphore(%261 : memref<!tpu.dma_semaphore, #tpu.memory_space<semaphore_mem>>)
      %c7_i32_132 = arith.constant 7 : i32
      %262 = arith.addi %198, %c7_i32_132 : i32
      %263 = arith.index_cast %262 : i32 to index
      %264 = memref.load %arg1[%263] : memref<64xi32, #tpu.memory_space<smem>>
      %c7_i32_133 = arith.constant 7 : i32
      %c1_i32_134 = arith.constant 1 : i32
      %c0_i32_135 = arith.constant 0 : i32
      %265 = tpu.memref_slice %arg3[%264, %c0_i32_135] : memref<50x128xf32, #tpu.memory_space<any>> -> memref<1x128xf32, #tpu.memory_space<any>>
      %266 = tpu.memref_squeeze %265 : memref<1x128xf32, #tpu.memory_space<any>> -> memref<128xf32, #tpu.memory_space<any>>
      %c0_i32_136 = arith.constant 0 : i32
      %267 = tpu.memref_slice %arg5[%123, %c7_i32_133, %c1_i32_134, %c0_i32_136] : memref<2x8x8x128xf32, #tpu.memory_space<vmem>> -> memref<1x1x1x128xf32, #tpu.memory_space<vmem>>
      %268 = tpu.memref_squeeze %267 : memref<1x1x1x128xf32, #tpu.memory_space<vmem>> -> memref<128xf32, #tpu.memory_space<vmem>>
      %269 = tpu.memref_slice %arg6[%123] : memref<2x!tpu.dma_semaphore, #tpu.memory_space<semaphore_mem>> -> memref<1x!tpu.dma_semaphore, #tpu.memory_space<semaphore_mem>>
      %270 = tpu.memref_squeeze %269 : memref<1x!tpu.dma_semaphore, #tpu.memory_space<semaphore_mem>> -> memref<!tpu.dma_semaphore, #tpu.memory_space<semaphore_mem>>
      tpu.enqueue_dma source(%266 : memref<128xf32, #tpu.memory_space<any>>) target(%268 : memref<128xf32, #tpu.memory_space<vmem>>) target_semaphore(%270 : memref<!tpu.dma_semaphore, #tpu.memory_space<semaphore_mem>>)
      %c16_i32 = arith.constant 16 : i32
      %271 = arith.addi %124, %c16_i32 : i32
      %c0_i32_137 = arith.constant 0 : i32
      %272 = arith.addi %271, %c0_i32_137 : i32
      %273 = arith.index_cast %272 : i32 to index
      %274 = memref.load %arg1[%273] : memref<64xi32, #tpu.memory_space<smem>>
      %c0_i32_138 = arith.constant 0 : i32
      %c2_i32_139 = arith.constant 2 : i32
      %c0_i32_140 = arith.constant 0 : i32
      %275 = tpu.memref_slice %arg3[%274, %c0_i32_140] : memref<50x128xf32, #tpu.memory_space<any>> -> memref<1x128xf32, #tpu.memory_space<any>>
      %276 = tpu.memref_squeeze %275 : memref<1x128xf32, #tpu.memory_space<any>> -> memref<128xf32, #tpu.memory_space<any>>
      %c0_i32_141 = arith.constant 0 : i32
      %277 = tpu.memref_slice %arg5[%123, %c0_i32_138, %c2_i32_139, %c0_i32_141] : memref<2x8x8x128xf32, #tpu.memory_space<vmem>> -> memref<1x1x1x128xf32, #tpu.memory_space<vmem>>
      %278 = tpu.memref_squeeze %277 : memref<1x1x1x128xf32, #tpu.memory_space<vmem>> -> memref<128xf32, #tpu.memory_space<vmem>>
      %279 = tpu.memref_slice %arg6[%123] : memref<2x!tpu.dma_semaphore, #tpu.memory_space<semaphore_mem>> -> memref<1x!tpu.dma_semaphore, #tpu.memory_space<semaphore_mem>>
      %280 = tpu.memref_squeeze %279 : memref<1x!tpu.dma_semaphore, #tpu.memory_space<semaphore_mem>> -> memref<!tpu.dma_semaphore, #tpu.memory_space<semaphore_mem>>
      tpu.enqueue_dma source(%276 : memref<128xf32, #tpu.memory_space<any>>) target(%278 : memref<128xf32, #tpu.memory_space<vmem>>) target_semaphore(%280 : memref<!tpu.dma_semaphore, #tpu.memory_space<semaphore_mem>>)
      %c1_i32_142 = arith.constant 1 : i32
      %281 = arith.addi %271, %c1_i32_142 : i32
      %282 = arith.index_cast %281 : i32 to index
      %283 = memref.load %arg1[%282] : memref<64xi32, #tpu.memory_space<smem>>
      %c1_i32_143 = arith.constant 1 : i32
      %c2_i32_144 = arith.constant 2 : i32
      %c0_i32_145 = arith.constant 0 : i32
      %284 = tpu.memref_slice %arg3[%283, %c0_i32_145] : memref<50x128xf32, #tpu.memory_space<any>> -> memref<1x128xf32, #tpu.memory_space<any>>
      %285 = tpu.memref_squeeze %284 : memref<1x128xf32, #tpu.memory_space<any>> -> memref<128xf32, #tpu.memory_space<any>>
      %c0_i32_146 = arith.constant 0 : i32
      %286 = tpu.memref_slice %arg5[%123, %c1_i32_143, %c2_i32_144, %c0_i32_146] : memref<2x8x8x128xf32, #tpu.memory_space<vmem>> -> memref<1x1x1x128xf32, #tpu.memory_space<vmem>>
      %287 = tpu.memref_squeeze %286 : memref<1x1x1x128xf32, #tpu.memory_space<vmem>> -> memref<128xf32, #tpu.memory_space<vmem>>
      %288 = tpu.memref_slice %arg6[%123] : memref<2x!tpu.dma_semaphore, #tpu.memory_space<semaphore_mem>> -> memref<1x!tpu.dma_semaphore, #tpu.memory_space<semaphore_mem>>
      %289 = tpu.memref_squeeze %288 : memref<1x!tpu.dma_semaphore, #tpu.memory_space<semaphore_mem>> -> memref<!tpu.dma_semaphore, #tpu.memory_space<semaphore_mem>>
      tpu.enqueue_dma source(%285 : memref<128xf32, #tpu.memory_space<any>>) target(%287 : memref<128xf32, #tpu.memory_space<vmem>>) target_semaphore(%289 : memref<!tpu.dma_semaphore, #tpu.memory_space<semaphore_mem>>)
      %c2_i32_147 = arith.constant 2 : i32
      %290 = arith.addi %271, %c2_i32_147 : i32
      %291 = arith.index_cast %290 : i32 to index
      %292 = memref.load %arg1[%291] : memref<64xi32, #tpu.memory_space<smem>>
      %c2_i32_148 = arith.constant 2 : i32
      %c2_i32_149 = arith.constant 2 : i32
      %c0_i32_150 = arith.constant 0 : i32
      %293 = tpu.memref_slice %arg3[%292, %c0_i32_150] : memref<50x128xf32, #tpu.memory_space<any>> -> memref<1x128xf32, #tpu.memory_space<any>>
      %294 = tpu.memref_squeeze %293 : memref<1x128xf32, #tpu.memory_space<any>> -> memref<128xf32, #tpu.memory_space<any>>
      %c0_i32_151 = arith.constant 0 : i32
      %295 = tpu.memref_slice %arg5[%123, %c2_i32_148, %c2_i32_149, %c0_i32_151] : memref<2x8x8x128xf32, #tpu.memory_space<vmem>> -> memref<1x1x1x128xf32, #tpu.memory_space<vmem>>
      %296 = tpu.memref_squeeze %295 : memref<1x1x1x128xf32, #tpu.memory_space<vmem>> -> memref<128xf32, #tpu.memory_space<vmem>>
      %297 = tpu.memref_slice %arg6[%123] : memref<2x!tpu.dma_semaphore, #tpu.memory_space<semaphore_mem>> -> memref<1x!tpu.dma_semaphore, #tpu.memory_space<semaphore_mem>>
      %298 = tpu.memref_squeeze %297 : memref<1x!tpu.dma_semaphore, #tpu.memory_space<semaphore_mem>> -> memref<!tpu.dma_semaphore, #tpu.memory_space<semaphore_mem>>
      tpu.enqueue_dma source(%294 : memref<128xf32, #tpu.memory_space<any>>) target(%296 : memref<128xf32, #tpu.memory_space<vmem>>) target_semaphore(%298 : memref<!tpu.dma_semaphore, #tpu.memory_space<semaphore_mem>>)
      %c3_i32_152 = arith.constant 3 : i32
      %299 = arith.addi %271, %c3_i32_152 : i32
      %300 = arith.index_cast %299 : i32 to index
      %301 = memref.load %arg1[%300] : memref<64xi32, #tpu.memory_space<smem>>
      %c3_i32_153 = arith.constant 3 : i32
      %c2_i32_154 = arith.constant 2 : i32
      %c0_i32_155 = arith.constant 0 : i32
      %302 = tpu.memref_slice %arg3[%301, %c0_i32_155] : memref<50x128xf32, #tpu.memory_space<any>> -> memref<1x128xf32, #tpu.memory_space<any>>
      %303 = tpu.memref_squeeze %302 : memref<1x128xf32, #tpu.memory_space<any>> -> memref<128xf32, #tpu.memory_space<any>>
      %c0_i32_156 = arith.constant 0 : i32
      %304 = tpu.memref_slice %arg5[%123, %c3_i32_153, %c2_i32_154, %c0_i32_156] : memref<2x8x8x128xf32, #tpu.memory_space<vmem>> -> memref<1x1x1x128xf32, #tpu.memory_space<vmem>>
      %305 = tpu.memref_squeeze %304 : memref<1x1x1x128xf32, #tpu.memory_space<vmem>> -> memref<128xf32, #tpu.memory_space<vmem>>
      %306 = tpu.memref_slice %arg6[%123] : memref<2x!tpu.dma_semaphore, #tpu.memory_space<semaphore_mem>> -> memref<1x!tpu.dma_semaphore, #tpu.memory_space<semaphore_mem>>
      %307 = tpu.memref_squeeze %306 : memref<1x!tpu.dma_semaphore, #tpu.memory_space<semaphore_mem>> -> memref<!tpu.dma_semaphore, #tpu.memory_space<semaphore_mem>>
      tpu.enqueue_dma source(%303 : memref<128xf32, #tpu.memory_space<any>>) target(%305 : memref<128xf32, #tpu.memory_space<vmem>>) target_semaphore(%307 : memref<!tpu.dma_semaphore, #tpu.memory_space<semaphore_mem>>)
      %c4_i32_157 = arith.constant 4 : i32
      %308 = arith.addi %271, %c4_i32_157 : i32
      %309 = arith.index_cast %308 : i32 to index
      %310 = memref.load %arg1[%309] : memref<64xi32, #tpu.memory_space<smem>>
      %c4_i32_158 = arith.constant 4 : i32
      %c2_i32_159 = arith.constant 2 : i32
      %c0_i32_160 = arith.constant 0 : i32
      %311 = tpu.memref_slice %arg3[%310, %c0_i32_160] : memref<50x128xf32, #tpu.memory_space<any>> -> memref<1x128xf32, #tpu.memory_space<any>>
      %312 = tpu.memref_squeeze %311 : memref<1x128xf32, #tpu.memory_space<any>> -> memref<128xf32, #tpu.memory_space<any>>
      %c0_i32_161 = arith.constant 0 : i32
      %313 = tpu.memref_slice %arg5[%123, %c4_i32_158, %c2_i32_159, %c0_i32_161] : memref<2x8x8x128xf32, #tpu.memory_space<vmem>> -> memref<1x1x1x128xf32, #tpu.memory_space<vmem>>
      %314 = tpu.memref_squeeze %313 : memref<1x1x1x128xf32, #tpu.memory_space<vmem>> -> memref<128xf32, #tpu.memory_space<vmem>>
      %315 = tpu.memref_slice %arg6[%123] : memref<2x!tpu.dma_semaphore, #tpu.memory_space<semaphore_mem>> -> memref<1x!tpu.dma_semaphore, #tpu.memory_space<semaphore_mem>>
      %316 = tpu.memref_squeeze %315 : memref<1x!tpu.dma_semaphore, #tpu.memory_space<semaphore_mem>> -> memref<!tpu.dma_semaphore, #tpu.memory_space<semaphore_mem>>
      tpu.enqueue_dma source(%312 : memref<128xf32, #tpu.memory_space<any>>) target(%314 : memref<128xf32, #tpu.memory_space<vmem>>) target_semaphore(%316 : memref<!tpu.dma_semaphore, #tpu.memory_space<semaphore_mem>>)
      %c5_i32_162 = arith.constant 5 : i32
      %317 = arith.addi %271, %c5_i32_162 : i32
      %318 = arith.index_cast %317 : i32 to index
      %319 = memref.load %arg1[%318] : memref<64xi32, #tpu.memory_space<smem>>
      %c5_i32_163 = arith.constant 5 : i32
      %c2_i32_164 = arith.constant 2 : i32
      %c0_i32_165 = arith.constant 0 : i32
      %320 = tpu.memref_slice %arg3[%319, %c0_i32_165] : memref<50x128xf32, #tpu.memory_space<any>> -> memref<1x128xf32, #tpu.memory_space<any>>
      %321 = tpu.memref_squeeze %320 : memref<1x128xf32, #tpu.memory_space<any>> -> memref<128xf32, #tpu.memory_space<any>>
      %c0_i32_166 = arith.constant 0 : i32
      %322 = tpu.memref_slice %arg5[%123, %c5_i32_163, %c2_i32_164, %c0_i32_166] : memref<2x8x8x128xf32, #tpu.memory_space<vmem>> -> memref<1x1x1x128xf32, #tpu.memory_space<vmem>>
      %323 = tpu.memref_squeeze %322 : memref<1x1x1x128xf32, #tpu.memory_space<vmem>> -> memref<128xf32, #tpu.memory_space<vmem>>
      %324 = tpu.memref_slice %arg6[%123] : memref<2x!tpu.dma_semaphore, #tpu.memory_space<semaphore_mem>> -> memref<1x!tpu.dma_semaphore, #tpu.memory_space<semaphore_mem>>
      %325 = tpu.memref_squeeze %324 : memref<1x!tpu.dma_semaphore, #tpu.memory_space<semaphore_mem>> -> memref<!tpu.dma_semaphore, #tpu.memory_space<semaphore_mem>>
      tpu.enqueue_dma source(%321 : memref<128xf32, #tpu.memory_space<any>>) target(%323 : memref<128xf32, #tpu.memory_space<vmem>>) target_semaphore(%325 : memref<!tpu.dma_semaphore, #tpu.memory_space<semaphore_mem>>)
      %c6_i32_167 = arith.constant 6 : i32
      %326 = arith.addi %271, %c6_i32_167 : i32
      %327 = arith.index_cast %326 : i32 to index
      %328 = memref.load %arg1[%327] : memref<64xi32, #tpu.memory_space<smem>>
      %c6_i32_168 = arith.constant 6 : i32
      %c2_i32_169 = arith.constant 2 : i32
      %c0_i32_170 = arith.constant 0 : i32
      %329 = tpu.memref_slice %arg3[%328, %c0_i32_170] : memref<50x128xf32, #tpu.memory_space<any>> -> memref<1x128xf32, #tpu.memory_space<any>>
      %330 = tpu.memref_squeeze %329 : memref<1x128xf32, #tpu.memory_space<any>> -> memref<128xf32, #tpu.memory_space<any>>
      %c0_i32_171 = arith.constant 0 : i32
      %331 = tpu.memref_slice %arg5[%123, %c6_i32_168, %c2_i32_169, %c0_i32_171] : memref<2x8x8x128xf32, #tpu.memory_space<vmem>> -> memref<1x1x1x128xf32, #tpu.memory_space<vmem>>
      %332 = tpu.memref_squeeze %331 : memref<1x1x1x128xf32, #tpu.memory_space<vmem>> -> memref<128xf32, #tpu.memory_space<vmem>>
      %333 = tpu.memref_slice %arg6[%123] : memref<2x!tpu.dma_semaphore, #tpu.memory_space<semaphore_mem>> -> memref<1x!tpu.dma_semaphore, #tpu.memory_space<semaphore_mem>>
      %334 = tpu.memref_squeeze %333 : memref<1x!tpu.dma_semaphore, #tpu.memory_space<semaphore_mem>> -> memref<!tpu.dma_semaphore, #tpu.memory_space<semaphore_mem>>
      tpu.enqueue_dma source(%330 : memref<128xf32, #tpu.memory_space<any>>) target(%332 : memref<128xf32, #tpu.memory_space<vmem>>) target_semaphore(%334 : memref<!tpu.dma_semaphore, #tpu.memory_space<semaphore_mem>>)
      %c7_i32_172 = arith.constant 7 : i32
      %335 = arith.addi %271, %c7_i32_172 : i32
      %336 = arith.index_cast %335 : i32 to index
      %337 = memref.load %arg1[%336] : memref<64xi32, #tpu.memory_space<smem>>
      %c7_i32_173 = arith.constant 7 : i32
      %c2_i32_174 = arith.constant 2 : i32
      %c0_i32_175 = arith.constant 0 : i32
      %338 = tpu.memref_slice %arg3[%337, %c0_i32_175] : memref<50x128xf32, #tpu.memory_space<any>> -> memref<1x128xf32, #tpu.memory_space<any>>
      %339 = tpu.memref_squeeze %338 : memref<1x128xf32, #tpu.memory_space<any>> -> memref<128xf32, #tpu.memory_space<any>>
      %c0_i32_176 = arith.constant 0 : i32
      %340 = tpu.memref_slice %arg5[%123, %c7_i32_173, %c2_i32_174, %c0_i32_176] : memref<2x8x8x128xf32, #tpu.memory_space<vmem>> -> memref<1x1x1x128xf32, #tpu.memory_space<vmem>>
      %341 = tpu.memref_squeeze %340 : memref<1x1x1x128xf32, #tpu.memory_space<vmem>> -> memref<128xf32, #tpu.memory_space<vmem>>
      %342 = tpu.memref_slice %arg6[%123] : memref<2x!tpu.dma_semaphore, #tpu.memory_space<semaphore_mem>> -> memref<1x!tpu.dma_semaphore, #tpu.memory_space<semaphore_mem>>
      %343 = tpu.memref_squeeze %342 : memref<1x!tpu.dma_semaphore, #tpu.memory_space<semaphore_mem>> -> memref<!tpu.dma_semaphore, #tpu.memory_space<semaphore_mem>>
      tpu.enqueue_dma source(%339 : memref<128xf32, #tpu.memory_space<any>>) target(%341 : memref<128xf32, #tpu.memory_space<vmem>>) target_semaphore(%343 : memref<!tpu.dma_semaphore, #tpu.memory_space<semaphore_mem>>)
      %c24_i32 = arith.constant 24 : i32
      %344 = arith.addi %124, %c24_i32 : i32
      %c0_i32_177 = arith.constant 0 : i32
      %345 = arith.addi %344, %c0_i32_177 : i32
      %346 = arith.index_cast %345 : i32 to index
      %347 = memref.load %arg1[%346] : memref<64xi32, #tpu.memory_space<smem>>
      %c0_i32_178 = arith.constant 0 : i32
      %c3_i32_179 = arith.constant 3 : i32
      %c0_i32_180 = arith.constant 0 : i32
      %348 = tpu.memref_slice %arg3[%347, %c0_i32_180] : memref<50x128xf32, #tpu.memory_space<any>> -> memref<1x128xf32, #tpu.memory_space<any>>
      %349 = tpu.memref_squeeze %348 : memref<1x128xf32, #tpu.memory_space<any>> -> memref<128xf32, #tpu.memory_space<any>>
      %c0_i32_181 = arith.constant 0 : i32
      %350 = tpu.memref_slice %arg5[%123, %c0_i32_178, %c3_i32_179, %c0_i32_181] : memref<2x8x8x128xf32, #tpu.memory_space<vmem>> -> memref<1x1x1x128xf32, #tpu.memory_space<vmem>>
      %351 = tpu.memref_squeeze %350 : memref<1x1x1x128xf32, #tpu.memory_space<vmem>> -> memref<128xf32, #tpu.memory_space<vmem>>
      %352 = tpu.memref_slice %arg6[%123] : memref<2x!tpu.dma_semaphore, #tpu.memory_space<semaphore_mem>> -> memref<1x!tpu.dma_semaphore, #tpu.memory_space<semaphore_mem>>
      %353 = tpu.memref_squeeze %352 : memref<1x!tpu.dma_semaphore, #tpu.memory_space<semaphore_mem>> -> memref<!tpu.dma_semaphore, #tpu.memory_space<semaphore_mem>>
      tpu.enqueue_dma source(%349 : memref<128xf32, #tpu.memory_space<any>>) target(%351 : memref<128xf32, #tpu.memory_space<vmem>>) target_semaphore(%353 : memref<!tpu.dma_semaphore, #tpu.memory_space<semaphore_mem>>)
      %c1_i32_182 = arith.constant 1 : i32
      %354 = arith.addi %344, %c1_i32_182 : i32
      %355 = arith.index_cast %354 : i32 to index
      %356 = memref.load %arg1[%355] : memref<64xi32, #tpu.memory_space<smem>>
      %c1_i32_183 = arith.constant 1 : i32
      %c3_i32_184 = arith.constant 3 : i32
      %c0_i32_185 = arith.constant 0 : i32
      %357 = tpu.memref_slice %arg3[%356, %c0_i32_185] : memref<50x128xf32, #tpu.memory_space<any>> -> memref<1x128xf32, #tpu.memory_space<any>>
      %358 = tpu.memref_squeeze %357 : memref<1x128xf32, #tpu.memory_space<any>> -> memref<128xf32, #tpu.memory_space<any>>
      %c0_i32_186 = arith.constant 0 : i32
      %359 = tpu.memref_slice %arg5[%123, %c1_i32_183, %c3_i32_184, %c0_i32_186] : memref<2x8x8x128xf32, #tpu.memory_space<vmem>> -> memref<1x1x1x128xf32, #tpu.memory_space<vmem>>
      %360 = tpu.memref_squeeze %359 : memref<1x1x1x128xf32, #tpu.memory_space<vmem>> -> memref<128xf32, #tpu.memory_space<vmem>>
      %361 = tpu.memref_slice %arg6[%123] : memref<2x!tpu.dma_semaphore, #tpu.memory_space<semaphore_mem>> -> memref<1x!tpu.dma_semaphore, #tpu.memory_space<semaphore_mem>>
      %362 = tpu.memref_squeeze %361 : memref<1x!tpu.dma_semaphore, #tpu.memory_space<semaphore_mem>> -> memref<!tpu.dma_semaphore, #tpu.memory_space<semaphore_mem>>
      tpu.enqueue_dma source(%358 : memref<128xf32, #tpu.memory_space<any>>) target(%360 : memref<128xf32, #tpu.memory_space<vmem>>) target_semaphore(%362 : memref<!tpu.dma_semaphore, #tpu.memory_space<semaphore_mem>>)
      %c2_i32_187 = arith.constant 2 : i32
      %363 = arith.addi %344, %c2_i32_187 : i32
      %364 = arith.index_cast %363 : i32 to index
      %365 = memref.load %arg1[%364] : memref<64xi32, #tpu.memory_space<smem>>
      %c2_i32_188 = arith.constant 2 : i32
      %c3_i32_189 = arith.constant 3 : i32
      %c0_i32_190 = arith.constant 0 : i32
      %366 = tpu.memref_slice %arg3[%365, %c0_i32_190] : memref<50x128xf32, #tpu.memory_space<any>> -> memref<1x128xf32, #tpu.memory_space<any>>
      %367 = tpu.memref_squeeze %366 : memref<1x128xf32, #tpu.memory_space<any>> -> memref<128xf32, #tpu.memory_space<any>>
      %c0_i32_191 = arith.constant 0 : i32
      %368 = tpu.memref_slice %arg5[%123, %c2_i32_188, %c3_i32_189, %c0_i32_191] : memref<2x8x8x128xf32, #tpu.memory_space<vmem>> -> memref<1x1x1x128xf32, #tpu.memory_space<vmem>>
      %369 = tpu.memref_squeeze %368 : memref<1x1x1x128xf32, #tpu.memory_space<vmem>> -> memref<128xf32, #tpu.memory_space<vmem>>
      %370 = tpu.memref_slice %arg6[%123] : memref<2x!tpu.dma_semaphore, #tpu.memory_space<semaphore_mem>> -> memref<1x!tpu.dma_semaphore, #tpu.memory_space<semaphore_mem>>
      %371 = tpu.memref_squeeze %370 : memref<1x!tpu.dma_semaphore, #tpu.memory_space<semaphore_mem>> -> memref<!tpu.dma_semaphore, #tpu.memory_space<semaphore_mem>>
      tpu.enqueue_dma source(%367 : memref<128xf32, #tpu.memory_space<any>>) target(%369 : memref<128xf32, #tpu.memory_space<vmem>>) target_semaphore(%371 : memref<!tpu.dma_semaphore, #tpu.memory_space<semaphore_mem>>)
      %c3_i32_192 = arith.constant 3 : i32
      %372 = arith.addi %344, %c3_i32_192 : i32
      %373 = arith.index_cast %372 : i32 to index
      %374 = memref.load %arg1[%373] : memref<64xi32, #tpu.memory_space<smem>>
      %c3_i32_193 = arith.constant 3 : i32
      %c3_i32_194 = arith.constant 3 : i32
      %c0_i32_195 = arith.constant 0 : i32
      %375 = tpu.memref_slice %arg3[%374, %c0_i32_195] : memref<50x128xf32, #tpu.memory_space<any>> -> memref<1x128xf32, #tpu.memory_space<any>>
      %376 = tpu.memref_squeeze %375 : memref<1x128xf32, #tpu.memory_space<any>> -> memref<128xf32, #tpu.memory_space<any>>
      %c0_i32_196 = arith.constant 0 : i32
      %377 = tpu.memref_slice %arg5[%123, %c3_i32_193, %c3_i32_194, %c0_i32_196] : memref<2x8x8x128xf32, #tpu.memory_space<vmem>> -> memref<1x1x1x128xf32, #tpu.memory_space<vmem>>
      %378 = tpu.memref_squeeze %377 : memref<1x1x1x128xf32, #tpu.memory_space<vmem>> -> memref<128xf32, #tpu.memory_space<vmem>>
      %379 = tpu.memref_slice %arg6[%123] : memref<2x!tpu.dma_semaphore, #tpu.memory_space<semaphore_mem>> -> memref<1x!tpu.dma_semaphore, #tpu.memory_space<semaphore_mem>>
      %380 = tpu.memref_squeeze %379 : memref<1x!tpu.dma_semaphore, #tpu.memory_space<semaphore_mem>> -> memref<!tpu.dma_semaphore, #tpu.memory_space<semaphore_mem>>
      tpu.enqueue_dma source(%376 : memref<128xf32, #tpu.memory_space<any>>) target(%378 : memref<128xf32, #tpu.memory_space<vmem>>) target_semaphore(%380 : memref<!tpu.dma_semaphore, #tpu.memory_space<semaphore_mem>>)
      %c4_i32_197 = arith.constant 4 : i32
      %381 = arith.addi %344, %c4_i32_197 : i32
      %382 = arith.index_cast %381 : i32 to index
      %383 = memref.load %arg1[%382] : memref<64xi32, #tpu.memory_space<smem>>
      %c4_i32_198 = arith.constant 4 : i32
      %c3_i32_199 = arith.constant 3 : i32
      %c0_i32_200 = arith.constant 0 : i32
      %384 = tpu.memref_slice %arg3[%383, %c0_i32_200] : memref<50x128xf32, #tpu.memory_space<any>> -> memref<1x128xf32, #tpu.memory_space<any>>
      %385 = tpu.memref_squeeze %384 : memref<1x128xf32, #tpu.memory_space<any>> -> memref<128xf32, #tpu.memory_space<any>>
      %c0_i32_201 = arith.constant 0 : i32
      %386 = tpu.memref_slice %arg5[%123, %c4_i32_198, %c3_i32_199, %c0_i32_201] : memref<2x8x8x128xf32, #tpu.memory_space<vmem>> -> memref<1x1x1x128xf32, #tpu.memory_space<vmem>>
      %387 = tpu.memref_squeeze %386 : memref<1x1x1x128xf32, #tpu.memory_space<vmem>> -> memref<128xf32, #tpu.memory_space<vmem>>
      %388 = tpu.memref_slice %arg6[%123] : memref<2x!tpu.dma_semaphore, #tpu.memory_space<semaphore_mem>> -> memref<1x!tpu.dma_semaphore, #tpu.memory_space<semaphore_mem>>
      %389 = tpu.memref_squeeze %388 : memref<1x!tpu.dma_semaphore, #tpu.memory_space<semaphore_mem>> -> memref<!tpu.dma_semaphore, #tpu.memory_space<semaphore_mem>>
      tpu.enqueue_dma source(%385 : memref<128xf32, #tpu.memory_space<any>>) target(%387 : memref<128xf32, #tpu.memory_space<vmem>>) target_semaphore(%389 : memref<!tpu.dma_semaphore, #tpu.memory_space<semaphore_mem>>)
      %c5_i32_202 = arith.constant 5 : i32
      %390 = arith.addi %344, %c5_i32_202 : i32
      %391 = arith.index_cast %390 : i32 to index
      %392 = memref.load %arg1[%391] : memref<64xi32, #tpu.memory_space<smem>>
      %c5_i32_203 = arith.constant 5 : i32
      %c3_i32_204 = arith.constant 3 : i32
      %c0_i32_205 = arith.constant 0 : i32
      %393 = tpu.memref_slice %arg3[%392, %c0_i32_205] : memref<50x128xf32, #tpu.memory_space<any>> -> memref<1x128xf32, #tpu.memory_space<any>>
      %394 = tpu.memref_squeeze %393 : memref<1x128xf32, #tpu.memory_space<any>> -> memref<128xf32, #tpu.memory_space<any>>
      %c0_i32_206 = arith.constant 0 : i32
      %395 = tpu.memref_slice %arg5[%123, %c5_i32_203, %c3_i32_204, %c0_i32_206] : memref<2x8x8x128xf32, #tpu.memory_space<vmem>> -> memref<1x1x1x128xf32, #tpu.memory_space<vmem>>
      %396 = tpu.memref_squeeze %395 : memref<1x1x1x128xf32, #tpu.memory_space<vmem>> -> memref<128xf32, #tpu.memory_space<vmem>>
      %397 = tpu.memref_slice %arg6[%123] : memref<2x!tpu.dma_semaphore, #tpu.memory_space<semaphore_mem>> -> memref<1x!tpu.dma_semaphore, #tpu.memory_space<semaphore_mem>>
      %398 = tpu.memref_squeeze %397 : memref<1x!tpu.dma_semaphore, #tpu.memory_space<semaphore_mem>> -> memref<!tpu.dma_semaphore, #tpu.memory_space<semaphore_mem>>
      tpu.enqueue_dma source(%394 : memref<128xf32, #tpu.memory_space<any>>) target(%396 : memref<128xf32, #tpu.memory_space<vmem>>) target_semaphore(%398 : memref<!tpu.dma_semaphore, #tpu.memory_space<semaphore_mem>>)
      %c6_i32_207 = arith.constant 6 : i32
      %399 = arith.addi %344, %c6_i32_207 : i32
      %400 = arith.index_cast %399 : i32 to index
      %401 = memref.load %arg1[%400] : memref<64xi32, #tpu.memory_space<smem>>
      %c6_i32_208 = arith.constant 6 : i32
      %c3_i32_209 = arith.constant 3 : i32
      %c0_i32_210 = arith.constant 0 : i32
      %402 = tpu.memref_slice %arg3[%401, %c0_i32_210] : memref<50x128xf32, #tpu.memory_space<any>> -> memref<1x128xf32, #tpu.memory_space<any>>
      %403 = tpu.memref_squeeze %402 : memref<1x128xf32, #tpu.memory_space<any>> -> memref<128xf32, #tpu.memory_space<any>>
      %c0_i32_211 = arith.constant 0 : i32
      %404 = tpu.memref_slice %arg5[%123, %c6_i32_208, %c3_i32_209, %c0_i32_211] : memref<2x8x8x128xf32, #tpu.memory_space<vmem>> -> memref<1x1x1x128xf32, #tpu.memory_space<vmem>>
      %405 = tpu.memref_squeeze %404 : memref<1x1x1x128xf32, #tpu.memory_space<vmem>> -> memref<128xf32, #tpu.memory_space<vmem>>
      %406 = tpu.memref_slice %arg6[%123] : memref<2x!tpu.dma_semaphore, #tpu.memory_space<semaphore_mem>> -> memref<1x!tpu.dma_semaphore, #tpu.memory_space<semaphore_mem>>
      %407 = tpu.memref_squeeze %406 : memref<1x!tpu.dma_semaphore, #tpu.memory_space<semaphore_mem>> -> memref<!tpu.dma_semaphore, #tpu.memory_space<semaphore_mem>>
      tpu.enqueue_dma source(%403 : memref<128xf32, #tpu.memory_space<any>>) target(%405 : memref<128xf32, #tpu.memory_space<vmem>>) target_semaphore(%407 : memref<!tpu.dma_semaphore, #tpu.memory_space<semaphore_mem>>)
      %c7_i32_212 = arith.constant 7 : i32
      %408 = arith.addi %344, %c7_i32_212 : i32
      %409 = arith.index_cast %408 : i32 to index
      %410 = memref.load %arg1[%409] : memref<64xi32, #tpu.memory_space<smem>>
      %c7_i32_213 = arith.constant 7 : i32
      %c3_i32_214 = arith.constant 3 : i32
      %c0_i32_215 = arith.constant 0 : i32
      %411 = tpu.memref_slice %arg3[%410, %c0_i32_215] : memref<50x128xf32, #tpu.memory_space<any>> -> memref<1x128xf32, #tpu.memory_space<any>>
      %412 = tpu.memref_squeeze %411 : memref<1x128xf32, #tpu.memory_space<any>> -> memref<128xf32, #tpu.memory_space<any>>
      %c0_i32_216 = arith.constant 0 : i32
      %413 = tpu.memref_slice %arg5[%123, %c7_i32_213, %c3_i32_214, %c0_i32_216] : memref<2x8x8x128xf32, #tpu.memory_space<vmem>> -> memref<1x1x1x128xf32, #tpu.memory_space<vmem>>
      %414 = tpu.memref_squeeze %413 : memref<1x1x1x128xf32, #tpu.memory_space<vmem>> -> memref<128xf32, #tpu.memory_space<vmem>>
      %415 = tpu.memref_slice %arg6[%123] : memref<2x!tpu.dma_semaphore, #tpu.memory_space<semaphore_mem>> -> memref<1x!tpu.dma_semaphore, #tpu.memory_space<semaphore_mem>>
      %416 = tpu.memref_squeeze %415 : memref<1x!tpu.dma_semaphore, #tpu.memory_space<semaphore_mem>> -> memref<!tpu.dma_semaphore, #tpu.memory_space<semaphore_mem>>
      tpu.enqueue_dma source(%412 : memref<128xf32, #tpu.memory_space<any>>) target(%414 : memref<128xf32, #tpu.memory_space<vmem>>) target_semaphore(%416 : memref<!tpu.dma_semaphore, #tpu.memory_space<semaphore_mem>>)
      %c32_i32 = arith.constant 32 : i32
      %417 = arith.addi %124, %c32_i32 : i32
      %c0_i32_217 = arith.constant 0 : i32
      %418 = arith.addi %417, %c0_i32_217 : i32
      %419 = arith.index_cast %418 : i32 to index
      %420 = memref.load %arg1[%419] : memref<64xi32, #tpu.memory_space<smem>>
      %c0_i32_218 = arith.constant 0 : i32
      %c4_i32_219 = arith.constant 4 : i32
      %c0_i32_220 = arith.constant 0 : i32
      %421 = tpu.memref_slice %arg3[%420, %c0_i32_220] : memref<50x128xf32, #tpu.memory_space<any>> -> memref<1x128xf32, #tpu.memory_space<any>>
      %422 = tpu.memref_squeeze %421 : memref<1x128xf32, #tpu.memory_space<any>> -> memref<128xf32, #tpu.memory_space<any>>
      %c0_i32_221 = arith.constant 0 : i32
      %423 = tpu.memref_slice %arg5[%123, %c0_i32_218, %c4_i32_219, %c0_i32_221] : memref<2x8x8x128xf32, #tpu.memory_space<vmem>> -> memref<1x1x1x128xf32, #tpu.memory_space<vmem>>
      %424 = tpu.memref_squeeze %423 : memref<1x1x1x128xf32, #tpu.memory_space<vmem>> -> memref<128xf32, #tpu.memory_space<vmem>>
      %425 = tpu.memref_slice %arg6[%123] : memref<2x!tpu.dma_semaphore, #tpu.memory_space<semaphore_mem>> -> memref<1x!tpu.dma_semaphore, #tpu.memory_space<semaphore_mem>>
      %426 = tpu.memref_squeeze %425 : memref<1x!tpu.dma_semaphore, #tpu.memory_space<semaphore_mem>> -> memref<!tpu.dma_semaphore, #tpu.memory_space<semaphore_mem>>
      tpu.enqueue_dma source(%422 : memref<128xf32, #tpu.memory_space<any>>) target(%424 : memref<128xf32, #tpu.memory_space<vmem>>) target_semaphore(%426 : memref<!tpu.dma_semaphore, #tpu.memory_space<semaphore_mem>>)
      %c1_i32_222 = arith.constant 1 : i32
      %427 = arith.addi %417, %c1_i32_222 : i32
      %428 = arith.index_cast %427 : i32 to index
      %429 = memref.load %arg1[%428] : memref<64xi32, #tpu.memory_space<smem>>
      %c1_i32_223 = arith.constant 1 : i32
      %c4_i32_224 = arith.constant 4 : i32
      %c0_i32_225 = arith.constant 0 : i32
      %430 = tpu.memref_slice %arg3[%429, %c0_i32_225] : memref<50x128xf32, #tpu.memory_space<any>> -> memref<1x128xf32, #tpu.memory_space<any>>
      %431 = tpu.memref_squeeze %430 : memref<1x128xf32, #tpu.memory_space<any>> -> memref<128xf32, #tpu.memory_space<any>>
      %c0_i32_226 = arith.constant 0 : i32
      %432 = tpu.memref_slice %arg5[%123, %c1_i32_223, %c4_i32_224, %c0_i32_226] : memref<2x8x8x128xf32, #tpu.memory_space<vmem>> -> memref<1x1x1x128xf32, #tpu.memory_space<vmem>>
      %433 = tpu.memref_squeeze %432 : memref<1x1x1x128xf32, #tpu.memory_space<vmem>> -> memref<128xf32, #tpu.memory_space<vmem>>
      %434 = tpu.memref_slice %arg6[%123] : memref<2x!tpu.dma_semaphore, #tpu.memory_space<semaphore_mem>> -> memref<1x!tpu.dma_semaphore, #tpu.memory_space<semaphore_mem>>
      %435 = tpu.memref_squeeze %434 : memref<1x!tpu.dma_semaphore, #tpu.memory_space<semaphore_mem>> -> memref<!tpu.dma_semaphore, #tpu.memory_space<semaphore_mem>>
      tpu.enqueue_dma source(%431 : memref<128xf32, #tpu.memory_space<any>>) target(%433 : memref<128xf32, #tpu.memory_space<vmem>>) target_semaphore(%435 : memref<!tpu.dma_semaphore, #tpu.memory_space<semaphore_mem>>)
      %c2_i32_227 = arith.constant 2 : i32
      %436 = arith.addi %417, %c2_i32_227 : i32
      %437 = arith.index_cast %436 : i32 to index
      %438 = memref.load %arg1[%437] : memref<64xi32, #tpu.memory_space<smem>>
      %c2_i32_228 = arith.constant 2 : i32
      %c4_i32_229 = arith.constant 4 : i32
      %c0_i32_230 = arith.constant 0 : i32
      %439 = tpu.memref_slice %arg3[%438, %c0_i32_230] : memref<50x128xf32, #tpu.memory_space<any>> -> memref<1x128xf32, #tpu.memory_space<any>>
      %440 = tpu.memref_squeeze %439 : memref<1x128xf32, #tpu.memory_space<any>> -> memref<128xf32, #tpu.memory_space<any>>
      %c0_i32_231 = arith.constant 0 : i32
      %441 = tpu.memref_slice %arg5[%123, %c2_i32_228, %c4_i32_229, %c0_i32_231] : memref<2x8x8x128xf32, #tpu.memory_space<vmem>> -> memref<1x1x1x128xf32, #tpu.memory_space<vmem>>
      %442 = tpu.memref_squeeze %441 : memref<1x1x1x128xf32, #tpu.memory_space<vmem>> -> memref<128xf32, #tpu.memory_space<vmem>>
      %443 = tpu.memref_slice %arg6[%123] : memref<2x!tpu.dma_semaphore, #tpu.memory_space<semaphore_mem>> -> memref<1x!tpu.dma_semaphore, #tpu.memory_space<semaphore_mem>>
      %444 = tpu.memref_squeeze %443 : memref<1x!tpu.dma_semaphore, #tpu.memory_space<semaphore_mem>> -> memref<!tpu.dma_semaphore, #tpu.memory_space<semaphore_mem>>
      tpu.enqueue_dma source(%440 : memref<128xf32, #tpu.memory_space<any>>) target(%442 : memref<128xf32, #tpu.memory_space<vmem>>) target_semaphore(%444 : memref<!tpu.dma_semaphore, #tpu.memory_space<semaphore_mem>>)
      %c3_i32_232 = arith.constant 3 : i32
      %445 = arith.addi %417, %c3_i32_232 : i32
      %446 = arith.index_cast %445 : i32 to index
      %447 = memref.load %arg1[%446] : memref<64xi32, #tpu.memory_space<smem>>
      %c3_i32_233 = arith.constant 3 : i32
      %c4_i32_234 = arith.constant 4 : i32
      %c0_i32_235 = arith.constant 0 : i32
      %448 = tpu.memref_slice %arg3[%447, %c0_i32_235] : memref<50x128xf32, #tpu.memory_space<any>> -> memref<1x128xf32, #tpu.memory_space<any>>
      %449 = tpu.memref_squeeze %448 : memref<1x128xf32, #tpu.memory_space<any>> -> memref<128xf32, #tpu.memory_space<any>>
      %c0_i32_236 = arith.constant 0 : i32
      %450 = tpu.memref_slice %arg5[%123, %c3_i32_233, %c4_i32_234, %c0_i32_236] : memref<2x8x8x128xf32, #tpu.memory_space<vmem>> -> memref<1x1x1x128xf32, #tpu.memory_space<vmem>>
      %451 = tpu.memref_squeeze %450 : memref<1x1x1x128xf32, #tpu.memory_space<vmem>> -> memref<128xf32, #tpu.memory_space<vmem>>
      %452 = tpu.memref_slice %arg6[%123] : memref<2x!tpu.dma_semaphore, #tpu.memory_space<semaphore_mem>> -> memref<1x!tpu.dma_semaphore, #tpu.memory_space<semaphore_mem>>
      %453 = tpu.memref_squeeze %452 : memref<1x!tpu.dma_semaphore, #tpu.memory_space<semaphore_mem>> -> memref<!tpu.dma_semaphore, #tpu.memory_space<semaphore_mem>>
      tpu.enqueue_dma source(%449 : memref<128xf32, #tpu.memory_space<any>>) target(%451 : memref<128xf32, #tpu.memory_space<vmem>>) target_semaphore(%453 : memref<!tpu.dma_semaphore, #tpu.memory_space<semaphore_mem>>)
      %c4_i32_237 = arith.constant 4 : i32
      %454 = arith.addi %417, %c4_i32_237 : i32
      %455 = arith.index_cast %454 : i32 to index
      %456 = memref.load %arg1[%455] : memref<64xi32, #tpu.memory_space<smem>>
      %c4_i32_238 = arith.constant 4 : i32
      %c4_i32_239 = arith.constant 4 : i32
      %c0_i32_240 = arith.constant 0 : i32
      %457 = tpu.memref_slice %arg3[%456, %c0_i32_240] : memref<50x128xf32, #tpu.memory_space<any>> -> memref<1x128xf32, #tpu.memory_space<any>>
      %458 = tpu.memref_squeeze %457 : memref<1x128xf32, #tpu.memory_space<any>> -> memref<128xf32, #tpu.memory_space<any>>
      %c0_i32_241 = arith.constant 0 : i32
      %459 = tpu.memref_slice %arg5[%123, %c4_i32_238, %c4_i32_239, %c0_i32_241] : memref<2x8x8x128xf32, #tpu.memory_space<vmem>> -> memref<1x1x1x128xf32, #tpu.memory_space<vmem>>
      %460 = tpu.memref_squeeze %459 : memref<1x1x1x128xf32, #tpu.memory_space<vmem>> -> memref<128xf32, #tpu.memory_space<vmem>>
      %461 = tpu.memref_slice %arg6[%123] : memref<2x!tpu.dma_semaphore, #tpu.memory_space<semaphore_mem>> -> memref<1x!tpu.dma_semaphore, #tpu.memory_space<semaphore_mem>>
      %462 = tpu.memref_squeeze %461 : memref<1x!tpu.dma_semaphore, #tpu.memory_space<semaphore_mem>> -> memref<!tpu.dma_semaphore, #tpu.memory_space<semaphore_mem>>
      tpu.enqueue_dma source(%458 : memref<128xf32, #tpu.memory_space<any>>) target(%460 : memref<128xf32, #tpu.memory_space<vmem>>) target_semaphore(%462 : memref<!tpu.dma_semaphore, #tpu.memory_space<semaphore_mem>>)
      %c5_i32_242 = arith.constant 5 : i32
      %463 = arith.addi %417, %c5_i32_242 : i32
      %464 = arith.index_cast %463 : i32 to index
      %465 = memref.load %arg1[%464] : memref<64xi32, #tpu.memory_space<smem>>
      %c5_i32_243 = arith.constant 5 : i32
      %c4_i32_244 = arith.constant 4 : i32
      %c0_i32_245 = arith.constant 0 : i32
      %466 = tpu.memref_slice %arg3[%465, %c0_i32_245] : memref<50x128xf32, #tpu.memory_space<any>> -> memref<1x128xf32, #tpu.memory_space<any>>
      %467 = tpu.memref_squeeze %466 : memref<1x128xf32, #tpu.memory_space<any>> -> memref<128xf32, #tpu.memory_space<any>>
      %c0_i32_246 = arith.constant 0 : i32
      %468 = tpu.memref_slice %arg5[%123, %c5_i32_243, %c4_i32_244, %c0_i32_246] : memref<2x8x8x128xf32, #tpu.memory_space<vmem>> -> memref<1x1x1x128xf32, #tpu.memory_space<vmem>>
      %469 = tpu.memref_squeeze %468 : memref<1x1x1x128xf32, #tpu.memory_space<vmem>> -> memref<128xf32, #tpu.memory_space<vmem>>
      %470 = tpu.memref_slice %arg6[%123] : memref<2x!tpu.dma_semaphore, #tpu.memory_space<semaphore_mem>> -> memref<1x!tpu.dma_semaphore, #tpu.memory_space<semaphore_mem>>
      %471 = tpu.memref_squeeze %470 : memref<1x!tpu.dma_semaphore, #tpu.memory_space<semaphore_mem>> -> memref<!tpu.dma_semaphore, #tpu.memory_space<semaphore_mem>>
      tpu.enqueue_dma source(%467 : memref<128xf32, #tpu.memory_space<any>>) target(%469 : memref<128xf32, #tpu.memory_space<vmem>>) target_semaphore(%471 : memref<!tpu.dma_semaphore, #tpu.memory_space<semaphore_mem>>)
      %c6_i32_247 = arith.constant 6 : i32
      %472 = arith.addi %417, %c6_i32_247 : i32
      %473 = arith.index_cast %472 : i32 to index
      %474 = memref.load %arg1[%473] : memref<64xi32, #tpu.memory_space<smem>>
      %c6_i32_248 = arith.constant 6 : i32
      %c4_i32_249 = arith.constant 4 : i32
      %c0_i32_250 = arith.constant 0 : i32
      %475 = tpu.memref_slice %arg3[%474, %c0_i32_250] : memref<50x128xf32, #tpu.memory_space<any>> -> memref<1x128xf32, #tpu.memory_space<any>>
      %476 = tpu.memref_squeeze %475 : memref<1x128xf32, #tpu.memory_space<any>> -> memref<128xf32, #tpu.memory_space<any>>
      %c0_i32_251 = arith.constant 0 : i32
      %477 = tpu.memref_slice %arg5[%123, %c6_i32_248, %c4_i32_249, %c0_i32_251] : memref<2x8x8x128xf32, #tpu.memory_space<vmem>> -> memref<1x1x1x128xf32, #tpu.memory_space<vmem>>
      %478 = tpu.memref_squeeze %477 : memref<1x1x1x128xf32, #tpu.memory_space<vmem>> -> memref<128xf32, #tpu.memory_space<vmem>>
      %479 = tpu.memref_slice %arg6[%123] : memref<2x!tpu.dma_semaphore, #tpu.memory_space<semaphore_mem>> -> memref<1x!tpu.dma_semaphore, #tpu.memory_space<semaphore_mem>>
      %480 = tpu.memref_squeeze %479 : memref<1x!tpu.dma_semaphore, #tpu.memory_space<semaphore_mem>> -> memref<!tpu.dma_semaphore, #tpu.memory_space<semaphore_mem>>
      tpu.enqueue_dma source(%476 : memref<128xf32, #tpu.memory_space<any>>) target(%478 : memref<128xf32, #tpu.memory_space<vmem>>) target_semaphore(%480 : memref<!tpu.dma_semaphore, #tpu.memory_space<semaphore_mem>>)
      %c7_i32_252 = arith.constant 7 : i32
      %481 = arith.addi %417, %c7_i32_252 : i32
      %482 = arith.index_cast %481 : i32 to index
      %483 = memref.load %arg1[%482] : memref<64xi32, #tpu.memory_space<smem>>
      %c7_i32_253 = arith.constant 7 : i32
      %c4_i32_254 = arith.constant 4 : i32
      %c0_i32_255 = arith.constant 0 : i32
      %484 = tpu.memref_slice %arg3[%483, %c0_i32_255] : memref<50x128xf32, #tpu.memory_space<any>> -> memref<1x128xf32, #tpu.memory_space<any>>
      %485 = tpu.memref_squeeze %484 : memref<1x128xf32, #tpu.memory_space<any>> -> memref<128xf32, #tpu.memory_space<any>>
      %c0_i32_256 = arith.constant 0 : i32
      %486 = tpu.memref_slice %arg5[%123, %c7_i32_253, %c4_i32_254, %c0_i32_256] : memref<2x8x8x128xf32, #tpu.memory_space<vmem>> -> memref<1x1x1x128xf32, #tpu.memory_space<vmem>>
      %487 = tpu.memref_squeeze %486 : memref<1x1x1x128xf32, #tpu.memory_space<vmem>> -> memref<128xf32, #tpu.memory_space<vmem>>
      %488 = tpu.memref_slice %arg6[%123] : memref<2x!tpu.dma_semaphore, #tpu.memory_space<semaphore_mem>> -> memref<1x!tpu.dma_semaphore, #tpu.memory_space<semaphore_mem>>
      %489 = tpu.memref_squeeze %488 : memref<1x!tpu.dma_semaphore, #tpu.memory_space<semaphore_mem>> -> memref<!tpu.dma_semaphore, #tpu.memory_space<semaphore_mem>>
      tpu.enqueue_dma source(%485 : memref<128xf32, #tpu.memory_space<any>>) target(%487 : memref<128xf32, #tpu.memory_space<vmem>>) target_semaphore(%489 : memref<!tpu.dma_semaphore, #tpu.memory_space<semaphore_mem>>)
      %c40_i32 = arith.constant 40 : i32
      %490 = arith.addi %124, %c40_i32 : i32
      %c0_i32_257 = arith.constant 0 : i32
      %491 = arith.addi %490, %c0_i32_257 : i32
      %492 = arith.index_cast %491 : i32 to index
      %493 = memref.load %arg1[%492] : memref<64xi32, #tpu.memory_space<smem>>
      %c0_i32_258 = arith.constant 0 : i32
      %c5_i32_259 = arith.constant 5 : i32
      %c0_i32_260 = arith.constant 0 : i32
      %494 = tpu.memref_slice %arg3[%493, %c0_i32_260] : memref<50x128xf32, #tpu.memory_space<any>> -> memref<1x128xf32, #tpu.memory_space<any>>
      %495 = tpu.memref_squeeze %494 : memref<1x128xf32, #tpu.memory_space<any>> -> memref<128xf32, #tpu.memory_space<any>>
      %c0_i32_261 = arith.constant 0 : i32
      %496 = tpu.memref_slice %arg5[%123, %c0_i32_258, %c5_i32_259, %c0_i32_261] : memref<2x8x8x128xf32, #tpu.memory_space<vmem>> -> memref<1x1x1x128xf32, #tpu.memory_space<vmem>>
      %497 = tpu.memref_squeeze %496 : memref<1x1x1x128xf32, #tpu.memory_space<vmem>> -> memref<128xf32, #tpu.memory_space<vmem>>
      %498 = tpu.memref_slice %arg6[%123] : memref<2x!tpu.dma_semaphore, #tpu.memory_space<semaphore_mem>> -> memref<1x!tpu.dma_semaphore, #tpu.memory_space<semaphore_mem>>
      %499 = tpu.memref_squeeze %498 : memref<1x!tpu.dma_semaphore, #tpu.memory_space<semaphore_mem>> -> memref<!tpu.dma_semaphore, #tpu.memory_space<semaphore_mem>>
      tpu.enqueue_dma source(%495 : memref<128xf32, #tpu.memory_space<any>>) target(%497 : memref<128xf32, #tpu.memory_space<vmem>>) target_semaphore(%499 : memref<!tpu.dma_semaphore, #tpu.memory_space<semaphore_mem>>)
      %c1_i32_262 = arith.constant 1 : i32
      %500 = arith.addi %490, %c1_i32_262 : i32
      %501 = arith.index_cast %500 : i32 to index
      %502 = memref.load %arg1[%501] : memref<64xi32, #tpu.memory_space<smem>>
      %c1_i32_263 = arith.constant 1 : i32
      %c5_i32_264 = arith.constant 5 : i32
      %c0_i32_265 = arith.constant 0 : i32
      %503 = tpu.memref_slice %arg3[%502, %c0_i32_265] : memref<50x128xf32, #tpu.memory_space<any>> -> memref<1x128xf32, #tpu.memory_space<any>>
      %504 = tpu.memref_squeeze %503 : memref<1x128xf32, #tpu.memory_space<any>> -> memref<128xf32, #tpu.memory_space<any>>
      %c0_i32_266 = arith.constant 0 : i32
      %505 = tpu.memref_slice %arg5[%123, %c1_i32_263, %c5_i32_264, %c0_i32_266] : memref<2x8x8x128xf32, #tpu.memory_space<vmem>> -> memref<1x1x1x128xf32, #tpu.memory_space<vmem>>
      %506 = tpu.memref_squeeze %505 : memref<1x1x1x128xf32, #tpu.memory_space<vmem>> -> memref<128xf32, #tpu.memory_space<vmem>>
      %507 = tpu.memref_slice %arg6[%123] : memref<2x!tpu.dma_semaphore, #tpu.memory_space<semaphore_mem>> -> memref<1x!tpu.dma_semaphore, #tpu.memory_space<semaphore_mem>>
      %508 = tpu.memref_squeeze %507 : memref<1x!tpu.dma_semaphore, #tpu.memory_space<semaphore_mem>> -> memref<!tpu.dma_semaphore, #tpu.memory_space<semaphore_mem>>
      tpu.enqueue_dma source(%504 : memref<128xf32, #tpu.memory_space<any>>) target(%506 : memref<128xf32, #tpu.memory_space<vmem>>) target_semaphore(%508 : memref<!tpu.dma_semaphore, #tpu.memory_space<semaphore_mem>>)
      %c2_i32_267 = arith.constant 2 : i32
      %509 = arith.addi %490, %c2_i32_267 : i32
      %510 = arith.index_cast %509 : i32 to index
      %511 = memref.load %arg1[%510] : memref<64xi32, #tpu.memory_space<smem>>
      %c2_i32_268 = arith.constant 2 : i32
      %c5_i32_269 = arith.constant 5 : i32
      %c0_i32_270 = arith.constant 0 : i32
      %512 = tpu.memref_slice %arg3[%511, %c0_i32_270] : memref<50x128xf32, #tpu.memory_space<any>> -> memref<1x128xf32, #tpu.memory_space<any>>
      %513 = tpu.memref_squeeze %512 : memref<1x128xf32, #tpu.memory_space<any>> -> memref<128xf32, #tpu.memory_space<any>>
      %c0_i32_271 = arith.constant 0 : i32
      %514 = tpu.memref_slice %arg5[%123, %c2_i32_268, %c5_i32_269, %c0_i32_271] : memref<2x8x8x128xf32, #tpu.memory_space<vmem>> -> memref<1x1x1x128xf32, #tpu.memory_space<vmem>>
      %515 = tpu.memref_squeeze %514 : memref<1x1x1x128xf32, #tpu.memory_space<vmem>> -> memref<128xf32, #tpu.memory_space<vmem>>
      %516 = tpu.memref_slice %arg6[%123] : memref<2x!tpu.dma_semaphore, #tpu.memory_space<semaphore_mem>> -> memref<1x!tpu.dma_semaphore, #tpu.memory_space<semaphore_mem>>
      %517 = tpu.memref_squeeze %516 : memref<1x!tpu.dma_semaphore, #tpu.memory_space<semaphore_mem>> -> memref<!tpu.dma_semaphore, #tpu.memory_space<semaphore_mem>>
      tpu.enqueue_dma source(%513 : memref<128xf32, #tpu.memory_space<any>>) target(%515 : memref<128xf32, #tpu.memory_space<vmem>>) target_semaphore(%517 : memref<!tpu.dma_semaphore, #tpu.memory_space<semaphore_mem>>)
      %c3_i32_272 = arith.constant 3 : i32
      %518 = arith.addi %490, %c3_i32_272 : i32
      %519 = arith.index_cast %518 : i32 to index
      %520 = memref.load %arg1[%519] : memref<64xi32, #tpu.memory_space<smem>>
      %c3_i32_273 = arith.constant 3 : i32
      %c5_i32_274 = arith.constant 5 : i32
      %c0_i32_275 = arith.constant 0 : i32
      %521 = tpu.memref_slice %arg3[%520, %c0_i32_275] : memref<50x128xf32, #tpu.memory_space<any>> -> memref<1x128xf32, #tpu.memory_space<any>>
      %522 = tpu.memref_squeeze %521 : memref<1x128xf32, #tpu.memory_space<any>> -> memref<128xf32, #tpu.memory_space<any>>
      %c0_i32_276 = arith.constant 0 : i32
      %523 = tpu.memref_slice %arg5[%123, %c3_i32_273, %c5_i32_274, %c0_i32_276] : memref<2x8x8x128xf32, #tpu.memory_space<vmem>> -> memref<1x1x1x128xf32, #tpu.memory_space<vmem>>
      %524 = tpu.memref_squeeze %523 : memref<1x1x1x128xf32, #tpu.memory_space<vmem>> -> memref<128xf32, #tpu.memory_space<vmem>>
      %525 = tpu.memref_slice %arg6[%123] : memref<2x!tpu.dma_semaphore, #tpu.memory_space<semaphore_mem>> -> memref<1x!tpu.dma_semaphore, #tpu.memory_space<semaphore_mem>>
      %526 = tpu.memref_squeeze %525 : memref<1x!tpu.dma_semaphore, #tpu.memory_space<semaphore_mem>> -> memref<!tpu.dma_semaphore, #tpu.memory_space<semaphore_mem>>
      tpu.enqueue_dma source(%522 : memref<128xf32, #tpu.memory_space<any>>) target(%524 : memref<128xf32, #tpu.memory_space<vmem>>) target_semaphore(%526 : memref<!tpu.dma_semaphore, #tpu.memory_space<semaphore_mem>>)
      %c4_i32_277 = arith.constant 4 : i32
      %527 = arith.addi %490, %c4_i32_277 : i32
      %528 = arith.index_cast %527 : i32 to index
      %529 = memref.load %arg1[%528] : memref<64xi32, #tpu.memory_space<smem>>
      %c4_i32_278 = arith.constant 4 : i32
      %c5_i32_279 = arith.constant 5 : i32
      %c0_i32_280 = arith.constant 0 : i32
      %530 = tpu.memref_slice %arg3[%529, %c0_i32_280] : memref<50x128xf32, #tpu.memory_space<any>> -> memref<1x128xf32, #tpu.memory_space<any>>
      %531 = tpu.memref_squeeze %530 : memref<1x128xf32, #tpu.memory_space<any>> -> memref<128xf32, #tpu.memory_space<any>>
      %c0_i32_281 = arith.constant 0 : i32
      %532 = tpu.memref_slice %arg5[%123, %c4_i32_278, %c5_i32_279, %c0_i32_281] : memref<2x8x8x128xf32, #tpu.memory_space<vmem>> -> memref<1x1x1x128xf32, #tpu.memory_space<vmem>>
      %533 = tpu.memref_squeeze %532 : memref<1x1x1x128xf32, #tpu.memory_space<vmem>> -> memref<128xf32, #tpu.memory_space<vmem>>
      %534 = tpu.memref_slice %arg6[%123] : memref<2x!tpu.dma_semaphore, #tpu.memory_space<semaphore_mem>> -> memref<1x!tpu.dma_semaphore, #tpu.memory_space<semaphore_mem>>
      %535 = tpu.memref_squeeze %534 : memref<1x!tpu.dma_semaphore, #tpu.memory_space<semaphore_mem>> -> memref<!tpu.dma_semaphore, #tpu.memory_space<semaphore_mem>>
      tpu.enqueue_dma source(%531 : memref<128xf32, #tpu.memory_space<any>>) target(%533 : memref<128xf32, #tpu.memory_space<vmem>>) target_semaphore(%535 : memref<!tpu.dma_semaphore, #tpu.memory_space<semaphore_mem>>)
      %c5_i32_282 = arith.constant 5 : i32
      %536 = arith.addi %490, %c5_i32_282 : i32
      %537 = arith.index_cast %536 : i32 to index
      %538 = memref.load %arg1[%537] : memref<64xi32, #tpu.memory_space<smem>>
      %c5_i32_283 = arith.constant 5 : i32
      %c5_i32_284 = arith.constant 5 : i32
      %c0_i32_285 = arith.constant 0 : i32
      %539 = tpu.memref_slice %arg3[%538, %c0_i32_285] : memref<50x128xf32, #tpu.memory_space<any>> -> memref<1x128xf32, #tpu.memory_space<any>>
      %540 = tpu.memref_squeeze %539 : memref<1x128xf32, #tpu.memory_space<any>> -> memref<128xf32, #tpu.memory_space<any>>
      %c0_i32_286 = arith.constant 0 : i32
      %541 = tpu.memref_slice %arg5[%123, %c5_i32_283, %c5_i32_284, %c0_i32_286] : memref<2x8x8x128xf32, #tpu.memory_space<vmem>> -> memref<1x1x1x128xf32, #tpu.memory_space<vmem>>
      %542 = tpu.memref_squeeze %541 : memref<1x1x1x128xf32, #tpu.memory_space<vmem>> -> memref<128xf32, #tpu.memory_space<vmem>>
      %543 = tpu.memref_slice %arg6[%123] : memref<2x!tpu.dma_semaphore, #tpu.memory_space<semaphore_mem>> -> memref<1x!tpu.dma_semaphore, #tpu.memory_space<semaphore_mem>>
      %544 = tpu.memref_squeeze %543 : memref<1x!tpu.dma_semaphore, #tpu.memory_space<semaphore_mem>> -> memref<!tpu.dma_semaphore, #tpu.memory_space<semaphore_mem>>
      tpu.enqueue_dma source(%540 : memref<128xf32, #tpu.memory_space<any>>) target(%542 : memref<128xf32, #tpu.memory_space<vmem>>) target_semaphore(%544 : memref<!tpu.dma_semaphore, #tpu.memory_space<semaphore_mem>>)
      %c6_i32_287 = arith.constant 6 : i32
      %545 = arith.addi %490, %c6_i32_287 : i32
      %546 = arith.index_cast %545 : i32 to index
      %547 = memref.load %arg1[%546] : memref<64xi32, #tpu.memory_space<smem>>
      %c6_i32_288 = arith.constant 6 : i32
      %c5_i32_289 = arith.constant 5 : i32
      %c0_i32_290 = arith.constant 0 : i32
      %548 = tpu.memref_slice %arg3[%547, %c0_i32_290] : memref<50x128xf32, #tpu.memory_space<any>> -> memref<1x128xf32, #tpu.memory_space<any>>
      %549 = tpu.memref_squeeze %548 : memref<1x128xf32, #tpu.memory_space<any>> -> memref<128xf32, #tpu.memory_space<any>>
      %c0_i32_291 = arith.constant 0 : i32
      %550 = tpu.memref_slice %arg5[%123, %c6_i32_288, %c5_i32_289, %c0_i32_291] : memref<2x8x8x128xf32, #tpu.memory_space<vmem>> -> memref<1x1x1x128xf32, #tpu.memory_space<vmem>>
      %551 = tpu.memref_squeeze %550 : memref<1x1x1x128xf32, #tpu.memory_space<vmem>> -> memref<128xf32, #tpu.memory_space<vmem>>
      %552 = tpu.memref_slice %arg6[%123] : memref<2x!tpu.dma_semaphore, #tpu.memory_space<semaphore_mem>> -> memref<1x!tpu.dma_semaphore, #tpu.memory_space<semaphore_mem>>
      %553 = tpu.memref_squeeze %552 : memref<1x!tpu.dma_semaphore, #tpu.memory_space<semaphore_mem>> -> memref<!tpu.dma_semaphore, #tpu.memory_space<semaphore_mem>>
      tpu.enqueue_dma source(%549 : memref<128xf32, #tpu.memory_space<any>>) target(%551 : memref<128xf32, #tpu.memory_space<vmem>>) target_semaphore(%553 : memref<!tpu.dma_semaphore, #tpu.memory_space<semaphore_mem>>)
      %c7_i32_292 = arith.constant 7 : i32
      %554 = arith.addi %490, %c7_i32_292 : i32
      %555 = arith.index_cast %554 : i32 to index
      %556 = memref.load %arg1[%555] : memref<64xi32, #tpu.memory_space<smem>>
      %c7_i32_293 = arith.constant 7 : i32
      %c5_i32_294 = arith.constant 5 : i32
      %c0_i32_295 = arith.constant 0 : i32
      %557 = tpu.memref_slice %arg3[%556, %c0_i32_295] : memref<50x128xf32, #tpu.memory_space<any>> -> memref<1x128xf32, #tpu.memory_space<any>>
      %558 = tpu.memref_squeeze %557 : memref<1x128xf32, #tpu.memory_space<any>> -> memref<128xf32, #tpu.memory_space<any>>
      %c0_i32_296 = arith.constant 0 : i32
      %559 = tpu.memref_slice %arg5[%123, %c7_i32_293, %c5_i32_294, %c0_i32_296] : memref<2x8x8x128xf32, #tpu.memory_space<vmem>> -> memref<1x1x1x128xf32, #tpu.memory_space<vmem>>
      %560 = tpu.memref_squeeze %559 : memref<1x1x1x128xf32, #tpu.memory_space<vmem>> -> memref<128xf32, #tpu.memory_space<vmem>>
      %561 = tpu.memref_slice %arg6[%123] : memref<2x!tpu.dma_semaphore, #tpu.memory_space<semaphore_mem>> -> memref<1x!tpu.dma_semaphore, #tpu.memory_space<semaphore_mem>>
      %562 = tpu.memref_squeeze %561 : memref<1x!tpu.dma_semaphore, #tpu.memory_space<semaphore_mem>> -> memref<!tpu.dma_semaphore, #tpu.memory_space<semaphore_mem>>
      tpu.enqueue_dma source(%558 : memref<128xf32, #tpu.memory_space<any>>) target(%560 : memref<128xf32, #tpu.memory_space<vmem>>) target_semaphore(%562 : memref<!tpu.dma_semaphore, #tpu.memory_space<semaphore_mem>>)
      %c48_i32 = arith.constant 48 : i32
      %563 = arith.addi %124, %c48_i32 : i32
      %c0_i32_297 = arith.constant 0 : i32
      %564 = arith.addi %563, %c0_i32_297 : i32
      %565 = arith.index_cast %564 : i32 to index
      %566 = memref.load %arg1[%565] : memref<64xi32, #tpu.memory_space<smem>>
      %c0_i32_298 = arith.constant 0 : i32
      %c6_i32_299 = arith.constant 6 : i32
      %c0_i32_300 = arith.constant 0 : i32
      %567 = tpu.memref_slice %arg3[%566, %c0_i32_300] : memref<50x128xf32, #tpu.memory_space<any>> -> memref<1x128xf32, #tpu.memory_space<any>>
      %568 = tpu.memref_squeeze %567 : memref<1x128xf32, #tpu.memory_space<any>> -> memref<128xf32, #tpu.memory_space<any>>
      %c0_i32_301 = arith.constant 0 : i32
      %569 = tpu.memref_slice %arg5[%123, %c0_i32_298, %c6_i32_299, %c0_i32_301] : memref<2x8x8x128xf32, #tpu.memory_space<vmem>> -> memref<1x1x1x128xf32, #tpu.memory_space<vmem>>
      %570 = tpu.memref_squeeze %569 : memref<1x1x1x128xf32, #tpu.memory_space<vmem>> -> memref<128xf32, #tpu.memory_space<vmem>>
      %571 = tpu.memref_slice %arg6[%123] : memref<2x!tpu.dma_semaphore, #tpu.memory_space<semaphore_mem>> -> memref<1x!tpu.dma_semaphore, #tpu.memory_space<semaphore_mem>>
      %572 = tpu.memref_squeeze %571 : memref<1x!tpu.dma_semaphore, #tpu.memory_space<semaphore_mem>> -> memref<!tpu.dma_semaphore, #tpu.memory_space<semaphore_mem>>
      tpu.enqueue_dma source(%568 : memref<128xf32, #tpu.memory_space<any>>) target(%570 : memref<128xf32, #tpu.memory_space<vmem>>) target_semaphore(%572 : memref<!tpu.dma_semaphore, #tpu.memory_space<semaphore_mem>>)
      %c1_i32_302 = arith.constant 1 : i32
      %573 = arith.addi %563, %c1_i32_302 : i32
      %574 = arith.index_cast %573 : i32 to index
      %575 = memref.load %arg1[%574] : memref<64xi32, #tpu.memory_space<smem>>
      %c1_i32_303 = arith.constant 1 : i32
      %c6_i32_304 = arith.constant 6 : i32
      %c0_i32_305 = arith.constant 0 : i32
      %576 = tpu.memref_slice %arg3[%575, %c0_i32_305] : memref<50x128xf32, #tpu.memory_space<any>> -> memref<1x128xf32, #tpu.memory_space<any>>
      %577 = tpu.memref_squeeze %576 : memref<1x128xf32, #tpu.memory_space<any>> -> memref<128xf32, #tpu.memory_space<any>>
      %c0_i32_306 = arith.constant 0 : i32
      %578 = tpu.memref_slice %arg5[%123, %c1_i32_303, %c6_i32_304, %c0_i32_306] : memref<2x8x8x128xf32, #tpu.memory_space<vmem>> -> memref<1x1x1x128xf32, #tpu.memory_space<vmem>>
      %579 = tpu.memref_squeeze %578 : memref<1x1x1x128xf32, #tpu.memory_space<vmem>> -> memref<128xf32, #tpu.memory_space<vmem>>
      %580 = tpu.memref_slice %arg6[%123] : memref<2x!tpu.dma_semaphore, #tpu.memory_space<semaphore_mem>> -> memref<1x!tpu.dma_semaphore, #tpu.memory_space<semaphore_mem>>
      %581 = tpu.memref_squeeze %580 : memref<1x!tpu.dma_semaphore, #tpu.memory_space<semaphore_mem>> -> memref<!tpu.dma_semaphore, #tpu.memory_space<semaphore_mem>>
      tpu.enqueue_dma source(%577 : memref<128xf32, #tpu.memory_space<any>>) target(%579 : memref<128xf32, #tpu.memory_space<vmem>>) target_semaphore(%581 : memref<!tpu.dma_semaphore, #tpu.memory_space<semaphore_mem>>)
      %c2_i32_307 = arith.constant 2 : i32
      %582 = arith.addi %563, %c2_i32_307 : i32
      %583 = arith.index_cast %582 : i32 to index
      %584 = memref.load %arg1[%583] : memref<64xi32, #tpu.memory_space<smem>>
      %c2_i32_308 = arith.constant 2 : i32
      %c6_i32_309 = arith.constant 6 : i32
      %c0_i32_310 = arith.constant 0 : i32
      %585 = tpu.memref_slice %arg3[%584, %c0_i32_310] : memref<50x128xf32, #tpu.memory_space<any>> -> memref<1x128xf32, #tpu.memory_space<any>>
      %586 = tpu.memref_squeeze %585 : memref<1x128xf32, #tpu.memory_space<any>> -> memref<128xf32, #tpu.memory_space<any>>
      %c0_i32_311 = arith.constant 0 : i32
      %587 = tpu.memref_slice %arg5[%123, %c2_i32_308, %c6_i32_309, %c0_i32_311] : memref<2x8x8x128xf32, #tpu.memory_space<vmem>> -> memref<1x1x1x128xf32, #tpu.memory_space<vmem>>
      %588 = tpu.memref_squeeze %587 : memref<1x1x1x128xf32, #tpu.memory_space<vmem>> -> memref<128xf32, #tpu.memory_space<vmem>>
      %589 = tpu.memref_slice %arg6[%123] : memref<2x!tpu.dma_semaphore, #tpu.memory_space<semaphore_mem>> -> memref<1x!tpu.dma_semaphore, #tpu.memory_space<semaphore_mem>>
      %590 = tpu.memref_squeeze %589 : memref<1x!tpu.dma_semaphore, #tpu.memory_space<semaphore_mem>> -> memref<!tpu.dma_semaphore, #tpu.memory_space<semaphore_mem>>
      tpu.enqueue_dma source(%586 : memref<128xf32, #tpu.memory_space<any>>) target(%588 : memref<128xf32, #tpu.memory_space<vmem>>) target_semaphore(%590 : memref<!tpu.dma_semaphore, #tpu.memory_space<semaphore_mem>>)
      %c3_i32_312 = arith.constant 3 : i32
      %591 = arith.addi %563, %c3_i32_312 : i32
      %592 = arith.index_cast %591 : i32 to index
      %593 = memref.load %arg1[%592] : memref<64xi32, #tpu.memory_space<smem>>
      %c3_i32_313 = arith.constant 3 : i32
      %c6_i32_314 = arith.constant 6 : i32
      %c0_i32_315 = arith.constant 0 : i32
      %594 = tpu.memref_slice %arg3[%593, %c0_i32_315] : memref<50x128xf32, #tpu.memory_space<any>> -> memref<1x128xf32, #tpu.memory_space<any>>
      %595 = tpu.memref_squeeze %594 : memref<1x128xf32, #tpu.memory_space<any>> -> memref<128xf32, #tpu.memory_space<any>>
      %c0_i32_316 = arith.constant 0 : i32
      %596 = tpu.memref_slice %arg5[%123, %c3_i32_313, %c6_i32_314, %c0_i32_316] : memref<2x8x8x128xf32, #tpu.memory_space<vmem>> -> memref<1x1x1x128xf32, #tpu.memory_space<vmem>>
      %597 = tpu.memref_squeeze %596 : memref<1x1x1x128xf32, #tpu.memory_space<vmem>> -> memref<128xf32, #tpu.memory_space<vmem>>
      %598 = tpu.memref_slice %arg6[%123] : memref<2x!tpu.dma_semaphore, #tpu.memory_space<semaphore_mem>> -> memref<1x!tpu.dma_semaphore, #tpu.memory_space<semaphore_mem>>
      %599 = tpu.memref_squeeze %598 : memref<1x!tpu.dma_semaphore, #tpu.memory_space<semaphore_mem>> -> memref<!tpu.dma_semaphore, #tpu.memory_space<semaphore_mem>>
      tpu.enqueue_dma source(%595 : memref<128xf32, #tpu.memory_space<any>>) target(%597 : memref<128xf32, #tpu.memory_space<vmem>>) target_semaphore(%599 : memref<!tpu.dma_semaphore, #tpu.memory_space<semaphore_mem>>)
      %c4_i32_317 = arith.constant 4 : i32
      %600 = arith.addi %563, %c4_i32_317 : i32
      %601 = arith.index_cast %600 : i32 to index
      %602 = memref.load %arg1[%601] : memref<64xi32, #tpu.memory_space<smem>>
      %c4_i32_318 = arith.constant 4 : i32
      %c6_i32_319 = arith.constant 6 : i32
      %c0_i32_320 = arith.constant 0 : i32
      %603 = tpu.memref_slice %arg3[%602, %c0_i32_320] : memref<50x128xf32, #tpu.memory_space<any>> -> memref<1x128xf32, #tpu.memory_space<any>>
      %604 = tpu.memref_squeeze %603 : memref<1x128xf32, #tpu.memory_space<any>> -> memref<128xf32, #tpu.memory_space<any>>
      %c0_i32_321 = arith.constant 0 : i32
      %605 = tpu.memref_slice %arg5[%123, %c4_i32_318, %c6_i32_319, %c0_i32_321] : memref<2x8x8x128xf32, #tpu.memory_space<vmem>> -> memref<1x1x1x128xf32, #tpu.memory_space<vmem>>
      %606 = tpu.memref_squeeze %605 : memref<1x1x1x128xf32, #tpu.memory_space<vmem>> -> memref<128xf32, #tpu.memory_space<vmem>>
      %607 = tpu.memref_slice %arg6[%123] : memref<2x!tpu.dma_semaphore, #tpu.memory_space<semaphore_mem>> -> memref<1x!tpu.dma_semaphore, #tpu.memory_space<semaphore_mem>>
      %608 = tpu.memref_squeeze %607 : memref<1x!tpu.dma_semaphore, #tpu.memory_space<semaphore_mem>> -> memref<!tpu.dma_semaphore, #tpu.memory_space<semaphore_mem>>
      tpu.enqueue_dma source(%604 : memref<128xf32, #tpu.memory_space<any>>) target(%606 : memref<128xf32, #tpu.memory_space<vmem>>) target_semaphore(%608 : memref<!tpu.dma_semaphore, #tpu.memory_space<semaphore_mem>>)
      %c5_i32_322 = arith.constant 5 : i32
      %609 = arith.addi %563, %c5_i32_322 : i32
      %610 = arith.index_cast %609 : i32 to index
      %611 = memref.load %arg1[%610] : memref<64xi32, #tpu.memory_space<smem>>
      %c5_i32_323 = arith.constant 5 : i32
      %c6_i32_324 = arith.constant 6 : i32
      %c0_i32_325 = arith.constant 0 : i32
      %612 = tpu.memref_slice %arg3[%611, %c0_i32_325] : memref<50x128xf32, #tpu.memory_space<any>> -> memref<1x128xf32, #tpu.memory_space<any>>
      %613 = tpu.memref_squeeze %612 : memref<1x128xf32, #tpu.memory_space<any>> -> memref<128xf32, #tpu.memory_space<any>>
      %c0_i32_326 = arith.constant 0 : i32
      %614 = tpu.memref_slice %arg5[%123, %c5_i32_323, %c6_i32_324, %c0_i32_326] : memref<2x8x8x128xf32, #tpu.memory_space<vmem>> -> memref<1x1x1x128xf32, #tpu.memory_space<vmem>>
      %615 = tpu.memref_squeeze %614 : memref<1x1x1x128xf32, #tpu.memory_space<vmem>> -> memref<128xf32, #tpu.memory_space<vmem>>
      %616 = tpu.memref_slice %arg6[%123] : memref<2x!tpu.dma_semaphore, #tpu.memory_space<semaphore_mem>> -> memref<1x!tpu.dma_semaphore, #tpu.memory_space<semaphore_mem>>
      %617 = tpu.memref_squeeze %616 : memref<1x!tpu.dma_semaphore, #tpu.memory_space<semaphore_mem>> -> memref<!tpu.dma_semaphore, #tpu.memory_space<semaphore_mem>>
      tpu.enqueue_dma source(%613 : memref<128xf32, #tpu.memory_space<any>>) target(%615 : memref<128xf32, #tpu.memory_space<vmem>>) target_semaphore(%617 : memref<!tpu.dma_semaphore, #tpu.memory_space<semaphore_mem>>)
      %c6_i32_327 = arith.constant 6 : i32
      %618 = arith.addi %563, %c6_i32_327 : i32
      %619 = arith.index_cast %618 : i32 to index
      %620 = memref.load %arg1[%619] : memref<64xi32, #tpu.memory_space<smem>>
      %c6_i32_328 = arith.constant 6 : i32
      %c6_i32_329 = arith.constant 6 : i32
      %c0_i32_330 = arith.constant 0 : i32
      %621 = tpu.memref_slice %arg3[%620, %c0_i32_330] : memref<50x128xf32, #tpu.memory_space<any>> -> memref<1x128xf32, #tpu.memory_space<any>>
      %622 = tpu.memref_squeeze %621 : memref<1x128xf32, #tpu.memory_space<any>> -> memref<128xf32, #tpu.memory_space<any>>
      %c0_i32_331 = arith.constant 0 : i32
      %623 = tpu.memref_slice %arg5[%123, %c6_i32_328, %c6_i32_329, %c0_i32_331] : memref<2x8x8x128xf32, #tpu.memory_space<vmem>> -> memref<1x1x1x128xf32, #tpu.memory_space<vmem>>
      %624 = tpu.memref_squeeze %623 : memref<1x1x1x128xf32, #tpu.memory_space<vmem>> -> memref<128xf32, #tpu.memory_space<vmem>>
      %625 = tpu.memref_slice %arg6[%123] : memref<2x!tpu.dma_semaphore, #tpu.memory_space<semaphore_mem>> -> memref<1x!tpu.dma_semaphore, #tpu.memory_space<semaphore_mem>>
      %626 = tpu.memref_squeeze %625 : memref<1x!tpu.dma_semaphore, #tpu.memory_space<semaphore_mem>> -> memref<!tpu.dma_semaphore, #tpu.memory_space<semaphore_mem>>
      tpu.enqueue_dma source(%622 : memref<128xf32, #tpu.memory_space<any>>) target(%624 : memref<128xf32, #tpu.memory_space<vmem>>) target_semaphore(%626 : memref<!tpu.dma_semaphore, #tpu.memory_space<semaphore_mem>>)
      %c7_i32_332 = arith.constant 7 : i32
      %627 = arith.addi %563, %c7_i32_332 : i32
      %628 = arith.index_cast %627 : i32 to index
      %629 = memref.load %arg1[%628] : memref<64xi32, #tpu.memory_space<smem>>
      %c7_i32_333 = arith.constant 7 : i32
      %c6_i32_334 = arith.constant 6 : i32
      %c0_i32_335 = arith.constant 0 : i32
      %630 = tpu.memref_slice %arg3[%629, %c0_i32_335] : memref<50x128xf32, #tpu.memory_space<any>> -> memref<1x128xf32, #tpu.memory_space<any>>
      %631 = tpu.memref_squeeze %630 : memref<1x128xf32, #tpu.memory_space<any>> -> memref<128xf32, #tpu.memory_space<any>>
      %c0_i32_336 = arith.constant 0 : i32
      %632 = tpu.memref_slice %arg5[%123, %c7_i32_333, %c6_i32_334, %c0_i32_336] : memref<2x8x8x128xf32, #tpu.memory_space<vmem>> -> memref<1x1x1x128xf32, #tpu.memory_space<vmem>>
      %633 = tpu.memref_squeeze %632 : memref<1x1x1x128xf32, #tpu.memory_space<vmem>> -> memref<128xf32, #tpu.memory_space<vmem>>
      %634 = tpu.memref_slice %arg6[%123] : memref<2x!tpu.dma_semaphore, #tpu.memory_space<semaphore_mem>> -> memref<1x!tpu.dma_semaphore, #tpu.memory_space<semaphore_mem>>
      %635 = tpu.memref_squeeze %634 : memref<1x!tpu.dma_semaphore, #tpu.memory_space<semaphore_mem>> -> memref<!tpu.dma_semaphore, #tpu.memory_space<semaphore_mem>>
      tpu.enqueue_dma source(%631 : memref<128xf32, #tpu.memory_space<any>>) target(%633 : memref<128xf32, #tpu.memory_space<vmem>>) target_semaphore(%635 : memref<!tpu.dma_semaphore, #tpu.memory_space<semaphore_mem>>)
      %c56_i32 = arith.constant 56 : i32
      %636 = arith.addi %124, %c56_i32 : i32
      %c0_i32_337 = arith.constant 0 : i32
      %637 = arith.addi %636, %c0_i32_337 : i32
      %638 = arith.index_cast %637 : i32 to index
      %639 = memref.load %arg1[%638] : memref<64xi32, #tpu.memory_space<smem>>
      %c0_i32_338 = arith.constant 0 : i32
      %c7_i32_339 = arith.constant 7 : i32
      %c0_i32_340 = arith.constant 0 : i32
      %640 = tpu.memref_slice %arg3[%639, %c0_i32_340] : memref<50x128xf32, #tpu.memory_space<any>> -> memref<1x128xf32, #tpu.memory_space<any>>
      %641 = tpu.memref_squeeze %640 : memref<1x128xf32, #tpu.memory_space<any>> -> memref<128xf32, #tpu.memory_space<any>>
      %c0_i32_341 = arith.constant 0 : i32
      %642 = tpu.memref_slice %arg5[%123, %c0_i32_338, %c7_i32_339, %c0_i32_341] : memref<2x8x8x128xf32, #tpu.memory_space<vmem>> -> memref<1x1x1x128xf32, #tpu.memory_space<vmem>>
      %643 = tpu.memref_squeeze %642 : memref<1x1x1x128xf32, #tpu.memory_space<vmem>> -> memref<128xf32, #tpu.memory_space<vmem>>
      %644 = tpu.memref_slice %arg6[%123] : memref<2x!tpu.dma_semaphore, #tpu.memory_space<semaphore_mem>> -> memref<1x!tpu.dma_semaphore, #tpu.memory_space<semaphore_mem>>
      %645 = tpu.memref_squeeze %644 : memref<1x!tpu.dma_semaphore, #tpu.memory_space<semaphore_mem>> -> memref<!tpu.dma_semaphore, #tpu.memory_space<semaphore_mem>>
      tpu.enqueue_dma source(%641 : memref<128xf32, #tpu.memory_space<any>>) target(%643 : memref<128xf32, #tpu.memory_space<vmem>>) target_semaphore(%645 : memref<!tpu.dma_semaphore, #tpu.memory_space<semaphore_mem>>)
      %c1_i32_342 = arith.constant 1 : i32
      %646 = arith.addi %636, %c1_i32_342 : i32
      %647 = arith.index_cast %646 : i32 to index
      %648 = memref.load %arg1[%647] : memref<64xi32, #tpu.memory_space<smem>>
      %c1_i32_343 = arith.constant 1 : i32
      %c7_i32_344 = arith.constant 7 : i32
      %c0_i32_345 = arith.constant 0 : i32
      %649 = tpu.memref_slice %arg3[%648, %c0_i32_345] : memref<50x128xf32, #tpu.memory_space<any>> -> memref<1x128xf32, #tpu.memory_space<any>>
      %650 = tpu.memref_squeeze %649 : memref<1x128xf32, #tpu.memory_space<any>> -> memref<128xf32, #tpu.memory_space<any>>
      %c0_i32_346 = arith.constant 0 : i32
      %651 = tpu.memref_slice %arg5[%123, %c1_i32_343, %c7_i32_344, %c0_i32_346] : memref<2x8x8x128xf32, #tpu.memory_space<vmem>> -> memref<1x1x1x128xf32, #tpu.memory_space<vmem>>
      %652 = tpu.memref_squeeze %651 : memref<1x1x1x128xf32, #tpu.memory_space<vmem>> -> memref<128xf32, #tpu.memory_space<vmem>>
      %653 = tpu.memref_slice %arg6[%123] : memref<2x!tpu.dma_semaphore, #tpu.memory_space<semaphore_mem>> -> memref<1x!tpu.dma_semaphore, #tpu.memory_space<semaphore_mem>>
      %654 = tpu.memref_squeeze %653 : memref<1x!tpu.dma_semaphore, #tpu.memory_space<semaphore_mem>> -> memref<!tpu.dma_semaphore, #tpu.memory_space<semaphore_mem>>
      tpu.enqueue_dma source(%650 : memref<128xf32, #tpu.memory_space<any>>) target(%652 : memref<128xf32, #tpu.memory_space<vmem>>) target_semaphore(%654 : memref<!tpu.dma_semaphore, #tpu.memory_space<semaphore_mem>>)
      %c2_i32_347 = arith.constant 2 : i32
      %655 = arith.addi %636, %c2_i32_347 : i32
      %656 = arith.index_cast %655 : i32 to index
      %657 = memref.load %arg1[%656] : memref<64xi32, #tpu.memory_space<smem>>
      %c2_i32_348 = arith.constant 2 : i32
      %c7_i32_349 = arith.constant 7 : i32
      %c0_i32_350 = arith.constant 0 : i32
      %658 = tpu.memref_slice %arg3[%657, %c0_i32_350] : memref<50x128xf32, #tpu.memory_space<any>> -> memref<1x128xf32, #tpu.memory_space<any>>
      %659 = tpu.memref_squeeze %658 : memref<1x128xf32, #tpu.memory_space<any>> -> memref<128xf32, #tpu.memory_space<any>>
      %c0_i32_351 = arith.constant 0 : i32
      %660 = tpu.memref_slice %arg5[%123, %c2_i32_348, %c7_i32_349, %c0_i32_351] : memref<2x8x8x128xf32, #tpu.memory_space<vmem>> -> memref<1x1x1x128xf32, #tpu.memory_space<vmem>>
      %661 = tpu.memref_squeeze %660 : memref<1x1x1x128xf32, #tpu.memory_space<vmem>> -> memref<128xf32, #tpu.memory_space<vmem>>
      %662 = tpu.memref_slice %arg6[%123] : memref<2x!tpu.dma_semaphore, #tpu.memory_space<semaphore_mem>> -> memref<1x!tpu.dma_semaphore, #tpu.memory_space<semaphore_mem>>
      %663 = tpu.memref_squeeze %662 : memref<1x!tpu.dma_semaphore, #tpu.memory_space<semaphore_mem>> -> memref<!tpu.dma_semaphore, #tpu.memory_space<semaphore_mem>>
      tpu.enqueue_dma source(%659 : memref<128xf32, #tpu.memory_space<any>>) target(%661 : memref<128xf32, #tpu.memory_space<vmem>>) target_semaphore(%663 : memref<!tpu.dma_semaphore, #tpu.memory_space<semaphore_mem>>)
      %c3_i32_352 = arith.constant 3 : i32
      %664 = arith.addi %636, %c3_i32_352 : i32
      %665 = arith.index_cast %664 : i32 to index
      %666 = memref.load %arg1[%665] : memref<64xi32, #tpu.memory_space<smem>>
      %c3_i32_353 = arith.constant 3 : i32
      %c7_i32_354 = arith.constant 7 : i32
      %c0_i32_355 = arith.constant 0 : i32
      %667 = tpu.memref_slice %arg3[%666, %c0_i32_355] : memref<50x128xf32, #tpu.memory_space<any>> -> memref<1x128xf32, #tpu.memory_space<any>>
      %668 = tpu.memref_squeeze %667 : memref<1x128xf32, #tpu.memory_space<any>> -> memref<128xf32, #tpu.memory_space<any>>
      %c0_i32_356 = arith.constant 0 : i32
      %669 = tpu.memref_slice %arg5[%123, %c3_i32_353, %c7_i32_354, %c0_i32_356] : memref<2x8x8x128xf32, #tpu.memory_space<vmem>> -> memref<1x1x1x128xf32, #tpu.memory_space<vmem>>
      %670 = tpu.memref_squeeze %669 : memref<1x1x1x128xf32, #tpu.memory_space<vmem>> -> memref<128xf32, #tpu.memory_space<vmem>>
      %671 = tpu.memref_slice %arg6[%123] : memref<2x!tpu.dma_semaphore, #tpu.memory_space<semaphore_mem>> -> memref<1x!tpu.dma_semaphore, #tpu.memory_space<semaphore_mem>>
      %672 = tpu.memref_squeeze %671 : memref<1x!tpu.dma_semaphore, #tpu.memory_space<semaphore_mem>> -> memref<!tpu.dma_semaphore, #tpu.memory_space<semaphore_mem>>
      tpu.enqueue_dma source(%668 : memref<128xf32, #tpu.memory_space<any>>) target(%670 : memref<128xf32, #tpu.memory_space<vmem>>) target_semaphore(%672 : memref<!tpu.dma_semaphore, #tpu.memory_space<semaphore_mem>>)
      %c4_i32_357 = arith.constant 4 : i32
      %673 = arith.addi %636, %c4_i32_357 : i32
      %674 = arith.index_cast %673 : i32 to index
      %675 = memref.load %arg1[%674] : memref<64xi32, #tpu.memory_space<smem>>
      %c4_i32_358 = arith.constant 4 : i32
      %c7_i32_359 = arith.constant 7 : i32
      %c0_i32_360 = arith.constant 0 : i32
      %676 = tpu.memref_slice %arg3[%675, %c0_i32_360] : memref<50x128xf32, #tpu.memory_space<any>> -> memref<1x128xf32, #tpu.memory_space<any>>
      %677 = tpu.memref_squeeze %676 : memref<1x128xf32, #tpu.memory_space<any>> -> memref<128xf32, #tpu.memory_space<any>>
      %c0_i32_361 = arith.constant 0 : i32
      %678 = tpu.memref_slice %arg5[%123, %c4_i32_358, %c7_i32_359, %c0_i32_361] : memref<2x8x8x128xf32, #tpu.memory_space<vmem>> -> memref<1x1x1x128xf32, #tpu.memory_space<vmem>>
      %679 = tpu.memref_squeeze %678 : memref<1x1x1x128xf32, #tpu.memory_space<vmem>> -> memref<128xf32, #tpu.memory_space<vmem>>
      %680 = tpu.memref_slice %arg6[%123] : memref<2x!tpu.dma_semaphore, #tpu.memory_space<semaphore_mem>> -> memref<1x!tpu.dma_semaphore, #tpu.memory_space<semaphore_mem>>
      %681 = tpu.memref_squeeze %680 : memref<1x!tpu.dma_semaphore, #tpu.memory_space<semaphore_mem>> -> memref<!tpu.dma_semaphore, #tpu.memory_space<semaphore_mem>>
      tpu.enqueue_dma source(%677 : memref<128xf32, #tpu.memory_space<any>>) target(%679 : memref<128xf32, #tpu.memory_space<vmem>>) target_semaphore(%681 : memref<!tpu.dma_semaphore, #tpu.memory_space<semaphore_mem>>)
      %c5_i32_362 = arith.constant 5 : i32
      %682 = arith.addi %636, %c5_i32_362 : i32
      %683 = arith.index_cast %682 : i32 to index
      %684 = memref.load %arg1[%683] : memref<64xi32, #tpu.memory_space<smem>>
      %c5_i32_363 = arith.constant 5 : i32
      %c7_i32_364 = arith.constant 7 : i32
      %c0_i32_365 = arith.constant 0 : i32
      %685 = tpu.memref_slice %arg3[%684, %c0_i32_365] : memref<50x128xf32, #tpu.memory_space<any>> -> memref<1x128xf32, #tpu.memory_space<any>>
      %686 = tpu.memref_squeeze %685 : memref<1x128xf32, #tpu.memory_space<any>> -> memref<128xf32, #tpu.memory_space<any>>
      %c0_i32_366 = arith.constant 0 : i32
      %687 = tpu.memref_slice %arg5[%123, %c5_i32_363, %c7_i32_364, %c0_i32_366] : memref<2x8x8x128xf32, #tpu.memory_space<vmem>> -> memref<1x1x1x128xf32, #tpu.memory_space<vmem>>
      %688 = tpu.memref_squeeze %687 : memref<1x1x1x128xf32, #tpu.memory_space<vmem>> -> memref<128xf32, #tpu.memory_space<vmem>>
      %689 = tpu.memref_slice %arg6[%123] : memref<2x!tpu.dma_semaphore, #tpu.memory_space<semaphore_mem>> -> memref<1x!tpu.dma_semaphore, #tpu.memory_space<semaphore_mem>>
      %690 = tpu.memref_squeeze %689 : memref<1x!tpu.dma_semaphore, #tpu.memory_space<semaphore_mem>> -> memref<!tpu.dma_semaphore, #tpu.memory_space<semaphore_mem>>
      tpu.enqueue_dma source(%686 : memref<128xf32, #tpu.memory_space<any>>) target(%688 : memref<128xf32, #tpu.memory_space<vmem>>) target_semaphore(%690 : memref<!tpu.dma_semaphore, #tpu.memory_space<semaphore_mem>>)
      %c6_i32_367 = arith.constant 6 : i32
      %691 = arith.addi %636, %c6_i32_367 : i32
      %692 = arith.index_cast %691 : i32 to index
      %693 = memref.load %arg1[%692] : memref<64xi32, #tpu.memory_space<smem>>
      %c6_i32_368 = arith.constant 6 : i32
      %c7_i32_369 = arith.constant 7 : i32
      %c0_i32_370 = arith.constant 0 : i32
      %694 = tpu.memref_slice %arg3[%693, %c0_i32_370] : memref<50x128xf32, #tpu.memory_space<any>> -> memref<1x128xf32, #tpu.memory_space<any>>
      %695 = tpu.memref_squeeze %694 : memref<1x128xf32, #tpu.memory_space<any>> -> memref<128xf32, #tpu.memory_space<any>>
      %c0_i32_371 = arith.constant 0 : i32
      %696 = tpu.memref_slice %arg5[%123, %c6_i32_368, %c7_i32_369, %c0_i32_371] : memref<2x8x8x128xf32, #tpu.memory_space<vmem>> -> memref<1x1x1x128xf32, #tpu.memory_space<vmem>>
      %697 = tpu.memref_squeeze %696 : memref<1x1x1x128xf32, #tpu.memory_space<vmem>> -> memref<128xf32, #tpu.memory_space<vmem>>
      %698 = tpu.memref_slice %arg6[%123] : memref<2x!tpu.dma_semaphore, #tpu.memory_space<semaphore_mem>> -> memref<1x!tpu.dma_semaphore, #tpu.memory_space<semaphore_mem>>
      %699 = tpu.memref_squeeze %698 : memref<1x!tpu.dma_semaphore, #tpu.memory_space<semaphore_mem>> -> memref<!tpu.dma_semaphore, #tpu.memory_space<semaphore_mem>>
      tpu.enqueue_dma source(%695 : memref<128xf32, #tpu.memory_space<any>>) target(%697 : memref<128xf32, #tpu.memory_space<vmem>>) target_semaphore(%699 : memref<!tpu.dma_semaphore, #tpu.memory_space<semaphore_mem>>)
      %c7_i32_372 = arith.constant 7 : i32
      %700 = arith.addi %636, %c7_i32_372 : i32
      %701 = arith.index_cast %700 : i32 to index
      %702 = memref.load %arg1[%701] : memref<64xi32, #tpu.memory_space<smem>>
      %c7_i32_373 = arith.constant 7 : i32
      %c7_i32_374 = arith.constant 7 : i32
      %c0_i32_375 = arith.constant 0 : i32
      %703 = tpu.memref_slice %arg3[%702, %c0_i32_375] : memref<50x128xf32, #tpu.memory_space<any>> -> memref<1x128xf32, #tpu.memory_space<any>>
      %704 = tpu.memref_squeeze %703 : memref<1x128xf32, #tpu.memory_space<any>> -> memref<128xf32, #tpu.memory_space<any>>
      %c0_i32_376 = arith.constant 0 : i32
      %705 = tpu.memref_slice %arg5[%123, %c7_i32_373, %c7_i32_374, %c0_i32_376] : memref<2x8x8x128xf32, #tpu.memory_space<vmem>> -> memref<1x1x1x128xf32, #tpu.memory_space<vmem>>
      %706 = tpu.memref_squeeze %705 : memref<1x1x1x128xf32, #tpu.memory_space<vmem>> -> memref<128xf32, #tpu.memory_space<vmem>>
      %707 = tpu.memref_slice %arg6[%123] : memref<2x!tpu.dma_semaphore, #tpu.memory_space<semaphore_mem>> -> memref<1x!tpu.dma_semaphore, #tpu.memory_space<semaphore_mem>>
      %708 = tpu.memref_squeeze %707 : memref<1x!tpu.dma_semaphore, #tpu.memory_space<semaphore_mem>> -> memref<!tpu.dma_semaphore, #tpu.memory_space<semaphore_mem>>
      tpu.enqueue_dma source(%704 : memref<128xf32, #tpu.memory_space<any>>) target(%706 : memref<128xf32, #tpu.memory_space<vmem>>) target_semaphore(%708 : memref<!tpu.dma_semaphore, #tpu.memory_space<semaphore_mem>>)
    } else {
    }
    %c1_i32_8 = arith.constant 1 : i32
    %17 = arith.subi %c1_i32_8, %9 : i32
    %c0_i32_9 = arith.constant 0 : i32
    %c0_i32_10 = arith.constant 0 : i32
    %c0_i32_11 = arith.constant 0 : i32
    %18 = tpu.memref_slice %arg5[%17, %c0_i32_9, %c0_i32_10, %c0_i32_11] : memref<2x8x8x128xf32, #tpu.memory_space<vmem>> -> memref<1x8x8x128xf32, #tpu.memory_space<vmem>>
    %19 = tpu.memref_squeeze %18 : memref<1x8x8x128xf32, #tpu.memory_space<vmem>> -> memref<8x8x128xf32, #tpu.memory_space<vmem>>
    %c0_i32_12 = arith.constant 0 : i32
    %c0_i32_13 = arith.constant 0 : i32
    %c0_i32_14 = arith.constant 0 : i32
    %20 = tpu.memref_slice %arg5[%9, %c0_i32_12, %c0_i32_13, %c0_i32_14] : memref<2x8x8x128xf32, #tpu.memory_space<vmem>> -> memref<1x8x8x128xf32, #tpu.memory_space<vmem>>
    %21 = tpu.memref_squeeze %20 : memref<1x8x8x128xf32, #tpu.memory_space<vmem>> -> memref<8x8x128xf32, #tpu.memory_space<vmem>>
    %22 = tpu.memref_slice %arg6[%9] : memref<2x!tpu.dma_semaphore, #tpu.memory_space<semaphore_mem>> -> memref<1x!tpu.dma_semaphore, #tpu.memory_space<semaphore_mem>>
    %23 = tpu.memref_squeeze %22 : memref<1x!tpu.dma_semaphore, #tpu.memory_space<semaphore_mem>> -> memref<!tpu.dma_semaphore, #tpu.memory_space<semaphore_mem>>
    tpu.wait_dma2 semaphore(%23 : memref<!tpu.dma_semaphore, #tpu.memory_space<semaphore_mem>>) src(%19 : memref<8x8x128xf32, #tpu.memory_space<vmem>>) dst(%21 : memref<8x8x128xf32, #tpu.memory_space<vmem>>)
    %c0 = arith.constant 0 : index
    %c0_15 = arith.constant 0 : index
    %24 = vector.load %arg2[%c0, %c0_15] : memref<8x1xi32, #tpu.memory_space<vmem>>, vector<8x1xi32>
    %25 = arith.sitofp %24 : vector<8x1xi32> to vector<8x1xf32>
    %cst = arith.constant 1.000000e+00 : f32
    %26 = vector.broadcast %cst : f32 to vector<8x1xf32>
    %27 = arith.maximumf %25, %26 : vector<8x1xf32>
    %cst_16 = arith.constant 1.000000e+00 : f32
    %28 = vector.broadcast %cst_16 : f32 to vector<8x1xf32>
    %29 = arith.divf %28, %27 : vector<8x1xf32>
    %cst_17 = arith.constant 0.000000e+00 : f32
    %30 = vector.broadcast %cst_17 : f32 to vector<8x128xf32>
    %c0_i32_18 = arith.constant 0 : i32
    %31 = vector.broadcast %c0_i32_18 : i32 to vector<8x1xi32>
    %32 = arith.cmpi sgt, %24, %31 : vector<8x1xi32>
    %cst_19 = arith.constant 0.000000e+00 : f32
    %33 = vector.broadcast %cst_19 : f32 to vector<8x1xf32>
    %34 = arith.select %32, %29, %33 : vector<8x1xi1>, vector<8x1xf32>
    %35 = arith.index_cast %9 : i32 to index
    %c0_20 = arith.constant 0 : index
    %c0_21 = arith.constant 0 : index
    %c0_22 = arith.constant 0 : index
    %36 = vector.load %arg5[%35, %c0_20, %c0_21, %c0_22] : memref<2x8x8x128xf32, #tpu.memory_space<vmem>>, vector<1x1x8x128xf32>
    %37 = vector.shape_cast %36 : vector<1x1x8x128xf32> to vector<8x128xf32>
    %38 = vector.broadcast %34 : vector<8x1xf32> to vector<8x128xf32>
    %39 = arith.mulf %38, %37 : vector<8x128xf32>
    %40 = arith.addf %30, %39 : vector<8x128xf32>
    %c1_i32_23 = arith.constant 1 : i32
    %41 = vector.broadcast %c1_i32_23 : i32 to vector<8x1xi32>
    %42 = arith.cmpi sgt, %24, %41 : vector<8x1xi32>
    %cst_24 = arith.constant 0.000000e+00 : f32
    %43 = vector.broadcast %cst_24 : f32 to vector<8x1xf32>
    %44 = arith.select %42, %29, %43 : vector<8x1xi1>, vector<8x1xf32>
    %45 = arith.index_cast %9 : i32 to index
    %c1 = arith.constant 1 : index
    %c0_25 = arith.constant 0 : index
    %c0_26 = arith.constant 0 : index
    %46 = vector.load %arg5[%45, %c1, %c0_25, %c0_26] : memref<2x8x8x128xf32, #tpu.memory_space<vmem>>, vector<1x1x8x128xf32>
    %47 = vector.shape_cast %46 : vector<1x1x8x128xf32> to vector<8x128xf32>
    %48 = vector.broadcast %44 : vector<8x1xf32> to vector<8x128xf32>
    %49 = arith.mulf %48, %47 : vector<8x128xf32>
    %50 = arith.addf %40, %49 : vector<8x128xf32>
    %c2_i32_27 = arith.constant 2 : i32
    %51 = vector.broadcast %c2_i32_27 : i32 to vector<8x1xi32>
    %52 = arith.cmpi sgt, %24, %51 : vector<8x1xi32>
    %cst_28 = arith.constant 0.000000e+00 : f32
    %53 = vector.broadcast %cst_28 : f32 to vector<8x1xf32>
    %54 = arith.select %52, %29, %53 : vector<8x1xi1>, vector<8x1xf32>
    %55 = arith.index_cast %9 : i32 to index
    %c2 = arith.constant 2 : index
    %c0_29 = arith.constant 0 : index
    %c0_30 = arith.constant 0 : index
    %56 = vector.load %arg5[%55, %c2, %c0_29, %c0_30] : memref<2x8x8x128xf32, #tpu.memory_space<vmem>>, vector<1x1x8x128xf32>
    %57 = vector.shape_cast %56 : vector<1x1x8x128xf32> to vector<8x128xf32>
    %58 = vector.broadcast %54 : vector<8x1xf32> to vector<8x128xf32>
    %59 = arith.mulf %58, %57 : vector<8x128xf32>
    %60 = arith.addf %50, %59 : vector<8x128xf32>
    %c3_i32 = arith.constant 3 : i32
    %61 = vector.broadcast %c3_i32 : i32 to vector<8x1xi32>
    %62 = arith.cmpi sgt, %24, %61 : vector<8x1xi32>
    %cst_31 = arith.constant 0.000000e+00 : f32
    %63 = vector.broadcast %cst_31 : f32 to vector<8x1xf32>
    %64 = arith.select %62, %29, %63 : vector<8x1xi1>, vector<8x1xf32>
    %65 = arith.index_cast %9 : i32 to index
    %c3 = arith.constant 3 : index
    %c0_32 = arith.constant 0 : index
    %c0_33 = arith.constant 0 : index
    %66 = vector.load %arg5[%65, %c3, %c0_32, %c0_33] : memref<2x8x8x128xf32, #tpu.memory_space<vmem>>, vector<1x1x8x128xf32>
    %67 = vector.shape_cast %66 : vector<1x1x8x128xf32> to vector<8x128xf32>
    %68 = vector.broadcast %64 : vector<8x1xf32> to vector<8x128xf32>
    %69 = arith.mulf %68, %67 : vector<8x128xf32>
    %70 = arith.addf %60, %69 : vector<8x128xf32>
    %c4_i32 = arith.constant 4 : i32
    %71 = vector.broadcast %c4_i32 : i32 to vector<8x1xi32>
    %72 = arith.cmpi sgt, %24, %71 : vector<8x1xi32>
    %cst_34 = arith.constant 0.000000e+00 : f32
    %73 = vector.broadcast %cst_34 : f32 to vector<8x1xf32>
    %74 = arith.select %72, %29, %73 : vector<8x1xi1>, vector<8x1xf32>
    %75 = arith.index_cast %9 : i32 to index
    %c4 = arith.constant 4 : index
    %c0_35 = arith.constant 0 : index
    %c0_36 = arith.constant 0 : index
    %76 = vector.load %arg5[%75, %c4, %c0_35, %c0_36] : memref<2x8x8x128xf32, #tpu.memory_space<vmem>>, vector<1x1x8x128xf32>
    %77 = vector.shape_cast %76 : vector<1x1x8x128xf32> to vector<8x128xf32>
    %78 = vector.broadcast %74 : vector<8x1xf32> to vector<8x128xf32>
    %79 = arith.mulf %78, %77 : vector<8x128xf32>
    %80 = arith.addf %70, %79 : vector<8x128xf32>
    %c5_i32 = arith.constant 5 : i32
    %81 = vector.broadcast %c5_i32 : i32 to vector<8x1xi32>
    %82 = arith.cmpi sgt, %24, %81 : vector<8x1xi32>
    %cst_37 = arith.constant 0.000000e+00 : f32
    %83 = vector.broadcast %cst_37 : f32 to vector<8x1xf32>
    %84 = arith.select %82, %29, %83 : vector<8x1xi1>, vector<8x1xf32>
    %85 = arith.index_cast %9 : i32 to index
    %c5 = arith.constant 5 : index
    %c0_38 = arith.constant 0 : index
    %c0_39 = arith.constant 0 : index
    %86 = vector.load %arg5[%85, %c5, %c0_38, %c0_39] : memref<2x8x8x128xf32, #tpu.memory_space<vmem>>, vector<1x1x8x128xf32>
    %87 = vector.shape_cast %86 : vector<1x1x8x128xf32> to vector<8x128xf32>
    %88 = vector.broadcast %84 : vector<8x1xf32> to vector<8x128xf32>
    %89 = arith.mulf %88, %87 : vector<8x128xf32>
    %90 = arith.addf %80, %89 : vector<8x128xf32>
    %c6_i32 = arith.constant 6 : i32
    %91 = vector.broadcast %c6_i32 : i32 to vector<8x1xi32>
    %92 = arith.cmpi sgt, %24, %91 : vector<8x1xi32>
    %cst_40 = arith.constant 0.000000e+00 : f32
    %93 = vector.broadcast %cst_40 : f32 to vector<8x1xf32>
    %94 = arith.select %92, %29, %93 : vector<8x1xi1>, vector<8x1xf32>
    %95 = arith.index_cast %9 : i32 to index
    %c6 = arith.constant 6 : index
    %c0_41 = arith.constant 0 : index
    %c0_42 = arith.constant 0 : index
    %96 = vector.load %arg5[%95, %c6, %c0_41, %c0_42] : memref<2x8x8x128xf32, #tpu.memory_space<vmem>>, vector<1x1x8x128xf32>
    %97 = vector.shape_cast %96 : vector<1x1x8x128xf32> to vector<8x128xf32>
    %98 = vector.broadcast %94 : vector<8x1xf32> to vector<8x128xf32>
    %99 = arith.mulf %98, %97 : vector<8x128xf32>
    %100 = arith.addf %90, %99 : vector<8x128xf32>
    %c7_i32 = arith.constant 7 : i32
    %101 = vector.broadcast %c7_i32 : i32 to vector<8x1xi32>
    %102 = arith.cmpi sgt, %24, %101 : vector<8x1xi32>
    %cst_43 = arith.constant 0.000000e+00 : f32
    %103 = vector.broadcast %cst_43 : f32 to vector<8x1xf32>
    %104 = arith.select %102, %29, %103 : vector<8x1xi1>, vector<8x1xf32>
    %105 = arith.index_cast %9 : i32 to index
    %c7 = arith.constant 7 : index
    %c0_44 = arith.constant 0 : index
    %c0_45 = arith.constant 0 : index
    %106 = vector.load %arg5[%105, %c7, %c0_44, %c0_45] : memref<2x8x8x128xf32, #tpu.memory_space<vmem>>, vector<1x1x8x128xf32>
    %107 = vector.shape_cast %106 : vector<1x1x8x128xf32> to vector<8x128xf32>
    %108 = vector.broadcast %104 : vector<8x1xf32> to vector<8x128xf32>
    %109 = arith.mulf %108, %107 : vector<8x128xf32>
    %110 = arith.addf %100, %109 : vector<8x128xf32>
    %c0_46 = arith.constant 0 : index
    %c0_47 = arith.constant 0 : index
    %111 = vector.load %arg4[%c0_46, %c0_47] : memref<8x128xf32, #tpu.memory_space<vmem>>, vector<8x128xf32>
    tpu.vector_store %arg4[%c0_46, %c0_47], %110 {strides = array<i32>} : memref<8x128xf32, #tpu.memory_space<vmem>>, vector<8x128xf32>,
    return
  }
  func.func @transform_0(%arg0: i32, %arg1: memref<64xi32, #tpu.memory_space<smem>>) -> (i32, i32) {
    %c0_i32 = arith.constant 0 : i32
    %c0_i32_0 = arith.constant 0 : i32
    return %arg0, %c0_i32 : i32, i32
  }
  func.func @transform_2(%arg0: i32, %arg1: memref<64xi32, #tpu.memory_space<smem>>) -> (i32, i32) {
    %c0_i32 = arith.constant 0 : i32
    %c0_i32_0 = arith.constant 0 : i32
    return %arg0, %c0_i32 : i32, i32
  }
}

</mosaic_0001>

<bundles_post_ra>
// kernel: _encode_with_padded_table.1
= control target key start
LH: loop header
LB: loop body
LE: loop exit
PB: predicated region body
PF: predicated region fallthrough
CT: control target
= control target key end

     0   :  { %s5446_s0 = inlined_call_operand.vmem [shape: s32[64], index: 0, kind: input, shape index: {}]   ;;  %s5447_s1 = inlined_call_operand.vmem [shape: s32[8,1], index: 1, kind: input, shape index: {}]   ;;  %s5448_s2 = inlined_call_operand.hbm [shape: f32[50,128], index: 2, kind: input, shape index: {}]   ;;  %s5449_s3 = inlined_call_operand.vmem [shape: f32[8,128], index: 3, kind: output, shape index: {}]  }
   0x1   :  { %s8_s14 = sshll.u32 %s5446_s0, 4  ;;  %s9_s14 = int_to_ptr.vmem [resolvable:$true] %s8_s14 }
   0x2   :  { %s3016_s15 = scalar_lea.vmem %s9_s14, 16  ;;  %p3021_p1 = scmp.lt.s32.totalorder %s9_s14, %s9_s14 }
   0x3   :  { %p3017_p0 = scmp.ne.s32.totalorder %s9_s14, %s3016_s15  ;;  %p3022_p2 = scmp.lt.s32.totalorder %s3016_s15, %s3016_s15 }
   0x5   :  { %p3023_p3 = por %p3022_p2, %p3021_p1 }
   0x7   :  { %p3024_p4 = pnand %p3023_p3, %p3017_p0 }
   0x9   :  { %3027 = shalt.err (!%p3024_p4)  }
   0xa   :  { %s4440_s16 = smov [#allocation5]  }
   0xb   :  { %11 = dma.vmem_to_smem %s9_s14, 16, %s4440_s16, [#allocation4] }
   0xc   :  { %4436 = dma.done.wait [#allocation4], 16 }
   0xd   :  { %4437 = vsyncadd [#allocation4], 4294967280 }
   0xe   :  { %13 = sfence }
   0xf   :  { %s28_s17 = sld [smem:[#allocation5]]  ;;  %s4441_s18 = smov [#allocation2]  }
  0x10   :  { %s38_s19 = sshll.u32 %s4441_s18, 4  ;;  %s4529_s20 = sld [smem:[#allocation5 + $0x1]]  ;;  %s4531_s19 = int_to_ptr.vmem [resolvable:$true] %s38_s19 }
  0x11   :  { %s4442_s0 = smov [#allocation2 + $0x8]   ;;  %s4533_s22 = sld [smem:[#allocation5 + $0x2]] }
  0x12   :  { %s53_s21 = sshll.u32 %s4442_s0, 4  ;;  %s4443_s23 = smov [#allocation2 + $0x10]   ;;  %s4535_s21 = int_to_ptr.vmem [resolvable:$true] %s53_s21 }
  0x13   :  { %s68_s24 = sshll.u32 %s4443_s23, 4  ;;  %s4537_s25 = sld [smem:[#allocation5 + $0x3]]  ;;  %s4539_s24 = int_to_ptr.vmem [resolvable:$true] %s68_s24 }
  0x14   :  { %s4548_s7 = scalar_lea.hbm %s5448_s2, 896 }
  0x15   :  { %s2689_s26 = sshll.u32 %s28_s17, 4 }
  0x16   :  { %s30_s29 = scalar_lea.hbm %s5448_s2, %s2689_s26  ;;  %s2691_s30 = sshll.u32 %s4529_s20, 4 }
  0x17   :  { %s3028_s4 = scalar_lea.hbm %s30_s29, 16  ;;  %p3031_p6 = scmp.lt.s32.totalorder %s30_s29, %s5448_s2 }
  0x18   :  { %p3029_p5 = scmp.ne.s32.totalorder %s30_s29, %s3028_s4  ;;  %p3032_p7 = scmp.lt.s32.totalorder %s4548_s7, %s3028_s4 }
  0x1a   :  { %p3033_p8 = por %p3032_p7, %p3031_p6 }
  0x1c   :  { %p3034_p9 = pnand %p3033_p8, %p3029_p5 }
  0x1e   :  { %3037 = shalt.err (!%p3034_p9)  }
  0x1f   :  { %s3038_s10 = scalar_lea.vmem %s4531_s19, 16  ;;  %s4557_s11 = scalar_lea.vmem %s4531_s19, 2048 }
  0x20   :  { %p3039_p10 = scmp.ne.s32.totalorder %s4531_s19, %s3038_s10  ;;  %p3043_p11 = scmp.lt.s32.totalorder %s4531_s19, %s4531_s19 }
  0x21   :  { %p3044_p12 = scmp.lt.s32.totalorder %s4557_s11, %s3038_s10 }
  0x23   :  { %p3045_p13 = por %p3044_p12, %p3043_p11 }
  0x25   :  { %p3046_p0 = pnand %p3045_p13, %p3039_p10 }
  0x27   :  { %3049 = shalt.err (!%p3046_p0)  }
  0x28   :  { %41 = dma.hbm_to_vmem [thread:$0]  %s30_s29, 16, %s4531_s19, [#allocation3] }
  0x29   :  { %s44_s14 = scalar_lea.hbm %s5448_s2, %s2691_s30  ;;  %s2693_s15 = sshll.u32 %s4533_s22, 4 }
  0x2a   :  { %s3050_s16 = scalar_lea.hbm %s44_s14, 16  ;;  %p3053_p2 = scmp.lt.s32.totalorder %s44_s14, %s5448_s2 }
  0x2b   :  { %p3051_p1 = scmp.ne.s32.totalorder %s44_s14, %s3050_s16  ;;  %p3054_p3 = scmp.lt.s32.totalorder %s4548_s7, %s3050_s16 }
  0x2d   :  { %p3055_p4 = por %p3054_p3, %p3053_p2 }
  0x2f   :  { %p3056_p5 = pnand %p3055_p4, %p3051_p1 }
  0x31   :  { %3059 = shalt.err (!%p3056_p5)  }
  0x32   :  { %s3060_s20 = scalar_lea.vmem %s4535_s21, 16  ;;  %p3065_p7 = scmp.lt.s32.totalorder %s4535_s21, %s4531_s19 }
  0x33   :  { %p3061_p6 = scmp.ne.s32.totalorder %s4535_s21, %s3060_s20  ;;  %p3066_p8 = scmp.lt.s32.totalorder %s4557_s11, %s3060_s20 }
  0x35   :  { %p3067_p9 = por %p3066_p8, %p3065_p7 }
  0x37   :  { %p3068_p10 = pnand %p3067_p9, %p3061_p6 }
  0x39   :  { %3071 = shalt.err (!%p3068_p10)  }
  0x3a   :  { %56 = dma.hbm_to_vmem [thread:$0]  %s44_s14, 16, %s4535_s21, [#allocation3] }
  0x3b   :  { %s59_s23 = scalar_lea.hbm %s5448_s2, %s2693_s15  ;;  %s2695_s26 = sshll.u32 %s4537_s25, 4 }
  0x3c   :  { %s3072_s27 = scalar_lea.hbm %s59_s23, 16  ;;  %p3075_p12 = scmp.lt.s32.totalorder %s59_s23, %s5448_s2 }
  0x3d   :  { %p3073_p11 = scmp.ne.s32.totalorder %s59_s23, %s3072_s27  ;;  %p3076_p13 = scmp.lt.s32.totalorder %s4548_s7, %s3072_s27 }
  0x3f   :  { %p3077_p0 = por %p3076_p13, %p3075_p12 }
  0x41   :  { %p3078_p1 = pnand %p3077_p0, %p3073_p11 }
  0x43   :  { %3081 = shalt.err (!%p3078_p1)  }
  0x44   :  { %s3082_s21 = scalar_lea.vmem %s4539_s24, 16  ;;  %p3087_p3 = scmp.lt.s32.totalorder %s4539_s24, %s4531_s19 }
  0x45   :  { %p3083_p2 = scmp.ne.s32.totalorder %s4539_s24, %s3082_s21  ;;  %p3088_p4 = scmp.lt.s32.totalorder %s4557_s11, %s3082_s21 }
  0x47   :  { %p3089_p5 = por %p3088_p4, %p3087_p3 }
  0x49   :  { %p3090_p6 = pnand %p3089_p5, %p3083_p2 }
  0x4b   :  { %3093 = shalt.err (!%p3090_p6)  }
  0x4c   :  { %71 = dma.hbm_to_vmem [thread:$0]  %s59_s23, 16, %s4539_s24, [#allocation3] }
  0x4d   :  { %s74_s4 = scalar_lea.hbm %s5448_s2, %s2695_s26  ;;  %s4444_s5 = smov [#allocation2 + $0x18]  }
  0x4e   :  { %s83_s6 = sshll.u32 %s4444_s5, 4  ;;  %s2696_s8 = sld [smem:[#allocation5 + $0x4]]  ;;  %s84_s6 = int_to_ptr.vmem [resolvable:$true] %s83_s6 }
  0x4f   :  { %s3094_s9 = scalar_lea.hbm %s74_s4, 16  ;;  %p3097_p8 = scmp.lt.s32.totalorder %s74_s4, %s5448_s2 }
  0x50   :  { %p3095_p7 = scmp.ne.s32.totalorder %s74_s4, %s3094_s9  ;;  %p3098_p9 = scmp.lt.s32.totalorder %s4548_s7, %s3094_s9 }
  0x52   :  { %p3099_p10 = por %p3098_p9, %p3097_p8 }
  0x54   :  { %p3100_p11 = pnand %p3099_p10, %p3095_p7 }
  0x56   :  { %3103 = shalt.err (!%p3100_p11)  }
  0x57   :  { %s3104_s13 = scalar_lea.vmem %s84_s6, 16  ;;  %p3109_p13 = scmp.lt.s32.totalorder %s84_s6, %s4531_s19 }
  0x58   :  { %p3105_p12 = scmp.ne.s32.totalorder %s84_s6, %s3104_s13  ;;  %p3110_p0 = scmp.lt.s32.totalorder %s4557_s11, %s3104_s13 }
  0x5a   :  { %p3111_p1 = por %p3110_p0, %p3109_p13 }
  0x5c   :  { %p3112_p2 = pnand %p3111_p1, %p3105_p12 }
  0x5e   :  { %3115 = shalt.err (!%p3112_p2)  }
  0x5f   :  { %86 = dma.hbm_to_vmem [thread:$0]  %s74_s4, 16, %s84_s6, [#allocation3] }
  0x60   :  { %s4445_s24 = smov [#allocation2 + $0x20]   ;;  %s2698_s15 = sld [smem:[#allocation5 + $0x5]] }
  0x61   :  { %s98_s14 = sshll.u32 %s4445_s24, 4  ;;  %s4446_s16 = smov [#allocation2 + $0x28]   ;;  %s99_s14 = int_to_ptr.vmem [resolvable:$true] %s98_s14 }
  0x62   :  { %s113_s17 = sshll.u32 %s4446_s16, 4  ;;  %s4600_s18 = sld [smem:[#allocation5 + $0x6]]  ;;  %s4602_s17 = int_to_ptr.vmem [resolvable:$true] %s113_s17 }
  0x63   :  { %s2697_s20 = sshll.u32 %s2696_s8, 4 }
  0x64   :  { %s89_s23 = scalar_lea.hbm %s5448_s2, %s2697_s20 }
  0x65   :  { %s3116_s26 = scalar_lea.hbm %s89_s23, 16  ;;  %p3119_p4 = scmp.lt.s32.totalorder %s89_s23, %s5448_s2 }
  0x66   :  { %p3117_p3 = scmp.ne.s32.totalorder %s89_s23, %s3116_s26  ;;  %p3120_p5 = scmp.lt.s32.totalorder %s4548_s7, %s3116_s26 }
  0x68   :  { %p3121_p6 = por %p3120_p5, %p3119_p4 }
  0x6a   :  { %p3122_p7 = pnand %p3121_p6, %p3117_p3 }
  0x6c   :  { %3125 = shalt.err (!%p3122_p7)  }
  0x6d   :  { %s3126_s29 = scalar_lea.vmem %s99_s14, 16  ;;  %p3131_p9 = scmp.lt.s32.totalorder %s99_s14, %s4531_s19 }
  0x6e   :  { %p3127_p8 = scmp.ne.s32.totalorder %s99_s14, %s3126_s29  ;;  %p3132_p10 = scmp.lt.s32.totalorder %s4557_s11, %s3126_s29 }
  0x70   :  { %p3133_p11 = por %p3132_p10, %p3131_p9 }
  0x72   :  { %p3134_p12 = pnand %p3133_p11, %p3127_p8 }
  0x74   :  { %3137 = shalt.err (!%p3134_p12)  }
  0x75   :  { %101 = dma.hbm_to_vmem [thread:$0]  %s89_s23, 16, %s99_s14, [#allocation3] }
  0x76   :  { %s2699_s21 = sshll.u32 %s2698_s15, 4  ;;  %s4447_s25 = smov [#allocation2 + $0x30]  }
  0x77   :  { %s128_s30 = sshll.u32 %s4447_s25, 4  ;;  %s104_s6 = scalar_lea.hbm %s5448_s2, %s2699_s21  ;;  %s4616_s30 = int_to_ptr.vmem [resolvable:$true] %s128_s30 }
  0x78   :  { %s3138_s8 = scalar_lea.hbm %s104_s6, 16  ;;  %p3141_p0 = scmp.lt.s32.totalorder %s104_s6, %s5448_s2 }
  0x79   :  { %p3139_p13 = scmp.ne.s32.totalorder %s104_s6, %s3138_s8  ;;  %p3142_p1 = scmp.lt.s32.totalorder %s4548_s7, %s3138_s8 }
  0x7b   :  { %p3143_p2 = por %p3142_p1, %p3141_p0 }
  0x7d   :  { %p3144_p3 = pnand %p3143_p2, %p3139_p13 }
  0x7f   :  { %3147 = shalt.err (!%p3144_p3)  }
  0x80   :  { %s3148_s12 = scalar_lea.vmem %s4602_s17, 16  ;;  %p3153_p5 = scmp.lt.s32.totalorder %s4602_s17, %s4531_s19 }
  0x81   :  { %p3149_p4 = scmp.ne.s32.totalorder %s4602_s17, %s3148_s12  ;;  %p3154_p6 = scmp.lt.s32.totalorder %s4557_s11, %s3148_s12 }
  0x83   :  { %p3155_p7 = por %p3154_p6, %p3153_p5 }
  0x85   :  { %p3156_p8 = pnand %p3155_p7, %p3149_p4 }
  0x87   :  { %3159 = shalt.err (!%p3156_p8)  }
  0x88   :  { %116 = dma.hbm_to_vmem [thread:$0]  %s104_s6, 16, %s4602_s17, [#allocation3] }
  0x89   :  { %s2701_s13 = sshll.u32 %s4600_s18, 4  ;;  %s2702_s24 = sld [smem:[#allocation5 + $0x7]] }
  0x8a   :  { %s119_s16 = scalar_lea.hbm %s5448_s2, %s2701_s13 }
  0x8b   :  { %s3160_s20 = scalar_lea.hbm %s119_s16, 16  ;;  %p3163_p10 = scmp.lt.s32.totalorder %s119_s16, %s5448_s2 }
  0x8c   :  { %p3161_p9 = scmp.ne.s32.totalorder %s119_s16, %s3160_s20  ;;  %p3164_p11 = scmp.lt.s32.totalorder %s4548_s7, %s3160_s20 }
  0x8e   :  { %p3165_p12 = por %p3164_p11, %p3163_p10 }
  0x90   :  { %p3166_p13 = pnand %p3165_p12, %p3161_p9 }
  0x92   :  { %3169 = shalt.err (!%p3166_p13)  }
  0x93   :  { %s3170_s17 = scalar_lea.vmem %s4616_s30, 16  ;;  %p3175_p1 = scmp.lt.s32.totalorder %s4616_s30, %s4531_s19 }
  0x94   :  { %p3171_p0 = scmp.ne.s32.totalorder %s4616_s30, %s3170_s17  ;;  %p3176_p2 = scmp.lt.s32.totalorder %s4557_s11, %s3170_s17 }
  0x96   :  { %p3177_p3 = por %p3176_p2, %p3175_p1 }
  0x98   :  { %p3178_p4 = pnand %p3177_p3, %p3171_p0 }
  0x9a   :  { %3181 = shalt.err (!%p3178_p4)  }
  0x9b   :  { %131 = dma.hbm_to_vmem [thread:$0]  %s119_s16, 16, %s4616_s30, [#allocation3] }
  0x9c   :  { %s4448_s18 = smov [#allocation2 + $0x38]   ;;  %s2704_s26 = sld [smem:[#allocation5 + $0x8]] }
  0x9d   :  { %s143_s23 = sshll.u32 %s4448_s18, 4  ;;  %s4449_s27 = smov [#allocation2 + $0x1]   ;;  %s144_s23 = int_to_ptr.vmem [resolvable:$true] %s143_s23 }
  0x9e   :  { %s158_s28 = sshll.u32 %s4449_s27, 4  ;;  %s4642_s29 = sld [smem:[#allocation5 + $0x9]]  ;;  %s4644_s28 = int_to_ptr.vmem [resolvable:$true] %s158_s28 }
  0x9f   :  { %s2703_s21 = sshll.u32 %s2702_s24, 4 }
  0xa0   :  { %s134_s5 = scalar_lea.hbm %s5448_s2, %s2703_s21 }
  0xa1   :  { %s3182_s6 = scalar_lea.hbm %s134_s5, 16  ;;  %p3185_p6 = scmp.lt.s32.totalorder %s134_s5, %s5448_s2 }
  0xa2   :  { %p3183_p5 = scmp.ne.s32.totalorder %s134_s5, %s3182_s6  ;;  %p3186_p7 = scmp.lt.s32.totalorder %s4548_s7, %s3182_s6 }
  0xa4   :  { %p3187_p8 = por %p3186_p7, %p3185_p6 }
  0xa6   :  { %p3188_p9 = pnand %p3187_p8, %p3183_p5 }
  0xa8   :  { %3191 = shalt.err (!%p3188_p9)  }
  0xa9   :  { %s3192_s30 = scalar_lea.vmem %s144_s23, 16  ;;  %p3197_p11 = scmp.lt.s32.totalorder %s144_s23, %s4531_s19 }
  0xaa   :  { %p3193_p10 = scmp.ne.s32.totalorder %s144_s23, %s3192_s30  ;;  %p3198_p12 = scmp.lt.s32.totalorder %s4557_s11, %s3192_s30 }
  0xac   :  { %p3199_p13 = por %p3198_p12, %p3197_p11 }
  0xae   :  { %p3200_p0 = pnand %p3199_p13, %p3193_p10 }
  0xb0   :  { %3203 = shalt.err (!%p3200_p0)  }
  0xb1   :  { %146 = dma.hbm_to_vmem [thread:$0]  %s134_s5, 16, %s144_s23, [#allocation3] }
  0xb2   :  { %s2705_s10 = sshll.u32 %s2704_s26, 4  ;;  %s4450_s12 = smov [#allocation2 + $0x9]  }
  0xb3   :  { %s173_s13 = sshll.u32 %s4450_s12, 4  ;;  %s149_s15 = scalar_lea.hbm %s5448_s2, %s2705_s10  ;;  %s4658_s13 = int_to_ptr.vmem [resolvable:$true] %s173_s13 }
  0xb4   :  { %s3204_s16 = scalar_lea.hbm %s149_s15, 16  ;;  %p3207_p2 = scmp.lt.s32.totalorder %s149_s15, %s5448_s2 }
  0xb5   :  { %p3205_p1 = scmp.ne.s32.totalorder %s149_s15, %s3204_s16  ;;  %p3208_p3 = scmp.lt.s32.totalorder %s4548_s7, %s3204_s16 }
  0xb7   :  { %p3209_p4 = por %p3208_p3, %p3207_p2 }
  0xb9   :  { %p3210_p5 = pnand %p3209_p4, %p3205_p1 }
  0xbb   :  { %3213 = shalt.err (!%p3210_p5)  }
  0xbc   :  { %s3214_s22 = scalar_lea.vmem %s4644_s28, 16  ;;  %p3219_p7 = scmp.lt.s32.totalorder %s4644_s28, %s4531_s19 }
  0xbd   :  { %p3215_p6 = scmp.ne.s32.totalorder %s4644_s28, %s3214_s22  ;;  %p3220_p8 = scmp.lt.s32.totalorder %s4557_s11, %s3214_s22 }
  0xbf   :  { %p3221_p9 = por %p3220_p8, %p3219_p7 }
  0xc1   :  { %p3222_p10 = pnand %p3221_p9, %p3215_p6 }
  0xc3   :  { %3225 = shalt.err (!%p3222_p10)  }
  0xc4   :  { %161 = dma.hbm_to_vmem [thread:$0]  %s149_s15, 16, %s4644_s28, [#allocation3] }
  0xc5   :  { %s2707_s17 = sshll.u32 %s4642_s29, 4  ;;  %s2708_s18 = sld [smem:[#allocation5 + $0xa]] }
  0xc6   :  { %s164_s27 = scalar_lea.hbm %s5448_s2, %s2707_s17 }
  0xc7   :  { %s3226_s21 = scalar_lea.hbm %s164_s27, 16  ;;  %p3229_p12 = scmp.lt.s32.totalorder %s164_s27, %s5448_s2 }
  0xc8   :  { %p3227_p11 = scmp.ne.s32.totalorder %s164_s27, %s3226_s21  ;;  %p3230_p13 = scmp.lt.s32.totalorder %s4548_s7, %s3226_s21 }
  0xca   :  { %p3231_p0 = por %p3230_p13, %p3229_p12 }
  0xcc   :  { %p3232_p1 = pnand %p3231_p0, %p3227_p11 }
  0xce   :  { %3235 = shalt.err (!%p3232_p1)  }
  0xcf   :  { %s3236_s28 = scalar_lea.vmem %s4658_s13, 16  ;;  %p3241_p3 = scmp.lt.s32.totalorder %s4658_s13, %s4531_s19 }
  0xd0   :  { %p3237_p2 = scmp.ne.s32.totalorder %s4658_s13, %s3236_s28  ;;  %p3242_p4 = scmp.lt.s32.totalorder %s4557_s11, %s3236_s28 }
  0xd2   :  { %p3243_p5 = por %p3242_p4, %p3241_p3 }
  0xd4   :  { %p3244_p6 = pnand %p3243_p5, %p3237_p2 }
  0xd6   :  { %3247 = shalt.err (!%p3244_p6)  }
  0xd7   :  { %176 = dma.hbm_to_vmem [thread:$0]  %s164_s27, 16, %s4658_s13, [#allocation3] }
  0xd8   :  { %s4451_s29 = smov [#allocation2 + $0x11]   ;;  %s2710_s6 = sld [smem:[#allocation5 + $0xb]] }
  0xd9   :  { %s188_s5 = sshll.u32 %s4451_s29, 4  ;;  %s4452_s8 = smov [#allocation2 + $0x19]   ;;  %s189_s5 = int_to_ptr.vmem [resolvable:$true] %s188_s5 }
  0xda   :  { %s203_s9 = sshll.u32 %s4452_s8, 4  ;;  %s4684_s30 = sld [smem:[#allocation5 + $0xc]]  ;;  %s4686_s9 = int_to_ptr.vmem [resolvable:$true] %s203_s9 }
  0xdb   :  { %s2709_s10 = sshll.u32 %s2708_s18, 4 }
  0xdc   :  { %s179_s14 = scalar_lea.hbm %s5448_s2, %s2709_s10 }
  0xdd   :  { %s3248_s15 = scalar_lea.hbm %s179_s14, 16  ;;  %p3251_p8 = scmp.lt.s32.totalorder %s179_s14, %s5448_s2 }
  0xde   :  { %p3249_p7 = scmp.ne.s32.totalorder %s179_s14, %s3248_s15  ;;  %p3252_p9 = scmp.lt.s32.totalorder %s4548_s7, %s3248_s15 }
  0xe0   :  { %p3253_p10 = por %p3252_p9, %p3251_p8 }
  0xe2   :  { %p3254_p11 = pnand %p3253_p10, %p3249_p7 }
  0xe4   :  { %3257 = shalt.err (!%p3254_p11)  }
  0xe5   :  { %s3258_s13 = scalar_lea.vmem %s189_s5, 16  ;;  %p3263_p13 = scmp.lt.s32.totalorder %s189_s5, %s4531_s19 }
  0xe6   :  { %p3259_p12 = scmp.ne.s32.totalorder %s189_s5, %s3258_s13  ;;  %p3264_p0 = scmp.lt.s32.totalorder %s4557_s11, %s3258_s13 }
  0xe8   :  { %p3265_p1 = por %p3264_p0, %p3263_p13 }
  0xea   :  { %p3266_p2 = pnand %p3265_p1, %p3259_p12 }
  0xec   :  { %3269 = shalt.err (!%p3266_p2)  }
  0xed   :  { %191 = dma.hbm_to_vmem [thread:$0]  %s179_s14, 16, %s189_s5, [#allocation3] }
  0xee   :  { %s2711_s0 = sshll.u32 %s2710_s6, 4  ;;  %s4453_s22 = smov [#allocation2 + $0x21]  }
  0xef   :  { %s218_s17 = sshll.u32 %s4453_s22, 4  ;;  %s194_s26 = scalar_lea.hbm %s5448_s2, %s2711_s0  ;;  %s4700_s17 = int_to_ptr.vmem [resolvable:$true] %s218_s17 }
  0xf0   :  { %s3270_s27 = scalar_lea.hbm %s194_s26, 16  ;;  %p3273_p4 = scmp.lt.s32.totalorder %s194_s26, %s5448_s2 }
  0xf1   :  { %p3271_p3 = scmp.ne.s32.totalorder %s194_s26, %s3270_s27  ;;  %p3274_p5 = scmp.lt.s32.totalorder %s4548_s7, %s3270_s27 }
  0xf3   :  { %p3275_p6 = por %p3274_p5, %p3273_p4 }
  0xf5   :  { %p3276_p7 = pnand %p3275_p6, %p3271_p3 }
  0xf7   :  { %3279 = shalt.err (!%p3276_p7)  }
  0xf8   :  { %s3280_s4 = scalar_lea.vmem %s4686_s9, 16  ;;  %p3285_p9 = scmp.lt.s32.totalorder %s4686_s9, %s4531_s19 }
  0xf9   :  { %p3281_p8 = scmp.ne.s32.totalorder %s4686_s9, %s3280_s4  ;;  %p3286_p10 = scmp.lt.s32.totalorder %s4557_s11, %s3280_s4 }
  0xfb   :  { %p3287_p11 = por %p3286_p10, %p3285_p9 }
  0xfd   :  { %p3288_p12 = pnand %p3287_p11, %p3281_p8 }
  0xff   :  { %3291 = shalt.err (!%p3288_p12)  }
 0x100   :  { %206 = dma.hbm_to_vmem [thread:$0]  %s194_s26, 16, %s4686_s9, [#allocation3] }
 0x101   :  { %s2713_s28 = sshll.u32 %s4684_s30, 4  ;;  %s2714_s29 = sld [smem:[#allocation5 + $0xd]] }
 0x102   :  { %s209_s8 = scalar_lea.hbm %s5448_s2, %s2713_s28 }
 0x103   :  { %s3292_s10 = scalar_lea.hbm %s209_s8, 16  ;;  %p3295_p0 = scmp.lt.s32.totalorder %s209_s8, %s5448_s2 }
 0x104   :  { %p3293_p13 = scmp.ne.s32.totalorder %s209_s8, %s3292_s10  ;;  %p3296_p1 = scmp.lt.s32.totalorder %s4548_s7, %s3292_s10 }
 0x106   :  { %p3297_p2 = por %p3296_p1, %p3295_p0 }
 0x108   :  { %p3298_p3 = pnand %p3297_p2, %p3293_p13 }
 0x10a   :  { %3301 = shalt.err (!%p3298_p3)  }
 0x10b   :  { %s3302_s9 = scalar_lea.vmem %s4700_s17, 16  ;;  %p3307_p5 = scmp.lt.s32.totalorder %s4700_s17, %s4531_s19 }
 0x10c   :  { %p3303_p4 = scmp.ne.s32.totalorder %s4700_s17, %s3302_s9  ;;  %p3308_p6 = scmp.lt.s32.totalorder %s4557_s11, %s3302_s9 }
 0x10e   :  { %p3309_p7 = por %p3308_p6, %p3307_p5 }
 0x110   :  { %p3310_p8 = pnand %p3309_p7, %p3303_p4 }
 0x112   :  { %3313 = shalt.err (!%p3310_p8)  }
 0x113   :  { %221 = dma.hbm_to_vmem [thread:$0]  %s209_s8, 16, %s4700_s17, [#allocation3] }
 0x114   :  { %s4454_s30 = smov [#allocation2 + $0x29]   ;;  %s2716_s15 = sld [smem:[#allocation5 + $0xe]] }
 0x115   :  { %s233_s14 = sshll.u32 %s4454_s30, 4  ;;  %s4455_s16 = smov [#allocation2 + $0x31]   ;;  %s234_s14 = int_to_ptr.vmem [resolvable:$true] %s233_s14 }
 0x116   :  { %s248_s20 = sshll.u32 %s4455_s16, 4  ;;  %s4726_s13 = sld [smem:[#allocation5 + $0xf]]  ;;  %s4728_s20 = int_to_ptr.vmem [resolvable:$true] %s248_s20 }
 0x117   :  { %s2715_s0 = sshll.u32 %s2714_s29, 4 }
 0x118   :  { %s224_s23 = scalar_lea.hbm %s5448_s2, %s2715_s0 }
 0x119   :  { %s3314_s26 = scalar_lea.hbm %s224_s23, 16  ;;  %p3317_p10 = scmp.lt.s32.totalorder %s224_s23, %s5448_s2 }
 0x11a   :  { %p3315_p9 = scmp.ne.s32.totalorder %s224_s23, %s3314_s26  ;;  %p3318_p11 = scmp.lt.s32.totalorder %s4548_s7, %s3314_s26 }
 0x11c   :  { %p3319_p12 = por %p3318_p11, %p3317_p10 }
 0x11e   :  { %p3320_p13 = pnand %p3319_p12, %p3315_p9 }
 0x120   :  { %3323 = shalt.err (!%p3320_p13)  }
 0x121   :  { %s3324_s17 = scalar_lea.vmem %s234_s14, 16  ;;  %p3329_p1 = scmp.lt.s32.totalorder %s234_s14, %s4531_s19 }
 0x122   :  { %p3325_p0 = scmp.ne.s32.totalorder %s234_s14, %s3324_s17  ;;  %p3330_p2 = scmp.lt.s32.totalorder %s4557_s11, %s3324_s17 }
 0x124   :  { %p3331_p3 = por %p3330_p2, %p3329_p1 }
 0x126   :  { %p3332_p4 = pnand %p3331_p3, %p3325_p0 }
 0x128   :  { %3335 = shalt.err (!%p3332_p4)  }
 0x129   :  { %236 = dma.hbm_to_vmem [thread:$0]  %s224_s23, 16, %s234_s14, [#allocation3] }
 0x12a   :  { %s2717_s25 = sshll.u32 %s2716_s15, 4  ;;  %s4456_s4 = smov [#allocation2 + $0x39]  }
 0x12b   :  { %s263_s28 = sshll.u32 %s4456_s4, 4  ;;  %s239_s6 = scalar_lea.hbm %s5448_s2, %s2717_s25  ;;  %s4742_s28 = int_to_ptr.vmem [resolvable:$true] %s263_s28 }
 0x12c   :  { %s3336_s8 = scalar_lea.hbm %s239_s6, 16  ;;  %p3339_p6 = scmp.lt.s32.totalorder %s239_s6, %s5448_s2 }
 0x12d   :  { %p3337_p5 = scmp.ne.s32.totalorder %s239_s6, %s3336_s8  ;;  %p3340_p7 = scmp.lt.s32.totalorder %s4548_s7, %s3336_s8 }
 0x12f   :  { %p3341_p8 = por %p3340_p7, %p3339_p6 }
 0x131   :  { %p3342_p9 = pnand %p3341_p8, %p3337_p5 }
 0x133   :  { %3345 = shalt.err (!%p3342_p9)  }
 0x134   :  { %s3346_s24 = scalar_lea.vmem %s4728_s20, 16  ;;  %p3351_p11 = scmp.lt.s32.totalorder %s4728_s20, %s4531_s19 }
 0x135   :  { %p3347_p10 = scmp.ne.s32.totalorder %s4728_s20, %s3346_s24  ;;  %p3352_p12 = scmp.lt.s32.totalorder %s4557_s11, %s3346_s24 }
 0x137   :  { %p3353_p13 = por %p3352_p12, %p3351_p11 }
 0x139   :  { %p3354_p0 = pnand %p3353_p13, %p3347_p10 }
 0x13b   :  { %3357 = shalt.err (!%p3354_p0)  }
 0x13c   :  { %251 = dma.hbm_to_vmem [thread:$0]  %s239_s6, 16, %s4728_s20, [#allocation3] }
 0x13d   :  { %s2719_s9 = sshll.u32 %s4726_s13, 4  ;;  %s2720_s30 = sld [smem:[#allocation5 + $0x10]] }
 0x13e   :  { %s254_s16 = scalar_lea.hbm %s5448_s2, %s2719_s9 }
 0x13f   :  { %s3358_s0 = scalar_lea.hbm %s254_s16, 16  ;;  %p3361_p2 = scmp.lt.s32.totalorder %s254_s16, %s5448_s2 }
 0x140   :  { %p3359_p1 = scmp.ne.s32.totalorder %s254_s16, %s3358_s0  ;;  %p3362_p3 = scmp.lt.s32.totalorder %s4548_s7, %s3358_s0 }
 0x142   :  { %p3363_p4 = por %p3362_p3, %p3361_p2 }
 0x144   :  { %p3364_p5 = pnand %p3363_p4, %p3359_p1 }
 0x146   :  { %3367 = shalt.err (!%p3364_p5)  }
 0x147   :  { %s3368_s20 = scalar_lea.vmem %s4742_s28, 16  ;;  %p3373_p7 = scmp.lt.s32.totalorder %s4742_s28, %s4531_s19 }
 0x148   :  { %p3369_p6 = scmp.ne.s32.totalorder %s4742_s28, %s3368_s20  ;;  %p3374_p8 = scmp.lt.s32.totalorder %s4557_s11, %s3368_s20 }
 0x14a   :  { %p3375_p9 = por %p3374_p8, %p3373_p7 }
 0x14c   :  { %p3376_p10 = pnand %p3375_p9, %p3369_p6 }
 0x14e   :  { %3379 = shalt.err (!%p3376_p10)  }
 0x14f   :  { %266 = dma.hbm_to_vmem [thread:$0]  %s254_s16, 16, %s4742_s28, [#allocation3] }
 0x150   :  { %s4457_s13 = smov [#allocation2 + $0x2]   ;;  %s2722_s26 = sld [smem:[#allocation5 + $0x11]] }
 0x151   :  { %s278_s23 = sshll.u32 %s4457_s13, 4  ;;  %s4458_s27 = smov [#allocation2 + $0xa]   ;;  %s279_s23 = int_to_ptr.vmem [resolvable:$true] %s278_s23 }
 0x152   :  { %s293_s21 = sshll.u32 %s4458_s27, 4  ;;  %s4768_s17 = sld [smem:[#allocation5 + $0x12]]  ;;  %s4770_s21 = int_to_ptr.vmem [resolvable:$true] %s293_s21 }
 0x153   :  { %s2721_s25 = sshll.u32 %s2720_s30, 4 }
 0x154   :  { %s269_s5 = scalar_lea.hbm %s5448_s2, %s2721_s25 }
 0x155   :  { %s3380_s6 = scalar_lea.hbm %s269_s5, 16  ;;  %p3383_p12 = scmp.lt.s32.totalorder %s269_s5, %s5448_s2 }
 0x156   :  { %p3381_p11 = scmp.ne.s32.totalorder %s269_s5, %s3380_s6  ;;  %p3384_p13 = scmp.lt.s32.totalorder %s4548_s7, %s3380_s6 }
 0x158   :  { %p3385_p0 = por %p3384_p13, %p3383_p12 }
 0x15a   :  { %p3386_p1 = pnand %p3385_p0, %p3381_p11 }
 0x15c   :  { %3389 = shalt.err (!%p3386_p1)  }
 0x15d   :  { %s3390_s28 = scalar_lea.vmem %s279_s23, 16  ;;  %p3395_p3 = scmp.lt.s32.totalorder %s279_s23, %s4531_s19 }
 0x15e   :  { %p3391_p2 = scmp.ne.s32.totalorder %s279_s23, %s3390_s28  ;;  %p3396_p4 = scmp.lt.s32.totalorder %s4557_s11, %s3390_s28 }
 0x160   :  { %p3397_p5 = por %p3396_p4, %p3395_p3 }
 0x162   :  { %p3398_p6 = pnand %p3397_p5, %p3391_p2 }
 0x164   :  { %3401 = shalt.err (!%p3398_p6)  }
 0x165   :  { %281 = dma.hbm_to_vmem [thread:$0]  %s269_s5, 16, %s279_s23, [#allocation3] }
 0x166   :  { %s2723_s12 = sshll.u32 %s2722_s26, 4  ;;  %s4459_s24 = smov [#allocation2 + $0x12]  }
 0x167   :  { %s308_s9 = sshll.u32 %s4459_s24, 4  ;;  %s284_s15 = scalar_lea.hbm %s5448_s2, %s2723_s12  ;;  %s4784_s9 = int_to_ptr.vmem [resolvable:$true] %s308_s9 }
 0x168   :  { %s3402_s16 = scalar_lea.hbm %s284_s15, 16  ;;  %p3405_p8 = scmp.lt.s32.totalorder %s284_s15, %s5448_s2 }
 0x169   :  { %p3403_p7 = scmp.ne.s32.totalorder %s284_s15, %s3402_s16  ;;  %p3406_p9 = scmp.lt.s32.totalorder %s4548_s7, %s3402_s16 }
 0x16b   :  { %p3407_p10 = por %p3406_p9, %p3405_p8 }
 0x16d   :  { %p3408_p11 = pnand %p3407_p10, %p3403_p7 }
 0x16f   :  { %3411 = shalt.err (!%p3408_p11)  }
 0x170   :  { %s3412_s18 = scalar_lea.vmem %s4770_s21, 16  ;;  %p3417_p13 = scmp.lt.s32.totalorder %s4770_s21, %s4531_s19 }
 0x171   :  { %p3413_p12 = scmp.ne.s32.totalorder %s4770_s21, %s3412_s18  ;;  %p3418_p0 = scmp.lt.s32.totalorder %s4557_s11, %s3412_s18 }
 0x173   :  { %p3419_p1 = por %p3418_p0, %p3417_p13 }
 0x175   :  { %p3420_p2 = pnand %p3419_p1, %p3413_p12 }
 0x177   :  { %3423 = shalt.err (!%p3420_p2)  }
 0x178   :  { %296 = dma.hbm_to_vmem [thread:$0]  %s284_s15, 16, %s4770_s21, [#allocation3] }
 0x179   :  { %s2725_s20 = sshll.u32 %s4768_s17, 4  ;;  %s2726_s13 = sld [smem:[#allocation5 + $0x13]] }
 0x17a   :  { %s299_s27 = scalar_lea.hbm %s5448_s2, %s2725_s20 }
 0x17b   :  { %s3424_s25 = scalar_lea.hbm %s299_s27, 16  ;;  %p3427_p4 = scmp.lt.s32.totalorder %s299_s27, %s5448_s2 }
 0x17c   :  { %p3425_p3 = scmp.ne.s32.totalorder %s299_s27, %s3424_s25  ;;  %p3428_p5 = scmp.lt.s32.totalorder %s4548_s7, %s3424_s25 }
 0x17e   :  { %p3429_p6 = por %p3428_p5, %p3427_p4 }
 0x180   :  { %p3430_p7 = pnand %p3429_p6, %p3425_p3 }
 0x182   :  { %3433 = shalt.err (!%p3430_p7)  }
 0x183   :  { %s3434_s21 = scalar_lea.vmem %s4784_s9, 16  ;;  %p3439_p9 = scmp.lt.s32.totalorder %s4784_s9, %s4531_s19 }
 0x184   :  { %p3435_p8 = scmp.ne.s32.totalorder %s4784_s9, %s3434_s21  ;;  %p3440_p10 = scmp.lt.s32.totalorder %s4557_s11, %s3434_s21 }
 0x186   :  { %p3441_p11 = por %p3440_p10, %p3439_p9 }
 0x188   :  { %p3442_p12 = pnand %p3441_p11, %p3435_p8 }
 0x18a   :  { %3445 = shalt.err (!%p3442_p12)  }
 0x18b   :  { %311 = dma.hbm_to_vmem [thread:$0]  %s299_s27, 16, %s4784_s9, [#allocation3] }
 0x18c   :  { %s4460_s17 = smov [#allocation2 + $0x1a]   ;;  %s2728_s6 = sld [smem:[#allocation5 + $0x14]] }
 0x18d   :  { %s323_s5 = sshll.u32 %s4460_s17, 4  ;;  %s4461_s8 = smov [#allocation2 + $0x22]   ;;  %s324_s5 = int_to_ptr.vmem [resolvable:$true] %s323_s5 }
 0x18e   :  { %s338_s10 = sshll.u32 %s4461_s8, 4  ;;  %s4810_s28 = sld [smem:[#allocation5 + $0x15]]  ;;  %s4812_s10 = int_to_ptr.vmem [resolvable:$true] %s338_s10 }
 0x18f   :  { %s2727_s12 = sshll.u32 %s2726_s13, 4 }
 0x190   :  { %s314_s14 = scalar_lea.hbm %s5448_s2, %s2727_s12 }
 0x191   :  { %s3446_s15 = scalar_lea.hbm %s314_s14, 16  ;;  %p3449_p0 = scmp.lt.s32.totalorder %s314_s14, %s5448_s2 }
 0x192   :  { %p3447_p13 = scmp.ne.s32.totalorder %s314_s14, %s3446_s15  ;;  %p3450_p1 = scmp.lt.s32.totalorder %s4548_s7, %s3446_s15 }
 0x194   :  { %p3451_p2 = por %p3450_p1, %p3449_p0 }
 0x196   :  { %p3452_p3 = pnand %p3451_p2, %p3447_p13 }
 0x198   :  { %3455 = shalt.err (!%p3452_p3)  }
 0x199   :  { %s3456_s9 = scalar_lea.vmem %s324_s5, 16  ;;  %p3461_p5 = scmp.lt.s32.totalorder %s324_s5, %s4531_s19 }
 0x19a   :  { %p3457_p4 = scmp.ne.s32.totalorder %s324_s5, %s3456_s9  ;;  %p3462_p6 = scmp.lt.s32.totalorder %s4557_s11, %s3456_s9 }
 0x19c   :  { %p3463_p7 = por %p3462_p6, %p3461_p5 }
 0x19e   :  { %p3464_p8 = pnand %p3463_p7, %p3457_p4 }
 0x1a0   :  { %3467 = shalt.err (!%p3464_p8)  }
 0x1a1   :  { %326 = dma.hbm_to_vmem [thread:$0]  %s314_s14, 16, %s324_s5, [#allocation3] }
 0x1a2   :  { %s2729_s22 = sshll.u32 %s2728_s6, 4  ;;  %s4462_s18 = smov [#allocation2 + $0x2a]  }
 0x1a3   :  { %s353_s20 = sshll.u32 %s4462_s18, 4  ;;  %s329_s26 = scalar_lea.hbm %s5448_s2, %s2729_s22  ;;  %s4826_s20 = int_to_ptr.vmem [resolvable:$true] %s353_s20 }
 0x1a4   :  { %s3468_s27 = scalar_lea.hbm %s329_s26, 16  ;;  %p3471_p10 = scmp.lt.s32.totalorder %s329_s26, %s5448_s2 }
 0x1a5   :  { %p3469_p9 = scmp.ne.s32.totalorder %s329_s26, %s3468_s27  ;;  %p3472_p11 = scmp.lt.s32.totalorder %s4548_s7, %s3468_s27 }
 0x1a7   :  { %p3473_p12 = por %p3472_p11, %p3471_p10 }
 0x1a9   :  { %p3474_p13 = pnand %p3473_p12, %p3469_p9 }
 0x1ab   :  { %3477 = shalt.err (!%p3474_p13)  }
 0x1ac   :  { %s3478_s29 = scalar_lea.vmem %s4812_s10, 16  ;;  %p3483_p1 = scmp.lt.s32.totalorder %s4812_s10, %s4531_s19 }
 0x1ad   :  { %p3479_p0 = scmp.ne.s32.totalorder %s4812_s10, %s3478_s29  ;;  %p3484_p2 = scmp.lt.s32.totalorder %s4557_s11, %s3478_s29 }
 0x1af   :  { %p3485_p3 = por %p3484_p2, %p3483_p1 }
 0x1b1   :  { %p3486_p4 = pnand %p3485_p3, %p3479_p0 }
 0x1b3   :  { %3489 = shalt.err (!%p3486_p4)  }
 0x1b4   :  { %341 = dma.hbm_to_vmem [thread:$0]  %s329_s26, 16, %s4812_s10, [#allocation3] }
 0x1b5   :  { %s2731_s21 = sshll.u32 %s4810_s28, 4  ;;  %s2732_s17 = sld [smem:[#allocation5 + $0x16]] }
 0x1b6   :  { %s344_s8 = scalar_lea.hbm %s5448_s2, %s2731_s21 }
 0x1b7   :  { %s3490_s12 = scalar_lea.hbm %s344_s8, 16  ;;  %p3493_p6 = scmp.lt.s32.totalorder %s344_s8, %s5448_s2 }
 0x1b8   :  { %p3491_p5 = scmp.ne.s32.totalorder %s344_s8, %s3490_s12  ;;  %p3494_p7 = scmp.lt.s32.totalorder %s4548_s7, %s3490_s12 }
 0x1ba   :  { %p3495_p8 = por %p3494_p7, %p3493_p6 }
 0x1bc   :  { %p3496_p9 = pnand %p3495_p8, %p3491_p5 }
 0x1be   :  { %3499 = shalt.err (!%p3496_p9)  }
 0x1bf   :  { %s3500_s10 = scalar_lea.vmem %s4826_s20, 16  ;;  %p3505_p11 = scmp.lt.s32.totalorder %s4826_s20, %s4531_s19 }
 0x1c0   :  { %p3501_p10 = scmp.ne.s32.totalorder %s4826_s20, %s3500_s10  ;;  %p3506_p12 = scmp.lt.s32.totalorder %s4557_s11, %s3500_s10 }
 0x1c2   :  { %p3507_p13 = por %p3506_p12, %p3505_p11 }
 0x1c4   :  { %p3508_p0 = pnand %p3507_p13, %p3501_p10 }
 0x1c6   :  { %3511 = shalt.err (!%p3508_p0)  }
 0x1c7   :  { %356 = dma.hbm_to_vmem [thread:$0]  %s344_s8, 16, %s4826_s20, [#allocation3] }
 0x1c8   :  { %s4463_s28 = smov [#allocation2 + $0x32]   ;;  %s2734_s15 = sld [smem:[#allocation5 + $0x17]] }
 0x1c9   :  { %s368_s14 = sshll.u32 %s4463_s28, 4  ;;  %s4464_s16 = smov [#allocation2 + $0x3a]   ;;  %s369_s14 = int_to_ptr.vmem [resolvable:$true] %s368_s14 }
 0x1ca   :  { %s383_s0 = sshll.u32 %s4464_s16, 4  ;;  %s4852_s9 = sld [smem:[#allocation5 + $0x18]]  ;;  %s4854_s0 = int_to_ptr.vmem [resolvable:$true] %s383_s0 }
 0x1cb   :  { %s2733_s22 = sshll.u32 %s2732_s17, 4 }
 0x1cc   :  { %s359_s23 = scalar_lea.hbm %s5448_s2, %s2733_s22 }
 0x1cd   :  { %s3512_s26 = scalar_lea.hbm %s359_s23, 16  ;;  %p3515_p2 = scmp.lt.s32.totalorder %s359_s23, %s5448_s2 }
 0x1ce   :  { %p3513_p1 = scmp.ne.s32.totalorder %s359_s23, %s3512_s26  ;;  %p3516_p3 = scmp.lt.s32.totalorder %s4548_s7, %s3512_s26 }
 0x1d0   :  { %p3517_p4 = por %p3516_p3, %p3515_p2 }
 0x1d2   :  { %p3518_p5 = pnand %p3517_p4, %p3513_p1 }
 0x1d4   :  { %3521 = shalt.err (!%p3518_p5)  }
 0x1d5   :  { %s3522_s20 = scalar_lea.vmem %s369_s14, 16  ;;  %p3527_p7 = scmp.lt.s32.totalorder %s369_s14, %s4531_s19 }
 0x1d6   :  { %p3523_p6 = scmp.ne.s32.totalorder %s369_s14, %s3522_s20  ;;  %p3528_p8 = scmp.lt.s32.totalorder %s4557_s11, %s3522_s20 }
 0x1d8   :  { %p3529_p9 = por %p3528_p8, %p3527_p7 }
 0x1da   :  { %p3530_p10 = pnand %p3529_p9, %p3523_p6 }
 0x1dc   :  { %3533 = shalt.err (!%p3530_p10)  }
 0x1dd   :  { %371 = dma.hbm_to_vmem [thread:$0]  %s359_s23, 16, %s369_s14, [#allocation3] }
 0x1de   :  { %s2735_s4 = sshll.u32 %s2734_s15, 4  ;;  %s4465_s29 = smov [#allocation2 + $0x3]  }
 0x1df   :  { %s398_s21 = sshll.u32 %s4465_s29, 4  ;;  %s374_s6 = scalar_lea.hbm %s5448_s2, %s2735_s4  ;;  %s4868_s21 = int_to_ptr.vmem [resolvable:$true] %s398_s21 }
 0x1e0   :  { %s3534_s8 = scalar_lea.hbm %s374_s6, 16  ;;  %p3537_p12 = scmp.lt.s32.totalorder %s374_s6, %s5448_s2 }
 0x1e1   :  { %p3535_p11 = scmp.ne.s32.totalorder %s374_s6, %s3534_s8  ;;  %p3538_p13 = scmp.lt.s32.totalorder %s4548_s7, %s3534_s8 }
 0x1e3   :  { %p3539_p0 = por %p3538_p13, %p3537_p12 }
 0x1e5   :  { %p3540_p1 = pnand %p3539_p0, %p3535_p11 }
 0x1e7   :  { %3543 = shalt.err (!%p3540_p1)  }
 0x1e8   :  { %s3544_s30 = scalar_lea.vmem %s4854_s0, 16  ;;  %p3549_p3 = scmp.lt.s32.totalorder %s4854_s0, %s4531_s19 }
 0x1e9   :  { %p3545_p2 = scmp.ne.s32.totalorder %s4854_s0, %s3544_s30  ;;  %p3550_p4 = scmp.lt.s32.totalorder %s4557_s11, %s3544_s30 }
 0x1eb   :  { %p3551_p5 = por %p3550_p4, %p3549_p3 }
 0x1ed   :  { %p3552_p6 = pnand %p3551_p5, %p3545_p2 }
 0x1ef   :  { %3555 = shalt.err (!%p3552_p6)  }
 0x1f0   :  { %386 = dma.hbm_to_vmem [thread:$0]  %s374_s6, 16, %s4854_s0, [#allocation3] }
 0x1f1   :  { %s2737_s10 = sshll.u32 %s4852_s9, 4  ;;  %s2738_s28 = sld [smem:[#allocation5 + $0x19]] }
 0x1f2   :  { %s389_s16 = scalar_lea.hbm %s5448_s2, %s2737_s10 }
 0x1f3   :  { %s3556_s22 = scalar_lea.hbm %s389_s16, 16  ;;  %p3559_p8 = scmp.lt.s32.totalorder %s389_s16, %s5448_s2 }
 0x1f4   :  { %p3557_p7 = scmp.ne.s32.totalorder %s389_s16, %s3556_s22  ;;  %p3560_p9 = scmp.lt.s32.totalorder %s4548_s7, %s3556_s22 }
 0x1f6   :  { %p3561_p10 = por %p3560_p9, %p3559_p8 }
 0x1f8   :  { %p3562_p11 = pnand %p3561_p10, %p3557_p7 }
 0x1fa   :  { %3565 = shalt.err (!%p3562_p11)  }
 0x1fb   :  { %s3566_s0 = scalar_lea.vmem %s4868_s21, 16  ;;  %p3571_p13 = scmp.lt.s32.totalorder %s4868_s21, %s4531_s19 }
 0x1fc   :  { %p3567_p12 = scmp.ne.s32.totalorder %s4868_s21, %s3566_s0  ;;  %p3572_p0 = scmp.lt.s32.totalorder %s4557_s11, %s3566_s0 }
 0x1fe   :  { %p3573_p1 = por %p3572_p0, %p3571_p13 }
 0x200   :  { %p3574_p2 = pnand %p3573_p1, %p3567_p12 }
 0x202   :  { %3577 = shalt.err (!%p3574_p2)  }
 0x203   :  { %401 = dma.hbm_to_vmem [thread:$0]  %s389_s16, 16, %s4868_s21, [#allocation3] }
 0x204   :  { %s4466_s9 = smov [#allocation2 + $0xb]   ;;  %s2740_s26 = sld [smem:[#allocation5 + $0x1a]] }
 0x205   :  { %s413_s23 = sshll.u32 %s4466_s9, 4  ;;  %s4467_s27 = smov [#allocation2 + $0x13]   ;;  %s414_s23 = int_to_ptr.vmem [resolvable:$true] %s413_s23 }
 0x206   :  { %s428_s25 = sshll.u32 %s4467_s27, 4  ;;  %s4894_s20 = sld [smem:[#allocation5 + $0x1b]]  ;;  %s4896_s25 = int_to_ptr.vmem [resolvable:$true] %s428_s25 }
 0x207   :  { %s2739_s4 = sshll.u32 %s2738_s28, 4 }
 0x208   :  { %s404_s5 = scalar_lea.hbm %s5448_s2, %s2739_s4 }
 0x209   :  { %s3578_s6 = scalar_lea.hbm %s404_s5, 16  ;;  %p3581_p4 = scmp.lt.s32.totalorder %s404_s5, %s5448_s2 }
 0x20a   :  { %p3579_p3 = scmp.ne.s32.totalorder %s404_s5, %s3578_s6  ;;  %p3582_p5 = scmp.lt.s32.totalorder %s4548_s7, %s3578_s6 }
 0x20c   :  { %p3583_p6 = por %p3582_p5, %p3581_p4 }
 0x20e   :  { %p3584_p7 = pnand %p3583_p6, %p3579_p3 }
 0x210   :  { %3587 = shalt.err (!%p3584_p7)  }
 0x211   :  { %s3588_s21 = scalar_lea.vmem %s414_s23, 16  ;;  %p3593_p9 = scmp.lt.s32.totalorder %s414_s23, %s4531_s19 }
 0x212   :  { %p3589_p8 = scmp.ne.s32.totalorder %s414_s23, %s3588_s21  ;;  %p3594_p10 = scmp.lt.s32.totalorder %s4557_s11, %s3588_s21 }
 0x214   :  { %p3595_p11 = por %p3594_p10, %p3593_p9 }
 0x216   :  { %p3596_p12 = pnand %p3595_p11, %p3589_p8 }
 0x218   :  { %3599 = shalt.err (!%p3596_p12)  }
 0x219   :  { %416 = dma.hbm_to_vmem [thread:$0]  %s404_s5, 16, %s414_s23, [#allocation3] }
 0x21a   :  { %s2741_s24 = sshll.u32 %s2740_s26, 4  ;;  %s4468_s30 = smov [#allocation2 + $0x1b]  }
 0x21b   :  { %s443_s10 = sshll.u32 %s4468_s30, 4  ;;  %s419_s15 = scalar_lea.hbm %s5448_s2, %s2741_s24  ;;  %s4910_s10 = int_to_ptr.vmem [resolvable:$true] %s443_s10 }
 0x21c   :  { %s3600_s16 = scalar_lea.hbm %s419_s15, 16  ;;  %p3603_p0 = scmp.lt.s32.totalorder %s419_s15, %s5448_s2 }
 0x21d   :  { %p3601_p13 = scmp.ne.s32.totalorder %s419_s15, %s3600_s16  ;;  %p3604_p1 = scmp.lt.s32.totalorder %s4548_s7, %s3600_s16 }
 0x21f   :  { %p3605_p2 = por %p3604_p1, %p3603_p0 }
 0x221   :  { %p3606_p3 = pnand %p3605_p2, %p3601_p13 }
 0x223   :  { %3609 = shalt.err (!%p3606_p3)  }
 0x224   :  { %s3610_s13 = scalar_lea.vmem %s4896_s25, 16  ;;  %p3615_p5 = scmp.lt.s32.totalorder %s4896_s25, %s4531_s19 }
 0x225   :  { %p3611_p4 = scmp.ne.s32.totalorder %s4896_s25, %s3610_s13  ;;  %p3616_p6 = scmp.lt.s32.totalorder %s4557_s11, %s3610_s13 }
 0x227   :  { %p3617_p7 = por %p3616_p6, %p3615_p5 }
 0x229   :  { %p3618_p8 = pnand %p3617_p7, %p3611_p4 }
 0x22b   :  { %3621 = shalt.err (!%p3618_p8)  }
 0x22c   :  { %431 = dma.hbm_to_vmem [thread:$0]  %s419_s15, 16, %s4896_s25, [#allocation3] }
 0x22d   :  { %s2743_s0 = sshll.u32 %s4894_s20, 4  ;;  %s2744_s9 = sld [smem:[#allocation5 + $0x1c]] }
 0x22e   :  { %s434_s27 = scalar_lea.hbm %s5448_s2, %s2743_s0 }
 0x22f   :  { %s3622_s4 = scalar_lea.hbm %s434_s27, 16  ;;  %p3625_p10 = scmp.lt.s32.totalorder %s434_s27, %s5448_s2 }
 0x230   :  { %p3623_p9 = scmp.ne.s32.totalorder %s434_s27, %s3622_s4  ;;  %p3626_p11 = scmp.lt.s32.totalorder %s4548_s7, %s3622_s4 }
 0x232   :  { %p3627_p12 = por %p3626_p11, %p3625_p10 }
 0x234   :  { %p3628_p13 = pnand %p3627_p12, %p3623_p9 }
 0x236   :  { %3631 = shalt.err (!%p3628_p13)  }
 0x237   :  { %s3632_s25 = scalar_lea.vmem %s4910_s10, 16  ;;  %p3637_p1 = scmp.lt.s32.totalorder %s4910_s10, %s4531_s19 }
 0x238   :  { %p3633_p0 = scmp.ne.s32.totalorder %s4910_s10, %s3632_s25  ;;  %p3638_p2 = scmp.lt.s32.totalorder %s4557_s11, %s3632_s25 }
 0x23a   :  { %p3639_p3 = por %p3638_p2, %p3637_p1 }
 0x23c   :  { %p3640_p4 = pnand %p3639_p3, %p3633_p0 }
 0x23e   :  { %3643 = shalt.err (!%p3640_p4)  }
 0x23f   :  { %446 = dma.hbm_to_vmem [thread:$0]  %s434_s27, 16, %s4910_s10, [#allocation3] }
 0x240   :  { %s4469_s20 = smov [#allocation2 + $0x23]   ;;  %s2746_s6 = sld [smem:[#allocation5 + $0x1d]] }
 0x241   :  { %s458_s5 = sshll.u32 %s4469_s20, 4  ;;  %s4470_s8 = smov [#allocation2 + $0x2b]   ;;  %s459_s5 = int_to_ptr.vmem [resolvable:$true] %s458_s5 }
 0x242   :  { %s473_s12 = sshll.u32 %s4470_s8, 4  ;;  %s4936_s21 = sld [smem:[#allocation5 + $0x1e]]  ;;  %s4938_s12 = int_to_ptr.vmem [resolvable:$true] %s473_s12 }
 0x243   :  { %s2745_s24 = sshll.u32 %s2744_s9, 4 }
 0x244   :  { %s449_s14 = scalar_lea.hbm %s5448_s2, %s2745_s24 }
 0x245   :  { %s3644_s15 = scalar_lea.hbm %s449_s14, 16  ;;  %p3647_p6 = scmp.lt.s32.totalorder %s449_s14, %s5448_s2 }
 0x246   :  { %p3645_p5 = scmp.ne.s32.totalorder %s449_s14, %s3644_s15  ;;  %p3648_p7 = scmp.lt.s32.totalorder %s4548_s7, %s3644_s15 }
 0x248   :  { %p3649_p8 = por %p3648_p7, %p3647_p6 }
 0x24a   :  { %p3650_p9 = pnand %p3649_p8, %p3645_p5 }
 0x24c   :  { %3653 = shalt.err (!%p3650_p9)  }
 0x24d   :  { %s3654_s10 = scalar_lea.vmem %s459_s5, 16  ;;  %p3659_p11 = scmp.lt.s32.totalorder %s459_s5, %s4531_s19 }
 0x24e   :  { %p3655_p10 = scmp.ne.s32.totalorder %s459_s5, %s3654_s10  ;;  %p3660_p12 = scmp.lt.s32.totalorder %s4557_s11, %s3654_s10 }
 0x250   :  { %p3661_p13 = por %p3660_p12, %p3659_p11 }
 0x252   :  { %p3662_p0 = pnand %p3661_p13, %p3655_p10 }
 0x254   :  { %3665 = shalt.err (!%p3662_p0)  }
 0x255   :  { %461 = dma.hbm_to_vmem [thread:$0]  %s449_s14, 16, %s459_s5, [#allocation3] }
 0x256   :  { %s2747_s18 = sshll.u32 %s2746_s6, 4  ;;  %s4471_s13 = smov [#allocation2 + $0x33]  }
 0x257   :  { %s488_s0 = sshll.u32 %s4471_s13, 4  ;;  %s464_s26 = scalar_lea.hbm %s5448_s2, %s2747_s18  ;;  %s4952_s0 = int_to_ptr.vmem [resolvable:$true] %s488_s0 }
 0x258   :  { %s3666_s27 = scalar_lea.hbm %s464_s26, 16  ;;  %p3669_p2 = scmp.lt.s32.totalorder %s464_s26, %s5448_s2 }
 0x259   :  { %p3667_p1 = scmp.ne.s32.totalorder %s464_s26, %s3666_s27  ;;  %p3670_p3 = scmp.lt.s32.totalorder %s4548_s7, %s3666_s27 }
 0x25b   :  { %p3671_p4 = por %p3670_p3, %p3669_p2 }
 0x25d   :  { %p3672_p5 = pnand %p3671_p4, %p3667_p1 }
 0x25f   :  { %3675 = shalt.err (!%p3672_p5)  }
 0x260   :  { %s3676_s17 = scalar_lea.vmem %s4938_s12, 16  ;;  %p3681_p7 = scmp.lt.s32.totalorder %s4938_s12, %s4531_s19 }
 0x261   :  { %p3677_p6 = scmp.ne.s32.totalorder %s4938_s12, %s3676_s17  ;;  %p3682_p8 = scmp.lt.s32.totalorder %s4557_s11, %s3676_s17 }
 0x263   :  { %p3683_p9 = por %p3682_p8, %p3681_p7 }
 0x265   :  { %p3684_p10 = pnand %p3683_p9, %p3677_p6 }
 0x267   :  { %3687 = shalt.err (!%p3684_p10)  }
 0x268   :  { %476 = dma.hbm_to_vmem [thread:$0]  %s464_s26, 16, %s4938_s12, [#allocation3] }
 0x269   :  { %s2749_s25 = sshll.u32 %s4936_s21, 4  ;;  %s2750_s20 = sld [smem:[#allocation5 + $0x1f]] }
 0x26a   :  { %s479_s8 = scalar_lea.hbm %s5448_s2, %s2749_s25 }
 0x26b   :  { %s3688_s24 = scalar_lea.hbm %s479_s8, 16  ;;  %p3691_p12 = scmp.lt.s32.totalorder %s479_s8, %s5448_s2 }
 0x26c   :  { %p3689_p11 = scmp.ne.s32.totalorder %s479_s8, %s3688_s24  ;;  %p3692_p13 = scmp.lt.s32.totalorder %s4548_s7, %s3688_s24 }
 0x26e   :  { %p3693_p0 = por %p3692_p13, %p3691_p12 }
 0x270   :  { %p3694_p1 = pnand %p3693_p0, %p3689_p11 }
 0x272   :  { %3697 = shalt.err (!%p3694_p1)  }
 0x273   :  { %s3698_s12 = scalar_lea.vmem %s4952_s0, 16  ;;  %p3703_p3 = scmp.lt.s32.totalorder %s4952_s0, %s4531_s19 }
 0x274   :  { %p3699_p2 = scmp.ne.s32.totalorder %s4952_s0, %s3698_s12  ;;  %p3704_p4 = scmp.lt.s32.totalorder %s4557_s11, %s3698_s12 }
 0x276   :  { %p3705_p5 = por %p3704_p4, %p3703_p3 }
 0x278   :  { %p3706_p6 = pnand %p3705_p5, %p3699_p2 }
 0x27a   :  { %3709 = shalt.err (!%p3706_p6)  }
 0x27b   :  { %491 = dma.hbm_to_vmem [thread:$0]  %s479_s8, 16, %s4952_s0, [#allocation3] }
 0x27c   :  { %s4472_s21 = smov [#allocation2 + $0x3b]   ;;  %s2752_s15 = sld [smem:[#allocation5 + $0x20]] }
 0x27d   :  { %s503_s14 = sshll.u32 %s4472_s21, 4  ;;  %s4473_s16 = smov [#allocation2 + $0x4]   ;;  %s504_s14 = int_to_ptr.vmem [resolvable:$true] %s503_s14 }
 0x27e   :  { %s518_s22 = sshll.u32 %s4473_s16, 4  ;;  %s4978_s10 = sld [smem:[#allocation5 + $0x21]]  ;;  %s4980_s22 = int_to_ptr.vmem [resolvable:$true] %s518_s22 }
 0x27f   :  { %s2751_s18 = sshll.u32 %s2750_s20, 4 }
 0x280   :  { %s494_s23 = scalar_lea.hbm %s5448_s2, %s2751_s18 }
 0x281   :  { %s3710_s26 = scalar_lea.hbm %s494_s23, 16  ;;  %p3713_p8 = scmp.lt.s32.totalorder %s494_s23, %s5448_s2 }
 0x282   :  { %p3711_p7 = scmp.ne.s32.totalorder %s494_s23, %s3710_s26  ;;  %p3714_p9 = scmp.lt.s32.totalorder %s4548_s7, %s3710_s26 }
 0x284   :  { %p3715_p10 = por %p3714_p9, %p3713_p8 }
 0x286   :  { %p3716_p11 = pnand %p3715_p10, %p3711_p7 }
 0x288   :  { %3719 = shalt.err (!%p3716_p11)  }
 0x289   :  { %s3720_s0 = scalar_lea.vmem %s504_s14, 16  ;;  %p3725_p13 = scmp.lt.s32.totalorder %s504_s14, %s4531_s19 }
 0x28a   :  { %p3721_p12 = scmp.ne.s32.totalorder %s504_s14, %s3720_s0  ;;  %p3726_p0 = scmp.lt.s32.totalorder %s4557_s11, %s3720_s0 }
 0x28c   :  { %p3727_p1 = por %p3726_p0, %p3725_p13 }
 0x28e   :  { %p3728_p2 = pnand %p3727_p1, %p3721_p12 }
 0x290   :  { %3731 = shalt.err (!%p3728_p2)  }
 0x291   :  { %506 = dma.hbm_to_vmem [thread:$0]  %s494_s23, 16, %s504_s14, [#allocation3] }
 0x292   :  { %s2753_s29 = sshll.u32 %s2752_s15, 4  ;;  %s4474_s17 = smov [#allocation2 + $0xc]  }
 0x293   :  { %s533_s25 = sshll.u32 %s4474_s17, 4  ;;  %s509_s6 = scalar_lea.hbm %s5448_s2, %s2753_s29  ;;  %s4994_s25 = int_to_ptr.vmem [resolvable:$true] %s533_s25 }
 0x294   :  { %s3732_s8 = scalar_lea.hbm %s509_s6, 16  ;;  %p3735_p4 = scmp.lt.s32.totalorder %s509_s6, %s5448_s2 }
 0x295   :  { %p3733_p3 = scmp.ne.s32.totalorder %s509_s6, %s3732_s8  ;;  %p3736_p5 = scmp.lt.s32.totalorder %s4548_s7, %s3732_s8 }
 0x297   :  { %p3737_p6 = por %p3736_p5, %p3735_p4 }
 0x299   :  { %p3738_p7 = pnand %p3737_p6, %p3733_p3 }
 0x29b   :  { %3741 = shalt.err (!%p3738_p7)  }
 0x29c   :  { %s3742_s28 = scalar_lea.vmem %s4980_s22, 16  ;;  %p3747_p9 = scmp.lt.s32.totalorder %s4980_s22, %s4531_s19 }
 0x29d   :  { %p3743_p8 = scmp.ne.s32.totalorder %s4980_s22, %s3742_s28  ;;  %p3748_p10 = scmp.lt.s32.totalorder %s4557_s11, %s3742_s28 }
 0x29f   :  { %p3749_p11 = por %p3748_p10, %p3747_p9 }
 0x2a1   :  { %p3750_p12 = pnand %p3749_p11, %p3743_p8 }
 0x2a3   :  { %3753 = shalt.err (!%p3750_p12)  }
 0x2a4   :  { %521 = dma.hbm_to_vmem [thread:$0]  %s509_s6, 16, %s4980_s22, [#allocation3] }
 0x2a5   :  { %s2755_s12 = sshll.u32 %s4978_s10, 4  ;;  %s2756_s21 = sld [smem:[#allocation5 + $0x22]] }
 0x2a6   :  { %s524_s16 = scalar_lea.hbm %s5448_s2, %s2755_s12 }
 0x2a7   :  { %s3754_s18 = scalar_lea.hbm %s524_s16, 16  ;;  %p3757_p0 = scmp.lt.s32.totalorder %s524_s16, %s5448_s2 }
 0x2a8   :  { %p3755_p13 = scmp.ne.s32.totalorder %s524_s16, %s3754_s18  ;;  %p3758_p1 = scmp.lt.s32.totalorder %s4548_s7, %s3754_s18 }
 0x2aa   :  { %p3759_p2 = por %p3758_p1, %p3757_p0 }
 0x2ac   :  { %p3760_p3 = pnand %p3759_p2, %p3755_p13 }
 0x2ae   :  { %3763 = shalt.err (!%p3760_p3)  }
 0x2af   :  { %s3764_s22 = scalar_lea.vmem %s4994_s25, 16  ;;  %p3769_p5 = scmp.lt.s32.totalorder %s4994_s25, %s4531_s19 }
 0x2b0   :  { %p3765_p4 = scmp.ne.s32.totalorder %s4994_s25, %s3764_s22  ;;  %p3770_p6 = scmp.lt.s32.totalorder %s4557_s11, %s3764_s22 }
 0x2b2   :  { %p3771_p7 = por %p3770_p6, %p3769_p5 }
 0x2b4   :  { %p3772_p8 = pnand %p3771_p7, %p3765_p4 }
 0x2b6   :  { %3775 = shalt.err (!%p3772_p8)  }
 0x2b7   :  { %536 = dma.hbm_to_vmem [thread:$0]  %s524_s16, 16, %s4994_s25, [#allocation3] }
 0x2b8   :  { %s4475_s10 = smov [#allocation2 + $0x14]   ;;  %s2758_s26 = sld [smem:[#allocation5 + $0x23]] }
 0x2b9   :  { %s548_s23 = sshll.u32 %s4475_s10, 4  ;;  %s4476_s27 = smov [#allocation2 + $0x1c]   ;;  %s549_s23 = int_to_ptr.vmem [resolvable:$true] %s548_s23 }
 0x2ba   :  { %s563_s4 = sshll.u32 %s4476_s27, 4  ;;  %s5020_s0 = sld [smem:[#allocation5 + $0x24]]  ;;  %s5022_s4 = int_to_ptr.vmem [resolvable:$true] %s563_s4 }
 0x2bb   :  { %s2757_s29 = sshll.u32 %s2756_s21, 4 }
 0x2bc   :  { %s539_s5 = scalar_lea.hbm %s5448_s2, %s2757_s29 }
 0x2bd   :  { %s3776_s6 = scalar_lea.hbm %s539_s5, 16  ;;  %p3779_p10 = scmp.lt.s32.totalorder %s539_s5, %s5448_s2 }
 0x2be   :  { %p3777_p9 = scmp.ne.s32.totalorder %s539_s5, %s3776_s6  ;;  %p3780_p11 = scmp.lt.s32.totalorder %s4548_s7, %s3776_s6 }
 0x2c0   :  { %p3781_p12 = por %p3780_p11, %p3779_p10 }
 0x2c2   :  { %p3782_p13 = pnand %p3781_p12, %p3777_p9 }
 0x2c4   :  { %3785 = shalt.err (!%p3782_p13)  }
 0x2c5   :  { %s3786_s25 = scalar_lea.vmem %s549_s23, 16  ;;  %p3791_p1 = scmp.lt.s32.totalorder %s549_s23, %s4531_s19 }
 0x2c6   :  { %p3787_p0 = scmp.ne.s32.totalorder %s549_s23, %s3786_s25  ;;  %p3792_p2 = scmp.lt.s32.totalorder %s4557_s11, %s3786_s25 }
 0x2c8   :  { %p3793_p3 = por %p3792_p2, %p3791_p1 }
 0x2ca   :  { %p3794_p4 = pnand %p3793_p3, %p3787_p0 }
 0x2cc   :  { %3797 = shalt.err (!%p3794_p4)  }
 0x2cd   :  { %551 = dma.hbm_to_vmem [thread:$0]  %s539_s5, 16, %s549_s23, [#allocation3] }
 0x2ce   :  { %s2759_s30 = sshll.u32 %s2758_s26, 4  ;;  %s4477_s28 = smov [#allocation2 + $0x24]  }
 0x2cf   :  { %s578_s12 = sshll.u32 %s4477_s28, 4  ;;  %s554_s15 = scalar_lea.hbm %s5448_s2, %s2759_s30  ;;  %s5036_s12 = int_to_ptr.vmem [resolvable:$true] %s578_s12 }
 0x2d0   :  { %s3798_s16 = scalar_lea.hbm %s554_s15, 16  ;;  %p3801_p6 = scmp.lt.s32.totalorder %s554_s15, %s5448_s2 }
 0x2d1   :  { %p3799_p5 = scmp.ne.s32.totalorder %s554_s15, %s3798_s16  ;;  %p3802_p7 = scmp.lt.s32.totalorder %s4548_s7, %s3798_s16 }
 0x2d3   :  { %p3803_p8 = por %p3802_p7, %p3801_p6 }
 0x2d5   :  { %p3804_p9 = pnand %p3803_p8, %p3799_p5 }
 0x2d7   :  { %3807 = shalt.err (!%p3804_p9)  }
 0x2d8   :  { %s3808_s9 = scalar_lea.vmem %s5022_s4, 16  ;;  %p3813_p11 = scmp.lt.s32.totalorder %s5022_s4, %s4531_s19 }
 0x2d9   :  { %p3809_p10 = scmp.ne.s32.totalorder %s5022_s4, %s3808_s9  ;;  %p3814_p12 = scmp.lt.s32.totalorder %s4557_s11, %s3808_s9 }
 0x2db   :  { %p3815_p13 = por %p3814_p12, %p3813_p11 }
 0x2dd   :  { %p3816_p0 = pnand %p3815_p13, %p3809_p10 }
 0x2df   :  { %3819 = shalt.err (!%p3816_p0)  }
 0x2e0   :  { %566 = dma.hbm_to_vmem [thread:$0]  %s554_s15, 16, %s5022_s4, [#allocation3] }
 0x2e1   :  { %s2761_s22 = sshll.u32 %s5020_s0, 4  ;;  %s2762_s10 = sld [smem:[#allocation5 + $0x25]] }
 0x2e2   :  { %s569_s27 = scalar_lea.hbm %s5448_s2, %s2761_s22 }
 0x2e3   :  { %s3820_s29 = scalar_lea.hbm %s569_s27, 16  ;;  %p3823_p2 = scmp.lt.s32.totalorder %s569_s27, %s5448_s2 }
 0x2e4   :  { %p3821_p1 = scmp.ne.s32.totalorder %s569_s27, %s3820_s29  ;;  %p3824_p3 = scmp.lt.s32.totalorder %s4548_s7, %s3820_s29 }
 0x2e6   :  { %p3825_p4 = por %p3824_p3, %p3823_p2 }
 0x2e8   :  { %p3826_p5 = pnand %p3825_p4, %p3821_p1 }
 0x2ea   :  { %3829 = shalt.err (!%p3826_p5)  }
 0x2eb   :  { %s3830_s4 = scalar_lea.vmem %s5036_s12, 16  ;;  %p3835_p7 = scmp.lt.s32.totalorder %s5036_s12, %s4531_s19 }
 0x2ec   :  { %p3831_p6 = scmp.ne.s32.totalorder %s5036_s12, %s3830_s4  ;;  %p3836_p8 = scmp.lt.s32.totalorder %s4557_s11, %s3830_s4 }
 0x2ee   :  { %p3837_p9 = por %p3836_p8, %p3835_p7 }
 0x2f0   :  { %p3838_p10 = pnand %p3837_p9, %p3831_p6 }
 0x2f2   :  { %3841 = shalt.err (!%p3838_p10)  }
 0x2f3   :  { %581 = dma.hbm_to_vmem [thread:$0]  %s569_s27, 16, %s5036_s12, [#allocation3] }
 0x2f4   :  { %s4478_s0 = smov [#allocation2 + $0x2c]   ;;  %s2764_s6 = sld [smem:[#allocation5 + $0x26]] }
 0x2f5   :  { %s593_s5 = sshll.u32 %s4478_s0, 4  ;;  %s4479_s8 = smov [#allocation2 + $0x34]   ;;  %s594_s5 = int_to_ptr.vmem [resolvable:$true] %s593_s5 }
 0x2f6   :  { %s608_s24 = sshll.u32 %s4479_s8, 4  ;;  %s5062_s25 = sld [smem:[#allocation5 + $0x27]]  ;;  %s5064_s24 = int_to_ptr.vmem [resolvable:$true] %s608_s24 }
 0x2f7   :  { %s2763_s30 = sshll.u32 %s2762_s10, 4 }
 0x2f8   :  { %s584_s14 = scalar_lea.hbm %s5448_s2, %s2763_s30 }
 0x2f9   :  { %s3842_s15 = scalar_lea.hbm %s584_s14, 16  ;;  %p3845_p12 = scmp.lt.s32.totalorder %s584_s14, %s5448_s2 }
 0x2fa   :  { %p3843_p11 = scmp.ne.s32.totalorder %s584_s14, %s3842_s15  ;;  %p3846_p13 = scmp.lt.s32.totalorder %s4548_s7, %s3842_s15 }
 0x2fc   :  { %p3847_p0 = por %p3846_p13, %p3845_p12 }
 0x2fe   :  { %p3848_p1 = pnand %p3847_p0, %p3843_p11 }
 0x300   :  { %3851 = shalt.err (!%p3848_p1)  }
 0x301   :  { %s3852_s12 = scalar_lea.vmem %s594_s5, 16  ;;  %p3857_p3 = scmp.lt.s32.totalorder %s594_s5, %s4531_s19 }
 0x302   :  { %p3853_p2 = scmp.ne.s32.totalorder %s594_s5, %s3852_s12  ;;  %p3858_p4 = scmp.lt.s32.totalorder %s4557_s11, %s3852_s12 }
 0x304   :  { %p3859_p5 = por %p3858_p4, %p3857_p3 }
 0x306   :  { %p3860_p6 = pnand %p3859_p5, %p3853_p2 }
 0x308   :  { %3863 = shalt.err (!%p3860_p6)  }
 0x309   :  { %596 = dma.hbm_to_vmem [thread:$0]  %s584_s14, 16, %s594_s5, [#allocation3] }
 0x30a   :  { %s2765_s13 = sshll.u32 %s2764_s6, 4  ;;  %s4480_s9 = smov [#allocation2 + $0x3c]  }
 0x30b   :  { %s623_s22 = sshll.u32 %s4480_s9, 4  ;;  %s599_s26 = scalar_lea.hbm %s5448_s2, %s2765_s13  ;;  %s5078_s22 = int_to_ptr.vmem [resolvable:$true] %s623_s22 }
 0x30c   :  { %s3864_s27 = scalar_lea.hbm %s599_s26, 16  ;;  %p3867_p8 = scmp.lt.s32.totalorder %s599_s26, %s5448_s2 }
 0x30d   :  { %p3865_p7 = scmp.ne.s32.totalorder %s599_s26, %s3864_s27  ;;  %p3868_p9 = scmp.lt.s32.totalorder %s4548_s7, %s3864_s27 }
 0x30f   :  { %p3869_p10 = por %p3868_p9, %p3867_p8 }
 0x311   :  { %p3870_p11 = pnand %p3869_p10, %p3865_p7 }
 0x313   :  { %3873 = shalt.err (!%p3870_p11)  }
 0x314   :  { %s3874_s20 = scalar_lea.vmem %s5064_s24, 16  ;;  %p3879_p13 = scmp.lt.s32.totalorder %s5064_s24, %s4531_s19 }
 0x315   :  { %p3875_p12 = scmp.ne.s32.totalorder %s5064_s24, %s3874_s20  ;;  %p3880_p0 = scmp.lt.s32.totalorder %s4557_s11, %s3874_s20 }
 0x317   :  { %p3881_p1 = por %p3880_p0, %p3879_p13 }
 0x319   :  { %p3882_p2 = pnand %p3881_p1, %p3875_p12 }
 0x31b   :  { %3885 = shalt.err (!%p3882_p2)  }
 0x31c   :  { %611 = dma.hbm_to_vmem [thread:$0]  %s599_s26, 16, %s5064_s24, [#allocation3] }
 0x31d   :  { %s2767_s4 = sshll.u32 %s5062_s25, 4  ;;  %s2768_s0 = sld [smem:[#allocation5 + $0x28]] }
 0x31e   :  { %s614_s8 = scalar_lea.hbm %s5448_s2, %s2767_s4 }
 0x31f   :  { %s3886_s30 = scalar_lea.hbm %s614_s8, 16  ;;  %p3889_p4 = scmp.lt.s32.totalorder %s614_s8, %s5448_s2 }
 0x320   :  { %p3887_p3 = scmp.ne.s32.totalorder %s614_s8, %s3886_s30  ;;  %p3890_p5 = scmp.lt.s32.totalorder %s4548_s7, %s3886_s30 }
 0x322   :  { %p3891_p6 = por %p3890_p5, %p3889_p4 }
 0x324   :  { %p3892_p7 = pnand %p3891_p6, %p3887_p3 }
 0x326   :  { %3895 = shalt.err (!%p3892_p7)  }
 0x327   :  { %s3896_s24 = scalar_lea.vmem %s5078_s22, 16  ;;  %p3901_p9 = scmp.lt.s32.totalorder %s5078_s22, %s4531_s19 }
 0x328   :  { %p3897_p8 = scmp.ne.s32.totalorder %s5078_s22, %s3896_s24  ;;  %p3902_p10 = scmp.lt.s32.totalorder %s4557_s11, %s3896_s24 }
 0x32a   :  { %p3903_p11 = por %p3902_p10, %p3901_p9 }
 0x32c   :  { %p3904_p12 = pnand %p3903_p11, %p3897_p8 }
 0x32e   :  { %3907 = shalt.err (!%p3904_p12)  }
 0x32f   :  { %626 = dma.hbm_to_vmem [thread:$0]  %s614_s8, 16, %s5078_s22, [#allocation3] }
 0x330   :  { %s4481_s25 = smov [#allocation2 + $0x5]   ;;  %s2770_s15 = sld [smem:[#allocation5 + $0x29]] }
 0x331   :  { %s638_s14 = sshll.u32 %s4481_s25, 4  ;;  %s4482_s16 = smov [#allocation2 + $0xd]   ;;  %s639_s14 = int_to_ptr.vmem [resolvable:$true] %s638_s14 }
 0x332   :  { %s653_s18 = sshll.u32 %s4482_s16, 4  ;;  %s5104_s12 = sld [smem:[#allocation5 + $0x2a]]  ;;  %s5106_s18 = int_to_ptr.vmem [resolvable:$true] %s653_s18 }
 0x333   :  { %s2769_s13 = sshll.u32 %s2768_s0, 4 }
 0x334   :  { %s629_s23 = scalar_lea.hbm %s5448_s2, %s2769_s13 }
 0x335   :  { %s3908_s26 = scalar_lea.hbm %s629_s23, 16  ;;  %p3911_p0 = scmp.lt.s32.totalorder %s629_s23, %s5448_s2 }
 0x336   :  { %p3909_p13 = scmp.ne.s32.totalorder %s629_s23, %s3908_s26  ;;  %p3912_p1 = scmp.lt.s32.totalorder %s4548_s7, %s3908_s26 }
 0x338   :  { %p3913_p2 = por %p3912_p1, %p3911_p0 }
 0x33a   :  { %p3914_p3 = pnand %p3913_p2, %p3909_p13 }
 0x33c   :  { %3917 = shalt.err (!%p3914_p3)  }
 0x33d   :  { %s3918_s22 = scalar_lea.vmem %s639_s14, 16  ;;  %p3923_p5 = scmp.lt.s32.totalorder %s639_s14, %s4531_s19 }
 0x33e   :  { %p3919_p4 = scmp.ne.s32.totalorder %s639_s14, %s3918_s22  ;;  %p3924_p6 = scmp.lt.s32.totalorder %s4557_s11, %s3918_s22 }
 0x340   :  { %p3925_p7 = por %p3924_p6, %p3923_p5 }
 0x342   :  { %p3926_p8 = pnand %p3925_p7, %p3919_p4 }
 0x344   :  { %3929 = shalt.err (!%p3926_p8)  }
 0x345   :  { %641 = dma.hbm_to_vmem [thread:$0]  %s629_s23, 16, %s639_s14, [#allocation3] }
 0x346   :  { %s2771_s17 = sshll.u32 %s2770_s15, 4  ;;  %s4483_s20 = smov [#allocation2 + $0x15]  }
 0x347   :  { %s668_s4 = sshll.u32 %s4483_s20, 4  ;;  %s644_s6 = scalar_lea.hbm %s5448_s2, %s2771_s17  ;;  %s5120_s4 = int_to_ptr.vmem [resolvable:$true] %s668_s4 }
 0x348   :  { %s3930_s8 = scalar_lea.hbm %s644_s6, 16  ;;  %p3933_p10 = scmp.lt.s32.totalorder %s644_s6, %s5448_s2 }
 0x349   :  { %p3931_p9 = scmp.ne.s32.totalorder %s644_s6, %s3930_s8  ;;  %p3934_p11 = scmp.lt.s32.totalorder %s4548_s7, %s3930_s8 }
 0x34b   :  { %p3935_p12 = por %p3934_p11, %p3933_p10 }
 0x34d   :  { %p3936_p13 = pnand %p3935_p12, %p3931_p9 }
 0x34f   :  { %3939 = shalt.err (!%p3936_p13)  }
 0x350   :  { %s3940_s21 = scalar_lea.vmem %s5106_s18, 16  ;;  %p3945_p1 = scmp.lt.s32.totalorder %s5106_s18, %s4531_s19 }
 0x351   :  { %p3941_p0 = scmp.ne.s32.totalorder %s5106_s18, %s3940_s21  ;;  %p3946_p2 = scmp.lt.s32.totalorder %s4557_s11, %s3940_s21 }
 0x353   :  { %p3947_p3 = por %p3946_p2, %p3945_p1 }
 0x355   :  { %p3948_p4 = pnand %p3947_p3, %p3941_p0 }
 0x357   :  { %3951 = shalt.err (!%p3948_p4)  }
 0x358   :  { %656 = dma.hbm_to_vmem [thread:$0]  %s644_s6, 16, %s5106_s18, [#allocation3] }
 0x359   :  { %s2773_s24 = sshll.u32 %s5104_s12, 4  ;;  %s2774_s25 = sld [smem:[#allocation5 + $0x2b]] }
 0x35a   :  { %s659_s16 = scalar_lea.hbm %s5448_s2, %s2773_s24 }
 0x35b   :  { %s3952_s13 = scalar_lea.hbm %s659_s16, 16  ;;  %p3955_p6 = scmp.lt.s32.totalorder %s659_s16, %s5448_s2 }
 0x35c   :  { %p3953_p5 = scmp.ne.s32.totalorder %s659_s16, %s3952_s13  ;;  %p3956_p7 = scmp.lt.s32.totalorder %s4548_s7, %s3952_s13 }
 0x35e   :  { %p3957_p8 = por %p3956_p7, %p3955_p6 }
 0x360   :  { %p3958_p9 = pnand %p3957_p8, %p3953_p5 }
 0x362   :  { %3961 = shalt.err (!%p3958_p9)  }
 0x363   :  { %s3962_s18 = scalar_lea.vmem %s5120_s4, 16  ;;  %p3967_p11 = scmp.lt.s32.totalorder %s5120_s4, %s4531_s19 }
 0x364   :  { %p3963_p10 = scmp.ne.s32.totalorder %s5120_s4, %s3962_s18  ;;  %p3968_p12 = scmp.lt.s32.totalorder %s4557_s11, %s3962_s18 }
 0x366   :  { %p3969_p13 = por %p3968_p12, %p3967_p11 }
 0x368   :  { %p3970_p0 = pnand %p3969_p13, %p3963_p10 }
 0x36a   :  { %3973 = shalt.err (!%p3970_p0)  }
 0x36b   :  { %671 = dma.hbm_to_vmem [thread:$0]  %s659_s16, 16, %s5120_s4, [#allocation3] }
 0x36c   :  { %s4484_s12 = smov [#allocation2 + $0x1d]   ;;  %s2776_s26 = sld [smem:[#allocation5 + $0x2c]] }
 0x36d   :  { %s683_s23 = sshll.u32 %s4484_s12, 4  ;;  %s4485_s27 = smov [#allocation2 + $0x25]   ;;  %s684_s23 = int_to_ptr.vmem [resolvable:$true] %s683_s23 }
 0x36e   :  { %s698_s29 = sshll.u32 %s4485_s27, 4  ;;  %s5146_s22 = sld [smem:[#allocation5 + $0x2d]]  ;;  %s5148_s29 = int_to_ptr.vmem [resolvable:$true] %s698_s29 }
 0x36f   :  { %s2775_s17 = sshll.u32 %s2774_s25, 4 }
 0x370   :  { %s674_s5 = scalar_lea.hbm %s5448_s2, %s2775_s17 }
 0x371   :  { %s3974_s6 = scalar_lea.hbm %s674_s5, 16  ;;  %p3977_p2 = scmp.lt.s32.totalorder %s674_s5, %s5448_s2 }
 0x372   :  { %p3975_p1 = scmp.ne.s32.totalorder %s674_s5, %s3974_s6  ;;  %p3978_p3 = scmp.lt.s32.totalorder %s4548_s7, %s3974_s6 }
 0x374   :  { %p3979_p4 = por %p3978_p3, %p3977_p2 }
 0x376   :  { %p3980_p5 = pnand %p3979_p4, %p3975_p1 }
 0x378   :  { %3983 = shalt.err (!%p3980_p5)  }
 0x379   :  { %s3984_s4 = scalar_lea.vmem %s684_s23, 16  ;;  %p3989_p7 = scmp.lt.s32.totalorder %s684_s23, %s4531_s19 }
 0x37a   :  { %p3985_p6 = scmp.ne.s32.totalorder %s684_s23, %s3984_s4  ;;  %p3990_p8 = scmp.lt.s32.totalorder %s4557_s11, %s3984_s4 }
 0x37c   :  { %p3991_p9 = por %p3990_p8, %p3989_p7 }
 0x37e   :  { %p3992_p10 = pnand %p3991_p9, %p3985_p6 }
 0x380   :  { %3995 = shalt.err (!%p3992_p10)  }
 0x381   :  { %686 = dma.hbm_to_vmem [thread:$0]  %s674_s5, 16, %s684_s23, [#allocation3] }
 0x382   :  { %s2777_s28 = sshll.u32 %s2776_s26, 4  ;;  %s4486_s21 = smov [#allocation2 + $0x2d]  }
 0x383   :  { %s713_s24 = sshll.u32 %s4486_s21, 4  ;;  %s689_s15 = scalar_lea.hbm %s5448_s2, %s2777_s28  ;;  %s5162_s24 = int_to_ptr.vmem [resolvable:$true] %s713_s24 }
 0x384   :  { %s3996_s16 = scalar_lea.hbm %s689_s15, 16  ;;  %p3999_p12 = scmp.lt.s32.totalorder %s689_s15, %s5448_s2 }
 0x385   :  { %p3997_p11 = scmp.ne.s32.totalorder %s689_s15, %s3996_s16  ;;  %p4000_p13 = scmp.lt.s32.totalorder %s4548_s7, %s3996_s16 }
 0x387   :  { %p4001_p0 = por %p4000_p13, %p3999_p12 }
 0x389   :  { %p4002_p1 = pnand %p4001_p0, %p3997_p11 }
 0x38b   :  { %4005 = shalt.err (!%p4002_p1)  }
 0x38c   :  { %s4006_s10 = scalar_lea.vmem %s5148_s29, 16  ;;  %p4011_p3 = scmp.lt.s32.totalorder %s5148_s29, %s4531_s19 }
 0x38d   :  { %p4007_p2 = scmp.ne.s32.totalorder %s5148_s29, %s4006_s10  ;;  %p4012_p4 = scmp.lt.s32.totalorder %s4557_s11, %s4006_s10 }
 0x38f   :  { %p4013_p5 = por %p4012_p4, %p4011_p3 }
 0x391   :  { %p4014_p6 = pnand %p4013_p5, %p4007_p2 }
 0x393   :  { %4017 = shalt.err (!%p4014_p6)  }
 0x394   :  { %701 = dma.hbm_to_vmem [thread:$0]  %s689_s15, 16, %s5148_s29, [#allocation3] }
 0x395   :  { %s2779_s18 = sshll.u32 %s5146_s22, 4  ;;  %s2780_s12 = sld [smem:[#allocation5 + $0x2e]] }
 0x396   :  { %s704_s27 = scalar_lea.hbm %s5448_s2, %s2779_s18 }
 0x397   :  { %s4018_s17 = scalar_lea.hbm %s704_s27, 16  ;;  %p4021_p8 = scmp.lt.s32.totalorder %s704_s27, %s5448_s2 }
 0x398   :  { %p4019_p7 = scmp.ne.s32.totalorder %s704_s27, %s4018_s17  ;;  %p4022_p9 = scmp.lt.s32.totalorder %s4548_s7, %s4018_s17 }
 0x39a   :  { %p4023_p10 = por %p4022_p9, %p4021_p8 }
 0x39c   :  { %p4024_p11 = pnand %p4023_p10, %p4019_p7 }
 0x39e   :  { %4027 = shalt.err (!%p4024_p11)  }
 0x39f   :  { %s4028_s29 = scalar_lea.vmem %s5162_s24, 16  ;;  %p4033_p13 = scmp.lt.s32.totalorder %s5162_s24, %s4531_s19 }
 0x3a0   :  { %p4029_p12 = scmp.ne.s32.totalorder %s5162_s24, %s4028_s29  ;;  %p4034_p0 = scmp.lt.s32.totalorder %s4557_s11, %s4028_s29 }
 0x3a2   :  { %p4035_p1 = por %p4034_p0, %p4033_p13 }
 0x3a4   :  { %p4036_p2 = pnand %p4035_p1, %p4029_p12 }
 0x3a6   :  { %4039 = shalt.err (!%p4036_p2)  }
 0x3a7   :  { %716 = dma.hbm_to_vmem [thread:$0]  %s704_s27, 16, %s5162_s24, [#allocation3] }
 0x3a8   :  { %s4487_s22 = smov [#allocation2 + $0x35]   ;;  %s2782_s6 = sld [smem:[#allocation5 + $0x2f]] }
 0x3a9   :  { %s728_s5 = sshll.u32 %s4487_s22, 4  ;;  %s4488_s8 = smov [#allocation2 + $0x3d]   ;;  %s729_s5 = int_to_ptr.vmem [resolvable:$true] %s728_s5 }
 0x3aa   :  { %s743_s30 = sshll.u32 %s4488_s8, 4  ;;  %s5188_s4 = sld [smem:[#allocation5 + $0x30]]  ;;  %s5190_s30 = int_to_ptr.vmem [resolvable:$true] %s743_s30 }
 0x3ab   :  { %s2781_s28 = sshll.u32 %s2780_s12, 4 }
 0x3ac   :  { %s719_s14 = scalar_lea.hbm %s5448_s2, %s2781_s28 }
 0x3ad   :  { %s4040_s15 = scalar_lea.hbm %s719_s14, 16  ;;  %p4043_p4 = scmp.lt.s32.totalorder %s719_s14, %s5448_s2 }
 0x3ae   :  { %p4041_p3 = scmp.ne.s32.totalorder %s719_s14, %s4040_s15  ;;  %p4044_p5 = scmp.lt.s32.totalorder %s4548_s7, %s4040_s15 }
 0x3b0   :  { %p4045_p6 = por %p4044_p5, %p4043_p4 }
 0x3b2   :  { %p4046_p7 = pnand %p4045_p6, %p4041_p3 }
 0x3b4   :  { %4049 = shalt.err (!%p4046_p7)  }
 0x3b5   :  { %s4050_s24 = scalar_lea.vmem %s729_s5, 16  ;;  %p4055_p9 = scmp.lt.s32.totalorder %s729_s5, %s4531_s19 }
 0x3b6   :  { %p4051_p8 = scmp.ne.s32.totalorder %s729_s5, %s4050_s24  ;;  %p4056_p10 = scmp.lt.s32.totalorder %s4557_s11, %s4050_s24 }
 0x3b8   :  { %p4057_p11 = por %p4056_p10, %p4055_p9 }
 0x3ba   :  { %p4058_p12 = pnand %p4057_p11, %p4051_p8 }
 0x3bc   :  { %4061 = shalt.err (!%p4058_p12)  }
 0x3bd   :  { %731 = dma.hbm_to_vmem [thread:$0]  %s719_s14, 16, %s729_s5, [#allocation3] }
 0x3be   :  { %s2783_s9 = sshll.u32 %s2782_s6, 4  ;;  %s4489_s10 = smov [#allocation2 + $0x6]  }
 0x3bf   :  { %s758_s18 = sshll.u32 %s4489_s10, 4  ;;  %s734_s26 = scalar_lea.hbm %s5448_s2, %s2783_s9  ;;  %s5204_s18 = int_to_ptr.vmem [resolvable:$true] %s758_s18 }
 0x3c0   :  { %s4062_s27 = scalar_lea.hbm %s734_s26, 16  ;;  %p4065_p0 = scmp.lt.s32.totalorder %s734_s26, %s5448_s2 }
 0x3c1   :  { %p4063_p13 = scmp.ne.s32.totalorder %s734_s26, %s4062_s27  ;;  %p4066_p1 = scmp.lt.s32.totalorder %s4548_s7, %s4062_s27 }
 0x3c3   :  { %p4067_p2 = por %p4066_p1, %p4065_p0 }
 0x3c5   :  { %p4068_p3 = pnand %p4067_p2, %p4063_p13 }
 0x3c7   :  { %4071 = shalt.err (!%p4068_p3)  }
 0x3c8   :  { %s4072_s0 = scalar_lea.vmem %s5190_s30, 16  ;;  %p4077_p5 = scmp.lt.s32.totalorder %s5190_s30, %s4531_s19 }
 0x3c9   :  { %p4073_p4 = scmp.ne.s32.totalorder %s5190_s30, %s4072_s0  ;;  %p4078_p6 = scmp.lt.s32.totalorder %s4557_s11, %s4072_s0 }
 0x3cb   :  { %p4079_p7 = por %p4078_p6, %p4077_p5 }
 0x3cd   :  { %p4080_p8 = pnand %p4079_p7, %p4073_p4 }
 0x3cf   :  { %4083 = shalt.err (!%p4080_p8)  }
 0x3d0   :  { %746 = dma.hbm_to_vmem [thread:$0]  %s734_s26, 16, %s5190_s30, [#allocation3] }
 0x3d1   :  { %s2785_s29 = sshll.u32 %s5188_s4, 4  ;;  %s2786_s22 = sld [smem:[#allocation5 + $0x31]] }
 0x3d2   :  { %s749_s8 = scalar_lea.hbm %s5448_s2, %s2785_s29 }
 0x3d3   :  { %s4084_s28 = scalar_lea.hbm %s749_s8, 16  ;;  %p4087_p10 = scmp.lt.s32.totalorder %s749_s8, %s5448_s2 }
 0x3d4   :  { %p4085_p9 = scmp.ne.s32.totalorder %s749_s8, %s4084_s28  ;;  %p4088_p11 = scmp.lt.s32.totalorder %s4548_s7, %s4084_s28 }
 0x3d6   :  { %p4089_p12 = por %p4088_p11, %p4087_p10 }
 0x3d8   :  { %p4090_p13 = pnand %p4089_p12, %p4085_p9 }
 0x3da   :  { %4093 = shalt.err (!%p4090_p13)  }
 0x3db   :  { %s4094_s30 = scalar_lea.vmem %s5204_s18, 16  ;;  %p4099_p1 = scmp.lt.s32.totalorder %s5204_s18, %s4531_s19 }
 0x3dc   :  { %p4095_p0 = scmp.ne.s32.totalorder %s5204_s18, %s4094_s30  ;;  %p4100_p2 = scmp.lt.s32.totalorder %s4557_s11, %s4094_s30 }
 0x3de   :  { %p4101_p3 = por %p4100_p2, %p4099_p1 }
 0x3e0   :  { %p4102_p4 = pnand %p4101_p3, %p4095_p0 }
 0x3e2   :  { %4105 = shalt.err (!%p4102_p4)  }
 0x3e3   :  { %761 = dma.hbm_to_vmem [thread:$0]  %s749_s8, 16, %s5204_s18, [#allocation3] }
 0x3e4   :  { %s4490_s4 = smov [#allocation2 + $0xe]   ;;  %s2788_s15 = sld [smem:[#allocation5 + $0x32]] }
 0x3e5   :  { %s773_s14 = sshll.u32 %s4490_s4, 4  ;;  %s4491_s16 = smov [#allocation2 + $0x16]   ;;  %s774_s14 = int_to_ptr.vmem [resolvable:$true] %s773_s14 }
 0x3e6   :  { %s788_s13 = sshll.u32 %s4491_s16, 4  ;;  %s5230_s24 = sld [smem:[#allocation5 + $0x33]]  ;;  %s5232_s13 = int_to_ptr.vmem [resolvable:$true] %s788_s13 }
 0x3e7   :  { %s2787_s9 = sshll.u32 %s2786_s22, 4 }
 0x3e8   :  { %s764_s23 = scalar_lea.hbm %s5448_s2, %s2787_s9 }
 0x3e9   :  { %s4106_s26 = scalar_lea.hbm %s764_s23, 16  ;;  %p4109_p6 = scmp.lt.s32.totalorder %s764_s23, %s5448_s2 }
 0x3ea   :  { %p4107_p5 = scmp.ne.s32.totalorder %s764_s23, %s4106_s26  ;;  %p4110_p7 = scmp.lt.s32.totalorder %s4548_s7, %s4106_s26 }
 0x3ec   :  { %p4111_p8 = por %p4110_p7, %p4109_p6 }
 0x3ee   :  { %p4112_p9 = pnand %p4111_p8, %p4107_p5 }
 0x3f0   :  { %4115 = shalt.err (!%p4112_p9)  }
 0x3f1   :  { %s4116_s18 = scalar_lea.vmem %s774_s14, 16  ;;  %p4121_p11 = scmp.lt.s32.totalorder %s774_s14, %s4531_s19 }
 0x3f2   :  { %p4117_p10 = scmp.ne.s32.totalorder %s774_s14, %s4116_s18  ;;  %p4122_p12 = scmp.lt.s32.totalorder %s4557_s11, %s4116_s18 }
 0x3f4   :  { %p4123_p13 = por %p4122_p12, %p4121_p11 }
 0x3f6   :  { %p4124_p0 = pnand %p4123_p13, %p4117_p10 }
 0x3f8   :  { %4127 = shalt.err (!%p4124_p0)  }
 0x3f9   :  { %776 = dma.hbm_to_vmem [thread:$0]  %s764_s23, 16, %s774_s14, [#allocation3] }
 0x3fa   :  { %s2789_s20 = sshll.u32 %s2788_s15, 4  ;;  %s4492_s0 = smov [#allocation2 + $0x1e]  }
 0x3fb   :  { %s803_s29 = sshll.u32 %s4492_s0, 4  ;;  %s779_s6 = scalar_lea.hbm %s5448_s2, %s2789_s20  ;;  %s5246_s29 = int_to_ptr.vmem [resolvable:$true] %s803_s29 }
 0x3fc   :  { %s4128_s8 = scalar_lea.hbm %s779_s6, 16  ;;  %p4131_p2 = scmp.lt.s32.totalorder %s779_s6, %s5448_s2 }
 0x3fd   :  { %p4129_p1 = scmp.ne.s32.totalorder %s779_s6, %s4128_s8  ;;  %p4132_p3 = scmp.lt.s32.totalorder %s4548_s7, %s4128_s8 }
 0x3ff   :  { %p4133_p4 = por %p4132_p3, %p4131_p2 }
 0x401   :  { %p4134_p5 = pnand %p4133_p4, %p4129_p1 }
 0x403   :  { %4137 = shalt.err (!%p4134_p5)  }
 0x404   :  { %s4138_s25 = scalar_lea.vmem %s5232_s13, 16  ;;  %p4143_p7 = scmp.lt.s32.totalorder %s5232_s13, %s4531_s19 }
 0x405   :  { %p4139_p6 = scmp.ne.s32.totalorder %s5232_s13, %s4138_s25  ;;  %p4144_p8 = scmp.lt.s32.totalorder %s4557_s11, %s4138_s25 }
 0x407   :  { %p4145_p9 = por %p4144_p8, %p4143_p7 }
 0x409   :  { %p4146_p10 = pnand %p4145_p9, %p4139_p6 }
 0x40b   :  { %4149 = shalt.err (!%p4146_p10)  }
 0x40c   :  { %791 = dma.hbm_to_vmem [thread:$0]  %s779_s6, 16, %s5232_s13, [#allocation3] }
 0x40d   :  { %s2791_s30 = sshll.u32 %s5230_s24, 4  ;;  %s2792_s4 = sld [smem:[#allocation5 + $0x34]] }
 0x40e   :  { %s794_s16 = scalar_lea.hbm %s5448_s2, %s2791_s30 }
 0x40f   :  { %s4150_s9 = scalar_lea.hbm %s794_s16, 16  ;;  %p4153_p12 = scmp.lt.s32.totalorder %s794_s16, %s5448_s2 }
 0x410   :  { %p4151_p11 = scmp.ne.s32.totalorder %s794_s16, %s4150_s9  ;;  %p4154_p13 = scmp.lt.s32.totalorder %s4548_s7, %s4150_s9 }
 0x412   :  { %p4155_p0 = por %p4154_p13, %p4153_p12 }
 0x414   :  { %p4156_p1 = pnand %p4155_p0, %p4151_p11 }
 0x416   :  { %4159 = shalt.err (!%p4156_p1)  }
 0x417   :  { %s4160_s13 = scalar_lea.vmem %s5246_s29, 16  ;;  %p4165_p3 = scmp.lt.s32.totalorder %s5246_s29, %s4531_s19 }
 0x418   :  { %p4161_p2 = scmp.ne.s32.totalorder %s5246_s29, %s4160_s13  ;;  %p4166_p4 = scmp.lt.s32.totalorder %s4557_s11, %s4160_s13 }
 0x41a   :  { %p4167_p5 = por %p4166_p4, %p4165_p3 }
 0x41c   :  { %p4168_p6 = pnand %p4167_p5, %p4161_p2 }
 0x41e   :  { %4171 = shalt.err (!%p4168_p6)  }
 0x41f   :  { %806 = dma.hbm_to_vmem [thread:$0]  %s794_s16, 16, %s5246_s29, [#allocation3] }
 0x420   :  { %s4493_s24 = smov [#allocation2 + $0x26]   ;;  %s2794_s26 = sld [smem:[#allocation5 + $0x35]] }
 0x421   :  { %s818_s23 = sshll.u32 %s4493_s24, 4  ;;  %s4494_s27 = smov [#allocation2 + $0x2e]   ;;  %s819_s23 = int_to_ptr.vmem [resolvable:$true] %s818_s23 }
 0x422   :  { %s833_s17 = sshll.u32 %s4494_s27, 4  ;;  %s5272_s18 = sld [smem:[#allocation5 + $0x36]]  ;;  %s5274_s17 = int_to_ptr.vmem [resolvable:$true] %s833_s17 }
 0x423   :  { %s2793_s20 = sshll.u32 %s2792_s4, 4 }
 0x424   :  { %s809_s5 = scalar_lea.hbm %s5448_s2, %s2793_s20 }
 0x425   :  { %s4172_s6 = scalar_lea.hbm %s809_s5, 16  ;;  %p4175_p8 = scmp.lt.s32.totalorder %s809_s5, %s5448_s2 }
 0x426   :  { %p4173_p7 = scmp.ne.s32.totalorder %s809_s5, %s4172_s6  ;;  %p4176_p9 = scmp.lt.s32.totalorder %s4548_s7, %s4172_s6 }
 0x428   :  { %p4177_p10 = por %p4176_p9, %p4175_p8 }
 0x42a   :  { %p4178_p11 = pnand %p4177_p10, %p4173_p7 }
 0x42c   :  { %4181 = shalt.err (!%p4178_p11)  }
 0x42d   :  { %s4182_s29 = scalar_lea.vmem %s819_s23, 16  ;;  %p4187_p13 = scmp.lt.s32.totalorder %s819_s23, %s4531_s19 }
 0x42e   :  { %p4183_p12 = scmp.ne.s32.totalorder %s819_s23, %s4182_s29  ;;  %p4188_p0 = scmp.lt.s32.totalorder %s4557_s11, %s4182_s29 }
 0x430   :  { %p4189_p1 = por %p4188_p0, %p4187_p13 }
 0x432   :  { %p4190_p2 = pnand %p4189_p1, %p4183_p12 }
 0x434   :  { %4193 = shalt.err (!%p4190_p2)  }
 0x435   :  { %821 = dma.hbm_to_vmem [thread:$0]  %s809_s5, 16, %s819_s23, [#allocation3] }
 0x436   :  { %s2795_s21 = sshll.u32 %s2794_s26, 4  ;;  %s4495_s25 = smov [#allocation2 + $0x36]  }
 0x437   :  { %s848_s30 = sshll.u32 %s4495_s25, 4  ;;  %s824_s15 = scalar_lea.hbm %s5448_s2, %s2795_s21  ;;  %s5288_s30 = int_to_ptr.vmem [resolvable:$true] %s848_s30 }
 0x438   :  { %s4194_s16 = scalar_lea.hbm %s824_s15, 16  ;;  %p4197_p4 = scmp.lt.s32.totalorder %s824_s15, %s5448_s2 }
 0x439   :  { %p4195_p3 = scmp.ne.s32.totalorder %s824_s15, %s4194_s16  ;;  %p4198_p5 = scmp.lt.s32.totalorder %s4548_s7, %s4194_s16 }
 0x43b   :  { %p4199_p6 = por %p4198_p5, %p4197_p4 }
 0x43d   :  { %p4200_p7 = pnand %p4199_p6, %p4195_p3 }
 0x43f   :  { %4203 = shalt.err (!%p4200_p7)  }
 0x440   :  { %s4204_s12 = scalar_lea.vmem %s5274_s17, 16  ;;  %p4209_p9 = scmp.lt.s32.totalorder %s5274_s17, %s4531_s19 }
 0x441   :  { %p4205_p8 = scmp.ne.s32.totalorder %s5274_s17, %s4204_s12  ;;  %p4210_p10 = scmp.lt.s32.totalorder %s4557_s11, %s4204_s12 }
 0x443   :  { %p4211_p11 = por %p4210_p10, %p4209_p9 }
 0x445   :  { %p4212_p12 = pnand %p4211_p11, %p4205_p8 }
 0x447   :  { %4215 = shalt.err (!%p4212_p12)  }
 0x448   :  { %836 = dma.hbm_to_vmem [thread:$0]  %s824_s15, 16, %s5274_s17, [#allocation3] }
 0x449   :  { %s2797_s13 = sshll.u32 %s5272_s18, 4  ;;  %s2798_s24 = sld [smem:[#allocation5 + $0x37]] }
 0x44a   :  { %s839_s27 = scalar_lea.hbm %s5448_s2, %s2797_s13 }
 0x44b   :  { %s4216_s20 = scalar_lea.hbm %s839_s27, 16  ;;  %p4219_p0 = scmp.lt.s32.totalorder %s839_s27, %s5448_s2 }
 0x44c   :  { %p4217_p13 = scmp.ne.s32.totalorder %s839_s27, %s4216_s20  ;;  %p4220_p1 = scmp.lt.s32.totalorder %s4548_s7, %s4216_s20 }
 0x44e   :  { %p4221_p2 = por %p4220_p1, %p4219_p0 }
 0x450   :  { %p4222_p3 = pnand %p4221_p2, %p4217_p13 }
 0x452   :  { %4225 = shalt.err (!%p4222_p3)  }
 0x453   :  { %s4226_s17 = scalar_lea.vmem %s5288_s30, 16  ;;  %p4231_p5 = scmp.lt.s32.totalorder %s5288_s30, %s4531_s19 }
 0x454   :  { %p4227_p4 = scmp.ne.s32.totalorder %s5288_s30, %s4226_s17  ;;  %p4232_p6 = scmp.lt.s32.totalorder %s4557_s11, %s4226_s17 }
 0x456   :  { %p4233_p7 = por %p4232_p6, %p4231_p5 }
 0x458   :  { %p4234_p8 = pnand %p4233_p7, %p4227_p4 }
 0x45a   :  { %4237 = shalt.err (!%p4234_p8)  }
 0x45b   :  { %851 = dma.hbm_to_vmem [thread:$0]  %s839_s27, 16, %s5288_s30, [#allocation3] }
 0x45c   :  { %s4496_s18 = smov [#allocation2 + $0x3e]   ;;  %s2800_s6 = sld [smem:[#allocation5 + $0x38]] }
 0x45d   :  { %s863_s5 = sshll.u32 %s4496_s18, 4  ;;  %s4497_s8 = smov [#allocation2 + $0x7]   ;;  %s864_s5 = int_to_ptr.vmem [resolvable:$true] %s863_s5 }
 0x45e   :  { %s878_s28 = sshll.u32 %s4497_s8, 4  ;;  %s5314_s29 = sld [smem:[#allocation5 + $0x39]]  ;;  %s5316_s28 = int_to_ptr.vmem [resolvable:$true] %s878_s28 }
 0x45f   :  { %s2799_s21 = sshll.u32 %s2798_s24, 4 }
 0x460   :  { %s854_s14 = scalar_lea.hbm %s5448_s2, %s2799_s21 }
 0x461   :  { %s4238_s15 = scalar_lea.hbm %s854_s14, 16  ;;  %p4241_p10 = scmp.lt.s32.totalorder %s854_s14, %s5448_s2 }
 0x462   :  { %p4239_p9 = scmp.ne.s32.totalorder %s854_s14, %s4238_s15  ;;  %p4242_p11 = scmp.lt.s32.totalorder %s4548_s7, %s4238_s15 }
 0x464   :  { %p4243_p12 = por %p4242_p11, %p4241_p10 }
 0x466   :  { %p4244_p13 = pnand %p4243_p12, %p4239_p9 }
 0x468   :  { %4247 = shalt.err (!%p4244_p13)  }
 0x469   :  { %s4248_s30 = scalar_lea.vmem %s864_s5, 16  ;;  %p4253_p1 = scmp.lt.s32.totalorder %s864_s5, %s4531_s19 }
 0x46a   :  { %p4249_p0 = scmp.ne.s32.totalorder %s864_s5, %s4248_s30  ;;  %p4254_p2 = scmp.lt.s32.totalorder %s4557_s11, %s4248_s30 }
 0x46c   :  { %p4255_p3 = por %p4254_p2, %p4253_p1 }
 0x46e   :  { %p4256_p4 = pnand %p4255_p3, %p4249_p0 }
 0x470   :  { %4259 = shalt.err (!%p4256_p4)  }
 0x471   :  { %866 = dma.hbm_to_vmem [thread:$0]  %s854_s14, 16, %s864_s5, [#allocation3] }
 0x472   :  { %s2801_s10 = sshll.u32 %s2800_s6, 4  ;;  %s4498_s12 = smov [#allocation2 + $0xf]  }
 0x473   :  { %s893_s13 = sshll.u32 %s4498_s12, 4  ;;  %s869_s26 = scalar_lea.hbm %s5448_s2, %s2801_s10  ;;  %s5330_s13 = int_to_ptr.vmem [resolvable:$true] %s893_s13 }
 0x474   :  { %s4260_s27 = scalar_lea.hbm %s869_s26, 16  ;;  %p4263_p6 = scmp.lt.s32.totalorder %s869_s26, %s5448_s2 }
 0x475   :  { %p4261_p5 = scmp.ne.s32.totalorder %s869_s26, %s4260_s27  ;;  %p4264_p7 = scmp.lt.s32.totalorder %s4548_s7, %s4260_s27 }
 0x477   :  { %p4265_p8 = por %p4264_p7, %p4263_p6 }
 0x479   :  { %p4266_p9 = pnand %p4265_p8, %p4261_p5 }
 0x47b   :  { %4269 = shalt.err (!%p4266_p9)  }
 0x47c   :  { %s4270_s22 = scalar_lea.vmem %s5316_s28, 16  ;;  %p4275_p11 = scmp.lt.s32.totalorder %s5316_s28, %s4531_s19 }
 0x47d   :  { %p4271_p10 = scmp.ne.s32.totalorder %s5316_s28, %s4270_s22  ;;  %p4276_p12 = scmp.lt.s32.totalorder %s4557_s11, %s4270_s22 }
 0x47f   :  { %p4277_p13 = por %p4276_p12, %p4275_p11 }
 0x481   :  { %p4278_p0 = pnand %p4277_p13, %p4271_p10 }
 0x483   :  { %4281 = shalt.err (!%p4278_p0)  }
 0x484   :  { %881 = dma.hbm_to_vmem [thread:$0]  %s869_s26, 16, %s5316_s28, [#allocation3] }
 0x485   :  { %s2803_s17 = sshll.u32 %s5314_s29, 4  ;;  %s2804_s18 = sld [smem:[#allocation5 + $0x3a]] }
 0x486   :  { %s884_s8 = scalar_lea.hbm %s5448_s2, %s2803_s17 }
 0x487   :  { %s4282_s21 = scalar_lea.hbm %s884_s8, 16  ;;  %p4285_p2 = scmp.lt.s32.totalorder %s884_s8, %s5448_s2 }
 0x488   :  { %p4283_p1 = scmp.ne.s32.totalorder %s884_s8, %s4282_s21  ;;  %p4286_p3 = scmp.lt.s32.totalorder %s4548_s7, %s4282_s21 }
 0x48a   :  { %p4287_p4 = por %p4286_p3, %p4285_p2 }
 0x48c   :  { %p4288_p5 = pnand %p4287_p4, %p4283_p1 }
 0x48e   :  { %4291 = shalt.err (!%p4288_p5)  }
 0x48f   :  { %s4292_s28 = scalar_lea.vmem %s5330_s13, 16  ;;  %p4297_p7 = scmp.lt.s32.totalorder %s5330_s13, %s4531_s19 }
 0x490   :  { %p4293_p6 = scmp.ne.s32.totalorder %s5330_s13, %s4292_s28  ;;  %p4298_p8 = scmp.lt.s32.totalorder %s4557_s11, %s4292_s28 }
 0x492   :  { %p4299_p9 = por %p4298_p8, %p4297_p7 }
 0x494   :  { %p4300_p10 = pnand %p4299_p9, %p4293_p6 }
 0x496   :  { %4303 = shalt.err (!%p4300_p10)  }
 0x497   :  { %896 = dma.hbm_to_vmem [thread:$0]  %s884_s8, 16, %s5330_s13, [#allocation3] }
 0x498   :  { %s4499_s29 = smov [#allocation2 + $0x17]   ;;  %s2806_s15 = sld [smem:[#allocation5 + $0x3b]] }
 0x499   :  { %s908_s14 = sshll.u32 %s4499_s29, 4  ;;  %s4500_s16 = smov [#allocation2 + $0x1f]   ;;  %s909_s14 = int_to_ptr.vmem [resolvable:$true] %s908_s14 }
 0x49a   :  { %s923_s9 = sshll.u32 %s4500_s16, 4  ;;  %s5356_s30 = sld [smem:[#allocation5 + $0x3c]]  ;;  %s5358_s9 = int_to_ptr.vmem [resolvable:$true] %s923_s9 }
 0x49b   :  { %s2805_s10 = sshll.u32 %s2804_s18, 4 }
 0x49c   :  { %s899_s23 = scalar_lea.hbm %s5448_s2, %s2805_s10 }
 0x49d   :  { %s4304_s26 = scalar_lea.hbm %s899_s23, 16  ;;  %p4307_p12 = scmp.lt.s32.totalorder %s899_s23, %s5448_s2 }
 0x49e   :  { %p4305_p11 = scmp.ne.s32.totalorder %s899_s23, %s4304_s26  ;;  %p4308_p13 = scmp.lt.s32.totalorder %s4548_s7, %s4304_s26 }
 0x4a0   :  { %p4309_p0 = por %p4308_p13, %p4307_p12 }
 0x4a2   :  { %p4310_p1 = pnand %p4309_p0, %p4305_p11 }
 0x4a4   :  { %4313 = shalt.err (!%p4310_p1)  }
 0x4a5   :  { %s4314_s13 = scalar_lea.vmem %s909_s14, 16  ;;  %p4319_p3 = scmp.lt.s32.totalorder %s909_s14, %s4531_s19 }
 0x4a6   :  { %p4315_p2 = scmp.ne.s32.totalorder %s909_s14, %s4314_s13  ;;  %p4320_p4 = scmp.lt.s32.totalorder %s4557_s11, %s4314_s13 }
 0x4a8   :  { %p4321_p5 = por %p4320_p4, %p4319_p3 }
 0x4aa   :  { %p4322_p6 = pnand %p4321_p5, %p4315_p2 }
 0x4ac   :  { %4325 = shalt.err (!%p4322_p6)  }
 0x4ad   :  { %911 = dma.hbm_to_vmem [thread:$0]  %s899_s23, 16, %s909_s14, [#allocation3] }
 0x4ae   :  { %s2807_s0 = sshll.u32 %s2806_s15, 4  ;;  %s4501_s22 = smov [#allocation2 + $0x27]  }
 0x4af   :  { %s938_s17 = sshll.u32 %s4501_s22, 4  ;;  %s914_s6 = scalar_lea.hbm %s5448_s2, %s2807_s0  ;;  %s5372_s17 = int_to_ptr.vmem [resolvable:$true] %s938_s17 }
 0x4b0   :  { %s4326_s8 = scalar_lea.hbm %s914_s6, 16  ;;  %p4329_p8 = scmp.lt.s32.totalorder %s914_s6, %s5448_s2 }
 0x4b1   :  { %p4327_p7 = scmp.ne.s32.totalorder %s914_s6, %s4326_s8  ;;  %p4330_p9 = scmp.lt.s32.totalorder %s4548_s7, %s4326_s8 }
 0x4b3   :  { %p4331_p10 = por %p4330_p9, %p4329_p8 }
 0x4b5   :  { %p4332_p11 = pnand %p4331_p10, %p4327_p7 }
 0x4b7   :  { %4335 = shalt.err (!%p4332_p11)  }
 0x4b8   :  { %s4336_s4 = scalar_lea.vmem %s5358_s9, 16  ;;  %p4341_p13 = scmp.lt.s32.totalorder %s5358_s9, %s4531_s19 }
 0x4b9   :  { %p4337_p12 = scmp.ne.s32.totalorder %s5358_s9, %s4336_s4  ;;  %p4342_p0 = scmp.lt.s32.totalorder %s4557_s11, %s4336_s4 }
 0x4bb   :  { %p4343_p1 = por %p4342_p0, %p4341_p13 }
 0x4bd   :  { %p4344_p2 = pnand %p4343_p1, %p4337_p12 }
 0x4bf   :  { %4347 = shalt.err (!%p4344_p2)  }
 0x4c0   :  { %926 = dma.hbm_to_vmem [thread:$0]  %s914_s6, 16, %s5358_s9, [#allocation3] }
 0x4c1   :  { %s2809_s28 = sshll.u32 %s5356_s30, 4  ;;  %s2810_s29 = sld [smem:[#allocation5 + $0x3d]] }
 0x4c2   :  { %s929_s16 = scalar_lea.hbm %s5448_s2, %s2809_s28 }
 0x4c3   :  { %s4348_s10 = scalar_lea.hbm %s929_s16, 16  ;;  %p4351_p4 = scmp.lt.s32.totalorder %s929_s16, %s5448_s2 }
 0x4c4   :  { %p4349_p3 = scmp.ne.s32.totalorder %s929_s16, %s4348_s10  ;;  %p4352_p5 = scmp.lt.s32.totalorder %s4548_s7, %s4348_s10 }
 0x4c6   :  { %p4353_p6 = por %p4352_p5, %p4351_p4 }
 0x4c8   :  { %p4354_p7 = pnand %p4353_p6, %p4349_p3 }
 0x4ca   :  { %4357 = shalt.err (!%p4354_p7)  }
 0x4cb   :  { %s4358_s9 = scalar_lea.vmem %s5372_s17, 16  ;;  %p4363_p9 = scmp.lt.s32.totalorder %s5372_s17, %s4531_s19 }
 0x4cc   :  { %p4359_p8 = scmp.ne.s32.totalorder %s5372_s17, %s4358_s9  ;;  %p4364_p10 = scmp.lt.s32.totalorder %s4557_s11, %s4358_s9 }
 0x4ce   :  { %p4365_p11 = por %p4364_p10, %p4363_p9 }
 0x4d0   :  { %p4366_p12 = pnand %p4365_p11, %p4359_p8 }
 0x4d2   :  { %4369 = shalt.err (!%p4366_p12)  }
 0x4d3   :  { %941 = dma.hbm_to_vmem [thread:$0]  %s929_s16, 16, %s5372_s17, [#allocation3] }
 0x4d4   :  { %s4502_s30 = smov [#allocation2 + $0x2f]   ;;  %s2812_s26 = sld [smem:[#allocation5 + $0x3e]] }
 0x4d5   :  { %s953_s23 = sshll.u32 %s4502_s30, 4  ;;  %s4503_s27 = smov [#allocation2 + $0x37]   ;;  %s954_s23 = int_to_ptr.vmem [resolvable:$true] %s953_s23 }
 0x4d6   :  { %s968_s20 = sshll.u32 %s4503_s27, 4  ;;  %s5398_s13 = sld [smem:[#allocation5 + $0x3f]]  ;;  %s5400_s20 = int_to_ptr.vmem [resolvable:$true] %s968_s20 }
 0x4d7   :  { %s2811_s0 = sshll.u32 %s2810_s29, 4 }
 0x4d8   :  { %s944_s5 = scalar_lea.hbm %s5448_s2, %s2811_s0 }
 0x4d9   :  { %s4370_s6 = scalar_lea.hbm %s944_s5, 16  ;;  %p4373_p0 = scmp.lt.s32.totalorder %s944_s5, %s5448_s2 }
 0x4da   :  { %p4371_p13 = scmp.ne.s32.totalorder %s944_s5, %s4370_s6  ;;  %p4374_p1 = scmp.lt.s32.totalorder %s4548_s7, %s4370_s6 }
 0x4dc   :  { %p4375_p2 = por %p4374_p1, %p4373_p0 }
 0x4de   :  { %p4376_p3 = pnand %p4375_p2, %p4371_p13 }
 0x4e0   :  { %4379 = shalt.err (!%p4376_p3)  }
 0x4e1   :  { %s4380_s17 = scalar_lea.vmem %s954_s23, 16  ;;  %p4385_p5 = scmp.lt.s32.totalorder %s954_s23, %s4531_s19 }
 0x4e2   :  { %p4381_p4 = scmp.ne.s32.totalorder %s954_s23, %s4380_s17  ;;  %p4386_p6 = scmp.lt.s32.totalorder %s4557_s11, %s4380_s17 }
 0x4e4   :  { %p4387_p7 = por %p4386_p6, %p4385_p5 }
 0x4e6   :  { %p4388_p8 = pnand %p4387_p7, %p4381_p4 }
 0x4e8   :  { %4391 = shalt.err (!%p4388_p8)  }
 0x4e9   :  { %956 = dma.hbm_to_vmem [thread:$0]  %s944_s5, 16, %s954_s23, [#allocation3] }
 0x4ea   :  { %s2813_s25 = sshll.u32 %s2812_s26, 4  ;;  %s4504_s4 = smov [#allocation2 + $0x3f]  }
 0x4eb   :  { %s983_s28 = sshll.u32 %s4504_s4, 4  ;;  %s959_s15 = scalar_lea.hbm %s5448_s2, %s2813_s25  ;;  %s5414_s28 = int_to_ptr.vmem [resolvable:$true] %s983_s28 }
 0x4ec   :  { %s4392_s16 = scalar_lea.hbm %s959_s15, 16  ;;  %p4395_p10 = scmp.lt.s32.totalorder %s959_s15, %s5448_s2 }
 0x4ed   :  { %p4393_p9 = scmp.ne.s32.totalorder %s959_s15, %s4392_s16  ;;  %p4396_p11 = scmp.lt.s32.totalorder %s4548_s7, %s4392_s16 }
 0x4ef   :  { %p4397_p12 = por %p4396_p11, %p4395_p10 }
 0x4f1   :  { %p4398_p13 = pnand %p4397_p12, %p4393_p9 }
 0x4f3   :  { %4401 = shalt.err (!%p4398_p13)  }
 0x4f4   :  { %s4402_s24 = scalar_lea.vmem %s5400_s20, 16  ;;  %p4407_p1 = scmp.lt.s32.totalorder %s5400_s20, %s4531_s19 }
 0x4f5   :  { %p4403_p0 = scmp.ne.s32.totalorder %s5400_s20, %s4402_s24  ;;  %p4408_p2 = scmp.lt.s32.totalorder %s4557_s11, %s4402_s24 }
 0x4f7   :  { %p4409_p3 = por %p4408_p2, %p4407_p1 }
 0x4f9   :  { %p4410_p4 = pnand %p4409_p3, %p4403_p0 }
 0x4fb   :  { %4413 = shalt.err (!%p4410_p4)  }
 0x4fc   :  { %971 = dma.hbm_to_vmem [thread:$0]  %s959_s15, 16, %s5400_s20, [#allocation3] }
 0x4fd   :  { %s2815_s9 = sshll.u32 %s5398_s13, 4 }
 0x4fe   :  { %s974_s26 = scalar_lea.hbm %s5448_s2, %s2815_s9 }
 0x4ff   :  { %s4414_s27 = scalar_lea.hbm %s974_s26, 16  ;;  %p4417_p6 = scmp.lt.s32.totalorder %s974_s26, %s5448_s2 }
 0x500   :  { %p4415_p5 = scmp.ne.s32.totalorder %s974_s26, %s4414_s27  ;;  %p4418_p7 = scmp.lt.s32.totalorder %s4548_s7, %s4414_s27 }
 0x502   :  { %p4419_p8 = por %p4418_p7, %p4417_p6 }
 0x504   :  { %p4420_p9 = pnand %p4419_p8, %p4415_p5 }
 0x506   :  { %4423 = shalt.err (!%p4420_p9)  }
 0x507   :  { %s4424_s20 = scalar_lea.vmem %s5414_s28, 16  ;;  %p4429_p11 = scmp.lt.s32.totalorder %s5414_s28, %s4531_s19 }
 0x508   :  { %p4425_p10 = scmp.ne.s32.totalorder %s5414_s28, %s4424_s20  ;;  %p4430_p12 = scmp.lt.s32.totalorder %s4557_s11, %s4424_s20 }
 0x50a   :  { %p4431_p13 = por %p4430_p12, %p4429_p11 }
 0x50c   :  { %p4432_p0 = pnand %p4431_p13, %p4425_p10 }
 0x50e   :  { %4435 = shalt.err (!%p4432_p0)  }
 0x50f   :  { %986 = dma.hbm_to_vmem [thread:$0]  %s974_s26, 16, %s5414_s28, [#allocation3] }
 0x510   :  { %4438 = dma.done.wait [#allocation3], 1024 }
 0x511   :  { %4439 = vsyncadd [#allocation3], 4294966272  ;;  %v4505_v0 = vmov 0   ;;  %v2098_v1 = vld [vmem:[%s5447_s1] sm:$0xff]  ;;  %v2119_v16 = vld [vmem:[#allocation2 + $0x8] sm:$0xff] }
 0x512   :  { %3013 = vset.pattern.permute.xlu1 %v4505_v0  ;;  %3012 = vset.pattern.permute.xlu0 %v4505_v0  ;;  %v2099_v2 = vcvt.s32.f32 %v2098_v1  ;;  %vm2127_vm0 = vcmp.gt.s32.totalorder %v2098_v1, 2  ;;  %vm2103_vm1 = vcmp.gt.s32.totalorder %v2098_v1, 0  ;;  %vm2139_vm2 = vcmp.gt.s32.totalorder %v2098_v1, 3  ;;  %v2107_v15 = vld [vmem:[#allocation2] sm:$0xff]  ;;  %v2131_v17 = vld [vmem:[#allocation2 + $0x10] sm:$0xff]  ;;  %v2143_v22 = vld [vmem:[#allocation2 + $0x18] sm:$0xff] }
 0x513   :  { %vm2115_vm3 = vcmp.gt.s32.totalorder %v2098_v1, 1  ;;  %vm2163_vm4 = vcmp.gt.s32.totalorder %v2098_v1, 5  ;;  %vm2151_vm5 = vcmp.gt.s32.totalorder %v2098_v1, 4  ;;  %vm2187_vm6 = vcmp.gt.s32.totalorder %v2098_v1, 7  ;;  %v2155_v26 = vld [vmem:[#allocation2 + $0x20] sm:$0xff]  ;;  %v2167_v30 = vld [vmem:[#allocation2 + $0x28] sm:$0xff] }
 0x514   :  { %v2100_v3 = vmax.f32 %v2099_v2, 1.0  ;;  %vm2175_vm7 = vcmp.gt.s32.totalorder %v2098_v1, 6  ;;  %v2179_v33 = vld [vmem:[#allocation2 + $0x30] sm:$0xff]  ;;  %v2191_v37 = vld [vmem:[#allocation2 + $0x38] sm:$0xff] }
 0x516   :  { %3014 = vrcp.f32 %v2100_v3 }
 0x523   :  { %v3015_v4 = vpop.eup %3014 }
 0x524   :  { %v2128_v5 = vsel %vm2127_vm0, %v3015_v4, 0.0  ;;  %v2104_v6 = vsel %vm2103_vm1, %v3015_v4, 0.0  ;;  %v2140_v7 = vsel %vm2139_vm2, %v3015_v4, 0.0  ;;  %v2116_v8 = vsel %vm2115_vm3, %v3015_v4, 0.0 }
 0x525   :  { %2134 = vperm.xlu1 %3013, %v2128_v5   ;;  %2110 = vperm.xlu0 %3012, %v2104_v6   ;;  %v2164_v9 = vsel %vm2163_vm4, %v3015_v4, 0.0  ;;  %v2152_v10 = vsel %vm2151_vm5, %v3015_v4, 0.0  ;;  %v2188_v11 = vsel %vm2187_vm6, %v3015_v4, 0.0  ;;  %v2176_v12 = vsel %vm2175_vm7, %v3015_v4, 0.0 }
 0x529   :  { %2146 = vperm.xlu1 %3013, %v2140_v7   ;;  %2122 = vperm.xlu0 %3012, %v2116_v8  }
 0x52d   :  { %2170 = vperm.xlu1 %3013, %v2164_v9   ;;  %2158 = vperm.xlu0 %3012, %v2152_v10  }
 0x531   :  { %2194 = vperm.xlu1 %3013, %v2188_v11   ;;  %2182 = vperm.xlu0 %3012, %v2176_v12  }
 0x5a0   :  { %v2135_v13 = vpop.permute.xlu1 %2134  ;;  %v2111_v14 = vpop.permute.xlu0 %2110 }
 0x5a1   :  { %v2113_v20 = vmul.f32 %v2111_v14, %v2107_v15  ;;  %v2137_v23 = vmul.f32 %v2135_v13, %v2131_v17 }
 0x5a4   :  { %v2147_v18 = vpop.permute.xlu1 %2146  ;;  %v2123_v19 = vpop.permute.xlu0 %2122 }
 0x5a5   :  { %v2125_v21 = vmul.f32 %v2123_v19, %v2119_v16  ;;  %v2149_v28 = vmul.f32 %v2147_v18, %v2143_v22 }
 0x5a7   :  { %v2126_v24 = vadd.f32 %v2125_v21, %v2113_v20 }
 0x5a8   :  { %v2171_v25 = vpop.permute.xlu1 %2170  ;;  %v2159_v27 = vpop.permute.xlu0 %2158 }
 0x5a9   :  { %v2138_v29 = vadd.f32 %v2137_v23, %v2126_v24  ;;  %v2161_v32 = vmul.f32 %v2159_v27, %v2155_v26  ;;  %v2173_v35 = vmul.f32 %v2171_v25, %v2167_v30 }
 0x5ab   :  { %v2150_v31 = vadd.f32 %v2149_v28, %v2138_v29 }
 0x5ac   :  { %v2183_v34 = vpop.permute.xlu0 %2182  ;;  %v2195_v38 = vpop.permute.xlu1 %2194 }
 0x5ad   :  { %v2162_v36 = vadd.f32 %v2161_v32, %v2150_v31  ;;  %v2185_v40 = vmul.f32 %v2183_v34, %v2179_v33  ;;  %v2197_v41 = vmul.f32 %v2195_v38, %v2191_v37 }
 0x5af   :  { %v2174_v39 = vadd.f32 %v2173_v35, %v2162_v36 }
 0x5b1   :  { %v2186_v42 = vadd.f32 %v2185_v40, %v2174_v39 }
 0x5b3   :  { %v2198_v43 = vadd.f32 %v2197_v41, %v2186_v42 }
 0x5b5   :  { %2199 = vst [vmem:[%s5449_s3] sm:$0xff] %v2198_v43 }
 0x5b6   :  { %2204 = vsyncmov [#allocation3] }
 0x5b9   :  { %s2205_s11 = vpop.sfrf %2204 }
 0x5ba   :  { %p2944_p1 = scmp.ne.s32.totalorder %s2205_s11, 0 }
 0x5bc   :  { %2209 = shalt.err (%p2944_p1)  }
 0x5bd   :  { %2211 = vsyncmov [#allocation3 + $0x1] }
 0x5c0   :  { %s2212_s13 = vpop.sfrf %2211 }
 0x5c1   :  { %p2945_p2 = scmp.ne.s32.totalorder %s2212_s13, 0 }
 0x5c3   :  { %2216 = shalt.err (%p2945_p2)  }

</bundles_post_ra>
